<compile_context>
chip_gen: v7x
topology: tpu7x:2x2x1
jax: 0.10.0
libtpu: 0.0.40
codegen_flags: <defaults>
</compile_context>

<pallas_src>
import functools

import numpy as np
import jax
import jax.numpy as jnp
from jax.experimental import pallas as pl
from jax.experimental.pallas import tpu as pltpu

# ---- model hyper-parameters (small, consistent with the module's __init__) ----
HID = 8            # hidden_channels = [8], num_layers = 1
OUT_CH = 2         # ouput_channels
SEQ = 8            # time steps n
H = W = 16         # img_size_list = [(16, 16)]
HW = H * W
IN_CH = 4 * HID    # self.active expects hidden_channels[-1] * 4 input channels
TAU = 0.8          # self.temperature
BN_EPS = 1e-5
# bidirectional=True so that contrast's Conv2d(hidden*2 -> out) input channels match.
# TODO(synk): the ConvLSTM class source is not provided; a standard ConvLSTM cell
#   (gates = conv(x) + conv(h) + b, gate order i/f/o/g, zero 'same' padding) is used, and
#   dropout(0.2) / training-mode BatchNorm are replaced by eval-mode semantics.


def _shift_matrix(hh, ww, mode):
    """(hw, 9*hw) 0/1 matrix S such that (x @ S)[c, k*hw + p] = x[c, src_k(p)],
    where src_k(p) offsets pixel p by 3x3 tap k (k = ky*3 + kx, dy=ky-1, dx=kx-1),
    with zero padding (mode='zero') or replication padding (mode='edge')."""
    hw = hh * ww
    s = np.zeros((hw, 9, hw), np.float32)
    taps = [(dy, dx) for dy in (-1, 0, 1) for dx in (-1, 0, 1)]
    for k, (dy, dx) in enumerate(taps):
        for y in range(hh):
            for x in range(ww):
                sy, sx = y + dy, x + dx
                if mode == "edge":
                    sy = min(max(sy, 0), hh - 1)
                    sx = min(max(sx, 0), ww - 1)
                elif not (0 <= sy < hh and 0 <= sx < ww):
                    continue
                s[sy * ww + sx, k, y * ww + x] = 1.0
    return jnp.asarray(s.reshape(hw, 9 * hw))


# =============================== Pallas kernels ===============================

def _ff_kernel(x_ref, shr_ref, w3_ref, bnsc_ref, bnsh_ref, w1_ref, shz_ref,
               wx_ref, b_ref, xg_ref, *, hw):
    """Per time step: active block (repl-pad conv3x3 -> BN -> ReLU -> conv1x1 -> ReLU)
    fused with the input->gate 3x3 conv (+bias) for BOTH ConvLSTM directions."""
    x = x_ref[...]                                                       # (4*HID, HW)
    # in-kernel im2col (replication pad) via shift-matrix matmul
    sx = jnp.dot(x, shr_ref[...], preferred_element_type=jnp.float32)    # (4*HID, 9*HW)
    colx = jnp.concatenate([sx[:, k * hw:(k + 1) * hw] for k in range(9)], axis=0)
    a1 = jnp.dot(w3_ref[...], colx, preferred_element_type=jnp.float32)  # (2*HID, HW)
    a1 = jnp.maximum(a1 * bnsc_ref[...] + bnsh_ref[...], 0.0)            # BN(eval)+ReLU
    a2 = jnp.maximum(jnp.dot(w1_ref[...], a1,
                             preferred_element_type=jnp.float32), 0.0)   # (HID, HW)
    # in-kernel im2col (zero pad) + input->gate conv for fwd+bwd directions
    sa = jnp.dot(a2, shz_ref[...], preferred_element_type=jnp.float32)   # (HID, 9*HW)
    cola = jnp.concatenate([sa[:, k * hw:(k + 1) * hw] for k in range(9)], axis=0)
    xg_ref[...] = (jnp.dot(wx_ref[...], cola,
                           preferred_element_type=jnp.float32) + b_ref[...])  # (8*HID, HW)


def _lstm_kernel(xg_ref, wh_ref, shz_ref, h_ref, h_scr, c_scr, *, hid, hw):
    """Whole-sequence bidirectional ConvLSTM recurrence.
    grid = (direction, time); h/c live in VMEM scratch across time steps."""
    t = pl.program_id(1)

    @pl.when(t == 0)
    def _():
        h_scr[...] = jnp.zeros((hid, hw), jnp.float32)
        c_scr[...] = jnp.zeros((hid, hw), jnp.float32)

    h_prev = h_scr[...]                                                  # (HID, HW)
    # 3x3 conv of h (zero 'same' padding) as shift-matrix matmul (in-kernel im2col)
    sh = jnp.dot(h_prev, shz_ref[...], preferred_element_type=jnp.float32)   # (HID, 9*HW)
    colh = jnp.concatenate([sh[:, k * hw:(k + 1) * hw] for k in range(9)], axis=0)
    gates = jnp.dot(wh_ref[...], colh,
                    preferred_element_type=jnp.float32) + xg_ref[...]    # (4*HID, HW)
    i = jax.nn.sigmoid(gates[0 * hid:1 * hid, :])
    f = jax.nn.sigmoid(gates[1 * hid:2 * hid, :])
    o = jax.nn.sigmoid(gates[2 * hid:3 * hid, :])
    g = jnp.tanh(gates[3 * hid:4 * hid, :])
    c_new = f * c_scr[...] + i * g
    h_new = o * jnp.tanh(c_new)
    c_scr[...] = c_new
    h_scr[...] = h_new
    h_ref[...] = h_new


def _head_kernel(lstm_ref, wbd_ref, gn_ref, sup_ref, con_ref, out_ref, *, seq, tau):
    """contrast (ReLU -> 1x1 conv, no bias) for all time steps at once via a
    block-diagonal weight, then sigmoid and the 2-class gumbel-softmax in closed
    form, folded with the cls_num = [[0],[1]] einsum."""
    feat = jnp.maximum(lstm_ref[...], 0.0)                               # (SEQ*2*HID, HW)
    sup = jnp.dot(wbd_ref[...], feat, preferred_element_type=jnp.float32)  # (2*SEQ, HW)
    con = jax.nn.sigmoid(sup)
    sup_ref[...] = sup
    con_ref[...] = con
    # softmax over 2 classes == sigmoid of the logit difference; einsum with [[0],[1]] == y1
    z = con + gn_ref[...]
    out_ref[...] = jax.nn.sigmoid((z[seq:2 * seq, :] - z[0:seq, :]) / tau)   # (SEQ, HW)


# ================================ JAX glue ====================================

@jax.jit
def convlstm_network_forward(x, params, gumbel_key):
    b, n, c_in, hh, ww = x.shape                   # (1, SEQ, 4*HID, H, W)
    hw = hh * ww
    hid = HID
    x_cm = x.reshape(n, c_in, hw)                  # squeeze() + channel-major rows

    shr = params['shift_repl']                     # (HW, 9*HW), replication pad
    shz = params['shift_zero']                     # (HW, 9*HW), zero pad

    # ---- derived weight matrices (tiny reshapes, run under jit) ----
    w3 = jnp.transpose(params['w_act3'], (0, 2, 3, 1)).reshape(2 * hid, 9 * c_in)
    bn_scale_v = params['bn_gamma'] / jnp.sqrt(params['bn_var'] + BN_EPS)
    bn_shift_v = params['bn_beta'] - params['bn_mean'] * bn_scale_v
    bn_scale = bn_scale_v.reshape(2 * hid, 1)
    bn_shift = bn_shift_v.reshape(2 * hid, 1)
    w1 = params['w_act1'][:, :, 0, 0]                                    # (HID, 2*HID)
    wx = jnp.concatenate(
        [jnp.transpose(params['wx_fwd'], (0, 2, 3, 1)).reshape(4 * hid, 9 * hid),
         jnp.transpose(params['wx_bwd'], (0, 2, 3, 1)).reshape(4 * hid, 9 * hid)],
        axis=0)                                                          # (8*HID, 9*HID)
    bias = jnp.concatenate([params['b_fwd'], params['b_bwd']]).reshape(8 * hid, 1)
    wh = jnp.stack(
        [jnp.transpose(params['wh_fwd'], (0, 2, 3, 1)).reshape(4 * hid, 9 * hid),
         jnp.transpose(params['wh_bwd'], (0, 2, 3, 1)).reshape(4 * hid, 9 * hid)],
        axis=0)                                                          # (2, 4*HID, 9*HID)

    # ---- kernel 1: active block + input->gate conv for both directions ----
    xg_all = pl.pallas_call(
        functools.partial(_ff_kernel, hw=hw),
        out_shape=jax.ShapeDtypeStruct((n, 8 * hid, hw), jnp.float32),
        grid=(n,),
        in_specs=[
            pl.BlockSpec((None, c_in, hw), lambda t: (t, 0, 0)),
            pl.BlockSpec((hw, 9 * hw), lambda t: (0, 0)),
            pl.BlockSpec((2 * hid, 9 * c_in), lambda t: (0, 0)),
            pl.BlockSpec((2 * hid, 1), lambda t: (0, 0)),
            pl.BlockSpec((2 * hid, 1), lambda t: (0, 0)),
            pl.BlockSpec((hid, 2 * hid), lambda t: (0, 0)),
            pl.BlockSpec((hw, 9 * hw), lambda t: (0, 0)),
            pl.BlockSpec((8 * hid, 9 * hid), lambda t: (0, 0)),
            pl.BlockSpec((8 * hid, 1), lambda t: (0, 0)),
        ],
        out_specs=pl.BlockSpec((None, 8 * hid, hw), lambda t: (t, 0, 0)),
        compiler_params=pltpu.CompilerParams(
            dimension_semantics=("parallel",),
            vmem_limit_bytes=32 * 1024 * 1024),
    )(x_cm, shr, w3, bn_scale, bn_shift, w1, shz, wx, bias)

    # ---- kernel 2: whole bidirectional recurrence in one call ----
    # grid axis 0 = direction (fwd/bwd), axis 1 = time; backward direction walks
    # time in reverse purely via the index_map (t -> n-1-t).
    h_seq = pl.pallas_call(
        functools.partial(_lstm_kernel, hid=hid, hw=hw),
        out_shape=jax.ShapeDtypeStruct((n, 2, hid, hw), jnp.float32),
        grid=(2, n),
        in_specs=[
            pl.BlockSpec((None, 4 * hid, hw),
                         lambda d, t: (t + d * (n - 1 - 2 * t), d, 0)),
            pl.BlockSpec((None, 4 * hid, 9 * hid), lambda d, t: (d, 0, 0)),
            pl.BlockSpec((hw, 9 * hw), lambda d, t: (0, 0)),
        ],
        out_specs=pl.BlockSpec((None, None, hid, hw),
                               lambda d, t: (t + d * (n - 1 - 2 * t), d, 0, 0)),
        scratch_shapes=[pltpu.VMEM((hid, hw), jnp.float32),
                        pltpu.VMEM((hid, hw), jnp.float32)],
        compiler_params=pltpu.CompilerParams(
            dimension_semantics=("parallel", "arbitrary"),
            vmem_limit_bytes=32 * 1024 * 1024),
    )(xg_all, wh, shz)

    # ---- kernel 3: contrast + sigmoid + gumbel-softmax head ----
    wc = params['w_con'][:, :, 0, 0]                                     # (2, 2*HID)
    # block-diagonal (per-time) 1x1-conv weight so all SEQ steps run as one matmul
    wbd = jnp.einsum('jc,ts->jtsc', wc,
                     jnp.eye(n, dtype=jnp.float32)).reshape(2 * n, n * 2 * hid)
    gnoise = jax.random.gumbel(gumbel_key, (2 * n, hw), dtype=jnp.float32)
    lstm_flat = h_seq.reshape(n * 2 * hid, hw)

    supfet2, contst2, out2 = pl.pallas_call(
        functools.partial(_head_kernel, seq=n, tau=TAU),
        out_shape=(jax.ShapeDtypeStruct((2 * n, hw), jnp.float32),
                   jax.ShapeDtypeStruct((2 * n, hw), jnp.float32),
                   jax.ShapeDtypeStruct((n, hw), jnp.float32)),
        grid=(1,),
        in_specs=[
            pl.BlockSpec((n * 2 * hid, hw), lambda i: (0, 0)),
            pl.BlockSpec((2 * n, n * 2 * hid), lambda i: (0, 0)),
            pl.BlockSpec((2 * n, hw), lambda i: (0, 0)),
        ],
        out_specs=(pl.BlockSpec((2 * n, hw), lambda i: (0, 0)),
                   pl.BlockSpec((2 * n, hw), lambda i: (0, 0)),
                   pl.BlockSpec((n, hw), lambda i: (0, 0))),
    )(lstm_flat, wbd, gnoise)

    # ---- reshape to the module's NCHW outputs (no transposes needed for h) ----
    output = out2.reshape(b, n, hh, ww)                                  # (b, n, h, w)
    input_tensor = h_seq.reshape(n, 2 * hid, hh, ww)                     # (n, 2*hid, h, w)
    contst = jnp.transpose(contst2.reshape(2, n, hh, ww), (1, 0, 2, 3))  # (n, 2, h, w)
    supfet = jnp.transpose(supfet2.reshape(2, n, hh, ww), (1, 0, 2, 3))  # (n, 2, h, w)
    return output, input_tensor, contst, supfet


def init_params(key):
    ks = jax.random.split(key, 12)
    p = {
        'w_act3': 0.1 * jax.random.normal(ks[0], (2 * HID, 4 * HID, 3, 3), jnp.float32),
        'bn_gamma': 1.0 + 0.1 * jax.random.normal(ks[1], (2 * HID,), jnp.float32),
        'bn_beta': 0.1 * jax.random.normal(ks[2], (2 * HID,), jnp.float32),
        'bn_mean': jnp.zeros((2 * HID,), jnp.float32),
        'bn_var': jnp.ones((2 * HID,), jnp.float32),
        'w_act1': 0.1 * jax.random.normal(ks[3], (HID, 2 * HID, 1, 1), jnp.float32),
        'wx_fwd': 0.1 * jax.random.normal(ks[4], (4 * HID, HID, 3, 3), jnp.float32),
        'wh_fwd': 0.1 * jax.random.normal(ks[5], (4 * HID, HID, 3, 3), jnp.float32),
        'b_fwd': 0.1 * jax.random.normal(ks[6], (4 * HID,), jnp.float32),
        'wx_bwd': 0.1 * jax.random.normal(ks[7], (4 * HID, HID, 3, 3), jnp.float32),
        'wh_bwd': 0.1 * jax.random.normal(ks[8], (4 * HID, HID, 3, 3), jnp.float32),
        'b_bwd': 0.1 * jax.random.normal(ks[9], (4 * HID,), jnp.float32),
        'w_con': 0.1 * jax.random.normal(ks[10], (OUT_CH, 2 * HID, 1, 1), jnp.float32),
        # constant 3x3-tap pixel-shift matrices (in-kernel im2col on the MXU)
        'shift_repl': _shift_matrix(H, W, 'edge'),
        'shift_zero': _shift_matrix(H, W, 'zero'),
    }
    return p, ks[11]


if __name__ == "__main__":
    key = jax.random.PRNGKey(0)
    k_param, k_x, k_gumbel = jax.random.split(key, 3)
    params, _ = init_params(k_param)
    x = jax.random.normal(k_x, (1, SEQ, IN_CH, H, W), jnp.float32)

    out, feat, contst, supfet = convlstm_network_forward(x, params, k_gumbel)
    jax.block_until_ready((out, feat, contst, supfet))

    assert out.shape == (1, SEQ, H, W)
    assert feat.shape == (SEQ, 2 * HID, H, W)
    assert contst.shape == (SEQ, OUT_CH, H, W)
    assert supfet.shape == (SEQ, OUT_CH, H, W)
    assert bool(jnp.all(jnp.isfinite(out)))
    print("KERNEL_OK")
</pallas_src>

<mosaic_0001>
module attributes {stable_mosaic.version = 11 : i64} {
  func.func @_lstm_kernel(%arg0: i32, %arg1: i32, %arg2: memref<1x32x256xf32, #tpu.memory_space<vmem>>, %arg3: memref<1x32x72xf32, #tpu.memory_space<vmem>>, %arg4: memref<256x2304xf32, #tpu.memory_space<vmem>>, %arg5: memref<1x1x8x256xf32, #tpu.memory_space<vmem>>, %arg6: memref<8x256xf32, #tpu.memory_space<vmem>>, %arg7: memref<8x256xf32, #tpu.memory_space<vmem>>) attributes {dimension_semantics = [#tpu.dimension_semantics<parallel>, #tpu.dimension_semantics<arbitrary>], iteration_bounds = array<i64: 2, 8>, scalar_prefetch = 0 : i64, scratch_operands = 2 : i64, tpu.core_type = #tpu.core_type<tc>, window_params = [{transform_indices = @transform_0, window_bounds = array<i64: 1, 32, 256>}, {transform_indices = @transform_1, window_bounds = array<i64: 1, 32, 72>}, {pipeline_mode = #tpu.pipeline_mode<synchronous>, transform_indices = @transform_2, window_bounds = array<i64: 256, 2304>}, {transform_indices = @transform_3, window_bounds = array<i64: 1, 1, 8, 256>}]} {
    %c0_i32 = arith.constant 0 : i32
    %0 = arith.cmpi eq, %arg1, %c0_i32 : i32
    %1 = arith.extui %0 : i1 to i32
    %c0_i32_0 = arith.constant 0 : i32
    %2 = arith.cmpi ne, %1, %c0_i32_0 : i32
    scf.if %2 {
      %cst_24 = arith.constant 0.000000e+00 : f32
      %53 = vector.broadcast %cst_24 : f32 to vector<8x256xf32>
      %c0_25 = arith.constant 0 : index
      %c0_26 = arith.constant 0 : index
      %54 = vector.load %arg6[%c0_25, %c0_26] : memref<8x256xf32, #tpu.memory_space<vmem>>, vector<8x256xf32>
      tpu.vector_store %arg6[%c0_25, %c0_26], %53 {strides = array<i32>} : memref<8x256xf32, #tpu.memory_space<vmem>>, vector<8x256xf32>,
      %cst_27 = arith.constant 0.000000e+00 : f32
      %55 = vector.broadcast %cst_27 : f32 to vector<8x256xf32>
      %c0_28 = arith.constant 0 : index
      %c0_29 = arith.constant 0 : index
      %56 = vector.load %arg7[%c0_28, %c0_29] : memref<8x256xf32, #tpu.memory_space<vmem>>, vector<8x256xf32>
      tpu.vector_store %arg7[%c0_28, %c0_29], %55 {strides = array<i32>} : memref<8x256xf32, #tpu.memory_space<vmem>>, vector<8x256xf32>,
    } else {
    }
    %c0 = arith.constant 0 : index
    %c0_1 = arith.constant 0 : index
    %3 = vector.load %arg6[%c0, %c0_1] : memref<8x256xf32, #tpu.memory_space<vmem>>, vector<8x256xf32>
    %c0_2 = arith.constant 0 : index
    %c0_3 = arith.constant 0 : index
    %4 = vector.load %arg4[%c0_2, %c0_3] : memref<256x2304xf32, #tpu.memory_space<vmem>>, vector<256x2304xf32>
    %cst = arith.constant dense<0.000000e+00> : vector<8x2304xf32>
    %5 = tpu.matmul %3, %4, %cst {dimension_numbers = #tpu.dot_dimension_numbers<[1], [0], [0], [1], [0, 0, 1, 1], [], []>} : vector<8x256xf32>, vector<256x2304xf32>, vector<8x2304xf32> -> vector<8x2304xf32>
    %6 = vector.extract_strided_slice %5 {offsets = [0, 0], sizes = [8, 256], strides = [1, 1]} : vector<8x2304xf32> to vector<8x256xf32>
    %7 = vector.extract_strided_slice %5 {offsets = [0, 256], sizes = [8, 256], strides = [1, 1]} : vector<8x2304xf32> to vector<8x256xf32>
    %8 = vector.extract_strided_slice %5 {offsets = [0, 512], sizes = [8, 256], strides = [1, 1]} : vector<8x2304xf32> to vector<8x256xf32>
    %9 = vector.extract_strided_slice %5 {offsets = [0, 768], sizes = [8, 256], strides = [1, 1]} : vector<8x2304xf32> to vector<8x256xf32>
    %10 = vector.extract_strided_slice %5 {offsets = [0, 1024], sizes = [8, 256], strides = [1, 1]} : vector<8x2304xf32> to vector<8x256xf32>
    %11 = vector.extract_strided_slice %5 {offsets = [0, 1280], sizes = [8, 256], strides = [1, 1]} : vector<8x2304xf32> to vector<8x256xf32>
    %12 = vector.extract_strided_slice %5 {offsets = [0, 1536], sizes = [8, 256], strides = [1, 1]} : vector<8x2304xf32> to vector<8x256xf32>
    %13 = vector.extract_strided_slice %5 {offsets = [0, 1792], sizes = [8, 256], strides = [1, 1]} : vector<8x2304xf32> to vector<8x256xf32>
    %14 = vector.extract_strided_slice %5 {offsets = [0, 2048], sizes = [8, 256], strides = [1, 1]} : vector<8x2304xf32> to vector<8x256xf32>
    %15 = tpu.concatenate %6, %7, %8, %9, %10, %11, %12, %13, %14 in 0 : vector<8x256xf32>, vector<8x256xf32>, vector<8x256xf32>, vector<8x256xf32>, vector<8x256xf32>, vector<8x256xf32>, vector<8x256xf32>, vector<8x256xf32>, vector<8x256xf32> -> vector<72x256xf32>
    %c0_4 = arith.constant 0 : index
    %c0_5 = arith.constant 0 : index
    %c0_6 = arith.constant 0 : index
    %16 = vector.load %arg3[%c0_4, %c0_5, %c0_6] : memref<1x32x72xf32, #tpu.memory_space<vmem>>, vector<1x32x72xf32>
    %17 = vector.shape_cast %16 : vector<1x32x72xf32> to vector<32x72xf32>
    %cst_7 = arith.constant dense<0.000000e+00> : vector<32x256xf32>
    %18 = tpu.matmul %17, %15, %cst_7 {dimension_numbers = #tpu.dot_dimension_numbers<[1], [0], [0], [1], [0, 0, 1, 1], [], []>} : vector<32x72xf32>, vector<72x256xf32>, vector<32x256xf32> -> vector<32x256xf32>
    %c0_8 = arith.constant 0 : index
    %c0_9 = arith.constant 0 : index
    %c0_10 = arith.constant 0 : index
    %19 = vector.load %arg2[%c0_8, %c0_9, %c0_10] : memref<1x32x256xf32, #tpu.memory_space<vmem>>, vector<1x32x256xf32>
    %20 = vector.shape_cast %19 : vector<1x32x256xf32> to vector<32x256xf32>
    %21 = arith.addf %18, %20 : vector<32x256xf32>
    %22 = vector.extract_strided_slice %21 {offsets = [0, 0], sizes = [8, 256], strides = [1, 1]} : vector<32x256xf32> to vector<8x256xf32>
    %23 = arith.negf %22 : vector<8x256xf32>
    %24 = math.exp %23 : vector<8x256xf32>
    %cst_11 = arith.constant 1.000000e+00 : f32
    %25 = vector.broadcast %cst_11 : f32 to vector<8x256xf32>
    %26 = arith.addf %25, %24 : vector<8x256xf32>
    %27 = arith.divf %25, %26 : vector<8x256xf32>
    %28 = vector.extract_strided_slice %21 {offsets = [8, 0], sizes = [8, 256], strides = [1, 1]} : vector<32x256xf32> to vector<8x256xf32>
    %29 = arith.negf %28 : vector<8x256xf32>
    %30 = math.exp %29 : vector<8x256xf32>
    %cst_12 = arith.constant 1.000000e+00 : f32
    %31 = vector.broadcast %cst_12 : f32 to vector<8x256xf32>
    %32 = arith.addf %31, %30 : vector<8x256xf32>
    %33 = arith.divf %31, %32 : vector<8x256xf32>
    %34 = vector.extract_strided_slice %21 {offsets = [16, 0], sizes = [8, 256], strides = [1, 1]} : vector<32x256xf32> to vector<8x256xf32>
    %35 = arith.negf %34 : vector<8x256xf32>
    %36 = math.exp %35 : vector<8x256xf32>
    %cst_13 = arith.constant 1.000000e+00 : f32
    %37 = vector.broadcast %cst_13 : f32 to vector<8x256xf32>
    %38 = arith.addf %37, %36 : vector<8x256xf32>
    %39 = arith.divf %37, %38 : vector<8x256xf32>
    %40 = vector.extract_strided_slice %21 {offsets = [24, 0], sizes = [8, 256], strides = [1, 1]} : vector<32x256xf32> to vector<8x256xf32>
    %41 = math.tanh %40 : vector<8x256xf32>
    %c0_14 = arith.constant 0 : index
    %c0_15 = arith.constant 0 : index
    %42 = vector.load %arg7[%c0_14, %c0_15] : memref<8x256xf32, #tpu.memory_space<vmem>>, vector<8x256xf32>
    %43 = arith.mulf %33, %42 : vector<8x256xf32>
    %44 = arith.mulf %27, %41 : vector<8x256xf32>
    %45 = arith.addf %43, %44 : vector<8x256xf32>
    %46 = math.tanh %45 : vector<8x256xf32>
    %47 = arith.mulf %39, %46 : vector<8x256xf32>
    %c0_16 = arith.constant 0 : index
    %c0_17 = arith.constant 0 : index
    %48 = vector.load %arg7[%c0_16, %c0_17] : memref<8x256xf32, #tpu.memory_space<vmem>>, vector<8x256xf32>
    tpu.vector_store %arg7[%c0_16, %c0_17], %45 {strides = array<i32>} : memref<8x256xf32, #tpu.memory_space<vmem>>, vector<8x256xf32>,
    %c0_18 = arith.constant 0 : index
    %c0_19 = arith.constant 0 : index
    %49 = vector.load %arg6[%c0_18, %c0_19] : memref<8x256xf32, #tpu.memory_space<vmem>>, vector<8x256xf32>
    tpu.vector_store %arg6[%c0_18, %c0_19], %47 {strides = array<i32>} : memref<8x256xf32, #tpu.memory_space<vmem>>, vector<8x256xf32>,
    %c0_20 = arith.constant 0 : index
    %c0_21 = arith.constant 0 : index
    %c0_22 = arith.constant 0 : index
    %c0_23 = arith.constant 0 : index
    %50 = vector.load %arg5[%c0_20, %c0_21, %c0_22, %c0_23] : memref<1x1x8x256xf32, #tpu.memory_space<vmem>>, vector<1x1x8x256xf32>
    %51 = vector.shape_cast %50 : vector<1x1x8x256xf32> to vector<8x256xf32>
    %52 = vector.shape_cast %47 : vector<8x256xf32> to vector<1x1x8x256xf32>
    tpu.vector_store %arg5[%c0_20, %c0_21, %c0_22, %c0_23], %52 {strides = array<i32>} : memref<1x1x8x256xf32, #tpu.memory_space<vmem>>, vector<1x1x8x256xf32>,
    return
  }
  func.func @transform_0(%arg0: i32, %arg1: i32) -> (i32, i32, i32) {
    %c2_i32 = arith.constant 2 : i32
    %0 = arith.muli %c2_i32, %arg1 : i32
    %c7_i32 = arith.constant 7 : i32
    %1 = arith.subi %c7_i32, %0 : i32
    %2 = arith.muli %arg0, %1 : i32
    %3 = arith.addi %arg1, %2 : i32
    %c0_i32 = arith.constant 0 : i32
    %c0_i32_0 = arith.constant 0 : i32
    return %3, %arg0, %c0_i32 : i32, i32, i32
  }
  func.func @transform_1(%arg0: i32, %arg1: i32) -> (i32, i32, i32) {
    %c0_i32 = arith.constant 0 : i32
    %c0_i32_0 = arith.constant 0 : i32
    %c0_i32_1 = arith.constant 0 : i32
    return %arg0, %c0_i32, %c0_i32_0 : i32, i32, i32
  }
  func.func @transform_2(%arg0: i32, %arg1: i32) -> (i32, i32) {
    %c0_i32 = arith.constant 0 : i32
    %c0_i32_0 = arith.constant 0 : i32
    %c0_i32_1 = arith.constant 0 : i32
    return %c0_i32, %c0_i32_0 : i32, i32
  }
  func.func @transform_3(%arg0: i32, %arg1: i32) -> (i32, i32, i32, i32) {
    %c2_i32 = arith.constant 2 : i32
    %0 = arith.muli %c2_i32, %arg1 : i32
    %c7_i32 = arith.constant 7 : i32
    %1 = arith.subi %c7_i32, %0 : i32
    %2 = arith.muli %arg0, %1 : i32
    %3 = arith.addi %arg1, %2 : i32
    %c0_i32 = arith.constant 0 : i32
    %c0_i32_0 = arith.constant 0 : i32
    %c0_i32_1 = arith.constant 0 : i32
    return %3, %arg0, %c0_i32, %c0_i32_0 : i32, i32, i32, i32
  }
}

module attributes {stable_mosaic.version = 11 : i64} {
  func.func @_ff_kernel(%arg0: i32, %arg1: memref<1x32x256xf32, #tpu.memory_space<vmem>>, %arg2: memref<256x2304xf32, #tpu.memory_space<vmem>>, %arg3: memref<16x288xf32, #tpu.memory_space<vmem>>, %arg4: memref<16x1xf32, #tpu.memory_space<vmem>>, %arg5: memref<16x1xf32, #tpu.memory_space<vmem>>, %arg6: memref<8x16xf32, #tpu.memory_space<vmem>>, %arg7: memref<256x2304xf32, #tpu.memory_space<vmem>>, %arg8: memref<64x72xf32, #tpu.memory_space<vmem>>, %arg9: memref<64x1xf32, #tpu.memory_space<vmem>>, %arg10: memref<1x64x256xf32, #tpu.memory_space<vmem>>) attributes {dimension_semantics = [#tpu.dimension_semantics<parallel>], iteration_bounds = array<i64: 8>, scalar_prefetch = 0 : i64, scratch_operands = 0 : i64, tpu.core_type = #tpu.core_type<tc>, window_params = [{transform_indices = @transform_0, window_bounds = array<i64: 1, 32, 256>}, {pipeline_mode = #tpu.pipeline_mode<synchronous>, transform_indices = @transform_1, window_bounds = array<i64: 256, 2304>}, {pipeline_mode = #tpu.pipeline_mode<synchronous>, transform_indices = @transform_2, window_bounds = array<i64: 16, 288>}, {pipeline_mode = #tpu.pipeline_mode<synchronous>, transform_indices = @transform_3, window_bounds = array<i64: 16, 1>}, {pipeline_mode = #tpu.pipeline_mode<synchronous>, transform_indices = @transform_4, window_bounds = array<i64: 16, 1>}, {pipeline_mode = #tpu.pipeline_mode<synchronous>, transform_indices = @transform_5, window_bounds = array<i64: 8, 16>}, {pipeline_mode = #tpu.pipeline_mode<synchronous>, transform_indices = @transform_6, window_bounds = array<i64: 256, 2304>}, {pipeline_mode = #tpu.pipeline_mode<synchronous>, transform_indices = @transform_7, window_bounds = array<i64: 64, 72>}, {pipeline_mode = #tpu.pipeline_mode<synchronous>, transform_indices = @transform_8, window_bounds = array<i64: 64, 1>}, {transform_indices = @transform_9, window_bounds = array<i64: 1, 64, 256>}]} {
    %c0 = arith.constant 0 : index
    %c0_0 = arith.constant 0 : index
    %c0_1 = arith.constant 0 : index
    %0 = vector.load %arg1[%c0, %c0_0, %c0_1] : memref<1x32x256xf32, #tpu.memory_space<vmem>>, vector<1x32x256xf32>
    %1 = vector.shape_cast %0 : vector<1x32x256xf32> to vector<32x256xf32>
    %c0_2 = arith.constant 0 : index
    %c0_3 = arith.constant 0 : index
    %2 = vector.load %arg2[%c0_2, %c0_3] : memref<256x2304xf32, #tpu.memory_space<vmem>>, vector<256x2304xf32>
    %cst = arith.constant dense<0.000000e+00> : vector<32x2304xf32>
    %3 = tpu.matmul %1, %2, %cst {dimension_numbers = #tpu.dot_dimension_numbers<[1], [0], [0], [1], [0, 0, 1, 1], [], []>} : vector<32x256xf32>, vector<256x2304xf32>, vector<32x2304xf32> -> vector<32x2304xf32>
    %4 = vector.extract_strided_slice %3 {offsets = [0, 0], sizes = [32, 256], strides = [1, 1]} : vector<32x2304xf32> to vector<32x256xf32>
    %5 = vector.extract_strided_slice %3 {offsets = [0, 256], sizes = [32, 256], strides = [1, 1]} : vector<32x2304xf32> to vector<32x256xf32>
    %6 = vector.extract_strided_slice %3 {offsets = [0, 512], sizes = [32, 256], strides = [1, 1]} : vector<32x2304xf32> to vector<32x256xf32>
    %7 = vector.extract_strided_slice %3 {offsets = [0, 768], sizes = [32, 256], strides = [1, 1]} : vector<32x2304xf32> to vector<32x256xf32>
    %8 = vector.extract_strided_slice %3 {offsets = [0, 1024], sizes = [32, 256], strides = [1, 1]} : vector<32x2304xf32> to vector<32x256xf32>
    %9 = vector.extract_strided_slice %3 {offsets = [0, 1280], sizes = [32, 256], strides = [1, 1]} : vector<32x2304xf32> to vector<32x256xf32>
    %10 = vector.extract_strided_slice %3 {offsets = [0, 1536], sizes = [32, 256], strides = [1, 1]} : vector<32x2304xf32> to vector<32x256xf32>
    %11 = vector.extract_strided_slice %3 {offsets = [0, 1792], sizes = [32, 256], strides = [1, 1]} : vector<32x2304xf32> to vector<32x256xf32>
    %12 = vector.extract_strided_slice %3 {offsets = [0, 2048], sizes = [32, 256], strides = [1, 1]} : vector<32x2304xf32> to vector<32x256xf32>
    %13 = tpu.concatenate %4, %5, %6, %7, %8, %9, %10, %11, %12 in 0 : vector<32x256xf32>, vector<32x256xf32>, vector<32x256xf32>, vector<32x256xf32>, vector<32x256xf32>, vector<32x256xf32>, vector<32x256xf32>, vector<32x256xf32>, vector<32x256xf32> -> vector<288x256xf32>
    %c0_4 = arith.constant 0 : index
    %c0_5 = arith.constant 0 : index
    %14 = vector.load %arg3[%c0_4, %c0_5] : memref<16x288xf32, #tpu.memory_space<vmem>>, vector<16x288xf32>
    %cst_6 = arith.constant dense<0.000000e+00> : vector<16x256xf32>
    %15 = tpu.matmul %14, %13, %cst_6 {dimension_numbers = #tpu.dot_dimension_numbers<[1], [0], [0], [1], [0, 0, 1, 1], [], []>} : vector<16x288xf32>, vector<288x256xf32>, vector<16x256xf32> -> vector<16x256xf32>
    %c0_7 = arith.constant 0 : index
    %c0_8 = arith.constant 0 : index
    %16 = vector.load %arg4[%c0_7, %c0_8] : memref<16x1xf32, #tpu.memory_space<vmem>>, vector<16x1xf32>
    %17 = vector.broadcast %16 : vector<16x1xf32> to vector<16x256xf32>
    %18 = arith.mulf %15, %17 : vector<16x256xf32>
    %c0_9 = arith.constant 0 : index
    %c0_10 = arith.constant 0 : index
    %19 = vector.load %arg5[%c0_9, %c0_10] : memref<16x1xf32, #tpu.memory_space<vmem>>, vector<16x1xf32>
    %20 = vector.broadcast %19 : vector<16x1xf32> to vector<16x256xf32>
    %21 = arith.addf %18, %20 : vector<16x256xf32>
    %cst_11 = arith.constant 0.000000e+00 : f32
    %22 = vector.broadcast %cst_11 : f32 to vector<16x256xf32>
    %23 = arith.maximumf %21, %22 : vector<16x256xf32>
    %c0_12 = arith.constant 0 : index
    %c0_13 = arith.constant 0 : index
    %24 = vector.load %arg6[%c0_12, %c0_13] : memref<8x16xf32, #tpu.memory_space<vmem>>, vector<8x16xf32>
    %cst_14 = arith.constant dense<0.000000e+00> : vector<8x256xf32>
    %25 = tpu.matmul %24, %23, %cst_14 {dimension_numbers = #tpu.dot_dimension_numbers<[1], [0], [0], [1], [0, 0, 1, 1], [], []>} : vector<8x16xf32>, vector<16x256xf32>, vector<8x256xf32> -> vector<8x256xf32>
    %cst_15 = arith.constant 0.000000e+00 : f32
    %26 = vector.broadcast %cst_15 : f32 to vector<8x256xf32>
    %27 = arith.maximumf %25, %26 : vector<8x256xf32>
    %c0_16 = arith.constant 0 : index
    %c0_17 = arith.constant 0 : index
    %28 = vector.load %arg7[%c0_16, %c0_17] : memref<256x2304xf32, #tpu.memory_space<vmem>>, vector<256x2304xf32>
    %cst_18 = arith.constant dense<0.000000e+00> : vector<8x2304xf32>
    %29 = tpu.matmul %27, %28, %cst_18 {dimension_numbers = #tpu.dot_dimension_numbers<[1], [0], [0], [1], [0, 0, 1, 1], [], []>} : vector<8x256xf32>, vector<256x2304xf32>, vector<8x2304xf32> -> vector<8x2304xf32>
    %30 = vector.extract_strided_slice %29 {offsets = [0, 0], sizes = [8, 256], strides = [1, 1]} : vector<8x2304xf32> to vector<8x256xf32>
    %31 = vector.extract_strided_slice %29 {offsets = [0, 256], sizes = [8, 256], strides = [1, 1]} : vector<8x2304xf32> to vector<8x256xf32>
    %32 = vector.extract_strided_slice %29 {offsets = [0, 512], sizes = [8, 256], strides = [1, 1]} : vector<8x2304xf32> to vector<8x256xf32>
    %33 = vector.extract_strided_slice %29 {offsets = [0, 768], sizes = [8, 256], strides = [1, 1]} : vector<8x2304xf32> to vector<8x256xf32>
    %34 = vector.extract_strided_slice %29 {offsets = [0, 1024], sizes = [8, 256], strides = [1, 1]} : vector<8x2304xf32> to vector<8x256xf32>
    %35 = vector.extract_strided_slice %29 {offsets = [0, 1280], sizes = [8, 256], strides = [1, 1]} : vector<8x2304xf32> to vector<8x256xf32>
    %36 = vector.extract_strided_slice %29 {offsets = [0, 1536], sizes = [8, 256], strides = [1, 1]} : vector<8x2304xf32> to vector<8x256xf32>
    %37 = vector.extract_strided_slice %29 {offsets = [0, 1792], sizes = [8, 256], strides = [1, 1]} : vector<8x2304xf32> to vector<8x256xf32>
    %38 = vector.extract_strided_slice %29 {offsets = [0, 2048], sizes = [8, 256], strides = [1, 1]} : vector<8x2304xf32> to vector<8x256xf32>
    %39 = tpu.concatenate %30, %31, %32, %33, %34, %35, %36, %37, %38 in 0 : vector<8x256xf32>, vector<8x256xf32>, vector<8x256xf32>, vector<8x256xf32>, vector<8x256xf32>, vector<8x256xf32>, vector<8x256xf32>, vector<8x256xf32>, vector<8x256xf32> -> vector<72x256xf32>
    %c0_19 = arith.constant 0 : index
    %c0_20 = arith.constant 0 : index
    %40 = vector.load %arg8[%c0_19, %c0_20] : memref<64x72xf32, #tpu.memory_space<vmem>>, vector<64x72xf32>
    %cst_21 = arith.constant dense<0.000000e+00> : vector<64x256xf32>
    %41 = tpu.matmul %40, %39, %cst_21 {dimension_numbers = #tpu.dot_dimension_numbers<[1], [0], [0], [1], [0, 0, 1, 1], [], []>} : vector<64x72xf32>, vector<72x256xf32>, vector<64x256xf32> -> vector<64x256xf32>
    %c0_22 = arith.constant 0 : index
    %c0_23 = arith.constant 0 : index
    %42 = vector.load %arg9[%c0_22, %c0_23] : memref<64x1xf32, #tpu.memory_space<vmem>>, vector<64x1xf32>
    %43 = vector.broadcast %42 : vector<64x1xf32> to vector<64x256xf32>
    %44 = arith.addf %41, %43 : vector<64x256xf32>
    %c0_24 = arith.constant 0 : index
    %c0_25 = arith.constant 0 : index
    %c0_26 = arith.constant 0 : index
    %45 = vector.load %arg10[%c0_24, %c0_25, %c0_26] : memref<1x64x256xf32, #tpu.memory_space<vmem>>, vector<1x64x256xf32>
    %46 = vector.shape_cast %45 : vector<1x64x256xf32> to vector<64x256xf32>
    %47 = vector.shape_cast %44 : vector<64x256xf32> to vector<1x64x256xf32>
    tpu.vector_store %arg10[%c0_24, %c0_25, %c0_26], %47 {strides = array<i32>} : memref<1x64x256xf32, #tpu.memory_space<vmem>>, vector<1x64x256xf32>,
    return
  }
  func.func @transform_0(%arg0: i32) -> (i32, i32, i32) {
    %c0_i32 = arith.constant 0 : i32
    %c0_i32_0 = arith.constant 0 : i32
    %c0_i32_1 = arith.constant 0 : i32
    return %arg0, %c0_i32, %c0_i32_0 : i32, i32, i32
  }
  func.func @transform_1(%arg0: i32) -> (i32, i32) {
    %c0_i32 = arith.constant 0 : i32
    %c0_i32_0 = arith.constant 0 : i32
    %c0_i32_1 = arith.constant 0 : i32
    return %c0_i32, %c0_i32_0 : i32, i32
  }
  func.func @transform_2(%arg0: i32) -> (i32, i32) {
    %c0_i32 = arith.constant 0 : i32
    %c0_i32_0 = arith.constant 0 : i32
    %c0_i32_1 = arith.constant 0 : i32
    return %c0_i32, %c0_i32_0 : i32, i32
  }
  func.func @transform_3(%arg0: i32) -> (i32, i32) {
    %c0_i32 = arith.constant 0 : i32
    %c0_i32_0 = arith.constant 0 : i32
    %c0_i32_1 = arith.constant 0 : i32
    return %c0_i32, %c0_i32_0 : i32, i32
  }
  func.func @transform_4(%arg0: i32) -> (i32, i32) {
    %c0_i32 = arith.constant 0 : i32
    %c0_i32_0 = arith.constant 0 : i32
    %c0_i32_1 = arith.constant 0 : i32
    return %c0_i32, %c0_i32_0 : i32, i32
  }
  func.func @transform_5(%arg0: i32) -> (i32, i32) {
    %c0_i32 = arith.constant 0 : i32
    %c0_i32_0 = arith.constant 0 : i32
    %c0_i32_1 = arith.constant 0 : i32
    return %c0_i32, %c0_i32_0 : i32, i32
  }
  func.func @transform_6(%arg0: i32) -> (i32, i32) {
    %c0_i32 = arith.constant 0 : i32
    %c0_i32_0 = arith.constant 0 : i32
    %c0_i32_1 = arith.constant 0 : i32
    return %c0_i32, %c0_i32_0 : i32, i32
  }
  func.func @transform_7(%arg0: i32) -> (i32, i32) {
    %c0_i32 = arith.constant 0 : i32
    %c0_i32_0 = arith.constant 0 : i32
    %c0_i32_1 = arith.constant 0 : i32
    return %c0_i32, %c0_i32_0 : i32, i32
  }
  func.func @transform_8(%arg0: i32) -> (i32, i32) {
    %c0_i32 = arith.constant 0 : i32
    %c0_i32_0 = arith.constant 0 : i32
    %c0_i32_1 = arith.constant 0 : i32
    return %c0_i32, %c0_i32_0 : i32, i32
  }
  func.func @transform_9(%arg0: i32) -> (i32, i32, i32) {
    %c0_i32 = arith.constant 0 : i32
    %c0_i32_0 = arith.constant 0 : i32
    %c0_i32_1 = arith.constant 0 : i32
    return %arg0, %c0_i32, %c0_i32_0 : i32, i32, i32
  }
}

module attributes {stable_mosaic.version = 11 : i64} {
  func.func @_head_kernel(%arg0: i32, %arg1: memref<128x256xf32, #tpu.memory_space<vmem>>, %arg2: memref<16x128xf32, #tpu.memory_space<vmem>>, %arg3: memref<16x256xf32, #tpu.memory_space<vmem>>, %arg4: memref<16x256xf32, #tpu.memory_space<vmem>>, %arg5: memref<16x256xf32, #tpu.memory_space<vmem>>, %arg6: memref<8x256xf32, #tpu.memory_space<vmem>>) attributes {dimension_semantics = [#tpu.dimension_semantics<arbitrary>], iteration_bounds = array<i64: 1>, scalar_prefetch = 0 : i64, scratch_operands = 0 : i64, tpu.core_type = #tpu.core_type<tc>, window_params = [{pipeline_mode = #tpu.pipeline_mode<synchronous>, transform_indices = @transform_0, window_bounds = array<i64: 128, 256>}, {pipeline_mode = #tpu.pipeline_mode<synchronous>, transform_indices = @transform_1, window_bounds = array<i64: 16, 128>}, {pipeline_mode = #tpu.pipeline_mode<synchronous>, transform_indices = @transform_2, window_bounds = array<i64: 16, 256>}, {pipeline_mode = #tpu.pipeline_mode<synchronous>, transform_indices = @transform_3, window_bounds = array<i64: 16, 256>}, {pipeline_mode = #tpu.pipeline_mode<synchronous>, transform_indices = @transform_4, window_bounds = array<i64: 16, 256>}, {pipeline_mode = #tpu.pipeline_mode<synchronous>, transform_indices = @transform_5, window_bounds = array<i64: 8, 256>}]} {
    %c0 = arith.constant 0 : index
    %c0_0 = arith.constant 0 : index
    %0 = vector.load %arg1[%c0, %c0_0] : memref<128x256xf32, #tpu.memory_space<vmem>>, vector<128x256xf32>
    %cst = arith.constant 0.000000e+00 : f32
    %1 = vector.broadcast %cst : f32 to vector<128x256xf32>
    %2 = arith.maximumf %0, %1 : vector<128x256xf32>
    %c0_1 = arith.constant 0 : index
    %c0_2 = arith.constant 0 : index
    %3 = vector.load %arg2[%c0_1, %c0_2] : memref<16x128xf32, #tpu.memory_space<vmem>>, vector<16x128xf32>
    %cst_3 = arith.constant dense<0.000000e+00> : vector<16x256xf32>
    %4 = tpu.matmul %3, %2, %cst_3 {dimension_numbers = #tpu.dot_dimension_numbers<[1], [0], [0], [1], [0, 0, 1, 1], [], []>} : vector<16x128xf32>, vector<128x256xf32>, vector<16x256xf32> -> vector<16x256xf32>
    %5 = arith.negf %4 : vector<16x256xf32>
    %6 = math.exp %5 : vector<16x256xf32>
    %cst_4 = arith.constant 1.000000e+00 : f32
    %7 = vector.broadcast %cst_4 : f32 to vector<16x256xf32>
    %8 = arith.addf %7, %6 : vector<16x256xf32>
    %9 = arith.divf %7, %8 : vector<16x256xf32>
    %c0_5 = arith.constant 0 : index
    %c0_6 = arith.constant 0 : index
    %10 = vector.load %arg4[%c0_5, %c0_6] : memref<16x256xf32, #tpu.memory_space<vmem>>, vector<16x256xf32>
    tpu.vector_store %arg4[%c0_5, %c0_6], %4 {strides = array<i32>} : memref<16x256xf32, #tpu.memory_space<vmem>>, vector<16x256xf32>,
    %c0_7 = arith.constant 0 : index
    %c0_8 = arith.constant 0 : index
    %11 = vector.load %arg5[%c0_7, %c0_8] : memref<16x256xf32, #tpu.memory_space<vmem>>, vector<16x256xf32>
    tpu.vector_store %arg5[%c0_7, %c0_8], %9 {strides = array<i32>} : memref<16x256xf32, #tpu.memory_space<vmem>>, vector<16x256xf32>,
    %c0_9 = arith.constant 0 : index
    %c0_10 = arith.constant 0 : index
    %12 = vector.load %arg3[%c0_9, %c0_10] : memref<16x256xf32, #tpu.memory_space<vmem>>, vector<16x256xf32>
    %13 = arith.addf %9, %12 : vector<16x256xf32>
    %14 = vector.extract_strided_slice %13 {offsets = [8, 0], sizes = [8, 256], strides = [1, 1]} : vector<16x256xf32> to vector<8x256xf32>
    %15 = vector.extract_strided_slice %13 {offsets = [0, 0], sizes = [8, 256], strides = [1, 1]} : vector<16x256xf32> to vector<8x256xf32>
    %16 = arith.subf %14, %15 : vector<8x256xf32>
    %cst_11 = arith.constant 8.000000e-01 : f32
    %17 = vector.broadcast %cst_11 : f32 to vector<8x256xf32>
    %18 = arith.divf %16, %17 : vector<8x256xf32>
    %19 = arith.negf %18 : vector<8x256xf32>
    %20 = math.exp %19 : vector<8x256xf32>
    %cst_12 = arith.constant 1.000000e+00 : f32
    %21 = vector.broadcast %cst_12 : f32 to vector<8x256xf32>
    %22 = arith.addf %21, %20 : vector<8x256xf32>
    %23 = arith.divf %21, %22 : vector<8x256xf32>
    %c0_13 = arith.constant 0 : index
    %c0_14 = arith.constant 0 : index
    %24 = vector.load %arg6[%c0_13, %c0_14] : memref<8x256xf32, #tpu.memory_space<vmem>>, vector<8x256xf32>
    tpu.vector_store %arg6[%c0_13, %c0_14], %23 {strides = array<i32>} : memref<8x256xf32, #tpu.memory_space<vmem>>, vector<8x256xf32>,
    return
  }
  func.func @transform_0(%arg0: i32) -> (i32, i32) {
    %c0_i32 = arith.constant 0 : i32
    %c0_i32_0 = arith.constant 0 : i32
    %c0_i32_1 = arith.constant 0 : i32
    return %c0_i32, %c0_i32_0 : i32, i32
  }
  func.func @transform_1(%arg0: i32) -> (i32, i32) {
    %c0_i32 = arith.constant 0 : i32
    %c0_i32_0 = arith.constant 0 : i32
    %c0_i32_1 = arith.constant 0 : i32
    return %c0_i32, %c0_i32_0 : i32, i32
  }
  func.func @transform_2(%arg0: i32) -> (i32, i32) {
    %c0_i32 = arith.constant 0 : i32
    %c0_i32_0 = arith.constant 0 : i32
    %c0_i32_1 = arith.constant 0 : i32
    return %c0_i32, %c0_i32_0 : i32, i32
  }
  func.func @transform_3(%arg0: i32) -> (i32, i32) {
    %c0_i32 = arith.constant 0 : i32
    %c0_i32_0 = arith.constant 0 : i32
    %c0_i32_1 = arith.constant 0 : i32
    return %c0_i32, %c0_i32_0 : i32, i32
  }
  func.func @transform_4(%arg0: i32) -> (i32, i32) {
    %c0_i32 = arith.constant 0 : i32
    %c0_i32_0 = arith.constant 0 : i32
    %c0_i32_1 = arith.constant 0 : i32
    return %c0_i32, %c0_i32_0 : i32, i32
  }
  func.func @transform_5(%arg0: i32) -> (i32, i32) {
    %c0_i32 = arith.constant 0 : i32
    %c0_i32_0 = arith.constant 0 : i32
    %c0_i32_1 = arith.constant 0 : i32
    return %c0_i32, %c0_i32_0 : i32, i32
  }
}

</mosaic_0001>

<bundles_post_ra>
// kernel: convlstm_network_forward.5
= control target key start
LH: loop header
LB: loop body
LE: loop exit
PB: predicated region body
PF: predicated region fallthrough
CT: control target
= control target key end

     0   :  { %v310_v3 = vmov 0.0   ;;  %s485_s0 = inlined_call_operand.vmem [shape: f32[128,256], index: 0, kind: input, shape index: {}]   ;;  %s486_s1 = inlined_call_operand.vmem [shape: f32[16,128], index: 1, kind: input, shape index: {}]   ;;  %s487_s3 = inlined_call_operand.vmem [shape: f32[16,256], index: 3, kind: output, shape index: {0}]   ;;  %s488_s2 = inlined_call_operand.vmem [shape: f32[16,256], index: 2, kind: input, shape index: {}]   ;;  %s489_s4 = inlined_call_operand.vmem [shape: f32[16,256], index: 4, kind: output, shape index: {1}]   ;;  %s490_s5 = inlined_call_operand.vmem [shape: f32[8,256], index: 5, kind: output, shape index: {2}]  }
   0x1   :  { %v18_v0 = vld [vmem:[%s485_s0 + $0x8] sm:$0xff]  ;;  %v20_v1 = vld [vmem:[%s485_s0 + $0x18] sm:$0xff]  ;;  %v17_v2 = vld [vmem:[%s485_s0] sm:$0xff]  ;;  %147 = vmatprep.mubr.f32.mxu0 %v310_v3  ;;  %153 = vmatprep.mubr.f32.mxu1 %v310_v3 }
   0x2   :  { %v50_v4 = vmax.f32 %v18_v0, 0.0  ;;  %v52_v5 = vmax.f32 %v20_v1, 0.0  ;;  %v19_v6 = vld [vmem:[%s485_s0 + $0x10] sm:$0xff]  ;;  %v49_v7 = vmax.f32 %v17_v2, 0.0  ;;  %v22_v8 = vld [vmem:[%s485_s0 + $0x28] sm:$0xff]  ;;  %v24_v9 = vld [vmem:[%s485_s0 + $0x38] sm:$0xff] }
   0x3   :  { %v51_v10 = vmax.f32 %v19_v6, 0.0  ;;  %v54_v11 = vmax.f32 %v22_v8, 0.0  ;;  %v56_v12 = vmax.f32 %v24_v9, 0.0  ;;  %v21_v13 = vld [vmem:[%s485_s0 + $0x20] sm:$0xff]  ;;  %v23_v14 = vld [vmem:[%s485_s0 + $0x30] sm:$0xff]  ;;  %v26_v15 = vld [vmem:[%s485_s0 + $0x48] sm:$0xff] }
   0x4   :  { %v237_v16 = vpack.c.bf16 %v52_v5, %v50_v4  ;;  %v53_v17 = vmax.f32 %v21_v13, 0.0  ;;  %v55_v18 = vmax.f32 %v23_v14, 0.0  ;;  %v28_v19 = vld [vmem:[%s485_s0 + $0x58] sm:$0xff]  ;;  %v58_v20 = vmax.f32 %v26_v15, 0.0  ;;  %v25_v21 = vld [vmem:[%s485_s0 + $0x40] sm:$0xff]  ;;  %v27_v22 = vld [vmem:[%s485_s0 + $0x50] sm:$0xff] }
   0x5   :  { %v239_v23 = vpack.c.bf16 %v51_v10, %v49_v7  ;;  %v241_v24 = vpack.c.bf16 %v56_v12, %v54_v11  ;;  %v60_v25 = vmax.f32 %v28_v19, 0.0  ;;  %v30_v26 = vld [vmem:[%s485_s0 + $0x68] sm:$0xff]  ;;  %v32_v27 = vld [vmem:[%s485_s0 + $0x78] sm:$0xff]  ;;  %v57_v29 = vmax.f32 %v25_v21, 0.0  ;;  %v29_v34 = vld [vmem:[%s485_s0 + $0x60] sm:$0xff] }
   0x6   :  { %238 = vmatprep.subr.bf16.mxu0 %v237_v16  ;;  %269 = vmatprep.subr.bf16.mxu1 %v237_v16  ;;  %v243_v28 = vpack.c.bf16 %v55_v18, %v53_v17  ;;  %v59_v30 = vmax.f32 %v27_v22, 0.0  ;;  %v62_v32 = vmax.f32 %v30_v26, 0.0  ;;  %v64_v33 = vmax.f32 %v32_v27, 0.0  ;;  %v31_v35 = vld [vmem:[%s485_s0 + $0x70] sm:$0xff]  ;;  %v34_v36 = vld [vmem:[%s485_s0 + $0x88] sm:$0xff]  ;;  %v36_v37 = vld [vmem:[%s485_s0 + $0x98] sm:$0xff] }
   0x7   :  { %240 = vmatpush1.bf16.msra.mxu0 %v239_v23  ;;  %277 = vmatpush1.bf16.msra.mxu1 %v239_v23  ;;  %v245_v31 = vpack.c.bf16 %v60_v25, %v58_v20  ;;  %v61_v39 = vmax.f32 %v29_v34, 0.0  ;;  %v63_v40 = vmax.f32 %v31_v35, 0.0  ;;  %v66_v42 = vmax.f32 %v34_v36, 0.0  ;;  %v33_v44 = vld [vmem:[%s485_s0 + $0x80] sm:$0xff]  ;;  %v35_v45 = vld [vmem:[%s485_s0 + $0x90] sm:$0xff]  ;;  %v38_v46 = vld [vmem:[%s485_s0 + $0xa8] sm:$0xff] }
   0x8   :  { %242 = vmatprep.subr.bf16.mxu0 %v241_v24  ;;  %270 = vmatprep.subr.bf16.mxu1 %v241_v24  ;;  %v247_v38 = vpack.c.bf16 %v59_v30, %v57_v29  ;;  %v249_v41 = vpack.c.bf16 %v64_v33, %v62_v32  ;;  %v68_v43 = vmax.f32 %v36_v37, 0.0  ;;  %v40_v47 = vld [vmem:[%s485_s0 + $0xb8] sm:$0xff]  ;;  %v65_v49 = vmax.f32 %v33_v44, 0.0  ;;  %v37_v54 = vld [vmem:[%s485_s0 + $0xa0] sm:$0xff]  ;;  %v39_v55 = vld [vmem:[%s485_s0 + $0xb0] sm:$0xff] }
   0x9   :  { %v251_v48 = vpack.c.bf16 %v63_v40, %v61_v39  ;;  %v67_v50 = vmax.f32 %v35_v45, 0.0  ;;  %v70_v52 = vmax.f32 %v38_v46, 0.0  ;;  %v72_v53 = vmax.f32 %v40_v47, 0.0  ;;  %v42_v56 = vld [vmem:[%s485_s0 + $0xc8] sm:$0xff]  ;;  %v44_v57 = vld [vmem:[%s485_s0 + $0xd8] sm:$0xff]  ;;  %v41_v0 = vld [vmem:[%s485_s0 + $0xc0] sm:$0xff] }
   0xa   :  { %v253_v51 = vpack.c.bf16 %v68_v43, %v66_v42  ;;  %v69_v59 = vmax.f32 %v37_v54, 0.0  ;;  %v71_v60 = vmax.f32 %v39_v55, 0.0  ;;  %v74_v62 = vmax.f32 %v42_v56, 0.0  ;;  %v43_v1 = vld [vmem:[%s485_s0 + $0xd0] sm:$0xff]  ;;  %v46_v2 = vld [vmem:[%s485_s0 + $0xe8] sm:$0xff]  ;;  %v48_v3 = vld [vmem:[%s485_s0 + $0xf8] sm:$0xff] }
   0xb   :  { %244 = vmatpush1.bf16.msra.mxu0 %v243_v28  ;;  %278 = vmatpush1.bf16.msra.mxu1 %v243_v28  ;;  %v255_v58 = vpack.c.bf16 %v67_v50, %v65_v49  ;;  %v257_v61 = vpack.c.bf16 %v72_v53, %v70_v52  ;;  %v76_v63 = vmax.f32 %v44_v57, 0.0  ;;  %v73_v5 = vmax.f32 %v41_v0, 0.0  ;;  %v45_v10 = vld [vmem:[%s485_s0 + $0xe0] sm:$0xff]  ;;  %v47_v11 = vld [vmem:[%s485_s0 + $0xf0] sm:$0xff]  ;;  %v82_v18 = vld [vmem:[%s486_s1 + $0x8] sm:$0xff] }
   0xc   :  { %246 = vmatprep.subr.bf16.mxu0 %v245_v31  ;;  %271 = vmatprep.subr.bf16.mxu1 %v245_v31  ;;  %v259_v4 = vpack.c.bf16 %v71_v60, %v69_v59  ;;  %v75_v6 = vmax.f32 %v43_v1, 0.0  ;;  %v78_v8 = vmax.f32 %v46_v2, 0.0  ;;  %v80_v9 = vmax.f32 %v48_v3, 0.0  ;;  %v81_v17 = vld [vmem:[%s486_s1] sm:$0xff]  ;;  %v194_v36 = vld [vmem:[%s488_s2 + $0x10] sm:$0xff] }
   0xd   :  { %v261_v7 = vpack.c.bf16 %v76_v63, %v74_v62  ;;  %v77_v13 = vmax.f32 %v45_v10, 0.0  ;;  %v79_v14 = vmax.f32 %v47_v11, 0.0  ;;  %v192_v35 = vld [vmem:[%s488_s2] sm:$0xff] }
   0xe   :  { %v263_v12 = vpack.c.bf16 %v75_v6, %v73_v5  ;;  %v265_v15 = vpack.c.bf16 %v80_v9, %v78_v8 }
   0xf   :  { %248 = vmatpush1.bf16.msra.mxu0 %v247_v38  ;;  %279 = vmatpush1.bf16.msra.mxu1 %v247_v38  ;;  %v267_v16 = vpack.c.bf16 %v79_v14, %v77_v13  ;;  %v193_v38 = vld [vmem:[%s488_s2 + $0x8] sm:$0xff] }
  0x10   :  { %250 = vmatprep.subr.bf16.mxu0 %v249_v41  ;;  %272 = vmatprep.subr.bf16.mxu1 %v249_v41  ;;  %v195_v41 = vld [vmem:[%s488_s2 + $0x18] sm:$0xff] }
  0x13   :  { %252 = vmatpush1.bf16.msra.mxu0 %v251_v48  ;;  %280 = vmatpush1.bf16.msra.mxu1 %v251_v48 }
  0x14   :  { %254 = vmatprep.subr.bf16.mxu0 %v253_v51  ;;  %273 = vmatprep.subr.bf16.mxu1 %v253_v51 }
  0x17   :  { %256 = vmatpush1.bf16.msra.mxu0 %v255_v58  ;;  %281 = vmatpush1.bf16.msra.mxu1 %v255_v58 }
  0x18   :  { %258 = vmatprep.subr.bf16.mxu0 %v257_v61  ;;  %274 = vmatprep.subr.bf16.mxu1 %v257_v61 }
  0x1b   :  { %260 = vmatpush1.bf16.msra.mxu0 %v259_v4  ;;  %282 = vmatpush1.bf16.msra.mxu1 %v259_v4 }
  0x1c   :  { %262 = vmatprep.subr.bf16.mxu0 %v261_v7  ;;  %275 = vmatprep.subr.bf16.mxu1 %v261_v7 }
  0x1f   :  { %264 = vmatpush1.bf16.msra.mxu0 %v263_v12  ;;  %283 = vmatpush1.bf16.msra.mxu1 %v263_v12 }
  0x20   :  { %266 = vmatprep.subr.bf16.mxu0 %v265_v15  ;;  %276 = vmatprep.subr.bf16.mxu1 %v265_v15 }
  0x23   :  { %268 = vmatpush1.bf16.msra.mxu0 %v267_v16  ;;  %284 = vmatpush1.bf16.msra.mxu1 %v267_v16 }
  0x26   :  { %148 = vmatmul.mubr.f32.vlgmr.msra.gmra.mrb[0].mxu0 %v81_v17  ;;  %154 = vmatmul.mubr.f32.vlgmr.msra.gmra.mrb[0].mxu1 %v82_v18 }
  0xf9   :  { %v149_v19 = vpop.f32.mrb[0].mxu0  ;;  %v155_v20 = vpop.f32.mrb[0].mxu1 }
  0xfa   :  { %v231_v21 = vmul.f32 -1.442695, %v149_v19  ;;  %184 = vst [vmem:[%s487_s3] sm:$0xff] %v149_v19  ;;  %v233_v22 = vmul.f32 -1.442695, %v155_v20  ;;  %186 = vst [vmem:[%s487_s3 + $0x10] sm:$0xff] %v155_v20  ;;  %v151_v23 = vpop.f32.mrb[1].mxu0 }
  0xfb   :  { %v157_v24 = vpop.f32.mrb[1].mxu1  ;;  %v232_v25 = vmul.f32 -1.442695, %v151_v23  ;;  %185 = vst [vmem:[%s487_s3 + $0x8] sm:$0xff] %v151_v23 }
  0xfc   :  { %v234_v26 = vmul.f32 -1.442695, %v157_v24  ;;  %187 = vst [vmem:[%s487_s3 + $0x18] sm:$0xff] %v157_v24  ;;  %286 = vpow2.f32 %v231_v21 }
  0xfd   :  { %288 = vpow2.f32 %v233_v22 }
  0xfe   :  { %290 = vpow2.f32 %v232_v25 }
  0xff   :  { %292 = vpow2.f32 %v234_v26 }
 0x106   :  { %v287_v27 = vpop.eup %286 }
 0x107   :  { %v289_v28 = vpop.eup %288  ;;  %v172_v29 = vadd.f32 1.0, %v287_v27 }
 0x108   :  { %v291_v30 = vpop.eup %290  ;;  %v174_v31 = vadd.f32 1.0, %v289_v28 }
 0x109   :  { %v293_v32 = vpop.eup %292  ;;  %294 = vrcp.f32 %v172_v29  ;;  %v173_v33 = vadd.f32 1.0, %v291_v30 }
 0x10a   :  { %296 = vrcp.f32 %v174_v31  ;;  %v175_v34 = vadd.f32 1.0, %v293_v32 }
 0x10b   :  { %298 = vrcp.f32 %v173_v33 }
 0x10c   :  { %300 = vrcp.f32 %v175_v34 }
 0x113   :  { %v295_v37 = vpop.eup %294 }
 0x114   :  { %v297_v39 = vpop.eup %296  ;;  %188 = vst [vmem:[%s489_s4] sm:$0xff] %v295_v37  ;;  %v196_v40 = vadd.f32 %v295_v37, %v192_v35 }
 0x115   :  { %v299_v42 = vpop.eup %298  ;;  %190 = vst [vmem:[%s489_s4 + $0x10] sm:$0xff] %v297_v39  ;;  %v198_v43 = vadd.f32 %v297_v39, %v194_v36 }
 0x116   :  { %v301_v44 = vpop.eup %300  ;;  %189 = vst [vmem:[%s489_s4 + $0x8] sm:$0xff] %v299_v42  ;;  %v197_v45 = vadd.f32 %v299_v42, %v193_v38 }
 0x117   :  { %v200_v46 = vsub.f32 %v198_v43, %v196_v40  ;;  %191 = vst [vmem:[%s489_s4 + $0x18] sm:$0xff] %v301_v44  ;;  %v199_v47 = vadd.f32 %v301_v44, %v195_v41 }
 0x119   :  { %v235_v48 = vmul.f32 -1.25, %v200_v46  ;;  %v201_v49 = vsub.f32 %v199_v47, %v197_v45 }
 0x11b   :  { %v207_v50 = vmul.f32 1.442695, %v235_v48  ;;  %v236_v51 = vmul.f32 -1.25, %v201_v49 }
 0x11d   :  { %302 = vpow2.f32 %v207_v50  ;;  %v209_v52 = vmul.f32 1.442695, %v236_v51 }
 0x11f   :  { %304 = vpow2.f32 %v209_v52 }
 0x127   :  { %v303_v53 = vpop.eup %302 }
 0x128   :  { %v211_v54 = vadd.f32 1.0, %v303_v53 }
 0x129   :  { %v305_v55 = vpop.eup %304 }
 0x12a   :  { %306 = vrcp.f32 %v211_v54  ;;  %v212_v56 = vadd.f32 1.0, %v305_v55 }
 0x12c   :  { %308 = vrcp.f32 %v212_v56 }
 0x134   :  { %v307_v57 = vpop.eup %306 }
 0x135   :  { %217 = vst [vmem:[%s490_s5] sm:$0xff] %v307_v57 }
 0x136   :  { %v309_v58 = vpop.eup %308 }
 0x137   :  { %218 = vst [vmem:[%s490_s5 + $0x8] sm:$0xff] %v309_v58 }

// kernel: convlstm_network_forward.4
= control target key start
LH: loop header
LB: loop body
LE: loop exit
PB: predicated region body
PF: predicated region fallthrough
CT: control target
= control target key end

     0   :  { %s2559_s12 = smov 0   ;;  %s2561_s13 = smov 0   ;;  %s4392_s0 = inlined_call_operand.vmem [shape: f32[8,64,256], index: 0, kind: input, shape index: {}]   ;;  %s4393_s1 = inlined_call_operand.vmem [shape: f32[2,32,72], index: 1, kind: input, shape index: {}]   ;;  %s4394_s2 = inlined_call_operand.vmem [shape: f32[256,2304], index: 2, kind: input, shape index: {}]   ;;  %s4395_s3 = inlined_call_operand.vmem [shape: f32[8,2,8,256], index: 3, kind: output, shape index: {}]  }
   0x1   :  { %s2563_s14 = smov 0   ;;  %s2565_s15 = smov 0  }
   0x2   :  { %s2567_s16 = smov 0  }
   0x3 LB: > { %s22_s17 = sadd.s32 1, %s2527_s14  ;;  %s25_s18 = sadd.s32 1, %s2531_s15  ;;  %s2535_s16 = sphi %s2567_s16, %s13_s16   ;;  %s2531_s15 = sphi %s2565_s15, %s4399_s15   ;;  %s2527_s14 = sphi %s2563_s14, %s4398_s14   ;;  %s2523_s13 = sphi %s2561_s13, %s4397_s13   ;;  %s2519_s12 = sphi %s2559_s12, %s4396_s12  }
   0x4   : > { %p23_p0 = scmp.ge.s32.totalorder %s22_s17, 8  ;;  %p1803_p1 = scmp.ge.s32.totalorder %s2535_s16, 1 }
   0x5   : > { %p193_p2 = scmp.lt.s32.totalorder %s2535_s16, 17 }
   0x6   : > { %s4401_s17 = smov (%p23_p0, %s22_s17), 0  ;;  %s4403_s18 = smov (!%p23_p0, %s25_s18), %s2531_s15 }
   0x7   : > { %p194_p3 = pnand %p1803_p1, %p193_p2  ;;  %p27_p4 = scmp.ge.s32.totalorder %s4403_s18, 2 }
   0x8   : > { %s1804_s19 = sshll.u32 (!%p194_p3), %s2519_s12, 1  ;;  %s1805_s20 = sshll.u32 (!%p194_p3), %s2523_s13, 2 }
   0x9   : > { %s4405_s18 = smov (%p27_p4, %s4403_s18), 0  ;;  %197 = sbr.rel (%p194_p3) target bundleno = 831 (0x33f), region = 32 }
   0xa   : > { %s240_s21 = ssub.s32 (!%p194_p3), 7, %s1804_s19  ;;  %p246_p5 = scmp.lt.s32.totalorder (!%p194_p3), %s1805_s20, 7 }
   0xb   : > { %s241_s22 = smul.u32 (!%p194_p3), %s2523_s13, %s240_s21  ;;  %p258_p6 = scmp.lt.s32.totalorder (!%p194_p3), %s2523_s13, 1 }
   0xc   : > { %p1815_p8 = scmp.ne.s32.totalorder (!%p194_p3), %s2519_s12, 0 }
   0xd   : > { %s242_s23 = sadd.s32 (!%p194_p3), %s2519_s12, %s241_s22 }
   0xe   : > { %p244_p7 = scmp.lt.s32.totalorder (!%p194_p3), %s242_s23, 7 }
  0x10   : > { %s4407_s20 = smov (!%p246_p5, %s1805_s20), 7  ;;  %s4409_s13 = smov (!%p258_p6, %s2523_s13), 1 }
  0x11   : > { %s1806_s24 = sshll.u32 %s4407_s20, 1  ;;  %s4411_s23 = smov (!%p244_p7, %s242_s23), 7  ;;  %v2537_v0 = vmov (!%p1815_p8), 0.0  }
  0x12   : > { %s1828_s25 = sshll.u32 %s4409_s13, 5  ;;  %s1812_s26 = sshll.u32 %s4409_s13, 1  ;;  %284 = vst [vmem:[#allocation2] sm:$0xff] (!%p1815_p8), %v2537_v0  ;;  %285 = vst [vmem:[#allocation2 + $0x8] sm:$0xff] (!%p1815_p8), %v2537_v0 }
  0x13   : > { %s1807_s27 = sshll.u32 %s4411_s23, 4  ;;  %s2596_s30 = scalar_lea.vmem %s4393_s1, %s1828_s25  ;;  %286 = vst [vmem:[#allocation3] sm:$0xff] (!%p1815_p8), %v2537_v0  ;;  %287 = vst [vmem:[#allocation3 + $0x8] sm:$0xff] (!%p1815_p8), %v2537_v0 }
  0x14   : > { %s250_s4 = sadd.s32 %s1807_s27, %s1806_s24  ;;  %s1813_s5 = sshll.u32 %s4411_s23, 2 }
  0x15   : > { %s1808_s6 = sshll.u32 %s250_s4, 3  ;;  %s273_s7 = sadd.s32 %s1813_s5, %s1812_s26 }
  0x16   : > { %s2601_s10 = scalar_lea.vmem %s4392_s0, %s1808_s6  ;;  %s1814_s11 = sshll.u32 %s273_s7, 3 }
  0x17   : > { %s2606_s13 = scalar_lea.vmem %s4395_s3, %s1814_s11  ;;  %283 = sbr.rel (%p1815_p8) target bundleno = 30 (0x1e), region = 36 }
  0x1e PF: > { %v291_v1 = vld [vmem:[%s4394_s2 + $0x8] sm:$0xff]  ;;  %v309_v2 = vld [vmem:[%s4394_s2 + $0x98] sm:$0xff]  ;;  %v290_v6 = vld [vmem:[%s4394_s2] sm:$0xff]  ;;  %vm1517_vm0 = vcmask 588800  }
  0x1f   : > { %v293_v3 = vld [vmem:[%s4394_s2 + $0x18] sm:$0xff]  ;;  %v1829_v4 = vpack.c.bf16 %v309_v2, %v291_v1  ;;  %v311_v5 = vld [vmem:[%s4394_s2 + $0xa8] sm:$0xff]  ;;  %v308_v7 = vld [vmem:[%s4394_s2 + $0x90] sm:$0xff] }
  0x20   : > { %v1893_v8 = vpack.c.bf16 %v311_v5, %v293_v3  ;;  %v1831_v9 = vpack.c.bf16 %v308_v7, %v290_v6  ;;  %v292_v10 = vld [vmem:[%s4394_s2 + $0x10] sm:$0xff]  ;;  %v310_v11 = vld [vmem:[%s4394_s2 + $0xa0] sm:$0xff]  ;;  %v327_v12 = vld [vmem:[%s4394_s2 + $0x128] sm:$0xff] }
  0x21   : > { %1830 = vmatprep.subr.bf16.mxu0 %v1829_v4  ;;  %v1895_v13 = vpack.c.bf16 %v310_v11, %v292_v10  ;;  %v345_v14 = vld [vmem:[%s4394_s2 + $0x1b8] sm:$0xff]  ;;  %v347_v16 = vld [vmem:[%s4394_s2 + $0x1c8] sm:$0xff]  ;;  %v326_v19 = vld [vmem:[%s4394_s2 + $0x120] sm:$0xff] }
  0x22   : > { %v329_v15 = vld [vmem:[%s4394_s2 + $0x138] sm:$0xff]  ;;  %1894 = vmatprep.subr.bf16.mxu1 %v1893_v8  ;;  %1832 = vmatpush1.bf16.msra.mxu0 %v1831_v9  ;;  %v1833_v17 = vpack.c.bf16 %v345_v14, %v327_v12  ;;  %v344_v20 = vld [vmem:[%s4394_s2 + $0x1b0] sm:$0xff]  ;;  %v346_v23 = vld [vmem:[%s4394_s2 + $0x1c0] sm:$0xff] }
  0x23   : > { %v1897_v18 = vpack.c.bf16 %v347_v16, %v329_v15  ;;  %v328_v21 = vld [vmem:[%s4394_s2 + $0x130] sm:$0xff]  ;;  %1896 = vmatpush1.bf16.msra.mxu1 %v1895_v13  ;;  %v1835_v22 = vpack.c.bf16 %v344_v20, %v326_v19  ;;  %v363_v24 = vld [vmem:[%s4394_s2 + $0x248] sm:$0xff]  ;;  %v381_v25 = vld [vmem:[%s4394_s2 + $0x2d8] sm:$0xff] }
  0x24   : > { %1834 = vmatprep.subr.bf16.mxu0 %v1833_v17  ;;  %v1899_v26 = vpack.c.bf16 %v346_v23, %v328_v21  ;;  %v1837_v27 = vpack.c.bf16 %v381_v25, %v363_v24  ;;  %v365_v28 = vld [vmem:[%s4394_s2 + $0x258] sm:$0xff]  ;;  %v383_v29 = vld [vmem:[%s4394_s2 + $0x2e8] sm:$0xff]  ;;  %v362_v30 = vld [vmem:[%s4394_s2 + $0x240] sm:$0xff] }
  0x25   : > { %1898 = vmatprep.subr.bf16.mxu1 %v1897_v18  ;;  %v1901_v31 = vpack.c.bf16 %v383_v29, %v365_v28  ;;  %v380_v32 = vld [vmem:[%s4394_s2 + $0x2d0] sm:$0xff]  ;;  %v382_v34 = vld [vmem:[%s4394_s2 + $0x2e0] sm:$0xff]  ;;  %v399_v36 = vld [vmem:[%s4394_s2 + $0x368] sm:$0xff] }
  0x26   : > { %v364_v33 = vld [vmem:[%s4394_s2 + $0x250] sm:$0xff]  ;;  %1836 = vmatpush1.bf16.msra.mxu0 %v1835_v22  ;;  %v1839_v35 = vpack.c.bf16 %v380_v32, %v362_v30  ;;  %v417_v37 = vld [vmem:[%s4394_s2 + $0x3f8] sm:$0xff]  ;;  %v419_v41 = vld [vmem:[%s4394_s2 + $0x408] sm:$0xff] }
  0x27   : > { %v401_v38 = vld [vmem:[%s4394_s2 + $0x378] sm:$0xff]  ;;  %1900 = vmatpush1.bf16.msra.mxu1 %v1899_v26  ;;  %1838 = vmatprep.subr.bf16.mxu0 %v1837_v27  ;;  %v1903_v39 = vpack.c.bf16 %v382_v34, %v364_v33  ;;  %v1841_v40 = vpack.c.bf16 %v417_v37, %v399_v36  ;;  %v398_v42 = vld [vmem:[%s4394_s2 + $0x360] sm:$0xff]  ;;  %v416_v43 = vld [vmem:[%s4394_s2 + $0x3f0] sm:$0xff] }
  0x28   : > { %1902 = vmatprep.subr.bf16.mxu1 %v1901_v31  ;;  %v1905_v44 = vpack.c.bf16 %v419_v41, %v401_v38  ;;  %v400_v45 = vld [vmem:[%s4394_s2 + $0x370] sm:$0xff]  ;;  %v418_v46 = vld [vmem:[%s4394_s2 + $0x400] sm:$0xff]  ;;  %v435_v47 = vld [vmem:[%s4394_s2 + $0x488] sm:$0xff]  ;;  %v1843_v51 = vpack.c.bf16 %v416_v43, %v398_v42 }
  0x29   : > { %v453_v48 = vld [vmem:[%s4394_s2 + $0x518] sm:$0xff]  ;;  %v455_v50 = vld [vmem:[%s4394_s2 + $0x528] sm:$0xff]  ;;  %v1907_v52 = vpack.c.bf16 %v418_v46, %v400_v45  ;;  %v434_v54 = vld [vmem:[%s4394_s2 + $0x480] sm:$0xff] }
  0x2a   : > { %v437_v49 = vld [vmem:[%s4394_s2 + $0x498] sm:$0xff]  ;;  %1840 = vmatpush1.bf16.msra.mxu0 %v1839_v35  ;;  %v1845_v53 = vpack.c.bf16 %v453_v48, %v435_v47  ;;  %v452_v55 = vld [vmem:[%s4394_s2 + $0x510] sm:$0xff]  ;;  %v454_v58 = vld [vmem:[%s4394_s2 + $0x520] sm:$0xff] }
  0x2b   : > { %1904 = vmatpush1.bf16.msra.mxu1 %v1903_v39  ;;  %1842 = vmatprep.subr.bf16.mxu0 %v1841_v40  ;;  %v436_v56 = vld [vmem:[%s4394_s2 + $0x490] sm:$0xff]  ;;  %v1909_v57 = vpack.c.bf16 %v455_v50, %v437_v49  ;;  %v471_v59 = vld [vmem:[%s4394_s2 + $0x5a8] sm:$0xff]  ;;  %v489_v60 = vld [vmem:[%s4394_s2 + $0x638] sm:$0xff]  ;;  %v1847_v63 = vpack.c.bf16 %v452_v55, %v434_v54 }
  0x2c   : > { %1906 = vmatprep.subr.bf16.mxu1 %v1905_v44  ;;  %v473_v61 = vld [vmem:[%s4394_s2 + $0x5b8] sm:$0xff]  ;;  %v491_v62 = vld [vmem:[%s4394_s2 + $0x648] sm:$0xff]  ;;  %v1911_v0 = vpack.c.bf16 %v454_v58, %v436_v56  ;;  %v1849_v1 = vpack.c.bf16 %v489_v60, %v471_v59  ;;  %v470_v2 = vld [vmem:[%s4394_s2 + $0x5a0] sm:$0xff] }
  0x2d   : > { %v488_v3 = vld [vmem:[%s4394_s2 + $0x630] sm:$0xff]  ;;  %v1913_v5 = vpack.c.bf16 %v491_v62, %v473_v61  ;;  %v490_v6 = vld [vmem:[%s4394_s2 + $0x640] sm:$0xff]  ;;  %v507_v7 = vld [vmem:[%s4394_s2 + $0x6c8] sm:$0xff] }
  0x2e   : > { %1844 = vmatpush1.bf16.msra.mxu0 %v1843_v51  ;;  %v472_v4 = vld [vmem:[%s4394_s2 + $0x5b0] sm:$0xff]  ;;  %v525_v8 = vld [vmem:[%s4394_s2 + $0x758] sm:$0xff]  ;;  %v527_v10 = vld [vmem:[%s4394_s2 + $0x768] sm:$0xff]  ;;  %v1851_v11 = vpack.c.bf16 %v488_v3, %v470_v2 }
  0x2f   : > { %1908 = vmatpush1.bf16.msra.mxu1 %v1907_v52  ;;  %1846 = vmatprep.subr.bf16.mxu0 %v1845_v53  ;;  %v509_v9 = vld [vmem:[%s4394_s2 + $0x6d8] sm:$0xff]  ;;  %v1915_v12 = vpack.c.bf16 %v490_v6, %v472_v4  ;;  %v1853_v13 = vpack.c.bf16 %v525_v8, %v507_v7  ;;  %v506_v14 = vld [vmem:[%s4394_s2 + $0x6c0] sm:$0xff]  ;;  %v524_v15 = vld [vmem:[%s4394_s2 + $0x750] sm:$0xff] }
  0x30   : > { %1910 = vmatprep.subr.bf16.mxu1 %v1909_v57  ;;  %v508_v16 = vld [vmem:[%s4394_s2 + $0x6d0] sm:$0xff]  ;;  %v1917_v17 = vpack.c.bf16 %v527_v10, %v509_v9  ;;  %v526_v18 = vld [vmem:[%s4394_s2 + $0x760] sm:$0xff]  ;;  %v543_v19 = vld [vmem:[%s4394_s2 + $0x7e8] sm:$0xff]  ;;  %v1855_v23 = vpack.c.bf16 %v524_v15, %v506_v14 }
  0x31   : > { %v561_v20 = vld [vmem:[%s4394_s2 + $0x878] sm:$0xff]  ;;  %v563_v22 = vld [vmem:[%s4394_s2 + $0x888] sm:$0xff]  ;;  %v1919_v24 = vpack.c.bf16 %v526_v18, %v508_v16  ;;  %v542_v26 = vld [vmem:[%s4394_s2 + $0x7e0] sm:$0xff] }
  0x32   : > { %1848 = vmatpush1.bf16.msra.mxu0 %v1847_v63  ;;  %v545_v21 = vld [vmem:[%s4394_s2 + $0x7f8] sm:$0xff]  ;;  %v1857_v25 = vpack.c.bf16 %v561_v20, %v543_v19  ;;  %v560_v27 = vld [vmem:[%s4394_s2 + $0x870] sm:$0xff]  ;;  %v562_v30 = vld [vmem:[%s4394_s2 + $0x880] sm:$0xff] }
  0x33   : > { %1912 = vmatpush1.bf16.msra.mxu1 %v1911_v0  ;;  %1850 = vmatprep.subr.bf16.mxu0 %v1849_v1  ;;  %v544_v28 = vld [vmem:[%s4394_s2 + $0x7f0] sm:$0xff]  ;;  %v1921_v29 = vpack.c.bf16 %v563_v22, %v545_v21  ;;  %v579_v31 = vld [vmem:[%s4394_s2 + $0x908] sm:$0xff]  ;;  %v597_v32 = vld [vmem:[%s4394_s2 + $0x998] sm:$0xff]  ;;  %v1859_v35 = vpack.c.bf16 %v560_v27, %v542_v26 }
  0x34   : > { %1914 = vmatprep.subr.bf16.mxu1 %v1913_v5  ;;  %v581_v33 = vld [vmem:[%s4394_s2 + $0x918] sm:$0xff]  ;;  %v599_v34 = vld [vmem:[%s4394_s2 + $0x9a8] sm:$0xff]  ;;  %v1923_v36 = vpack.c.bf16 %v562_v30, %v544_v28  ;;  %v1861_v37 = vpack.c.bf16 %v597_v32, %v579_v31  ;;  %v578_v38 = vld [vmem:[%s4394_s2 + $0x900] sm:$0xff] }
  0x35   : > { %v596_v39 = vld [vmem:[%s4394_s2 + $0x990] sm:$0xff]  ;;  %v1925_v41 = vpack.c.bf16 %v599_v34, %v581_v33  ;;  %v598_v42 = vld [vmem:[%s4394_s2 + $0x9a0] sm:$0xff]  ;;  %v615_v43 = vld [vmem:[%s4394_s2 + $0xa28] sm:$0xff] }
  0x36   : > { %1852 = vmatpush1.bf16.msra.mxu0 %v1851_v11  ;;  %v580_v40 = vld [vmem:[%s4394_s2 + $0x910] sm:$0xff]  ;;  %v633_v44 = vld [vmem:[%s4394_s2 + $0xab8] sm:$0xff]  ;;  %v635_v46 = vld [vmem:[%s4394_s2 + $0xac8] sm:$0xff]  ;;  %v1863_v47 = vpack.c.bf16 %v596_v39, %v578_v38 }
  0x37   : > { %1916 = vmatpush1.bf16.msra.mxu1 %v1915_v12  ;;  %1854 = vmatprep.subr.bf16.mxu0 %v1853_v13  ;;  %v617_v45 = vld [vmem:[%s4394_s2 + $0xa38] sm:$0xff]  ;;  %v1927_v48 = vpack.c.bf16 %v598_v42, %v580_v40  ;;  %v1865_v49 = vpack.c.bf16 %v633_v44, %v615_v43  ;;  %v614_v50 = vld [vmem:[%s4394_s2 + $0xa20] sm:$0xff]  ;;  %v632_v51 = vld [vmem:[%s4394_s2 + $0xab0] sm:$0xff] }
  0x38   : > { %1918 = vmatprep.subr.bf16.mxu1 %v1917_v17  ;;  %v616_v52 = vld [vmem:[%s4394_s2 + $0xa30] sm:$0xff]  ;;  %v1929_v53 = vpack.c.bf16 %v635_v46, %v617_v45  ;;  %v634_v54 = vld [vmem:[%s4394_s2 + $0xac0] sm:$0xff]  ;;  %v651_v55 = vld [vmem:[%s4394_s2 + $0xb48] sm:$0xff]  ;;  %v1867_v59 = vpack.c.bf16 %v632_v51, %v614_v50 }
  0x39   : > { %v669_v56 = vld [vmem:[%s4394_s2 + $0xbd8] sm:$0xff]  ;;  %v671_v58 = vld [vmem:[%s4394_s2 + $0xbe8] sm:$0xff]  ;;  %v1931_v60 = vpack.c.bf16 %v634_v54, %v616_v52  ;;  %v650_v62 = vld [vmem:[%s4394_s2 + $0xb40] sm:$0xff] }
  0x3a   : > { %1856 = vmatpush1.bf16.msra.mxu0 %v1855_v23  ;;  %v653_v57 = vld [vmem:[%s4394_s2 + $0xb58] sm:$0xff]  ;;  %v1869_v61 = vpack.c.bf16 %v669_v56, %v651_v55  ;;  %v668_v63 = vld [vmem:[%s4394_s2 + $0xbd0] sm:$0xff]  ;;  %v670_v2 = vld [vmem:[%s4394_s2 + $0xbe0] sm:$0xff] }
  0x3b   : > { %1920 = vmatpush1.bf16.msra.mxu1 %v1919_v24  ;;  %1858 = vmatprep.subr.bf16.mxu0 %v1857_v25  ;;  %v652_v0 = vld [vmem:[%s4394_s2 + $0xb50] sm:$0xff]  ;;  %v1933_v1 = vpack.c.bf16 %v671_v58, %v653_v57  ;;  %v687_v3 = vld [vmem:[%s4394_s2 + $0xc68] sm:$0xff]  ;;  %v705_v4 = vld [vmem:[%s4394_s2 + $0xcf8] sm:$0xff]  ;;  %v1871_v7 = vpack.c.bf16 %v668_v63, %v650_v62 }
  0x3c   : > { %1922 = vmatprep.subr.bf16.mxu1 %v1921_v29  ;;  %v689_v5 = vld [vmem:[%s4394_s2 + $0xc78] sm:$0xff]  ;;  %v707_v6 = vld [vmem:[%s4394_s2 + $0xd08] sm:$0xff]  ;;  %v686_v8 = vld [vmem:[%s4394_s2 + $0xc60] sm:$0xff]  ;;  %v1935_v9 = vpack.c.bf16 %v670_v2, %v652_v0  ;;  %v1873_v10 = vpack.c.bf16 %v705_v4, %v687_v3 }
  0x3d   : > { %v704_v11 = vld [vmem:[%s4394_s2 + $0xcf0] sm:$0xff]  ;;  %v706_v13 = vld [vmem:[%s4394_s2 + $0xd00] sm:$0xff]  ;;  %v1937_v14 = vpack.c.bf16 %v707_v6, %v689_v5  ;;  %v723_v15 = vld [vmem:[%s4394_s2 + $0xd88] sm:$0xff] }
  0x3e   : > { %1860 = vmatpush1.bf16.msra.mxu0 %v1859_v35  ;;  %v688_v12 = vld [vmem:[%s4394_s2 + $0xc70] sm:$0xff]  ;;  %v741_v16 = vld [vmem:[%s4394_s2 + $0xe18] sm:$0xff]  ;;  %v2903_v17 = vld [vmem:[#allocation2 + $0x8] sm:$0xff]  ;;  %v1875_v20 = vpack.c.bf16 %v704_v11, %v686_v8 }
  0x3f   : > { %1924 = vmatpush1.bf16.msra.mxu1 %v1923_v36  ;;  %1862 = vmatprep.subr.bf16.mxu0 %v1861_v37  ;;  %v725_v18 = vld [vmem:[%s4394_s2 + $0xd98] sm:$0xff]  ;;  %v743_v19 = vld [vmem:[%s4394_s2 + $0xe28] sm:$0xff]  ;;  %v1939_v21 = vpack.c.bf16 %v706_v13, %v688_v12  ;;  %v1877_v22 = vpack.c.bf16 %v741_v16, %v723_v15  ;;  %v722_v23 = vld [vmem:[%s4394_s2 + $0xd80] sm:$0xff] }
  0x40   : > { %1926 = vmatprep.subr.bf16.mxu1 %v1925_v41  ;;  %930 = vmatprep.mubr.f32.mxu0 %v2903_v17  ;;  %v740_v24 = vld [vmem:[%s4394_s2 + $0xe10] sm:$0xff]  ;;  %v1941_v26 = vpack.c.bf16 %v743_v19, %v725_v18  ;;  %v742_v27 = vld [vmem:[%s4394_s2 + $0xe20] sm:$0xff]  ;;  %v759_v28 = vld [vmem:[%s4394_s2 + $0xea8] sm:$0xff] }
  0x41   : > { %1001 = vmatprep.mubr.f32.mxu1 %v2903_v17  ;;  %v724_v25 = vld [vmem:[%s4394_s2 + $0xd90] sm:$0xff]  ;;  %v777_v29 = vld [vmem:[%s4394_s2 + $0xf38] sm:$0xff]  ;;  %v779_v31 = vld [vmem:[%s4394_s2 + $0xf48] sm:$0xff]  ;;  %v1879_v32 = vpack.c.bf16 %v740_v24, %v722_v23 }
  0x42   : > { %1864 = vmatpush1.bf16.msra.mxu0 %v1863_v47  ;;  %v761_v30 = vld [vmem:[%s4394_s2 + $0xeb8] sm:$0xff]  ;;  %v1943_v33 = vpack.c.bf16 %v742_v27, %v724_v25  ;;  %v1881_v34 = vpack.c.bf16 %v777_v29, %v759_v28  ;;  %v758_v35 = vld [vmem:[%s4394_s2 + $0xea0] sm:$0xff]  ;;  %v776_v36 = vld [vmem:[%s4394_s2 + $0xf30] sm:$0xff] }
  0x43   : > { %1928 = vmatpush1.bf16.msra.mxu1 %v1927_v48  ;;  %1866 = vmatprep.subr.bf16.mxu0 %v1865_v49  ;;  %v760_v37 = vld [vmem:[%s4394_s2 + $0xeb0] sm:$0xff]  ;;  %v1945_v38 = vpack.c.bf16 %v779_v31, %v761_v30  ;;  %v778_v39 = vld [vmem:[%s4394_s2 + $0xf40] sm:$0xff]  ;;  %v795_v40 = vld [vmem:[%s4394_s2 + $0xfc8] sm:$0xff]  ;;  %v1883_v44 = vpack.c.bf16 %v776_v36, %v758_v35 }
  0x44   : > { %1930 = vmatprep.subr.bf16.mxu1 %v1929_v53  ;;  %v813_v41 = vld [vmem:[%s4394_s2 + $0x1058] sm:$0xff]  ;;  %v815_v43 = vld [vmem:[%s4394_s2 + $0x1068] sm:$0xff]  ;;  %v1947_v45 = vpack.c.bf16 %v778_v39, %v760_v37  ;;  %v794_v47 = vld [vmem:[%s4394_s2 + $0xfc0] sm:$0xff] }
  0x45   : > { %v797_v42 = vld [vmem:[%s4394_s2 + $0xfd8] sm:$0xff]  ;;  %v1885_v46 = vpack.c.bf16 %v813_v41, %v795_v40  ;;  %v812_v48 = vld [vmem:[%s4394_s2 + $0x1050] sm:$0xff]  ;;  %v814_v51 = vld [vmem:[%s4394_s2 + $0x1060] sm:$0xff] }
  0x46   : > { %1868 = vmatpush1.bf16.msra.mxu0 %v1867_v59  ;;  %v796_v49 = vld [vmem:[%s4394_s2 + $0xfd0] sm:$0xff]  ;;  %v1949_v50 = vpack.c.bf16 %v815_v43, %v797_v42  ;;  %v831_v52 = vld [vmem:[%s4394_s2 + $0x10e8] sm:$0xff]  ;;  %v849_v53 = vld [vmem:[%s4394_s2 + $0x1178] sm:$0xff]  ;;  %v1887_v56 = vpack.c.bf16 %v812_v48, %v794_v47 }
  0x47   : > { %1932 = vmatpush1.bf16.msra.mxu1 %v1931_v60  ;;  %1870 = vmatprep.subr.bf16.mxu0 %v1869_v61  ;;  %v833_v54 = vld [vmem:[%s4394_s2 + $0x10f8] sm:$0xff]  ;;  %v851_v55 = vld [vmem:[%s4394_s2 + $0x1188] sm:$0xff]  ;;  %v1951_v57 = vpack.c.bf16 %v814_v51, %v796_v49  ;;  %v1889_v58 = vpack.c.bf16 %v849_v53, %v831_v52  ;;  %v830_v59 = vld [vmem:[%s4394_s2 + $0x10e0] sm:$0xff] }
  0x48   : > { %1934 = vmatprep.subr.bf16.mxu1 %v1933_v1  ;;  %v848_v60 = vld [vmem:[%s4394_s2 + $0x1170] sm:$0xff]  ;;  %v1953_v62 = vpack.c.bf16 %v851_v55, %v833_v54  ;;  %v850_v63 = vld [vmem:[%s4394_s2 + $0x1180] sm:$0xff]  ;;  %v295_v0 = vld [vmem:[%s4394_s2 + $0x28] sm:$0xff] }
  0x49   : > { %v832_v61 = vld [vmem:[%s4394_s2 + $0x10f0] sm:$0xff]  ;;  %v313_v1 = vld [vmem:[%s4394_s2 + $0xb8] sm:$0xff]  ;;  %v315_v3 = vld [vmem:[%s4394_s2 + $0xc8] sm:$0xff]  ;;  %v1891_v4 = vpack.c.bf16 %v848_v60, %v830_v59 }
  0x4a   : > { %1872 = vmatpush1.bf16.msra.mxu0 %v1871_v7  ;;  %v297_v2 = vld [vmem:[%s4394_s2 + $0x38] sm:$0xff]  ;;  %v1955_v5 = vpack.c.bf16 %v850_v63, %v832_v61  ;;  %v1957_v6 = vpack.c.bf16 %v313_v1, %v295_v0  ;;  %v294_v7 = vld [vmem:[%s4394_s2 + $0x20] sm:$0xff]  ;;  %v312_v8 = vld [vmem:[%s4394_s2 + $0xb0] sm:$0xff] }
  0x4b   : > { %1936 = vmatpush1.bf16.msra.mxu1 %v1935_v9  ;;  %1874 = vmatprep.subr.bf16.mxu0 %v1873_v10  ;;  %v296_v9 = vld [vmem:[%s4394_s2 + $0x30] sm:$0xff]  ;;  %v2021_v10 = vpack.c.bf16 %v315_v3, %v297_v2  ;;  %v314_v11 = vld [vmem:[%s4394_s2 + $0xc0] sm:$0xff]  ;;  %v331_v12 = vld [vmem:[%s4394_s2 + $0x148] sm:$0xff]  ;;  %v1959_v18 = vpack.c.bf16 %v312_v8, %v294_v7 }
  0x4c   : > { %1938 = vmatprep.subr.bf16.mxu1 %v1937_v14  ;;  %v349_v13 = vld [vmem:[%s4394_s2 + $0x1d8] sm:$0xff]  ;;  %v351_v15 = vld [vmem:[%s4394_s2 + $0x1e8] sm:$0xff]  ;;  %v3033_v16 = vld [vmem:[#allocation2] sm:$0xff]  ;;  %v2023_v19 = vpack.c.bf16 %v314_v11, %v296_v9 }
  0x4d   : > { %v333_v14 = vld [vmem:[%s4394_s2 + $0x158] sm:$0xff]  ;;  %v332_v23 = vld [vmem:[%s4394_s2 + $0x150] sm:$0xff]  ;;  %v350_v25 = vld [vmem:[%s4394_s2 + $0x1e0] sm:$0xff] }
  0x4e   : > { %1876 = vmatpush1.bf16.msra.mxu0 %v1875_v20  ;;  %v1961_v20 = vpack.c.bf16 %v349_v13, %v331_v12  ;;  %v2025_v24 = vpack.c.bf16 %v351_v15, %v333_v14  ;;  %v385_v27 = vld [vmem:[%s4394_s2 + $0x2f8] sm:$0xff]  ;;  %v387_v29 = vld [vmem:[%s4394_s2 + $0x308] sm:$0xff]  ;;  %v2027_v31 = vpack.c.bf16 %v350_v25, %v332_v23  ;;  %v368_v35 = vld [vmem:[%s4394_s2 + $0x270] sm:$0xff] }
  0x4f   : > { %1940 = vmatpush1.bf16.msra.mxu1 %v1939_v21  ;;  %1878 = vmatprep.subr.bf16.mxu0 %v1877_v22  ;;  %v330_v21 = vld [vmem:[%s4394_s2 + $0x140] sm:$0xff]  ;;  %v348_v22 = vld [vmem:[%s4394_s2 + $0x1d0] sm:$0xff]  ;;  %v369_v28 = vld [vmem:[%s4394_s2 + $0x278] sm:$0xff] }
  0x50   : > { %1942 = vmatprep.subr.bf16.mxu1 %v1941_v26  ;;  %v367_v26 = vld [vmem:[%s4394_s2 + $0x268] sm:$0xff]  ;;  %v1963_v30 = vpack.c.bf16 %v348_v22, %v330_v21  ;;  %v2029_v36 = vpack.c.bf16 %v387_v29, %v369_v28  ;;  %v386_v37 = vld [vmem:[%s4394_s2 + $0x300] sm:$0xff]  ;;  %v421_v39 = vld [vmem:[%s4394_s2 + $0x418] sm:$0xff] }
  0x51   : > { %v405_v40 = vld [vmem:[%s4394_s2 + $0x398] sm:$0xff]  ;;  %v423_v41 = vld [vmem:[%s4394_s2 + $0x428] sm:$0xff]  ;;  %v2031_v43 = vpack.c.bf16 %v386_v37, %v368_v35  ;;  %v404_v47 = vld [vmem:[%s4394_s2 + $0x390] sm:$0xff] }
  0x52   : > { %1880 = vmatpush1.bf16.msra.mxu0 %v1879_v32  ;;  %v1965_v32 = vpack.c.bf16 %v385_v27, %v367_v26  ;;  %v2033_v48 = vpack.c.bf16 %v423_v41, %v405_v40  ;;  %v422_v49 = vld [vmem:[%s4394_s2 + $0x420] sm:$0xff]  ;;  %v457_v51 = vld [vmem:[%s4394_s2 + $0x538] sm:$0xff]  ;;  %v459_v53 = vld [vmem:[%s4394_s2 + $0x548] sm:$0xff] }
  0x53   : > { %1944 = vmatpush1.bf16.msra.mxu1 %v1943_v33  ;;  %1882 = vmatprep.subr.bf16.mxu0 %v1881_v34  ;;  %v366_v33 = vld [vmem:[%s4394_s2 + $0x260] sm:$0xff]  ;;  %v384_v34 = vld [vmem:[%s4394_s2 + $0x2f0] sm:$0xff]  ;;  %v441_v52 = vld [vmem:[%s4394_s2 + $0x4b8] sm:$0xff]  ;;  %v2035_v55 = vpack.c.bf16 %v422_v49, %v404_v47 }
  0x54   : > { %1946 = vmatprep.subr.bf16.mxu1 %v1945_v38  ;;  %v403_v38 = vld [vmem:[%s4394_s2 + $0x388] sm:$0xff]  ;;  %v1967_v42 = vpack.c.bf16 %v384_v34, %v366_v33  ;;  %v440_v59 = vld [vmem:[%s4394_s2 + $0x4b0] sm:$0xff]  ;;  %v2037_v60 = vpack.c.bf16 %v459_v53, %v441_v52  ;;  %v458_v61 = vld [vmem:[%s4394_s2 + $0x540] sm:$0xff] }
  0x55   : > { %v493_v63 = vld [vmem:[%s4394_s2 + $0x658] sm:$0xff]  ;;  %v495_v1 = vld [vmem:[%s4394_s2 + $0x668] sm:$0xff]  ;;  %v2039_v3 = vpack.c.bf16 %v458_v61, %v440_v59  ;;  %v476_v7 = vld [vmem:[%s4394_s2 + $0x5d0] sm:$0xff] }
  0x56   : > { %1884 = vmatpush1.bf16.msra.mxu0 %v1883_v44  ;;  %v1969_v44 = vpack.c.bf16 %v421_v39, %v403_v38  ;;  %v477_v0 = vld [vmem:[%s4394_s2 + $0x5d8] sm:$0xff]  ;;  %v494_v9 = vld [vmem:[%s4394_s2 + $0x660] sm:$0xff]  ;;  %v531_v13 = vld [vmem:[%s4394_s2 + $0x788] sm:$0xff] }
  0x57   : > { %1948 = vmatpush1.bf16.msra.mxu1 %v1947_v45  ;;  %1886 = vmatprep.subr.bf16.mxu0 %v1885_v46  ;;  %v402_v45 = vld [vmem:[%s4394_s2 + $0x380] sm:$0xff]  ;;  %v420_v46 = vld [vmem:[%s4394_s2 + $0x410] sm:$0xff]  ;;  %v2041_v8 = vpack.c.bf16 %v495_v1, %v477_v0  ;;  %v529_v11 = vld [vmem:[%s4394_s2 + $0x778] sm:$0xff]  ;;  %v2043_v15 = vpack.c.bf16 %v494_v9, %v476_v7 }
  0x58   : > { %1950 = vmatprep.subr.bf16.mxu1 %v1949_v50  ;;  %v439_v50 = vld [vmem:[%s4394_s2 + $0x4a8] sm:$0xff]  ;;  %v1971_v54 = vpack.c.bf16 %v420_v46, %v402_v45  ;;  %v513_v12 = vld [vmem:[%s4394_s2 + $0x6f8] sm:$0xff]  ;;  %v512_v21 = vld [vmem:[%s4394_s2 + $0x6f0] sm:$0xff] }
  0x59   : > { %v2045_v22 = vpack.c.bf16 %v531_v13, %v513_v12  ;;  %v530_v23 = vld [vmem:[%s4394_s2 + $0x780] sm:$0xff]  ;;  %v565_v25 = vld [vmem:[%s4394_s2 + $0x898] sm:$0xff]  ;;  %v567_v27 = vld [vmem:[%s4394_s2 + $0x8a8] sm:$0xff] }
  0x5a   : > { %1888 = vmatpush1.bf16.msra.mxu0 %v1887_v56  ;;  %v1973_v56 = vpack.c.bf16 %v457_v51, %v439_v50  ;;  %v549_v26 = vld [vmem:[%s4394_s2 + $0x818] sm:$0xff]  ;;  %v2047_v29 = vpack.c.bf16 %v530_v23, %v512_v21  ;;  %v548_v33 = vld [vmem:[%s4394_s2 + $0x810] sm:$0xff]  ;;  %v566_v35 = vld [vmem:[%s4394_s2 + $0x8a0] sm:$0xff] }
  0x5b   : > { %1952 = vmatpush1.bf16.msra.mxu1 %v1951_v57  ;;  %1890 = vmatprep.subr.bf16.mxu0 %v1889_v58  ;;  %v438_v57 = vld [vmem:[%s4394_s2 + $0x4a0] sm:$0xff]  ;;  %v456_v58 = vld [vmem:[%s4394_s2 + $0x530] sm:$0xff]  ;;  %v2049_v34 = vpack.c.bf16 %v567_v27, %v549_v26  ;;  %v601_v37 = vld [vmem:[%s4394_s2 + $0x9b8] sm:$0xff]  ;;  %v2051_v41 = vpack.c.bf16 %v566_v35, %v548_v33 }
  0x5c   : > { %1954 = vmatprep.subr.bf16.mxu1 %v1953_v62  ;;  %v475_v62 = vld [vmem:[%s4394_s2 + $0x5c8] sm:$0xff]  ;;  %v1975_v2 = vpack.c.bf16 %v456_v58, %v438_v57  ;;  %v585_v38 = vld [vmem:[%s4394_s2 + $0x938] sm:$0xff]  ;;  %v584_v45 = vld [vmem:[%s4394_s2 + $0x930] sm:$0xff] }
  0x5d   : > { %v603_v39 = vld [vmem:[%s4394_s2 + $0x9c8] sm:$0xff]  ;;  %v602_v47 = vld [vmem:[%s4394_s2 + $0x9c0] sm:$0xff]  ;;  %v637_v49 = vld [vmem:[%s4394_s2 + $0xad8] sm:$0xff] }
  0x5e   : > { %1892 = vmatpush1.bf16.msra.mxu0 %v1891_v4  ;;  %v1977_v4 = vpack.c.bf16 %v493_v63, %v475_v62  ;;  %v2053_v46 = vpack.c.bf16 %v603_v39, %v585_v38  ;;  %v621_v50 = vld [vmem:[%s4394_s2 + $0xa58] sm:$0xff]  ;;  %v639_v51 = vld [vmem:[%s4394_s2 + $0xae8] sm:$0xff]  ;;  %v2055_v53 = vpack.c.bf16 %v602_v47, %v584_v45  ;;  %v620_v57 = vld [vmem:[%s4394_s2 + $0xa50] sm:$0xff] }
  0x5f   : > { %1956 = vmatpush1.bf16.msra.mxu1 %v1955_v5  ;;  %1958 = vmatprep.subr.bf16.mxu0 %v1957_v6  ;;  %v474_v5 = vld [vmem:[%s4394_s2 + $0x5c0] sm:$0xff]  ;;  %v492_v6 = vld [vmem:[%s4394_s2 + $0x650] sm:$0xff]  ;;  %v2057_v58 = vpack.c.bf16 %v639_v51, %v621_v50  ;;  %v673_v61 = vld [vmem:[%s4394_s2 + $0xbf8] sm:$0xff] }
  0x60   : > { %2022 = vmatprep.subr.bf16.mxu1 %v2021_v10  ;;  %v511_v10 = vld [vmem:[%s4394_s2 + $0x6e8] sm:$0xff]  ;;  %v1979_v14 = vpack.c.bf16 %v492_v6, %v474_v5  ;;  %v638_v59 = vld [vmem:[%s4394_s2 + $0xae0] sm:$0xff]  ;;  %v657_v62 = vld [vmem:[%s4394_s2 + $0xb78] sm:$0xff] }
  0x61   : > { %931 = vmatmul.mubr.f32.vlgmr.msra.gmra.mrb[0].mxu0 %v3033_v16  ;;  %v675_v63 = vld [vmem:[%s4394_s2 + $0xc08] sm:$0xff]  ;;  %v2059_v1 = vpack.c.bf16 %v638_v59, %v620_v57  ;;  %v656_v5 = vld [vmem:[%s4394_s2 + $0xb70] sm:$0xff]  ;;  %v674_v7 = vld [vmem:[%s4394_s2 + $0xc00] sm:$0xff] }
  0x62   : > { %1002 = vmatmul.mubr.f32.vlgmr.msra.gmra.mrb[0].mxu1 %v3033_v16  ;;  %1960 = vmatpush1.bf16.msra.mxu0 %v1959_v18  ;;  %v1981_v18 = vpack.c.bf16 %v529_v11, %v511_v10  ;;  %v2061_v6 = vpack.c.bf16 %v675_v63, %v657_v62  ;;  %v709_v9 = vld [vmem:[%s4394_s2 + $0xd18] sm:$0xff]  ;;  %v711_v11 = vld [vmem:[%s4394_s2 + $0xd28] sm:$0xff]  ;;  %v2063_v13 = vpack.c.bf16 %v674_v7, %v656_v5  ;;  %v710_v21 = vld [vmem:[%s4394_s2 + $0xd20] sm:$0xff] }
  0x63   : > { %2024 = vmatpush1.bf16.msra.mxu1 %v2023_v19  ;;  %1962 = vmatprep.subr.bf16.mxu0 %v1961_v20  ;;  %v510_v19 = vld [vmem:[%s4394_s2 + $0x6e0] sm:$0xff]  ;;  %v528_v20 = vld [vmem:[%s4394_s2 + $0x770] sm:$0xff]  ;;  %v693_v10 = vld [vmem:[%s4394_s2 + $0xc98] sm:$0xff] }
  0x64   : > { %2026 = vmatprep.subr.bf16.mxu1 %v2025_v24  ;;  %1072 = vmatprep.mubr.f32.mxu0 %v2903_v17  ;;  %v547_v24 = vld [vmem:[%s4394_s2 + $0x808] sm:$0xff]  ;;  %v1983_v28 = vpack.c.bf16 %v528_v20, %v510_v19  ;;  %v692_v19 = vld [vmem:[%s4394_s2 + $0xc90] sm:$0xff]  ;;  %v2065_v20 = vpack.c.bf16 %v711_v11, %v693_v10  ;;  %v745_v23 = vld [vmem:[%s4394_s2 + $0xe38] sm:$0xff] }
  0x65   : > { %1143 = vmatprep.mubr.f32.mxu1 %v2903_v17  ;;  %v2067_v27 = vpack.c.bf16 %v710_v21, %v692_v19  ;;  %v746_v33 = vld [vmem:[%s4394_s2 + $0xe40] sm:$0xff]  ;;  %v781_v35 = vld [vmem:[%s4394_s2 + $0xf58] sm:$0xff] }
  0x66   : > { %1964 = vmatpush1.bf16.msra.mxu0 %v1963_v30  ;;  %v1985_v30 = vpack.c.bf16 %v565_v25, %v547_v24  ;;  %v729_v24 = vld [vmem:[%s4394_s2 + $0xdb8] sm:$0xff]  ;;  %v747_v25 = vld [vmem:[%s4394_s2 + $0xe48] sm:$0xff]  ;;  %v782_v45 = vld [vmem:[%s4394_s2 + $0xf60] sm:$0xff] }
  0x67   : > { %2028 = vmatpush1.bf16.msra.mxu1 %v2027_v31  ;;  %1966 = vmatprep.subr.bf16.mxu0 %v1965_v32  ;;  %v546_v31 = vld [vmem:[%s4394_s2 + $0x800] sm:$0xff]  ;;  %v564_v32 = vld [vmem:[%s4394_s2 + $0x890] sm:$0xff]  ;;  %v817_v47 = vld [vmem:[%s4394_s2 + $0x1078] sm:$0xff] }
  0x68   : > { %2030 = vmatprep.subr.bf16.mxu1 %v2029_v36  ;;  %v583_v36 = vld [vmem:[%s4394_s2 + $0x928] sm:$0xff]  ;;  %v1987_v40 = vpack.c.bf16 %v564_v32, %v546_v31  ;;  %v728_v31 = vld [vmem:[%s4394_s2 + $0xdb0] sm:$0xff]  ;;  %v2069_v32 = vpack.c.bf16 %v747_v25, %v729_v24  ;;  %v818_v57 = vld [vmem:[%s4394_s2 + $0x1080] sm:$0xff] }
  0x69   : > { %v2071_v39 = vpack.c.bf16 %v746_v33, %v728_v31  ;;  %v853_v59 = vld [vmem:[%s4394_s2 + $0x1198] sm:$0xff]  ;;  %v854_v5 = vld [vmem:[%s4394_s2 + $0x11a0] sm:$0xff] }
  0x6a   : > { %1968 = vmatpush1.bf16.msra.mxu0 %v1967_v42  ;;  %v1989_v42 = vpack.c.bf16 %v601_v37, %v583_v36  ;;  %v765_v36 = vld [vmem:[%s4394_s2 + $0xed8] sm:$0xff]  ;;  %v783_v37 = vld [vmem:[%s4394_s2 + $0xf68] sm:$0xff]  ;;  %v318_v19 = vld [vmem:[%s4394_s2 + $0xe0] sm:$0xff] }
  0x6b   : > { %2032 = vmatpush1.bf16.msra.mxu1 %v2031_v43  ;;  %1970 = vmatprep.subr.bf16.mxu0 %v1969_v44  ;;  %v582_v43 = vld [vmem:[%s4394_s2 + $0x920] sm:$0xff]  ;;  %v600_v44 = vld [vmem:[%s4394_s2 + $0x9b0] sm:$0xff]  ;;  %v317_v7 = vld [vmem:[%s4394_s2 + $0xd8] sm:$0xff] }
  0x6c   : > { %2034 = vmatprep.subr.bf16.mxu1 %v2033_v48  ;;  %v619_v48 = vld [vmem:[%s4394_s2 + $0xa48] sm:$0xff]  ;;  %v1991_v52 = vpack.c.bf16 %v600_v44, %v582_v43  ;;  %v764_v43 = vld [vmem:[%s4394_s2 + $0xed0] sm:$0xff]  ;;  %v2073_v44 = vpack.c.bf16 %v783_v37, %v765_v36  ;;  %v353_v21 = vld [vmem:[%s4394_s2 + $0x1f8] sm:$0xff] }
  0x6d   : > { %v2075_v51 = vpack.c.bf16 %v782_v45, %v764_v43  ;;  %v354_v31 = vld [vmem:[%s4394_s2 + $0x200] sm:$0xff]  ;;  %v389_v33 = vld [vmem:[%s4394_s2 + $0x318] sm:$0xff]  ;;  %v407_v43 = vld [vmem:[%s4394_s2 + $0x3a8] sm:$0xff] }
  0x6e   : > { %1972 = vmatpush1.bf16.msra.mxu0 %v1971_v54  ;;  %v1993_v54 = vpack.c.bf16 %v637_v49, %v619_v48  ;;  %v801_v48 = vld [vmem:[%s4394_s2 + $0xff8] sm:$0xff]  ;;  %v819_v49 = vld [vmem:[%s4394_s2 + $0x1088] sm:$0xff] }
  0x6f   : > { %2036 = vmatpush1.bf16.msra.mxu1 %v2035_v55  ;;  %1974 = vmatprep.subr.bf16.mxu0 %v1973_v56  ;;  %v618_v55 = vld [vmem:[%s4394_s2 + $0xa40] sm:$0xff]  ;;  %v636_v56 = vld [vmem:[%s4394_s2 + $0xad0] sm:$0xff]  ;;  %v409_v45 = vld [vmem:[%s4394_s2 + $0x3b8] sm:$0xff] }
  0x70   : > { %2038 = vmatprep.subr.bf16.mxu1 %v2037_v60  ;;  %v655_v60 = vld [vmem:[%s4394_s2 + $0xb68] sm:$0xff]  ;;  %v1995_v0 = vpack.c.bf16 %v636_v56, %v618_v55  ;;  %v800_v55 = vld [vmem:[%s4394_s2 + $0xff0] sm:$0xff]  ;;  %v2077_v56 = vpack.c.bf16 %v819_v49, %v801_v48 }
  0x71   : > { %v2079_v63 = vpack.c.bf16 %v818_v57, %v800_v55  ;;  %v461_v55 = vld [vmem:[%s4394_s2 + $0x558] sm:$0xff]  ;;  %v463_v57 = vld [vmem:[%s4394_s2 + $0x568] sm:$0xff] }
  0x72   : > { %1976 = vmatpush1.bf16.msra.mxu0 %v1975_v2  ;;  %v1997_v2 = vpack.c.bf16 %v673_v61, %v655_v60  ;;  %v837_v60 = vld [vmem:[%s4394_s2 + $0x1118] sm:$0xff]  ;;  %v855_v61 = vld [vmem:[%s4394_s2 + $0x11a8] sm:$0xff] }
  0x73   : > { %2040 = vmatpush1.bf16.msra.mxu1 %v2039_v3  ;;  %1978 = vmatprep.subr.bf16.mxu0 %v1977_v4  ;;  %v654_v3 = vld [vmem:[%s4394_s2 + $0xb60] sm:$0xff]  ;;  %v672_v4 = vld [vmem:[%s4394_s2 + $0xbf0] sm:$0xff] }
  0x74   : > { %2042 = vmatprep.subr.bf16.mxu1 %v2041_v8  ;;  %v691_v8 = vld [vmem:[%s4394_s2 + $0xc88] sm:$0xff]  ;;  %v1999_v12 = vpack.c.bf16 %v672_v4, %v654_v3  ;;  %v836_v3 = vld [vmem:[%s4394_s2 + $0x1110] sm:$0xff]  ;;  %v2081_v4 = vpack.c.bf16 %v855_v61, %v837_v60  ;;  %v442_v61 = vld [vmem:[%s4394_s2 + $0x4c0] sm:$0xff] }
  0x75   : > { %v2083_v11 = vpack.c.bf16 %v854_v5, %v836_v3  ;;  %v497_v3 = vld [vmem:[%s4394_s2 + $0x678] sm:$0xff]  ;;  %v499_v5 = vld [vmem:[%s4394_s2 + $0x688] sm:$0xff] }
  0x76   : > { %1980 = vmatpush1.bf16.msra.mxu0 %v1979_v14  ;;  %v2001_v14 = vpack.c.bf16 %v709_v9, %v691_v8  ;;  %v301_v8 = vld [vmem:[%s4394_s2 + $0x58] sm:$0xff]  ;;  %v319_v9 = vld [vmem:[%s4394_s2 + $0xe8] sm:$0xff] }
  0x77   : > { %2044 = vmatpush1.bf16.msra.mxu1 %v2043_v15  ;;  %1982 = vmatprep.subr.bf16.mxu0 %v1981_v18  ;;  %v690_v15 = vld [vmem:[%s4394_s2 + $0xc80] sm:$0xff]  ;;  %v708_v18 = vld [vmem:[%s4394_s2 + $0xd10] sm:$0xff] }
  0x78   : > { %2046 = vmatprep.subr.bf16.mxu1 %v2045_v22  ;;  %v727_v22 = vld [vmem:[%s4394_s2 + $0xda8] sm:$0xff]  ;;  %v2003_v26 = vpack.c.bf16 %v708_v18, %v690_v15  ;;  %v300_v15 = vld [vmem:[%s4394_s2 + $0x50] sm:$0xff]  ;;  %v2149_v18 = vpack.c.bf16 %v319_v9, %v301_v8  ;;  %v478_v9 = vld [vmem:[%s4394_s2 + $0x5e0] sm:$0xff] }
  0x79   : > { %v2151_v25 = vpack.c.bf16 %v318_v19, %v300_v15  ;;  %v533_v15 = vld [vmem:[%s4394_s2 + $0x798] sm:$0xff]  ;;  %v535_v19 = vld [vmem:[%s4394_s2 + $0x7a8] sm:$0xff] }
  0x7a   : > { %1984 = vmatpush1.bf16.msra.mxu0 %v1983_v28  ;;  %v2005_v28 = vpack.c.bf16 %v745_v23, %v727_v22  ;;  %v337_v22 = vld [vmem:[%s4394_s2 + $0x178] sm:$0xff]  ;;  %v355_v23 = vld [vmem:[%s4394_s2 + $0x208] sm:$0xff] }
  0x7b   : > { %2048 = vmatpush1.bf16.msra.mxu1 %v2047_v29  ;;  %1986 = vmatprep.subr.bf16.mxu0 %v1985_v30  ;;  %v726_v29 = vld [vmem:[%s4394_s2 + $0xda0] sm:$0xff]  ;;  %v744_v30 = vld [vmem:[%s4394_s2 + $0xe30] sm:$0xff] }
  0x7c   : > { %2050 = vmatprep.subr.bf16.mxu1 %v2049_v34  ;;  %v763_v34 = vld [vmem:[%s4394_s2 + $0xec8] sm:$0xff]  ;;  %v2007_v38 = vpack.c.bf16 %v744_v30, %v726_v29  ;;  %v336_v29 = vld [vmem:[%s4394_s2 + $0x170] sm:$0xff]  ;;  %v2153_v30 = vpack.c.bf16 %v355_v23, %v337_v22  ;;  %v514_v23 = vld [vmem:[%s4394_s2 + $0x700] sm:$0xff] }
  0x7d   : > { %v2155_v37 = vpack.c.bf16 %v354_v31, %v336_v29  ;;  %v569_v29 = vld [vmem:[%s4394_s2 + $0x8b8] sm:$0xff]  ;;  %v571_v31 = vld [vmem:[%s4394_s2 + $0x8c8] sm:$0xff] }
  0x7e   : > { %1988 = vmatpush1.bf16.msra.mxu0 %v1987_v40  ;;  %v2009_v40 = vpack.c.bf16 %v781_v35, %v763_v34  ;;  %v373_v34 = vld [vmem:[%s4394_s2 + $0x298] sm:$0xff]  ;;  %v391_v35 = vld [vmem:[%s4394_s2 + $0x328] sm:$0xff] }
  0x7f   : > { %2052 = vmatpush1.bf16.msra.mxu1 %v2051_v41  ;;  %1990 = vmatprep.subr.bf16.mxu0 %v1989_v42  ;;  %v762_v41 = vld [vmem:[%s4394_s2 + $0xec0] sm:$0xff]  ;;  %v780_v42 = vld [vmem:[%s4394_s2 + $0xf50] sm:$0xff] }
  0x80   : > { %2054 = vmatprep.subr.bf16.mxu1 %v2053_v46  ;;  %v799_v46 = vld [vmem:[%s4394_s2 + $0xfe8] sm:$0xff]  ;;  %v2011_v50 = vpack.c.bf16 %v780_v42, %v762_v41  ;;  %v372_v41 = vld [vmem:[%s4394_s2 + $0x290] sm:$0xff]  ;;  %v390_v42 = vld [vmem:[%s4394_s2 + $0x320] sm:$0xff] }
  0x81   : > { %v2159_v48 = vpack.c.bf16 %v390_v42, %v372_v41  ;;  %v605_v41 = vld [vmem:[%s4394_s2 + $0x9d8] sm:$0xff]  ;;  %v607_v42 = vld [vmem:[%s4394_s2 + $0x9e8] sm:$0xff] }
  0x82   : > { %1992 = vmatpush1.bf16.msra.mxu0 %v1991_v52  ;;  %v2013_v52 = vpack.c.bf16 %v817_v47, %v799_v46  ;;  %v427_v46 = vld [vmem:[%s4394_s2 + $0x448] sm:$0xff] }
  0x83   : > { %2056 = vmatpush1.bf16.msra.mxu1 %v2055_v53  ;;  %1994 = vmatprep.subr.bf16.mxu0 %v1993_v54  ;;  %v798_v53 = vld [vmem:[%s4394_s2 + $0xfe0] sm:$0xff]  ;;  %v816_v54 = vld [vmem:[%s4394_s2 + $0x1070] sm:$0xff] }
  0x84   : > { %2058 = vmatprep.subr.bf16.mxu1 %v2057_v58  ;;  %v835_v58 = vld [vmem:[%s4394_s2 + $0x1108] sm:$0xff]  ;;  %v2015_v62 = vpack.c.bf16 %v816_v54, %v798_v53  ;;  %v426_v53 = vld [vmem:[%s4394_s2 + $0x440] sm:$0xff] }
  0x85   : > { %v443_v54 = vld [vmem:[%s4394_s2 + $0x4c8] sm:$0xff] }
  0x86   : > { %1996 = vmatpush1.bf16.msra.mxu0 %v1995_v0  ;;  %v2017_v0 = vpack.c.bf16 %v853_v59, %v835_v58  ;;  %v2101_v60 = vpack.c.bf16 %v461_v55, %v443_v54 }
  0x87   : > { %2060 = vmatpush1.bf16.msra.mxu1 %v2059_v1  ;;  %1998 = vmatprep.subr.bf16.mxu0 %v1997_v2  ;;  %v834_v1 = vld [vmem:[%s4394_s2 + $0x1100] sm:$0xff]  ;;  %v852_v2 = vld [vmem:[%s4394_s2 + $0x1190] sm:$0xff] }
  0x88   : > { %2062 = vmatprep.subr.bf16.mxu1 %v2061_v6  ;;  %v299_v6 = vld [vmem:[%s4394_s2 + $0x48] sm:$0xff]  ;;  %v2019_v10 = vpack.c.bf16 %v852_v2, %v834_v1  ;;  %v462_v1 = vld [vmem:[%s4394_s2 + $0x560] sm:$0xff] }
  0x89   : > { %v479_v2 = vld [vmem:[%s4394_s2 + $0x5e8] sm:$0xff] }
  0x8a   : > { %2000 = vmatpush1.bf16.msra.mxu0 %v1999_v12  ;;  %v2085_v12 = vpack.c.bf16 %v317_v7, %v299_v6  ;;  %v2105_v8 = vpack.c.bf16 %v497_v3, %v479_v2 }
  0x8b   : > { %2064 = vmatpush1.bf16.msra.mxu1 %v2063_v13  ;;  %2002 = vmatprep.subr.bf16.mxu0 %v2001_v14  ;;  %v298_v13 = vld [vmem:[%s4394_s2 + $0x40] sm:$0xff]  ;;  %v316_v14 = vld [vmem:[%s4394_s2 + $0xd0] sm:$0xff] }
  0x8c   : > { %2066 = vmatprep.subr.bf16.mxu1 %v2065_v20  ;;  %v335_v20 = vld [vmem:[%s4394_s2 + $0x168] sm:$0xff]  ;;  %v2087_v24 = vpack.c.bf16 %v316_v14, %v298_v13  ;;  %v498_v13 = vld [vmem:[%s4394_s2 + $0x680] sm:$0xff] }
  0x8d   : > { %v515_v14 = vld [vmem:[%s4394_s2 + $0x708] sm:$0xff] }
  0x8e   : > { %2004 = vmatpush1.bf16.msra.mxu0 %v2003_v26  ;;  %v2089_v26 = vpack.c.bf16 %v353_v21, %v335_v20  ;;  %v2109_v22 = vpack.c.bf16 %v533_v15, %v515_v14 }
  0x8f   : > { %2068 = vmatpush1.bf16.msra.mxu1 %v2067_v27  ;;  %2006 = vmatprep.subr.bf16.mxu0 %v2005_v28  ;;  %v334_v27 = vld [vmem:[%s4394_s2 + $0x160] sm:$0xff]  ;;  %v352_v28 = vld [vmem:[%s4394_s2 + $0x1f0] sm:$0xff] }
  0x90   : > { %2070 = vmatprep.subr.bf16.mxu1 %v2069_v32  ;;  %v371_v32 = vld [vmem:[%s4394_s2 + $0x288] sm:$0xff]  ;;  %v2091_v36 = vpack.c.bf16 %v352_v28, %v334_v27  ;;  %v534_v27 = vld [vmem:[%s4394_s2 + $0x7a0] sm:$0xff] }
  0x91   : > { %v551_v28 = vld [vmem:[%s4394_s2 + $0x828] sm:$0xff] }
  0x92   : > { %2008 = vmatpush1.bf16.msra.mxu0 %v2007_v38  ;;  %v2093_v38 = vpack.c.bf16 %v389_v33, %v371_v32 }
  0x93   : > { %2072 = vmatpush1.bf16.msra.mxu1 %v2071_v39  ;;  %2010 = vmatprep.subr.bf16.mxu0 %v2009_v40  ;;  %v370_v39 = vld [vmem:[%s4394_s2 + $0x280] sm:$0xff]  ;;  %v388_v40 = vld [vmem:[%s4394_s2 + $0x310] sm:$0xff] }
  0x94   : > { %2074 = vmatprep.subr.bf16.mxu1 %v2073_v44  ;;  %v425_v44 = vld [vmem:[%s4394_s2 + $0x438] sm:$0xff]  ;;  %v2095_v47 = vpack.c.bf16 %v388_v40, %v370_v39  ;;  %v570_v39 = vld [vmem:[%s4394_s2 + $0x8c0] sm:$0xff]  ;;  %v587_v40 = vld [vmem:[%s4394_s2 + $0x948] sm:$0xff] }
  0x95   : > { %v2097_v49 = vpack.c.bf16 %v425_v44, %v407_v43 }
  0x96   : > { %2012 = vmatpush1.bf16.msra.mxu0 %v2011_v50  ;;  %v406_v50 = vld [vmem:[%s4394_s2 + $0x3a0] sm:$0xff] }
  0x97   : > { %2076 = vmatpush1.bf16.msra.mxu1 %v2075_v51  ;;  %2014 = vmatprep.subr.bf16.mxu0 %v2013_v52  ;;  %v424_v51 = vld [vmem:[%s4394_s2 + $0x430] sm:$0xff] }
  0x98   : > { %2078 = vmatprep.subr.bf16.mxu1 %v2077_v56  ;;  %v408_v52 = vld [vmem:[%s4394_s2 + $0x3b0] sm:$0xff]  ;;  %v445_v56 = vld [vmem:[%s4394_s2 + $0x4d8] sm:$0xff]  ;;  %v2099_v58 = vpack.c.bf16 %v424_v51, %v406_v50  ;;  %v606_v50 = vld [vmem:[%s4394_s2 + $0x9e0] sm:$0xff] }
  0x99   : > { %v2163_v59 = vpack.c.bf16 %v426_v53, %v408_v52  ;;  %v623_v51 = vld [vmem:[%s4394_s2 + $0xa68] sm:$0xff]  ;;  %v641_v52 = vld [vmem:[%s4394_s2 + $0xaf8] sm:$0xff] }
  0x9a   : > { %2016 = vmatpush1.bf16.msra.mxu0 %v2015_v62  ;;  %v460_v62 = vld [vmem:[%s4394_s2 + $0x550] sm:$0xff]  ;;  %v643_v53 = vld [vmem:[%s4394_s2 + $0xb08] sm:$0xff] }
  0x9b   : > { %2080 = vmatpush1.bf16.msra.mxu1 %v2079_v63  ;;  %2018 = vmatprep.subr.bf16.mxu0 %v2017_v0  ;;  %v444_v63 = vld [vmem:[%s4394_s2 + $0x4d0] sm:$0xff]  ;;  %v2165_v0 = vpack.c.bf16 %v463_v57, %v445_v56  ;;  %v2103_v6 = vpack.c.bf16 %v460_v62, %v442_v61  ;;  %v2121_v56 = vpack.c.bf16 %v641_v52, %v623_v51  ;;  %v622_v57 = vld [vmem:[%s4394_s2 + $0xa60] sm:$0xff]  ;;  %v659_v62 = vld [vmem:[%s4394_s2 + $0xb88] sm:$0xff] }
  0x9c   : > { %2082 = vmatprep.subr.bf16.mxu1 %v2081_v4  ;;  %v481_v4 = vld [vmem:[%s4394_s2 + $0x5f8] sm:$0xff]  ;;  %v2167_v7 = vpack.c.bf16 %v462_v1, %v444_v63  ;;  %v642_v61 = vld [vmem:[%s4394_s2 + $0xb00] sm:$0xff]  ;;  %v679_v1 = vld [vmem:[%s4394_s2 + $0xc28] sm:$0xff] }
  0x9d   : > { %v677_v63 = vld [vmem:[%s4394_s2 + $0xc18] sm:$0xff] }
  0x9e   : > { %2020 = vmatpush1.bf16.msra.mxu0 %v2019_v10  ;;  %v496_v10 = vld [vmem:[%s4394_s2 + $0x670] sm:$0xff] }
  0x9f   : > { %2084 = vmatpush1.bf16.msra.mxu1 %v2083_v11  ;;  %2086 = vmatprep.subr.bf16.mxu0 %v2085_v12  ;;  %v480_v11 = vld [vmem:[%s4394_s2 + $0x5f0] sm:$0xff]  ;;  %v2169_v12 = vpack.c.bf16 %v499_v5, %v481_v4  ;;  %v2107_v20 = vpack.c.bf16 %v496_v10, %v478_v9  ;;  %v2125_v4 = vpack.c.bf16 %v677_v63, %v659_v62  ;;  %v658_v5 = vld [vmem:[%s4394_s2 + $0xb80] sm:$0xff]  ;;  %v695_v10 = vld [vmem:[%s4394_s2 + $0xca8] sm:$0xff] }
  0xa0   : > { %2150 = vmatprep.subr.bf16.mxu1 %v2149_v18  ;;  %v517_v18 = vld [vmem:[%s4394_s2 + $0x718] sm:$0xff]  ;;  %v2171_v21 = vpack.c.bf16 %v498_v13, %v480_v11  ;;  %v678_v9 = vld [vmem:[%s4394_s2 + $0xc20] sm:$0xff]  ;;  %v715_v13 = vld [vmem:[%s4394_s2 + $0xd48] sm:$0xff] }
  0xa1   : > { %1073 = vmatmul.mubr.f32.vlgmr.msra.gmra.mrb[2].mxu0 %v3033_v16  ;;  %v713_v11 = vld [vmem:[%s4394_s2 + $0xd38] sm:$0xff] }
  0xa2   : > { %1144 = vmatmul.mubr.f32.vlgmr.msra.gmra.mrb[2].mxu1 %v3033_v16  ;;  %2088 = vmatpush1.bf16.msra.mxu0 %v2087_v24  ;;  %v2157_v16 = vpack.c.bf16 %v391_v35, %v373_v34  ;;  %v532_v24 = vld [vmem:[%s4394_s2 + $0x790] sm:$0xff]  ;;  %v2113_v34 = vpack.c.bf16 %v569_v29, %v551_v28  ;;  %v550_v35 = vld [vmem:[%s4394_s2 + $0x820] sm:$0xff] }
  0xa3   : > { %2152 = vmatpush1.bf16.msra.mxu1 %v2151_v25  ;;  %2090 = vmatprep.subr.bf16.mxu0 %v2089_v26  ;;  %v516_v25 = vld [vmem:[%s4394_s2 + $0x710] sm:$0xff]  ;;  %v2173_v26 = vpack.c.bf16 %v535_v19, %v517_v18  ;;  %v2111_v32 = vpack.c.bf16 %v532_v24, %v514_v23  ;;  %v2129_v18 = vpack.c.bf16 %v713_v11, %v695_v10  ;;  %v694_v19 = vld [vmem:[%s4394_s2 + $0xca0] sm:$0xff]  ;;  %v731_v24 = vld [vmem:[%s4394_s2 + $0xdc8] sm:$0xff] }
  0xa4   : > { %2154 = vmatprep.subr.bf16.mxu1 %v2153_v30  ;;  %1214 = vmatprep.mubr.f32.mxu0 %v2903_v17  ;;  %v553_v30 = vld [vmem:[%s4394_s2 + $0x838] sm:$0xff]  ;;  %v2175_v33 = vpack.c.bf16 %v534_v27, %v516_v25  ;;  %v714_v23 = vld [vmem:[%s4394_s2 + $0xd40] sm:$0xff]  ;;  %v751_v27 = vld [vmem:[%s4394_s2 + $0xe68] sm:$0xff] }
  0xa5   : > { %1285 = vmatprep.mubr.f32.mxu1 %v2903_v17  ;;  %v2161_v17 = vpack.c.bf16 %v427_v46, %v409_v45  ;;  %v2117_v45 = vpack.c.bf16 %v605_v41, %v587_v40  ;;  %v586_v46 = vld [vmem:[%s4394_s2 + $0x940] sm:$0xff]  ;;  %v749_v25 = vld [vmem:[%s4394_s2 + $0xe58] sm:$0xff] }
  0xa6   : > { %2092 = vmatpush1.bf16.msra.mxu0 %v2091_v36  ;;  %v568_v36 = vld [vmem:[%s4394_s2 + $0x8b0] sm:$0xff] }
  0xa7   : > { %2156 = vmatpush1.bf16.msra.mxu1 %v2155_v37  ;;  %2094 = vmatprep.subr.bf16.mxu0 %v2093_v38  ;;  %v552_v37 = vld [vmem:[%s4394_s2 + $0x830] sm:$0xff]  ;;  %v2177_v38 = vpack.c.bf16 %v571_v31, %v553_v30  ;;  %v2115_v43 = vpack.c.bf16 %v568_v36, %v550_v35  ;;  %v2133_v30 = vpack.c.bf16 %v749_v25, %v731_v24  ;;  %v730_v31 = vld [vmem:[%s4394_s2 + $0xdc0] sm:$0xff]  ;;  %v767_v36 = vld [vmem:[%s4394_s2 + $0xee8] sm:$0xff] }
  0xa8   : > { %2158 = vmatprep.subr.bf16.mxu1 %v2157_v16  ;;  %v589_v16 = vld [vmem:[%s4394_s2 + $0x958] sm:$0xff]  ;;  %v2179_v44 = vpack.c.bf16 %v570_v39, %v552_v37  ;;  %v750_v35 = vld [vmem:[%s4394_s2 + $0xe60] sm:$0xff]  ;;  %v787_v39 = vld [vmem:[%s4394_s2 + $0xf88] sm:$0xff] }
  0xa9   : > { %v785_v37 = vld [vmem:[%s4394_s2 + $0xf78] sm:$0xff] }
  0xaa   : > { %2096 = vmatpush1.bf16.msra.mxu0 %v2095_v47  ;;  %v604_v47 = vld [vmem:[%s4394_s2 + $0x9d0] sm:$0xff] }
  0xab   : > { %2160 = vmatpush1.bf16.msra.mxu1 %v2159_v48  ;;  %2098 = vmatprep.subr.bf16.mxu0 %v2097_v49  ;;  %v588_v48 = vld [vmem:[%s4394_s2 + $0x950] sm:$0xff]  ;;  %v2181_v49 = vpack.c.bf16 %v607_v42, %v589_v16  ;;  %v2119_v54 = vpack.c.bf16 %v604_v47, %v586_v46  ;;  %v2137_v16 = vpack.c.bf16 %v785_v37, %v767_v36  ;;  %v766_v42 = vld [vmem:[%s4394_s2 + $0xee0] sm:$0xff]  ;;  %v803_v47 = vld [vmem:[%s4394_s2 + $0x1008] sm:$0xff] }
  0xac   : > { %2162 = vmatprep.subr.bf16.mxu1 %v2161_v17  ;;  %v625_v17 = vld [vmem:[%s4394_s2 + $0xa78] sm:$0xff]  ;;  %v2183_v55 = vpack.c.bf16 %v606_v50, %v588_v48  ;;  %v786_v46 = vld [vmem:[%s4394_s2 + $0xf80] sm:$0xff]  ;;  %v823_v50 = vld [vmem:[%s4394_s2 + $0x10a8] sm:$0xff] }
  0xad   : > { %v821_v48 = vld [vmem:[%s4394_s2 + $0x1098] sm:$0xff]  ;;  %v395_v36 = vld [vmem:[%s4394_s2 + $0x348] sm:$0xff] }
  0xae   : > { %2100 = vmatpush1.bf16.msra.mxu0 %v2099_v58  ;;  %v640_v58 = vld [vmem:[%s4394_s2 + $0xaf0] sm:$0xff] }
  0xaf   : > { %2164 = vmatpush1.bf16.msra.mxu1 %v2163_v59  ;;  %2102 = vmatprep.subr.bf16.mxu0 %v2101_v60  ;;  %v624_v59 = vld [vmem:[%s4394_s2 + $0xa70] sm:$0xff]  ;;  %v2185_v60 = vpack.c.bf16 %v643_v53, %v625_v17  ;;  %v2123_v2 = vpack.c.bf16 %v640_v58, %v622_v57  ;;  %v2141_v17 = vpack.c.bf16 %v821_v48, %v803_v47  ;;  %v802_v53 = vld [vmem:[%s4394_s2 + $0x1000] sm:$0xff]  ;;  %v839_v58 = vld [vmem:[%s4394_s2 + $0x1128] sm:$0xff] }
  0xb0   : > { %2166 = vmatprep.subr.bf16.mxu1 %v2165_v0  ;;  %v661_v0 = vld [vmem:[%s4394_s2 + $0xb98] sm:$0xff]  ;;  %v2187_v3 = vpack.c.bf16 %v642_v61, %v624_v59  ;;  %v822_v57 = vld [vmem:[%s4394_s2 + $0x10a0] sm:$0xff]  ;;  %v859_v61 = vld [vmem:[%s4394_s2 + $0x11c8] sm:$0xff] }
  0xb1   : > { %v857_v59 = vld [vmem:[%s4394_s2 + $0x11b8] sm:$0xff]  ;;  %v431_v48 = vld [vmem:[%s4394_s2 + $0x468] sm:$0xff] }
  0xb2   : > { %2104 = vmatpush1.bf16.msra.mxu0 %v2103_v6  ;;  %v676_v6 = vld [vmem:[%s4394_s2 + $0xc10] sm:$0xff]  ;;  %v413_v47 = vld [vmem:[%s4394_s2 + $0x3d8] sm:$0xff] }
  0xb3   : > { %2168 = vmatpush1.bf16.msra.mxu1 %v2167_v7  ;;  %2106 = vmatprep.subr.bf16.mxu0 %v2105_v8  ;;  %v660_v7 = vld [vmem:[%s4394_s2 + $0xb90] sm:$0xff]  ;;  %v2189_v8 = vpack.c.bf16 %v679_v1, %v661_v0  ;;  %v2127_v14 = vpack.c.bf16 %v676_v6, %v658_v5  ;;  %v2145_v0 = vpack.c.bf16 %v857_v59, %v839_v58  ;;  %v838_v1 = vld [vmem:[%s4394_s2 + $0x1120] sm:$0xff]  ;;  %v303_v6 = vld [vmem:[%s4394_s2 + $0x68] sm:$0xff] }
  0xb4   : > { %2170 = vmatprep.subr.bf16.mxu1 %v2169_v12  ;;  %v697_v12 = vld [vmem:[%s4394_s2 + $0xcb8] sm:$0xff]  ;;  %v2191_v15 = vpack.c.bf16 %v678_v9, %v660_v7  ;;  %v858_v5 = vld [vmem:[%s4394_s2 + $0x11c0] sm:$0xff]  ;;  %v323_v9 = vld [vmem:[%s4394_s2 + $0x108] sm:$0xff] }
  0xb5   : > { %v321_v7 = vld [vmem:[%s4394_s2 + $0xf8] sm:$0xff]  ;;  %v467_v59 = vld [vmem:[%s4394_s2 + $0x588] sm:$0xff] }
  0xb6   : > { %2108 = vmatpush1.bf16.msra.mxu0 %v2107_v20  ;;  %v712_v20 = vld [vmem:[%s4394_s2 + $0xd30] sm:$0xff]  ;;  %v449_v58 = vld [vmem:[%s4394_s2 + $0x4f8] sm:$0xff] }
  0xb7   : > { %2172 = vmatpush1.bf16.msra.mxu1 %v2171_v21  ;;  %2110 = vmatprep.subr.bf16.mxu0 %v2109_v22  ;;  %v696_v21 = vld [vmem:[%s4394_s2 + $0xcb0] sm:$0xff]  ;;  %v2193_v22 = vpack.c.bf16 %v715_v13, %v697_v12  ;;  %v2131_v28 = vpack.c.bf16 %v712_v20, %v694_v19  ;;  %v2213_v12 = vpack.c.bf16 %v321_v7, %v303_v6  ;;  %v302_v13 = vld [vmem:[%s4394_s2 + $0x60] sm:$0xff]  ;;  %v339_v20 = vld [vmem:[%s4394_s2 + $0x188] sm:$0xff] }
  0xb8   : > { %2174 = vmatprep.subr.bf16.mxu1 %v2173_v26  ;;  %v733_v26 = vld [vmem:[%s4394_s2 + $0xdd8] sm:$0xff]  ;;  %v2195_v29 = vpack.c.bf16 %v714_v23, %v696_v21  ;;  %v322_v19 = vld [vmem:[%s4394_s2 + $0x100] sm:$0xff]  ;;  %v359_v23 = vld [vmem:[%s4394_s2 + $0x228] sm:$0xff] }
  0xb9   : > { %v357_v21 = vld [vmem:[%s4394_s2 + $0x218] sm:$0xff]  ;;  %v503_v7 = vld [vmem:[%s4394_s2 + $0x6a8] sm:$0xff] }
  0xba   : > { %2112 = vmatpush1.bf16.msra.mxu0 %v2111_v32  ;;  %v748_v32 = vld [vmem:[%s4394_s2 + $0xe50] sm:$0xff]  ;;  %v485_v6 = vld [vmem:[%s4394_s2 + $0x618] sm:$0xff] }
  0xbb   : > { %2176 = vmatpush1.bf16.msra.mxu1 %v2175_v33  ;;  %2114 = vmatprep.subr.bf16.mxu0 %v2113_v34  ;;  %v732_v33 = vld [vmem:[%s4394_s2 + $0xdd0] sm:$0xff]  ;;  %v2197_v34 = vpack.c.bf16 %v751_v27, %v733_v26  ;;  %v2135_v40 = vpack.c.bf16 %v748_v32, %v730_v31  ;;  %v2217_v26 = vpack.c.bf16 %v357_v21, %v339_v20  ;;  %v338_v27 = vld [vmem:[%s4394_s2 + $0x180] sm:$0xff]  ;;  %v375_v32 = vld [vmem:[%s4394_s2 + $0x2a8] sm:$0xff] }
  0xbc   : > { %2178 = vmatprep.subr.bf16.mxu1 %v2177_v38  ;;  %v769_v38 = vld [vmem:[%s4394_s2 + $0xef8] sm:$0xff]  ;;  %v2199_v41 = vpack.c.bf16 %v750_v35, %v732_v33  ;;  %v358_v31 = vld [vmem:[%s4394_s2 + $0x220] sm:$0xff]  ;;  %v539_v21 = vld [vmem:[%s4394_s2 + $0x7c8] sm:$0xff] }
  0xbd   : > { %v393_v33 = vld [vmem:[%s4394_s2 + $0x338] sm:$0xff] }
  0xbe   : > { %2116 = vmatpush1.bf16.msra.mxu0 %v2115_v43  ;;  %v784_v43 = vld [vmem:[%s4394_s2 + $0xf70] sm:$0xff]  ;;  %v377_v35 = vld [vmem:[%s4394_s2 + $0x2b8] sm:$0xff] }
  0xbf   : > { %2180 = vmatpush1.bf16.msra.mxu1 %v2179_v44  ;;  %2118 = vmatprep.subr.bf16.mxu0 %v2117_v45  ;;  %v768_v44 = vld [vmem:[%s4394_s2 + $0xef0] sm:$0xff]  ;;  %v2201_v45 = vpack.c.bf16 %v787_v39, %v769_v38  ;;  %v2139_v51 = vpack.c.bf16 %v784_v43, %v766_v42  ;;  %v2221_v39 = vpack.c.bf16 %v393_v33, %v375_v32  ;;  %v394_v43 = vld [vmem:[%s4394_s2 + $0x340] sm:$0xff]  ;;  %v521_v20 = vld [vmem:[%s4394_s2 + $0x738] sm:$0xff] }
  0xc0   : > { %2182 = vmatprep.subr.bf16.mxu1 %v2181_v49  ;;  %v805_v49 = vld [vmem:[%s4394_s2 + $0x1018] sm:$0xff]  ;;  %v2203_v52 = vpack.c.bf16 %v786_v46, %v768_v44  ;;  %v2285_v42 = vpack.c.bf16 %v395_v36, %v377_v35  ;;  %v411_v44 = vld [vmem:[%s4394_s2 + $0x3c8] sm:$0xff] }
  0xc1   : > { %v3857_v46 = vld [vmem:[#allocation2 + $0x8] sm:$0xff]  ;;  %v557_v32 = vld [vmem:[%s4394_s2 + $0x858] sm:$0xff] }
  0xc2   : > { %2120 = vmatpush1.bf16.msra.mxu0 %v2119_v54  ;;  %v820_v54 = vld [vmem:[%s4394_s2 + $0x1090] sm:$0xff]  ;;  %v575_v33 = vld [vmem:[%s4394_s2 + $0x8e8] sm:$0xff] }
  0xc3   : > { %2184 = vmatpush1.bf16.msra.mxu1 %v2183_v55  ;;  %2122 = vmatprep.subr.bf16.mxu0 %v2121_v56  ;;  %v804_v55 = vld [vmem:[%s4394_s2 + $0x1010] sm:$0xff]  ;;  %v2205_v56 = vpack.c.bf16 %v823_v50, %v805_v49  ;;  %v2143_v62 = vpack.c.bf16 %v820_v54, %v802_v53  ;;  %v2289_v54 = vpack.c.bf16 %v431_v48, %v413_v47 }
  0xc4   : > { %2186 = vmatprep.subr.bf16.mxu1 %v2185_v60  ;;  %v841_v60 = vld [vmem:[%s4394_s2 + $0x1138] sm:$0xff]  ;;  %v2207_v63 = vpack.c.bf16 %v822_v57, %v804_v55  ;;  %v412_v53 = vld [vmem:[%s4394_s2 + $0x3d0] sm:$0xff]  ;;  %v430_v55 = vld [vmem:[%s4394_s2 + $0x460] sm:$0xff] }
  0xc5   : > { %v465_v57 = vld [vmem:[%s4394_s2 + $0x578] sm:$0xff] }
  0xc6   : > { %2124 = vmatpush1.bf16.msra.mxu0 %v2123_v2  ;;  %v856_v2 = vld [vmem:[%s4394_s2 + $0x11b0] sm:$0xff] }
  0xc7   : > { %2188 = vmatpush1.bf16.msra.mxu1 %v2187_v3  ;;  %2126 = vmatprep.subr.bf16.mxu0 %v2125_v4  ;;  %v840_v3 = vld [vmem:[%s4394_s2 + $0x1130] sm:$0xff]  ;;  %v2209_v4 = vpack.c.bf16 %v859_v61, %v841_v60  ;;  %v2147_v10 = vpack.c.bf16 %v856_v2, %v838_v1  ;;  %v2291_v61 = vpack.c.bf16 %v430_v55, %v412_v53  ;;  %v610_v53 = vld [vmem:[%s4394_s2 + $0xa00] sm:$0xff]  ;;  %v645_v55 = vld [vmem:[%s4394_s2 + $0xb18] sm:$0xff] }
  0xc8   : > { %2190 = vmatprep.subr.bf16.mxu1 %v2189_v8  ;;  %v305_v8 = vld [vmem:[%s4394_s2 + $0x78] sm:$0xff]  ;;  %v2211_v11 = vpack.c.bf16 %v858_v5, %v840_v3  ;;  %v448_v1 = vld [vmem:[%s4394_s2 + $0x4f0] sm:$0xff]  ;;  %v2293_v2 = vpack.c.bf16 %v467_v59, %v449_v58  ;;  %v466_v3 = vld [vmem:[%s4394_s2 + $0x580] sm:$0xff] }
  0xc9   : > { %v501_v5 = vld [vmem:[%s4394_s2 + $0x698] sm:$0xff] }
  0xca   : > { %2128 = vmatpush1.bf16.msra.mxu0 %v2127_v14  ;;  %v320_v14 = vld [vmem:[%s4394_s2 + $0xf0] sm:$0xff] }
  0xcb   : > { %2192 = vmatpush1.bf16.msra.mxu1 %v2191_v15  ;;  %2130 = vmatprep.subr.bf16.mxu0 %v2129_v18  ;;  %v304_v15 = vld [vmem:[%s4394_s2 + $0x70] sm:$0xff]  ;;  %v2277_v18 = vpack.c.bf16 %v323_v9, %v305_v8  ;;  %v2215_v24 = vpack.c.bf16 %v320_v14, %v302_v13  ;;  %v2295_v9 = vpack.c.bf16 %v466_v3, %v448_v1  ;;  %v646_v1 = vld [vmem:[%s4394_s2 + $0xb20] sm:$0xff]  ;;  %v681_v3 = vld [vmem:[%s4394_s2 + $0xc38] sm:$0xff] }
  0xcc   : > { %2194 = vmatprep.subr.bf16.mxu1 %v2193_v22  ;;  %v341_v22 = vld [vmem:[%s4394_s2 + $0x198] sm:$0xff]  ;;  %v2279_v25 = vpack.c.bf16 %v322_v19, %v304_v15  ;;  %v484_v13 = vld [vmem:[%s4394_s2 + $0x610] sm:$0xff]  ;;  %v2297_v14 = vpack.c.bf16 %v503_v7, %v485_v6  ;;  %v502_v15 = vld [vmem:[%s4394_s2 + $0x6a0] sm:$0xff] }
  0xcd   : > { %v537_v19 = vld [vmem:[%s4394_s2 + $0x7b8] sm:$0xff] }
  0xce   : > { %2132 = vmatpush1.bf16.msra.mxu0 %v2131_v28  ;;  %v356_v28 = vld [vmem:[%s4394_s2 + $0x210] sm:$0xff] }
  0xcf   : > { %2196 = vmatpush1.bf16.msra.mxu1 %v2195_v29  ;;  %2134 = vmatprep.subr.bf16.mxu0 %v2133_v30  ;;  %v340_v29 = vld [vmem:[%s4394_s2 + $0x190] sm:$0xff]  ;;  %v2281_v30 = vpack.c.bf16 %v359_v23, %v341_v22  ;;  %v2219_v37 = vpack.c.bf16 %v356_v28, %v338_v27  ;;  %v2299_v23 = vpack.c.bf16 %v502_v15, %v484_v13  ;;  %v682_v13 = vld [vmem:[%s4394_s2 + $0xc40] sm:$0xff]  ;;  %v717_v15 = vld [vmem:[%s4394_s2 + $0xd58] sm:$0xff] }
  0xd0   : > { %2198 = vmatprep.subr.bf16.mxu1 %v2197_v34  ;;  %v3829_v34 = vld [vmem:[#allocation2] sm:$0xff]  ;;  %v2283_v38 = vpack.c.bf16 %v358_v31, %v340_v29  ;;  %v520_v27 = vld [vmem:[%s4394_s2 + $0x730] sm:$0xff]  ;;  %v2301_v28 = vpack.c.bf16 %v539_v21, %v521_v20  ;;  %v573_v31 = vld [vmem:[%s4394_s2 + $0x8d8] sm:$0xff] }
  0xd1   : > { %v538_v29 = vld [vmem:[%s4394_s2 + $0x7c0] sm:$0xff] }
  0xd2   : > { %2136 = vmatpush1.bf16.msra.mxu0 %v2135_v40  ;;  %v374_v40 = vld [vmem:[%s4394_s2 + $0x2a0] sm:$0xff]  ;;  %v2303_v36 = vpack.c.bf16 %v538_v29, %v520_v27  ;;  %v753_v29 = vld [vmem:[%s4394_s2 + $0xe78] sm:$0xff] }
  0xd3   : > { %2200 = vmatpush1.bf16.msra.mxu1 %v2199_v41  ;;  %2138 = vmatprep.subr.bf16.mxu0 %v2137_v16  ;;  %v392_v41 = vld [vmem:[%s4394_s2 + $0x330] sm:$0xff]  ;;  %v718_v27 = vld [vmem:[%s4394_s2 + $0xd60] sm:$0xff] }
  0xd4   : > { %2202 = vmatprep.subr.bf16.mxu1 %v2201_v45  ;;  %v376_v16 = vld [vmem:[%s4394_s2 + $0x2b0] sm:$0xff]  ;;  %v429_v45 = vld [vmem:[%s4394_s2 + $0x458] sm:$0xff]  ;;  %v2223_v49 = vpack.c.bf16 %v392_v41, %v374_v40  ;;  %v2305_v41 = vpack.c.bf16 %v575_v33, %v557_v32 }
  0xd5   : > { %v2287_v50 = vpack.c.bf16 %v394_v43, %v376_v16  ;;  %v556_v40 = vld [vmem:[%s4394_s2 + $0x850] sm:$0xff]  ;;  %v574_v16 = vld [vmem:[%s4394_s2 + $0x8e0] sm:$0xff]  ;;  %v609_v43 = vld [vmem:[%s4394_s2 + $0x9f8] sm:$0xff] }
  0xd6   : > { %2140 = vmatpush1.bf16.msra.mxu0 %v2139_v51  ;;  %v2225_v51 = vpack.c.bf16 %v429_v45, %v411_v44  ;;  %v593_v44 = vld [vmem:[%s4394_s2 + $0x978] sm:$0xff]  ;;  %v611_v45 = vld [vmem:[%s4394_s2 + $0xa08] sm:$0xff]  ;;  %v2307_v48 = vpack.c.bf16 %v574_v16, %v556_v40  ;;  %v754_v40 = vld [vmem:[%s4394_s2 + $0xe80] sm:$0xff] }
  0xd7   : > { %2204 = vmatpush1.bf16.msra.mxu1 %v2203_v52  ;;  %2142 = vmatprep.subr.bf16.mxu0 %v2141_v17  ;;  %v410_v52 = vld [vmem:[%s4394_s2 + $0x3c0] sm:$0xff]  ;;  %v428_v17 = vld [vmem:[%s4394_s2 + $0x450] sm:$0xff]  ;;  %v789_v16 = vld [vmem:[%s4394_s2 + $0xf98] sm:$0xff] }
  0xd8   : > { %2206 = vmatprep.subr.bf16.mxu1 %v2205_v56  ;;  %v447_v56 = vld [vmem:[%s4394_s2 + $0x4e8] sm:$0xff]  ;;  %v2227_v60 = vpack.c.bf16 %v428_v17, %v410_v52  ;;  %v592_v52 = vld [vmem:[%s4394_s2 + $0x970] sm:$0xff]  ;;  %v2309_v17 = vpack.c.bf16 %v611_v45, %v593_v44 }
  0xd9   : > { %v2311_v59 = vpack.c.bf16 %v610_v53, %v592_v52  ;;  %v790_v52 = vld [vmem:[%s4394_s2 + $0xfa0] sm:$0xff]  ;;  %v825_v53 = vld [vmem:[%s4394_s2 + $0x10b8] sm:$0xff] }
  0xda   : > { %2144 = vmatpush1.bf16.msra.mxu0 %v2143_v62  ;;  %v2229_v62 = vpack.c.bf16 %v465_v57, %v447_v56  ;;  %v629_v56 = vld [vmem:[%s4394_s2 + $0xa98] sm:$0xff]  ;;  %v647_v57 = vld [vmem:[%s4394_s2 + $0xb28] sm:$0xff] }
  0xdb   : > { %2208 = vmatpush1.bf16.msra.mxu1 %v2207_v63  ;;  %2146 = vmatprep.subr.bf16.mxu0 %v2145_v0  ;;  %v446_v63 = vld [vmem:[%s4394_s2 + $0x4e0] sm:$0xff]  ;;  %v464_v0 = vld [vmem:[%s4394_s2 + $0x570] sm:$0xff] }
  0xdc   : > { %2210 = vmatprep.subr.bf16.mxu1 %v2209_v4  ;;  %v483_v4 = vld [vmem:[%s4394_s2 + $0x608] sm:$0xff]  ;;  %v2231_v8 = vpack.c.bf16 %v464_v0, %v446_v63  ;;  %v628_v63 = vld [vmem:[%s4394_s2 + $0xa90] sm:$0xff]  ;;  %v2313_v0 = vpack.c.bf16 %v647_v57, %v629_v56 }
  0xdd   : > { %v2315_v7 = vpack.c.bf16 %v646_v1, %v628_v63  ;;  %v826_v63 = vld [vmem:[%s4394_s2 + $0x10c0] sm:$0xff]  ;;  %v861_v1 = vld [vmem:[%s4394_s2 + $0x11d8] sm:$0xff] }
  0xde   : > { %2148 = vmatpush1.bf16.msra.mxu0 %v2147_v10  ;;  %v2233_v10 = vpack.c.bf16 %v501_v5, %v483_v4  ;;  %v665_v4 = vld [vmem:[%s4394_s2 + $0xbb8] sm:$0xff]  ;;  %v683_v5 = vld [vmem:[%s4394_s2 + $0xc48] sm:$0xff] }
  0xdf   : > { %2212 = vmatpush1.bf16.msra.mxu1 %v2211_v11  ;;  %2214 = vmatprep.subr.bf16.mxu0 %v2213_v12  ;;  %v482_v11 = vld [vmem:[%s4394_s2 + $0x600] sm:$0xff]  ;;  %v500_v12 = vld [vmem:[%s4394_s2 + $0x690] sm:$0xff] }
  0xe0   : > { %2278 = vmatprep.subr.bf16.mxu1 %v2277_v18  ;;  %v519_v18 = vld [vmem:[%s4394_s2 + $0x728] sm:$0xff]  ;;  %v2235_v22 = vpack.c.bf16 %v500_v12, %v482_v11  ;;  %v664_v11 = vld [vmem:[%s4394_s2 + $0xbb0] sm:$0xff]  ;;  %v2317_v12 = vpack.c.bf16 %v683_v5, %v665_v4 }
  0xe1   : > { %1215 = vmatmul.mubr.f32.vlgmr.msra.gmra.mrb[4].mxu0 %v3829_v34  ;;  %v2319_v21 = vpack.c.bf16 %v682_v13, %v664_v11  ;;  %v862_v11 = vld [vmem:[%s4394_s2 + $0x11e0] sm:$0xff]  ;;  %v325_v13 = vld [vmem:[%s4394_s2 + $0x118] sm:$0xff] }
  0xe2   : > { %1286 = vmatmul.mubr.f32.vlgmr.msra.gmra.mrb[4].mxu1 %v3829_v34  ;;  %2216 = vmatpush1.bf16.msra.mxu0 %v2215_v24  ;;  %v2237_v24 = vpack.c.bf16 %v537_v19, %v519_v18  ;;  %v701_v18 = vld [vmem:[%s4394_s2 + $0xcd8] sm:$0xff]  ;;  %v719_v19 = vld [vmem:[%s4394_s2 + $0xd68] sm:$0xff] }
  0xe3   : > { %2280 = vmatpush1.bf16.msra.mxu1 %v2279_v25  ;;  %2218 = vmatprep.subr.bf16.mxu0 %v2217_v26  ;;  %v518_v25 = vld [vmem:[%s4394_s2 + $0x720] sm:$0xff]  ;;  %v536_v26 = vld [vmem:[%s4394_s2 + $0x7b0] sm:$0xff] }
  0xe4   : > { %2282 = vmatprep.subr.bf16.mxu1 %v2281_v30  ;;  %1356 = vmatprep.mubr.f32.mxu0 %v3857_v46  ;;  %v555_v30 = vld [vmem:[%s4394_s2 + $0x848] sm:$0xff]  ;;  %v2239_v35 = vpack.c.bf16 %v536_v26, %v518_v25  ;;  %v700_v25 = vld [vmem:[%s4394_s2 + $0xcd0] sm:$0xff]  ;;  %v2321_v26 = vpack.c.bf16 %v719_v19, %v701_v18  ;;  %v306_v19 = vld [vmem:[%s4394_s2 + $0x80] sm:$0xff] }
  0xe5   : > { %1427 = vmatprep.mubr.f32.mxu1 %v3857_v46  ;;  %v2323_v33 = vpack.c.bf16 %v718_v27, %v700_v25  ;;  %v342_v25 = vld [vmem:[%s4394_s2 + $0x1a0] sm:$0xff]  ;;  %v379_v27 = vld [vmem:[%s4394_s2 + $0x2c8] sm:$0xff] }
  0xe6   : > { %2220 = vmatpush1.bf16.msra.mxu0 %v2219_v37  ;;  %v2241_v37 = vpack.c.bf16 %v573_v31, %v555_v30  ;;  %v737_v30 = vld [vmem:[%s4394_s2 + $0xdf8] sm:$0xff]  ;;  %v755_v31 = vld [vmem:[%s4394_s2 + $0xe88] sm:$0xff] }
  0xe7   : > { %2284 = vmatpush1.bf16.msra.mxu1 %v2283_v38  ;;  %2222 = vmatprep.subr.bf16.mxu0 %v2221_v39  ;;  %v554_v38 = vld [vmem:[%s4394_s2 + $0x840] sm:$0xff]  ;;  %v572_v39 = vld [vmem:[%s4394_s2 + $0x8d0] sm:$0xff] }
  0xe8   : > { %2286 = vmatprep.subr.bf16.mxu1 %v2285_v42  ;;  %v591_v42 = vld [vmem:[%s4394_s2 + $0x968] sm:$0xff]  ;;  %v2243_v47 = vpack.c.bf16 %v572_v39, %v554_v38  ;;  %v736_v38 = vld [vmem:[%s4394_s2 + $0xdf0] sm:$0xff]  ;;  %v2325_v39 = vpack.c.bf16 %v755_v31, %v737_v30  ;;  %v378_v31 = vld [vmem:[%s4394_s2 + $0x2c0] sm:$0xff] }
  0xe9   : > { %v2327_v45 = vpack.c.bf16 %v754_v40, %v736_v38  ;;  %v414_v38 = vld [vmem:[%s4394_s2 + $0x3e0] sm:$0xff]  ;;  %v469_v40 = vld [vmem:[%s4394_s2 + $0x598] sm:$0xff] }
  0xea   : > { %2224 = vmatpush1.bf16.msra.mxu0 %v2223_v49  ;;  %v2245_v49 = vpack.c.bf16 %v609_v43, %v591_v42  ;;  %v773_v42 = vld [vmem:[%s4394_s2 + $0xf18] sm:$0xff]  ;;  %v791_v43 = vld [vmem:[%s4394_s2 + $0xfa8] sm:$0xff] }
  0xeb   : > { %2288 = vmatpush1.bf16.msra.mxu1 %v2287_v50  ;;  %2226 = vmatprep.subr.bf16.mxu0 %v2225_v51  ;;  %v590_v50 = vld [vmem:[%s4394_s2 + $0x960] sm:$0xff]  ;;  %v608_v51 = vld [vmem:[%s4394_s2 + $0x9f0] sm:$0xff] }
  0xec   : > { %2290 = vmatprep.subr.bf16.mxu1 %v2289_v54  ;;  %v627_v54 = vld [vmem:[%s4394_s2 + $0xa88] sm:$0xff]  ;;  %v2247_v58 = vpack.c.bf16 %v608_v51, %v590_v50  ;;  %v772_v50 = vld [vmem:[%s4394_s2 + $0xf10] sm:$0xff]  ;;  %v2329_v51 = vpack.c.bf16 %v791_v43, %v773_v42  ;;  %v450_v42 = vld [vmem:[%s4394_s2 + $0x500] sm:$0xff] }
  0xed   : > { %v2331_v57 = vpack.c.bf16 %v790_v52, %v772_v50  ;;  %v468_v43 = vld [vmem:[%s4394_s2 + $0x590] sm:$0xff]  ;;  %v541_v52 = vld [vmem:[%s4394_s2 + $0x7d8] sm:$0xff] }
  0xee   : > { %2228 = vmatpush1.bf16.msra.mxu0 %v2227_v60  ;;  %v2249_v60 = vpack.c.bf16 %v645_v55, %v627_v54  ;;  %v809_v54 = vld [vmem:[%s4394_s2 + $0x1038] sm:$0xff]  ;;  %v827_v55 = vld [vmem:[%s4394_s2 + $0x10c8] sm:$0xff]  ;;  %v504_v50 = vld [vmem:[%s4394_s2 + $0x6b0] sm:$0xff] }
  0xef   : > { %2292 = vmatpush1.bf16.msra.mxu1 %v2291_v61  ;;  %2230 = vmatprep.subr.bf16.mxu0 %v2229_v62  ;;  %v626_v61 = vld [vmem:[%s4394_s2 + $0xa80] sm:$0xff]  ;;  %v644_v62 = vld [vmem:[%s4394_s2 + $0xb10] sm:$0xff] }
  0xf0   : > { %2294 = vmatprep.subr.bf16.mxu1 %v2293_v2  ;;  %v663_v2 = vld [vmem:[%s4394_s2 + $0xba8] sm:$0xff]  ;;  %v2251_v6 = vpack.c.bf16 %v644_v62, %v626_v61  ;;  %v808_v61 = vld [vmem:[%s4394_s2 + $0x1030] sm:$0xff]  ;;  %v2333_v62 = vpack.c.bf16 %v827_v55, %v809_v54  ;;  %v522_v54 = vld [vmem:[%s4394_s2 + $0x740] sm:$0xff] }
  0xf1   : > { %v2335_v5 = vpack.c.bf16 %v826_v63, %v808_v61  ;;  %v540_v55 = vld [vmem:[%s4394_s2 + $0x7d0] sm:$0xff] }
  0xf2   : > { %2232 = vmatpush1.bf16.msra.mxu0 %v2231_v8  ;;  %v2253_v8 = vpack.c.bf16 %v681_v3, %v663_v2  ;;  %v845_v2 = vld [vmem:[%s4394_s2 + $0x1158] sm:$0xff]  ;;  %v863_v3 = vld [vmem:[%s4394_s2 + $0x11e8] sm:$0xff]  ;;  %v2367_v63 = vpack.c.bf16 %v540_v55, %v522_v54 }
  0xf3   : > { %2296 = vmatpush1.bf16.msra.mxu1 %v2295_v9  ;;  %2234 = vmatprep.subr.bf16.mxu0 %v2233_v10  ;;  %v662_v9 = vld [vmem:[%s4394_s2 + $0xba0] sm:$0xff]  ;;  %v680_v10 = vld [vmem:[%s4394_s2 + $0xc30] sm:$0xff] }
  0xf4   : > { %2298 = vmatprep.subr.bf16.mxu1 %v2297_v14  ;;  %v699_v14 = vld [vmem:[%s4394_s2 + $0xcc8] sm:$0xff]  ;;  %v2255_v20 = vpack.c.bf16 %v680_v10, %v662_v9  ;;  %v844_v9 = vld [vmem:[%s4394_s2 + $0x1150] sm:$0xff]  ;;  %v2337_v10 = vpack.c.bf16 %v863_v3, %v845_v2  ;;  %v558_v2 = vld [vmem:[%s4394_s2 + $0x860] sm:$0xff] }
  0xf5   : > { %v576_v3 = vld [vmem:[%s4394_s2 + $0x8f0] sm:$0xff] }
  0xf6   : > { %2236 = vmatpush1.bf16.msra.mxu0 %v2235_v22  ;;  %v2257_v22 = vpack.c.bf16 %v717_v15, %v699_v14  ;;  %v2339_v15 = vpack.c.bf16 %v862_v11, %v844_v9  ;;  %v612_v9 = vld [vmem:[%s4394_s2 + $0xa10] sm:$0xff]  ;;  %v649_v11 = vld [vmem:[%s4394_s2 + $0xb38] sm:$0xff] }
  0xf7   : > { %2300 = vmatpush1.bf16.msra.mxu1 %v2299_v23  ;;  %2238 = vmatprep.subr.bf16.mxu0 %v2237_v24  ;;  %v698_v23 = vld [vmem:[%s4394_s2 + $0xcc0] sm:$0xff]  ;;  %v716_v24 = vld [vmem:[%s4394_s2 + $0xd50] sm:$0xff] }
  0xf8   : > { %2302 = vmatprep.subr.bf16.mxu1 %v2301_v28  ;;  %v735_v28 = vld [vmem:[%s4394_s2 + $0xde8] sm:$0xff]  ;;  %v2259_v32 = vpack.c.bf16 %v716_v24, %v698_v23 }
  0xfa   : > { %2240 = vmatpush1.bf16.msra.mxu0 %v2239_v35  ;;  %v2261_v35 = vpack.c.bf16 %v753_v29, %v735_v28  ;;  %v397_v28 = vld [vmem:[%s4394_s2 + $0x358] sm:$0xff] }
  0xfb   : > { %2304 = vmatpush1.bf16.msra.mxu1 %v2303_v36  ;;  %2242 = vmatprep.subr.bf16.mxu0 %v2241_v37  ;;  %v734_v36 = vld [vmem:[%s4394_s2 + $0xde0] sm:$0xff]  ;;  %v752_v37 = vld [vmem:[%s4394_s2 + $0xe70] sm:$0xff]  ;;  %v2349_v30 = vpack.c.bf16 %v397_v28, %v379_v27 }
  0xfc   : > { %2306 = vmatprep.subr.bf16.mxu1 %v2305_v41  ;;  %v771_v41 = vld [vmem:[%s4394_s2 + $0xf08] sm:$0xff]  ;;  %v2263_v44 = vpack.c.bf16 %v752_v37, %v734_v36  ;;  %v702_v28 = vld [vmem:[%s4394_s2 + $0xce0] sm:$0xff] }
  0xfe   : > { %2244 = vmatpush1.bf16.msra.mxu0 %v2243_v47  ;;  %v2265_v47 = vpack.c.bf16 %v789_v16, %v771_v41 }
  0xff   : > { %2308 = vmatpush1.bf16.msra.mxu1 %v2307_v48  ;;  %2246 = vmatprep.subr.bf16.mxu0 %v2245_v49  ;;  %v770_v48 = vld [vmem:[%s4394_s2 + $0xf00] sm:$0xff]  ;;  %v788_v49 = vld [vmem:[%s4394_s2 + $0xf90] sm:$0xff] }
 0x100   : > { %2310 = vmatprep.subr.bf16.mxu1 %v2309_v17  ;;  %v807_v17 = vld [vmem:[%s4394_s2 + $0x1028] sm:$0xff]  ;;  %v2267_v56 = vpack.c.bf16 %v788_v49, %v770_v48  ;;  %v486_v49 = vld [vmem:[%s4394_s2 + $0x620] sm:$0xff] }
 0x102   : > { %2248 = vmatpush1.bf16.msra.mxu0 %v2247_v58  ;;  %v2269_v58 = vpack.c.bf16 %v825_v53, %v807_v17  ;;  %v2363_v17 = vpack.c.bf16 %v504_v50, %v486_v49  ;;  %v865_v49 = vld [vmem:[%s4394_s2 + $0x11f8] sm:$0xff] }
 0x103   : > { %2312 = vmatpush1.bf16.msra.mxu1 %v2311_v59  ;;  %2250 = vmatprep.subr.bf16.mxu0 %v2249_v60  ;;  %v806_v59 = vld [vmem:[%s4394_s2 + $0x1020] sm:$0xff]  ;;  %v824_v60 = vld [vmem:[%s4394_s2 + $0x10b0] sm:$0xff] }
 0x104   : > { %2314 = vmatprep.subr.bf16.mxu1 %v2313_v0  ;;  %v843_v0 = vld [vmem:[%s4394_s2 + $0x1148] sm:$0xff]  ;;  %v2271_v4 = vpack.c.bf16 %v824_v60, %v806_v59 }
 0x106   : > { %2252 = vmatpush1.bf16.msra.mxu0 %v2251_v6  ;;  %v2273_v6 = vpack.c.bf16 %v861_v1, %v843_v0 }
 0x107   : > { %2316 = vmatpush1.bf16.msra.mxu1 %v2315_v7  ;;  %2254 = vmatprep.subr.bf16.mxu0 %v2253_v8  ;;  %v842_v7 = vld [vmem:[%s4394_s2 + $0x1140] sm:$0xff]  ;;  %v860_v8 = vld [vmem:[%s4394_s2 + $0x11d0] sm:$0xff] }
 0x108   : > { %2318 = vmatprep.subr.bf16.mxu1 %v2317_v12  ;;  %v307_v12 = vld [vmem:[%s4394_s2 + $0x88] sm:$0xff]  ;;  %v2275_v14 = vpack.c.bf16 %v860_v8, %v842_v7  ;;  %v594_v8 = vld [vmem:[%s4394_s2 + $0x980] sm:$0xff] }
 0x109   : > { %v2341_v18 = vpack.c.bf16 %v325_v13, %v307_v12  ;;  %v2375_v12 = vpack.c.bf16 %v612_v9, %v594_v8 }
 0x10a   : > { %2256 = vmatpush1.bf16.msra.mxu0 %v2255_v20  ;;  %v324_v20 = vld [vmem:[%s4394_s2 + $0x110] sm:$0xff] }
 0x10b   : > { %2320 = vmatpush1.bf16.msra.mxu1 %v2319_v21  ;;  %2258 = vmatprep.subr.bf16.mxu0 %v2257_v22  ;;  %v343_v21 = vld [vmem:[%s4394_s2 + $0x1a8] sm:$0xff]  ;;  %v361_v22 = vld [vmem:[%s4394_s2 + $0x238] sm:$0xff]  ;;  %v2343_v23 = vpack.c.bf16 %v324_v20, %v306_v19 }
 0x10c   : > { %2322 = vmatprep.subr.bf16.mxu1 %v2321_v26  ;;  %v2345_v24 = vpack.c.bf16 %v361_v22, %v343_v21  ;;  %v360_v26 = vld [vmem:[%s4394_s2 + $0x230] sm:$0xff]  ;;  %v685_v19 = vld [vmem:[%s4394_s2 + $0xc58] sm:$0xff]  ;;  %v666_v22 = vld [vmem:[%s4394_s2 + $0xbc0] sm:$0xff] }
 0x10d   : > { %v2347_v29 = vpack.c.bf16 %v360_v26, %v342_v25  ;;  %v721_v25 = vld [vmem:[%s4394_s2 + $0xd78] sm:$0xff] }
 0x10e   : > { %2260 = vmatpush1.bf16.msra.mxu0 %v2259_v32  ;;  %v396_v32 = vld [vmem:[%s4394_s2 + $0x350] sm:$0xff] }
 0x10f   : > { %2324 = vmatpush1.bf16.msra.mxu1 %v2323_v33  ;;  %2262 = vmatprep.subr.bf16.mxu0 %v2261_v35  ;;  %v415_v33 = vld [vmem:[%s4394_s2 + $0x3e8] sm:$0xff]  ;;  %v433_v35 = vld [vmem:[%s4394_s2 + $0x478] sm:$0xff]  ;;  %v2351_v36 = vpack.c.bf16 %v396_v32, %v378_v31 }
 0x110   : > { %2326 = vmatprep.subr.bf16.mxu1 %v2325_v39  ;;  %v2353_v37 = vpack.c.bf16 %v433_v35, %v415_v33  ;;  %v451_v39 = vld [vmem:[%s4394_s2 + $0x508] sm:$0xff]  ;;  %v757_v31 = vld [vmem:[%s4394_s2 + $0xe98] sm:$0xff]  ;;  %v738_v35 = vld [vmem:[%s4394_s2 + $0xe00] sm:$0xff] }
 0x111   : > { %v2357_v16 = vpack.c.bf16 %v469_v40, %v451_v39  ;;  %v774_v40 = vld [vmem:[%s4394_s2 + $0xf20] sm:$0xff] }
 0x112   : > { %2264 = vmatpush1.bf16.msra.mxu0 %v2263_v44  ;;  %v487_v44 = vld [vmem:[%s4394_s2 + $0x628] sm:$0xff] }
 0x113   : > { %2328 = vmatpush1.bf16.msra.mxu1 %v2327_v45  ;;  %2266 = vmatprep.subr.bf16.mxu0 %v2265_v47  ;;  %v505_v45 = vld [vmem:[%s4394_s2 + $0x6b8] sm:$0xff]  ;;  %v2359_v47 = vpack.c.bf16 %v468_v43, %v450_v42 }
 0x114   : > { %2330 = vmatprep.subr.bf16.mxu1 %v2329_v51  ;;  %v2361_v48 = vpack.c.bf16 %v505_v45, %v487_v44  ;;  %v523_v51 = vld [vmem:[%s4394_s2 + $0x748] sm:$0xff]  ;;  %v829_v42 = vld [vmem:[%s4394_s2 + $0x10d8] sm:$0xff]  ;;  %v810_v45 = vld [vmem:[%s4394_s2 + $0x1040] sm:$0xff] }
 0x115   : > { %v2365_v53 = vpack.c.bf16 %v541_v52, %v523_v51  ;;  %v846_v52 = vld [vmem:[%s4394_s2 + $0x1160] sm:$0xff] }
 0x116   : > { %2268 = vmatpush1.bf16.msra.mxu0 %v2267_v56 }
 0x117   : > { %2332 = vmatpush1.bf16.msra.mxu1 %v2331_v57  ;;  %2270 = vmatprep.subr.bf16.mxu0 %v2269_v58  ;;  %v559_v57 = vld [vmem:[%s4394_s2 + $0x868] sm:$0xff]  ;;  %v577_v58 = vld [vmem:[%s4394_s2 + $0x8f8] sm:$0xff] }
 0x118   : > { %2334 = vmatprep.subr.bf16.mxu1 %v2333_v62  ;;  %v2369_v1 = vpack.c.bf16 %v577_v58, %v559_v57 }
 0x11a   : > { %2272 = vmatpush1.bf16.msra.mxu0 %v2271_v4  ;;  %v595_v4 = vld [vmem:[%s4394_s2 + $0x988] sm:$0xff] }
 0x11b   : > { %2336 = vmatpush1.bf16.msra.mxu1 %v2335_v5  ;;  %2274 = vmatprep.subr.bf16.mxu0 %v2273_v6  ;;  %v613_v5 = vld [vmem:[%s4394_s2 + $0xa18] sm:$0xff]  ;;  %v2371_v6 = vpack.c.bf16 %v576_v3, %v558_v2  ;;  %v2538_v2 = vmov 0.0  }
 0x11c   : > { %2338 = vmatprep.subr.bf16.mxu1 %v2337_v10  ;;  %v2373_v7 = vpack.c.bf16 %v613_v5, %v595_v4  ;;  %v631_v10 = vld [vmem:[%s4394_s2 + $0xaa8] sm:$0xff] }
 0x11d   : > { %v2377_v13 = vpack.c.bf16 %v649_v11, %v631_v10  ;;  %v1505_v10 = vld [vmem:[%s2596_s30] sm:$0xff]  ;;  %v1506_v11 = vld [vmem:[%s2596_s30 + $0x8] sm:$0xff] }
 0x11e   : > { %2276 = vmatpush1.bf16.msra.mxu0 %v2275_v14  ;;  %v630_v14 = vld [vmem:[%s4394_s2 + $0xaa0] sm:$0xff] }
 0x11f   : > { %2340 = vmatpush1.bf16.msra.mxu1 %v2339_v15  ;;  %2342 = vmatprep.subr.bf16.mxu0 %v2341_v18  ;;  %v648_v15 = vld [vmem:[%s4394_s2 + $0xb30] sm:$0xff]  ;;  %v667_v18 = vld [vmem:[%s4394_s2 + $0xbc8] sm:$0xff] }
 0x120   : > { %v2379_v20 = vpack.c.bf16 %v648_v15, %v630_v14  ;;  %v2381_v21 = vpack.c.bf16 %v685_v19, %v667_v18  ;;  %v1509_v14 = vld [vmem:[%s2601_s10] sm:$0xff]  ;;  %v1510_v15 = vld [vmem:[%s2601_s10 + $0x8] sm:$0xff] }
 0x121   : > { %1357 = vmatmul.mubr.f32.vlgmr.msra.gmra.mrb[6].mxu0 %v3829_v34 }
 0x122   : > { %1428 = vmatmul.mubr.f32.vlgmr.msra.gmra.mrb[6].mxu1 %v3829_v34  ;;  %2344 = vmatpush1.bf16.msra.mxu0 %v2343_v23  ;;  %v684_v23 = vld [vmem:[%s4394_s2 + $0xc50] sm:$0xff] }
 0x123   : > { %2346 = vmatprep.subr.bf16.mxu0 %v2345_v24  ;;  %1498 = vmatprep.mubr.f32.mxu0 %v3857_v46  ;;  %v432_v46 = vld [vmem:[%s4394_s2 + $0x470] sm:$0xff]  ;;  %v703_v24 = vld [vmem:[%s4394_s2 + $0xce8] sm:$0xff]  ;;  %v2383_v26 = vpack.c.bf16 %v684_v23, %v666_v22 }
 0x124   : > { %v2355_v41 = vpack.c.bf16 %v432_v46, %v414_v38  ;;  %v2385_v27 = vpack.c.bf16 %v721_v25, %v703_v24  ;;  %v793_v38 = vld [vmem:[%s4394_s2 + $0xfb8] sm:$0xff]  ;;  %1594 = vmatprep.mubr.f32.mxu1 %v2538_v2  ;;  %v1511_v22 = vld [vmem:[%s2601_s10 + $0x10] sm:$0xff] }
 0x125   : > { %v1512_v24 = vld [vmem:[%s2601_s10 + $0x18] sm:$0xff] }
 0x126   : > { %2348 = vmatpush1.bf16.msra.mxu0 %v2347_v29  ;;  %v720_v29 = vld [vmem:[%s4394_s2 + $0xd70] sm:$0xff] }
 0x127   : > { %2350 = vmatprep.subr.bf16.mxu0 %v2349_v30  ;;  %v739_v30 = vld [vmem:[%s4394_s2 + $0xe08] sm:$0xff]  ;;  %v2387_v32 = vpack.c.bf16 %v720_v29, %v702_v28 }
 0x128   : > { %v2389_v33 = vpack.c.bf16 %v757_v31, %v739_v30  ;;  %v1513_v30 = vld [vmem:[%s2601_s10 + $0x20] sm:$0xff] }
 0x12a   : > { %2352 = vmatpush1.bf16.msra.mxu0 %v2351_v36  ;;  %v756_v36 = vld [vmem:[%s4394_s2 + $0xe90] sm:$0xff] }
 0x12b   : > { %2354 = vmatprep.subr.bf16.mxu0 %v2353_v37  ;;  %v775_v37 = vld [vmem:[%s4394_s2 + $0xf28] sm:$0xff]  ;;  %v2391_v46 = vpack.c.bf16 %v756_v36, %v738_v35 }
 0x12c   : > { %v2393_v39 = vpack.c.bf16 %v793_v38, %v775_v37 }
 0x12e   : > { %2356 = vmatpush1.bf16.msra.mxu0 %v2355_v41  ;;  %v792_v41 = vld [vmem:[%s4394_s2 + $0xfb0] sm:$0xff] }
 0x12f   : > { %2358 = vmatprep.subr.bf16.mxu0 %v2357_v16  ;;  %v811_v16 = vld [vmem:[%s4394_s2 + $0x1048] sm:$0xff]  ;;  %v2395_v43 = vpack.c.bf16 %v792_v41, %v774_v40  ;;  %v1516_v40 = vld [vmem:[%s2601_s10 + $0x38] sm:$0xff] }
 0x130   : > { %v2397_v44 = vpack.c.bf16 %v829_v42, %v811_v16 }
 0x132   : > { %2360 = vmatpush1.bf16.msra.mxu0 %v2359_v47  ;;  %v828_v47 = vld [vmem:[%s4394_s2 + $0x10d0] sm:$0xff] }
 0x133   : > { %2362 = vmatprep.subr.bf16.mxu0 %v2361_v48  ;;  %v847_v48 = vld [vmem:[%s4394_s2 + $0x1168] sm:$0xff]  ;;  %v2399_v50 = vpack.c.bf16 %v828_v47, %v810_v45 }
 0x134   : > { %v932_v56 = vpop.f32.mrb[0].mxu0  ;;  %v2401_v51 = vpack.c.bf16 %v865_v49, %v847_v48 }
 0x135   : > { %v1003_v59 = vpop.f32.mrb[0].mxu1  ;;  %v934_v60 = vpop.f32.mrb[1].mxu0 }
 0x136   : > { %v2407_v61 = vpack.c.bf16 %v1003_v59, %v932_v56  ;;  %v1005_v62 = vpop.f32.mrb[1].mxu1  ;;  %2364 = vmatpush1.bf16.msra.mxu0 %v2363_v17  ;;  %v864_v17 = vld [vmem:[%s4394_s2 + $0x11f0] sm:$0xff] }
 0x137   : > { %v2405_v0 = vpack.c.bf16 %v1005_v62, %v934_v60  ;;  %2366 = vmatprep.subr.bf16.mxu0 %v2365_v53  ;;  %v2403_v53 = vpack.c.bf16 %v864_v17, %v846_v52 }
 0x139   : > { %2406 = vmatprep.subr.bf16.mxu1 %v2405_v0 }
 0x13a   : > { %2408 = vmatpush1.bf16.msra.mxu1 %v2407_v61  ;;  %2368 = vmatpush1.bf16.msra.mxu0 %v2367_v63 }
 0x13b   : > { %2370 = vmatprep.subr.bf16.mxu0 %v2369_v1 }
 0x13e   : > { %2372 = vmatpush1.bf16.msra.mxu0 %v2371_v6 }
 0x13f   : > { %2374 = vmatprep.subr.bf16.mxu0 %v2373_v7 }
 0x142   : > { %2376 = vmatpush1.bf16.msra.mxu0 %v2375_v12  ;;  %v1507_v12 = vld [vmem:[%s2596_s30 + $0x10] sm:$0xff] }
 0x143   : > { %2378 = vmatprep.subr.bf16.mxu0 %v2377_v13  ;;  %v1508_v13 = vld [vmem:[%s2596_s30 + $0x18] sm:$0xff] }
 0x146   : > { %2380 = vmatpush1.bf16.msra.mxu0 %v2379_v20 }
 0x147   : > { %2382 = vmatprep.subr.bf16.mxu0 %v2381_v21 }
 0x14a   : > { %2384 = vmatpush1.bf16.msra.mxu0 %v2383_v26 }
 0x14b   : > { %2386 = vmatprep.subr.bf16.mxu0 %v2385_v27 }
 0x14e   : > { %2388 = vmatpush1.bf16.msra.mxu0 %v2387_v32  ;;  %v1514_v32 = vld [vmem:[%s2601_s10 + $0x28] sm:$0xff] }
 0x14f   : > { %2390 = vmatprep.subr.bf16.mxu0 %v2389_v33 }
 0x152   : > { %2392 = vmatpush1.bf16.msra.mxu0 %v2391_v46  ;;  %v1515_v46 = vld [vmem:[%s2601_s10 + $0x30] sm:$0xff] }
 0x153   : > { %2394 = vmatprep.subr.bf16.mxu0 %v2393_v39 }
 0x156   : > { %2396 = vmatpush1.bf16.msra.mxu0 %v2395_v43 }
 0x157   : > { %2398 = vmatprep.subr.bf16.mxu0 %v2397_v44 }
 0x15a   : > { %2400 = vmatpush1.bf16.msra.mxu0 %v2399_v50 }
 0x15b   : > { %2402 = vmatprep.subr.bf16.mxu0 %v2401_v51 }
 0x15e   : > { %2404 = vmatpush1.bf16.msra.mxu0 %v2403_v53 }
 0x161   : > { %1499 = vmatmul.mubr.f32.vlgmr.msra.gmra.mrb[8].mxu0 %v3829_v34 }
 0x174   : > { %v1074_v54 = vpop.f32.mrb[2].mxu0 }
 0x175   : > { %v1145_v55 = vpop.f32.mrb[2].mxu1  ;;  %v1076_v56 = vpop.f32.mrb[3].mxu0 }
 0x176   : > { %v2411_v57 = vpack.c.bf16 %v1145_v55, %v1074_v54  ;;  %v1147_v58 = vpop.f32.mrb[3].mxu1 }
 0x177   : > { %v2409_v59 = vpack.c.bf16 %v1147_v58, %v1076_v56 }
 0x179   : > { %2410 = vmatprep.subr.bf16.mxu1 %v2409_v59 }
 0x17a   : > { %2412 = vmatpush1.bf16.msra.mxu1 %v2411_v57 }
 0x1b4   : > { %v1216_v60 = vpop.f32.mrb[4].mxu0 }
 0x1b5   : > { %v1287_v61 = vpop.f32.mrb[4].mxu1  ;;  %v1218_v62 = vpop.f32.mrb[5].mxu0 }
 0x1b6   : > { %v2415_v63 = vpack.c.bf16 %v1287_v61, %v1216_v60  ;;  %v1289_v0 = vpop.f32.mrb[5].mxu1  ;;  %v1657_v60 = vld [vmem:[#allocation3] sm:$0xff] }
 0x1b7   : > { %v2413_v1 = vpack.c.bf16 %v1289_v0, %v1218_v62  ;;  %v1658_v62 = vld [vmem:[#allocation3 + $0x8] sm:$0xff] }
 0x1b9   : > { %2414 = vmatprep.subr.bf16.mxu1 %v2413_v1 }
 0x1ba   : > { %2416 = vmatpush1.bf16.msra.mxu1 %v2415_v63 }
 0x1f4   : > { %v1358_v34 = vpop.f32.mrb[6].mxu0 }
 0x1f5   : > { %v1429_v3 = vpop.f32.mrb[6].mxu1  ;;  %v1360_v4 = vpop.f32.mrb[7].mxu0 }
 0x1f6   : > { %v2419_v5 = vpack.c.bf16 %v1429_v3, %v1358_v34  ;;  %v1431_v6 = vpop.f32.mrb[7].mxu1 }
 0x1f7   : > { %v2417_v7 = vpack.c.bf16 %v1431_v6, %v1360_v4 }
 0x1f9   : > { %2418 = vmatprep.subr.bf16.mxu1 %v2417_v7 }
 0x1fa   : > { %2420 = vmatpush1.bf16.msra.mxu1 %v2419_v5 }
 0x234   : > { %v1500_v8 = vpop.f32.mrb[8].mxu0 }
 0x235   : > { %v1502_v9 = vpop.f32.mrb[9].mxu0 }
 0x236   : > { %1546 = vmatprep.subr.mxu1 %v1502_v9 }
 0x237   : > { %1547 = vmatpush1.msra.mxu1 %v1500_v8 }
 0x238   : > { %1816 = vmatmul.mubr.msk.f32.vlgmr.msra.gmra.mrb[8].mxu1 %vm1517_vm0, %v1505_v10 }
 0x239   : > { %1600 = vmatprep.mubr.f32.mxu1 %v2538_v2 }
 0x23c   : > { %1817 = vmatmul.mubr.msk.f32.gmra.mrb[10].mxu1 %vm1517_vm0, %v1506_v11 }
 0x23d   : > { %1606 = vmatprep.mubr.f32.mxu1 %v2538_v2 }
 0x240   : > { %1818 = vmatmul.mubr.msk.f32.gmra.mrb[12].mxu1 %vm1517_vm0, %v1507_v12 }
 0x241   : > { %1612 = vmatprep.mubr.f32.mxu1 %v2538_v2 }
 0x244   : > { %1819 = vmatmul.mubr.msk.f32.gmra.mrb[14].mxu1 %vm1517_vm0, %v1508_v13 }
 0x30b   : > { %v1596_v18 = vpop.f32.mrb[8].mxu1 }
 0x30c   : > { %v1597_v19 = vadd.f32 %v1596_v18, %v1509_v14  ;;  %v1598_v20 = vpop.f32.mrb[9].mxu1 }
 0x30d   : > { %v1599_v21 = vadd.f32 %v1598_v20, %v1510_v15 }
 0x30e   : > { %v1820_v23 = vmul.f32 -1.442695, %v1597_v19 }
 0x30f   : > { %v1821_v25 = vmul.f32 -1.442695, %v1599_v21  ;;  %v1602_v26 = vpop.f32.mrb[10].mxu1 }
 0x310   : > { %2463 = vpow2.f32 %v1820_v23  ;;  %v1603_v27 = vadd.f32 %v1602_v26, %v1511_v22  ;;  %v1604_v28 = vpop.f32.mrb[11].mxu1 }
 0x311   : > { %2465 = vpow2.f32 %v1821_v25  ;;  %v1605_v29 = vadd.f32 %v1604_v28, %v1512_v24 }
 0x312   : > { %v1822_v31 = vmul.f32 -1.442695, %v1603_v27 }
 0x313   : > { %v1823_v33 = vmul.f32 -1.442695, %v1605_v29  ;;  %v1608_v35 = vpop.f32.mrb[12].mxu1 }
 0x314   : > { %2467 = vpow2.f32 %v1822_v31  ;;  %v1609_v36 = vadd.f32 %v1608_v35, %v1513_v30  ;;  %v1610_v37 = vpop.f32.mrb[13].mxu1 }
 0x315   : > { %2469 = vpow2.f32 %v1823_v33  ;;  %v1611_v38 = vadd.f32 %v1610_v37, %v1514_v32 }
 0x316   : > { %v1824_v39 = vmul.f32 -1.442695, %v1609_v36 }
 0x317   : > { %v1825_v41 = vmul.f32 -1.442695, %v1611_v38  ;;  %v1614_v16 = vpop.f32.mrb[14].mxu1 }
 0x318   : > { %v1615_v42 = vadd.f32 %v1614_v16, %v1515_v46  ;;  %v1616_v43 = vpop.f32.mrb[15].mxu1  ;;  %2471 = vpow2.f32 %v1824_v39 }
 0x319   : > { %v1617_v44 = vadd.f32 %v1616_v43, %v1516_v40  ;;  %2473 = vpow2.f32 %v1825_v41 }
 0x31a   : > { %v2464_v45 = vpop.eup %2463  ;;  %2475 = vtanh.f32 %v1615_v42 }
 0x31b   : > { %v2466_v47 = vpop.eup %2465  ;;  %v1625_v48 = vadd.f32 1.0, %v2464_v45  ;;  %2477 = vtanh.f32 %v1617_v44 }
 0x31c   : > { %v1626_v49 = vadd.f32 1.0, %v2466_v47 }
 0x31d   : > { %2479 = vrcp.f32 %v1625_v48 }
 0x31e   : > { %v2468_v50 = vpop.eup %2467  ;;  %2481 = vrcp.f32 %v1626_v49 }
 0x31f   : > { %v2470_v51 = vpop.eup %2469  ;;  %v1637_v52 = vadd.f32 1.0, %v2468_v50 }
 0x320   : > { %v1638_v17 = vadd.f32 1.0, %v2470_v51 }
 0x321   : > { %2483 = vrcp.f32 %v1637_v52 }
 0x322   : > { %2485 = vrcp.f32 %v1638_v17  ;;  %v2472_v53 = vpop.eup %2471 }
 0x323   : > { %v2474_v54 = vpop.eup %2473  ;;  %v1649_v63 = vadd.f32 1.0, %v2472_v53 }
 0x324   : > { %v2476_v55 = vpop.eup %2475  ;;  %v1650_v1 = vadd.f32 1.0, %v2474_v54 }
 0x325   : > { %v2478_v56 = vpop.eup %2477  ;;  %2487 = vrcp.f32 %v1649_v63 }
 0x326   : > { %2489 = vrcp.f32 %v1650_v1 }
 0x327   : > { %v2480_v57 = vpop.eup %2479 }
 0x328   : > { %v2482_v58 = vpop.eup %2481  ;;  %v1661_v59 = vmul.f32 %v2480_v57, %v2476_v55 }
 0x329   : > { %v1662_v61 = vmul.f32 %v2482_v58, %v2478_v56 }
 0x32b   : > { %v2484_v0 = vpop.eup %2483 }
 0x32c   : > { %v2486_v2 = vpop.eup %2485  ;;  %v1659_v34 = vmul.f32 %v2484_v0, %v1657_v60 }
 0x32d   : > { %v1660_v3 = vmul.f32 %v2486_v2, %v1658_v62 }
 0x32e   : > { %v1663_v4 = vadd.f32 %v1661_v59, %v1659_v34 }
 0x32f   : > { %v1664_v5 = vadd.f32 %v1662_v61, %v1660_v3  ;;  %v2488_v6 = vpop.eup %2487 }
 0x330   : > { %2491 = vtanh.f32 %v1663_v4  ;;  %1669 = vst [vmem:[#allocation3] sm:$0xff] %v1663_v4  ;;  %v2490_v7 = vpop.eup %2489 }
 0x331   : > { %2493 = vtanh.f32 %v1664_v5  ;;  %1670 = vst [vmem:[#allocation3 + $0x8] sm:$0xff] %v1664_v5 }
 0x33a   : > { %v2492_v8 = vpop.eup %2491 }
 0x33b   : > { %v2494_v9 = vpop.eup %2493  ;;  %v1667_v10 = vmul.f32 %v2492_v8, %v2488_v6 }
 0x33c   : > { %v1668_v11 = vmul.f32 %v2494_v9, %v2490_v7 }
 0x33d   : > { %1671 = vst [vmem:[#allocation2] sm:$0xff] %v1667_v10  ;;  %1673 = vst [vmem:[%s2606_s13] sm:$0xff] %v1667_v10 }
 0x33e   : > { %1672 = vst [vmem:[#allocation2 + $0x8] sm:$0xff] %v1668_v11  ;;  %1674 = vst [vmem:[%s2606_s13 + $0x8] sm:$0xff] %v1668_v11 }
 0x33f PF: > { %s13_s16 = sadd.s32 1, %s2535_s16   ;;  %s4396_s12 = smov %s2527_s14 }
 0x340   : > { %p10_p9 = scmp.ge.s32.totalorder %s13_s16, 18   ;;  %s4397_s13 = smov %s2531_s15 }
 0x341   : > { %s4398_s14 = smov %s4401_s17  ;;  %s4399_s15 = smov %s4405_s18 }
 0x342   :  { %12 = sbr.rel (!%p10_p9) target bundleno = 3 (0x3), region = 69 }

// kernel: convlstm_network_forward.3
= control target key start
LH: loop header
LB: loop body
LE: loop exit
PB: predicated region body
PF: predicated region fallthrough
CT: control target
= control target key end

     0   :  { %14 = vsyncpa [#allocation3], 0  ;;  %s5423_s0 = inlined_call_operand.vmem [shape: f32[8,32,256], index: 0, kind: input, shape index: {}]   ;;  %s5424_s1 = inlined_call_operand.hbm [shape: f32[256,2304], index: 1, kind: input, shape index: {}]   ;;  %s5425_s2 = inlined_call_operand.vmem [shape: f32[16,288], index: 2, kind: input, shape index: {}]   ;;  %s5426_s3 = inlined_call_operand.vmem [shape: f32[16,1], index: 3, kind: input, shape index: {}]   ;;  %s5427_s4 = inlined_call_operand.vmem [shape: f32[16,1], index: 4, kind: input, shape index: {}]   ;;  %s5428_s5 = inlined_call_operand.hbm [shape: f32[8,16], index: 5, kind: input, shape index: {}]   ;;  %s5429_s6 = inlined_call_operand.hbm [shape: f32[256,2304], index: 6, kind: input, shape index: {}]   ;;  %s5430_s7 = inlined_call_operand.vmem [shape: f32[64,72], index: 7, kind: input, shape index: {}]   ;;  %s5431_s8 = inlined_call_operand.vmem [shape: f32[64,1], index: 8, kind: input, shape index: {}]   ;;  %s5432_s9 = inlined_call_operand.vmem [shape: f32[8,64,256], index: 9, kind: output, shape index: {}]  }
   0x1   :  { %15 = vsyncpa [#allocation5], 0  ;;  %s5040_s30 = smov 0  }
   0x2 LB: > { %s4983_s10 = smov [#allocation4]   ;;  %s5046_s12 = sadd.s32 4294967295, %s4981_s30   ;;  %s4981_s30 = sphi %s5040_s30, %s21_s30  }
   0x3   : > { %s281_s11 = sshll.u32 %s4983_s10, 4  ;;  %p3554_p0 = scmp.ge.s32.totalorder %s4981_s30, 1  ;;  %s282_s11 = int_to_ptr.vmem [resolvable:$true] %s281_s11 }
   0x4   : > { %p246_p1 = scmp.lt.s32.totalorder %s4981_s30, 9  ;;  %p5433_p2 = scmp.eq.s32.totalorder %s5046_s12, 0 }
   0x5   : > { %s4984_s14 = smov [#allocation2]   ;;  %s4985_s17 = smov [#allocation6]  }
   0x6   : > { %p5051_p3 = pnand %p3554_p0, %p246_p1  ;;  %s258_s15 = sshll.u32 %s4984_s14, 4  ;;  %s5063_s15 = int_to_ptr.vmem [resolvable:$true] %s258_s15 }
   0x7   : > { %s291_s18 = sshll.u32 %s4985_s17, 4  ;;  %s4883_s21 = scalar_lea.hbm %s5428_s5, 128  ;;  %s5065_s18 = int_to_ptr.vmem [resolvable:$true] %s291_s18 }
   0x8   : > { %s5435_s13 = scalar_select %p5051_p3, 1, 0 }
   0x9   : > { %p4842_p4 = pneg %p5051_p3  ;;  %p4884_p6 = scmp.ne.s32.totalorder %s5428_s5, %s4883_s21 }
   0xa   : > { %p4890_p10 = scmp.lt.u32.totalorder %s4883_s21, %s5428_s5 }
   0xb   : > { %p5059_p5 = pnand %p5433_p2, %p4842_p4 }
   0xd   : > { %p5075_p7 = pneg %p5059_p5 }
   0xf   : > { %p4886_p8 = pnand %p5075_p7, %p4884_p6 }
  0x11   : > { %p4887_p9 = pneg %p4886_p8 }
  0x13   : > { %p4892_p11 = pnand %p4890_p10, %p4887_p9 }
  0x15   : > { %4895 = shalt.err (!%p4892_p11)
}
  0x16   : > { %s4896_s27 = scalar_lea.vmem %s282_s11, 128  ;;  %p4904_p1 = scmp.lt.s32.totalorder %s282_s11, %s282_s11 }
  0x17   : > { %p4897_p12 = scmp.ne.s32.totalorder %s282_s11, %s4896_s27  ;;  %p4905_p4 = scmp.lt.s32.totalorder %s4896_s27, %s4896_s27 }
  0x19   : > { %p4899_p13 = pnand %p4897_p12, %p5075_p7  ;;  %p4906_p2 = por %p4905_p4, %p4904_p1 }
  0x1b   : > { %p4900_p0 = pneg %p4899_p13 }
  0x1d   : > { %p4907_p3 = pnand %p4906_p2, %p4900_p0 }
  0x1f   : > { %4910 = shalt.err (!%p4907_p3)
}
  0x20   : > { %4848 = dma.hbm_to_vmem [thread:$0]  (!%p5059_p5), %s5428_s5, 128, %s282_s11, [#allocation5]  }
  0x21   : > { %s4911_s17 = scalar_lea.hbm %s5424_s1, 73728 }
  0x22   : > { %p4912_p6 = scmp.ne.s32.totalorder %s5424_s1, %s4911_s17  ;;  %p4918_p2 = scmp.lt.u32.totalorder %s4911_s17, %s5424_s1 }
  0x24   : > { %p4914_p8 = pnand %p4912_p6, %p5075_p7 }
  0x26   : > { %p4915_p9 = pneg %p4914_p8 }
  0x28   : > { %p4920_p3 = pnand %p4918_p2, %p4915_p9 }
  0x2a   : > { %4923 = shalt.err (!%p4920_p3)
}
  0x2b   : > { %s4924_s11 = scalar_lea.vmem %s5063_s15, 73728  ;;  %p4932_p13 = scmp.lt.s32.totalorder %s5063_s15, %s5063_s15 }
  0x2c   : > { %p4925_p10 = scmp.ne.s32.totalorder %s5063_s15, %s4924_s11  ;;  %p4933_p0 = scmp.lt.s32.totalorder %s4924_s11, %s4924_s11 }
  0x2e   : > { %p4927_p11 = pnand %p4925_p10, %p5075_p7  ;;  %p4934_p1 = por %p4933_p0, %p4932_p13 }
  0x30   : > { %p4928_p12 = pneg %p4927_p11 }
  0x32   : > { %p4935_p4 = pnand %p4934_p1, %p4928_p12 }
  0x34   : > { %4938 = shalt.err (!%p4935_p4)
}
  0x35   : > { %s4986_s23 = smov 2304   ;;  %s4987_s25 = smov 144  }
  0x36   : > { %4845 = dma.hbm_to_vmem [thread:$0]  (!%p5059_p5), %s5424_s1, 73728, %s5063_s15, [#allocation3], %s4986_s23, %s4986_s23, %s4987_s25  }
  0x37   : > { %s4939_s10 = scalar_lea.hbm %s5429_s6, 73728 }
  0x38   : > { %p4940_p6 = scmp.ne.s32.totalorder %s5429_s6, %s4939_s10  ;;  %p4946_p2 = scmp.lt.u32.totalorder %s4939_s10, %s5429_s6 }
  0x3a   : > { %p4942_p8 = pnand %p4940_p6, %p5075_p7 }
  0x3c   : > { %p4943_p9 = pneg %p4942_p8 }
  0x3e   : > { %p4948_p3 = pnand %p4946_p2, %p4943_p9 }
  0x40   : > { %4951 = shalt.err (!%p4948_p3)
}
  0x41   : > { %s4952_s15 = scalar_lea.vmem %s5065_s18, 73728  ;;  %p4960_p13 = scmp.lt.s32.totalorder %s5065_s18, %s5065_s18 }
  0x42   : > { %p4953_p10 = scmp.ne.s32.totalorder %s5065_s18, %s4952_s15  ;;  %p4961_p0 = scmp.lt.s32.totalorder %s4952_s15, %s4952_s15 }
  0x44   : > { %p4955_p11 = pnand %p4953_p10, %p5075_p7  ;;  %p4962_p1 = por %p4961_p0, %p4960_p13 }
  0x46   : > { %p4956_p12 = pneg %p4955_p11 }
  0x48   : > { %p4963_p4 = pnand %p4962_p1, %p4956_p12 }
  0x4a   : > { %4966 = shalt.err (!%p4963_p4)
}
  0x4b   : > { %4851 = dma.hbm_to_vmem [thread:$0]  (!%p5059_p5), %s5429_s6, 73728, %s5065_s18, [#allocation5], %s4986_s23, %s4986_s23, %s4987_s25  }
  0x4c   : > { %p5438_p6 = scmp.ne.s32.totalorder %s5435_s13, 0 }
  0x4d   : > { %p5439_p8 = scmp.eq.s32.totalorder (!%p5438_p6), %s5046_s12, 0 }
  0x4e   : > { %321 = sbr.rel (%p5438_p6) target bundleno = 1806 (0x70e), region = 56 }
  0x55   : > { %4972 = dma.done.wait (%p5439_p8), [#allocation3], 73728   ;;  %p5440_p7 = pmov %p5439_p8 }
  0x57   : > { %4974 = vsyncadd (%p5440_p7), [#allocation3], 4294893568  ;;  %p5441_p9 = pmov %p5440_p7 }
  0x58   : > { %p5442_p2 = pmov %p5440_p7 }
  0x59   : > { %4976 = dma.done.wait (%p5441_p9), [#allocation5], 73856  }
  0x5a   : > { %4978 = vsyncadd (%p5442_p2), [#allocation5], 4294893440  ;;  %v384_v0 = vld [vmem:[#allocation2 + $0x8] sm:$0xff]  ;;  %v402_v1 = vld [vmem:[#allocation2 + $0x98] sm:$0xff]  ;;  %p365_p5 = scmp.lt.s32.totalorder %s5046_s12, 7  ;;  %vm1766_vm0 = vcmask 261120  }
  0x5b   : > { %v383_v2 = vld [vmem:[#allocation2] sm:$0xff]  ;;  %v3582_v3 = vpack.c.bf16 %v402_v1, %v384_v0  ;;  %v401_v4 = vld [vmem:[#allocation2 + $0x90] sm:$0xff]  ;;  %v420_v5 = vld [vmem:[#allocation2 + $0x128] sm:$0xff]  ;;  %vm1964_vm1 = vcmask 130048   ;;  %vm3312_vm2 = vcmask 588800  }
  0x5c   : > { %v438_v6 = vld [vmem:[#allocation2 + $0x1b8] sm:$0xff]  ;;  %v3584_v7 = vpack.c.bf16 %v401_v4, %v383_v2  ;;  %v419_v9 = vld [vmem:[#allocation2 + $0x120] sm:$0xff]  ;;  %v437_v10 = vld [vmem:[#allocation2 + $0x1b0] sm:$0xff]  ;;  %s5444_s12 = smov (!%p365_p5, %s5046_s12), 7 }
  0x5d   : > { %v3586_v8 = vpack.c.bf16 %v438_v6, %v420_v5  ;;  %v456_v11 = vld [vmem:[#allocation2 + $0x248] sm:$0xff]  ;;  %3583 = vmatprep.subr.bf16.mxu0 %v3582_v3  ;;  %v474_v12 = vld [vmem:[#allocation2 + $0x2d8] sm:$0xff]  ;;  %v3588_v13 = vpack.c.bf16 %v437_v10, %v419_v9  ;;  %v455_v15 = vld [vmem:[#allocation2 + $0x240] sm:$0xff]  ;;  %s3580_s13 = sshll.u32 %s5444_s12, 6  ;;  %s3581_s22 = sshll.u32 %s5444_s12, 7 }
  0x5e   : > { %3585 = vmatpush1.bf16.msra.mxu0 %v3584_v7  ;;  %v3590_v14 = vpack.c.bf16 %v474_v12, %v456_v11  ;;  %v473_v16 = vld [vmem:[#allocation2 + $0x2d0] sm:$0xff]  ;;  %v492_v17 = vld [vmem:[#allocation2 + $0x368] sm:$0xff]  ;;  %v510_v18 = vld [vmem:[#allocation2 + $0x3f8] sm:$0xff]  ;;  %s5157_s24 = scalar_lea.vmem %s5423_s0, %s3580_s13  ;;  %s5402_s18 = scalar_lea.vmem %s5432_s9, %s3581_s22 }
  0x5f   : > { %3587 = vmatprep.subr.bf16.mxu0 %v3586_v8  ;;  %v3592_v19 = vpack.c.bf16 %v473_v16, %v455_v15  ;;  %v491_v20 = vld [vmem:[#allocation2 + $0x360] sm:$0xff]  ;;  %v3594_v21 = vpack.c.bf16 %v510_v18, %v492_v17  ;;  %v509_v22 = vld [vmem:[#allocation2 + $0x3f0] sm:$0xff]  ;;  %v386_v23 = vld [vmem:[#allocation2 + $0x18] sm:$0xff] }
  0x60   : > { %v404_v24 = vld [vmem:[#allocation2 + $0xa8] sm:$0xff]  ;;  %v546_v26 = vld [vmem:[#allocation2 + $0x518] sm:$0xff]  ;;  %v385_v28 = vld [vmem:[#allocation2 + $0x10] sm:$0xff]  ;;  %v3596_v30 = vpack.c.bf16 %v509_v22, %v491_v20 }
  0x61   : > { %v528_v25 = vld [vmem:[#allocation2 + $0x488] sm:$0xff]  ;;  %v3646_v27 = vpack.c.bf16 %v404_v24, %v386_v23  ;;  %v403_v29 = vld [vmem:[#allocation2 + $0xa0] sm:$0xff]  ;;  %v422_v33 = vld [vmem:[#allocation2 + $0x138] sm:$0xff] }
  0x62   : > { %3589 = vmatpush1.bf16.msra.mxu0 %v3588_v13  ;;  %v527_v31 = vld [vmem:[#allocation2 + $0x480] sm:$0xff]  ;;  %v3648_v32 = vpack.c.bf16 %v403_v29, %v385_v28  ;;  %v440_v34 = vld [vmem:[#allocation2 + $0x1c8] sm:$0xff]  ;;  %v3598_v35 = vpack.c.bf16 %v546_v26, %v528_v25  ;;  %v545_v36 = vld [vmem:[#allocation2 + $0x510] sm:$0xff] }
  0x63   : > { %3591 = vmatprep.subr.bf16.mxu0 %v3590_v14  ;;  %3647 = vmatprep.subr.bf16.mxu1 %v3646_v27  ;;  %v3650_v37 = vpack.c.bf16 %v440_v34, %v422_v33  ;;  %v421_v38 = vld [vmem:[#allocation2 + $0x130] sm:$0xff]  ;;  %v439_v39 = vld [vmem:[#allocation2 + $0x1c0] sm:$0xff]  ;;  %v564_v40 = vld [vmem:[#allocation2 + $0x5a8] sm:$0xff]  ;;  %v3600_v45 = vpack.c.bf16 %v545_v36, %v527_v31 }
  0x64   : > { %v582_v41 = vld [vmem:[#allocation2 + $0x638] sm:$0xff]  ;;  %3649 = vmatpush1.bf16.msra.mxu1 %v3648_v32  ;;  %v3652_v42 = vpack.c.bf16 %v439_v39, %v421_v38  ;;  %v476_v44 = vld [vmem:[#allocation2 + $0x2e8] sm:$0xff]  ;;  %v563_v46 = vld [vmem:[#allocation2 + $0x5a0] sm:$0xff] }
  0x65   : > { %v458_v43 = vld [vmem:[#allocation2 + $0x258] sm:$0xff]  ;;  %3651 = vmatprep.subr.bf16.mxu1 %v3650_v37  ;;  %v457_v48 = vld [vmem:[#allocation2 + $0x250] sm:$0xff]  ;;  %v475_v49 = vld [vmem:[#allocation2 + $0x2e0] sm:$0xff]  ;;  %v3602_v50 = vpack.c.bf16 %v582_v41, %v564_v40 }
  0x66   : > { %3593 = vmatpush1.bf16.msra.mxu0 %v3592_v19  ;;  %v3654_v47 = vpack.c.bf16 %v476_v44, %v458_v43  ;;  %v581_v51 = vld [vmem:[#allocation2 + $0x630] sm:$0xff]  ;;  %v494_v52 = vld [vmem:[#allocation2 + $0x378] sm:$0xff]  ;;  %v512_v53 = vld [vmem:[#allocation2 + $0x408] sm:$0xff]  ;;  %v3656_v56 = vpack.c.bf16 %v475_v49, %v457_v48 }
  0x67   : > { %3595 = vmatprep.subr.bf16.mxu0 %v3594_v21  ;;  %v600_v54 = vld [vmem:[#allocation2 + $0x6c8] sm:$0xff]  ;;  %v618_v55 = vld [vmem:[#allocation2 + $0x758] sm:$0xff]  ;;  %v3658_v57 = vpack.c.bf16 %v512_v53, %v494_v52  ;;  %v493_v58 = vld [vmem:[#allocation2 + $0x370] sm:$0xff]  ;;  %v3604_v60 = vpack.c.bf16 %v581_v51, %v563_v46 }
  0x68   : > { %3653 = vmatpush1.bf16.msra.mxu1 %v3652_v42  ;;  %v511_v59 = vld [vmem:[#allocation2 + $0x400] sm:$0xff]  ;;  %v530_v61 = vld [vmem:[#allocation2 + $0x498] sm:$0xff]  ;;  %v548_v62 = vld [vmem:[#allocation2 + $0x528] sm:$0xff]  ;;  %v3606_v63 = vpack.c.bf16 %v618_v55, %v600_v54 }
  0x69   : > { %3655 = vmatprep.subr.bf16.mxu1 %v3654_v47  ;;  %v599_v0 = vld [vmem:[#allocation2 + $0x6c0] sm:$0xff]  ;;  %v617_v1 = vld [vmem:[#allocation2 + $0x750] sm:$0xff]  ;;  %v636_v2 = vld [vmem:[#allocation2 + $0x7e8] sm:$0xff]  ;;  %v3660_v4 = vpack.c.bf16 %v511_v59, %v493_v58  ;;  %v3662_v5 = vpack.c.bf16 %v548_v62, %v530_v61 }
  0x6a   : > { %3597 = vmatpush1.bf16.msra.mxu0 %v3596_v30  ;;  %v654_v3 = vld [vmem:[#allocation2 + $0x878] sm:$0xff]  ;;  %v529_v6 = vld [vmem:[#allocation2 + $0x490] sm:$0xff]  ;;  %v547_v7 = vld [vmem:[#allocation2 + $0x520] sm:$0xff]  ;;  %v3608_v8 = vpack.c.bf16 %v617_v1, %v599_v0 }
  0x6b   : > { %3599 = vmatprep.subr.bf16.mxu0 %v3598_v35  ;;  %v566_v9 = vld [vmem:[#allocation2 + $0x5b8] sm:$0xff]  ;;  %v584_v10 = vld [vmem:[#allocation2 + $0x648] sm:$0xff]  ;;  %v3610_v11 = vpack.c.bf16 %v654_v3, %v636_v2  ;;  %v635_v12 = vld [vmem:[#allocation2 + $0x7e0] sm:$0xff]  ;;  %v3664_v16 = vpack.c.bf16 %v547_v7, %v529_v6 }
  0x6c   : > { %3657 = vmatpush1.bf16.msra.mxu1 %v3656_v56  ;;  %v653_v13 = vld [vmem:[#allocation2 + $0x870] sm:$0xff]  ;;  %v672_v14 = vld [vmem:[#allocation2 + $0x908] sm:$0xff]  ;;  %v690_v15 = vld [vmem:[#allocation2 + $0x998] sm:$0xff]  ;;  %v3666_v17 = vpack.c.bf16 %v584_v10, %v566_v9 }
  0x6d   : > { %3659 = vmatprep.subr.bf16.mxu1 %v3658_v57  ;;  %v565_v18 = vld [vmem:[#allocation2 + $0x5b0] sm:$0xff]  ;;  %v583_v19 = vld [vmem:[#allocation2 + $0x640] sm:$0xff]  ;;  %v3612_v20 = vpack.c.bf16 %v653_v13, %v635_v12  ;;  %v602_v21 = vld [vmem:[#allocation2 + $0x6d8] sm:$0xff]  ;;  %v3614_v23 = vpack.c.bf16 %v690_v15, %v672_v14 }
  0x6e   : > { %3601 = vmatpush1.bf16.msra.mxu0 %v3600_v45  ;;  %v620_v22 = vld [vmem:[#allocation2 + $0x768] sm:$0xff]  ;;  %v671_v24 = vld [vmem:[#allocation2 + $0x900] sm:$0xff]  ;;  %v689_v25 = vld [vmem:[#allocation2 + $0x990] sm:$0xff]  ;;  %v3668_v28 = vpack.c.bf16 %v583_v19, %v565_v18 }
  0x6f   : > { %3603 = vmatprep.subr.bf16.mxu0 %v3602_v50  ;;  %v708_v26 = vld [vmem:[#allocation2 + $0xa28] sm:$0xff]  ;;  %v726_v27 = vld [vmem:[#allocation2 + $0xab8] sm:$0xff]  ;;  %v3670_v29 = vpack.c.bf16 %v620_v22, %v602_v21  ;;  %v601_v30 = vld [vmem:[#allocation2 + $0x6d0] sm:$0xff]  ;;  %v3616_v32 = vpack.c.bf16 %v689_v25, %v671_v24 }
  0x70   : > { %3661 = vmatpush1.bf16.msra.mxu1 %v3660_v4  ;;  %v619_v31 = vld [vmem:[#allocation2 + $0x760] sm:$0xff]  ;;  %v638_v33 = vld [vmem:[#allocation2 + $0x7f8] sm:$0xff]  ;;  %v656_v34 = vld [vmem:[#allocation2 + $0x888] sm:$0xff]  ;;  %v3618_v35 = vpack.c.bf16 %v726_v27, %v708_v26 }
  0x71   : > { %3663 = vmatprep.subr.bf16.mxu1 %v3662_v5  ;;  %v707_v36 = vld [vmem:[#allocation2 + $0xa20] sm:$0xff]  ;;  %v725_v37 = vld [vmem:[#allocation2 + $0xab0] sm:$0xff]  ;;  %v5160_v38 = vld [vmem:[%s5157_s24 + $0x8] sm:$0xff]  ;;  %v3672_v41 = vpack.c.bf16 %v619_v31, %v601_v30  ;;  %v3674_v42 = vpack.c.bf16 %v656_v34, %v638_v33 }
  0x72   : > { %3605 = vmatpush1.bf16.msra.mxu0 %v3604_v60  ;;  %v744_v39 = vld [vmem:[#allocation2 + $0xb48] sm:$0xff]  ;;  %v762_v40 = vld [vmem:[#allocation2 + $0xbd8] sm:$0xff]  ;;  %1023 = vmatprep.mubr.f32.mxu0 %v5160_v38  ;;  %v637_v43 = vld [vmem:[#allocation2 + $0x7f0] sm:$0xff]  ;;  %v3620_v45 = vpack.c.bf16 %v725_v37, %v707_v36 }
  0x73   : > { %3607 = vmatprep.subr.bf16.mxu0 %v3606_v63  ;;  %v655_v44 = vld [vmem:[#allocation2 + $0x880] sm:$0xff]  ;;  %1112 = vmatprep.mubr.f32.mxu1 %v5160_v38  ;;  %v674_v46 = vld [vmem:[#allocation2 + $0x918] sm:$0xff]  ;;  %v692_v47 = vld [vmem:[#allocation2 + $0x9a8] sm:$0xff]  ;;  %v3622_v48 = vpack.c.bf16 %v762_v40, %v744_v39 }
  0x74   : > { %3665 = vmatpush1.bf16.msra.mxu1 %v3664_v16  ;;  %v743_v49 = vld [vmem:[#allocation2 + $0xb40] sm:$0xff]  ;;  %v761_v50 = vld [vmem:[#allocation2 + $0xbd0] sm:$0xff]  ;;  %v780_v51 = vld [vmem:[#allocation2 + $0xc68] sm:$0xff]  ;;  %v3676_v53 = vpack.c.bf16 %v655_v44, %v637_v43  ;;  %v3678_v54 = vpack.c.bf16 %v692_v47, %v674_v46 }
  0x75   : > { %3667 = vmatprep.subr.bf16.mxu1 %v3666_v17  ;;  %v798_v52 = vld [vmem:[#allocation2 + $0xcf8] sm:$0xff]  ;;  %v673_v55 = vld [vmem:[#allocation2 + $0x910] sm:$0xff]  ;;  %v691_v56 = vld [vmem:[#allocation2 + $0x9a0] sm:$0xff]  ;;  %v3624_v57 = vpack.c.bf16 %v761_v50, %v743_v49 }
  0x76   : > { %3609 = vmatpush1.bf16.msra.mxu0 %v3608_v8  ;;  %v710_v58 = vld [vmem:[#allocation2 + $0xa38] sm:$0xff]  ;;  %v728_v59 = vld [vmem:[#allocation2 + $0xac8] sm:$0xff]  ;;  %v3626_v60 = vpack.c.bf16 %v798_v52, %v780_v51  ;;  %v779_v61 = vld [vmem:[#allocation2 + $0xc60] sm:$0xff]  ;;  %v3680_v1 = vpack.c.bf16 %v691_v56, %v673_v55 }
  0x77   : > { %3611 = vmatprep.subr.bf16.mxu0 %v3610_v11  ;;  %v797_v62 = vld [vmem:[#allocation2 + $0xcf0] sm:$0xff]  ;;  %v816_v63 = vld [vmem:[#allocation2 + $0xd88] sm:$0xff]  ;;  %v834_v0 = vld [vmem:[#allocation2 + $0xe18] sm:$0xff]  ;;  %v3682_v2 = vpack.c.bf16 %v728_v59, %v710_v58 }
  0x78   : > { %3669 = vmatpush1.bf16.msra.mxu1 %v3668_v28  ;;  %v709_v3 = vld [vmem:[#allocation2 + $0xa30] sm:$0xff]  ;;  %v727_v4 = vld [vmem:[#allocation2 + $0xac0] sm:$0xff]  ;;  %v3628_v5 = vpack.c.bf16 %v797_v62, %v779_v61  ;;  %v746_v6 = vld [vmem:[#allocation2 + $0xb58] sm:$0xff]  ;;  %v3630_v8 = vpack.c.bf16 %v834_v0, %v816_v63 }
  0x79   : > { %3671 = vmatprep.subr.bf16.mxu1 %v3670_v29  ;;  %v764_v7 = vld [vmem:[#allocation2 + $0xbe8] sm:$0xff]  ;;  %v815_v9 = vld [vmem:[#allocation2 + $0xd80] sm:$0xff]  ;;  %v833_v10 = vld [vmem:[#allocation2 + $0xe10] sm:$0xff]  ;;  %v3684_v13 = vpack.c.bf16 %v727_v4, %v709_v3 }
  0x7a   : > { %3613 = vmatpush1.bf16.msra.mxu0 %v3612_v20  ;;  %v852_v11 = vld [vmem:[#allocation2 + $0xea8] sm:$0xff]  ;;  %v870_v12 = vld [vmem:[#allocation2 + $0xf38] sm:$0xff]  ;;  %v3686_v14 = vpack.c.bf16 %v764_v7, %v746_v6  ;;  %v745_v15 = vld [vmem:[#allocation2 + $0xb50] sm:$0xff]  ;;  %v3632_v17 = vpack.c.bf16 %v833_v10, %v815_v9 }
  0x7b   : > { %3615 = vmatprep.subr.bf16.mxu0 %v3614_v23  ;;  %v763_v16 = vld [vmem:[#allocation2 + $0xbe0] sm:$0xff]  ;;  %v782_v18 = vld [vmem:[#allocation2 + $0xc78] sm:$0xff]  ;;  %v800_v19 = vld [vmem:[#allocation2 + $0xd08] sm:$0xff]  ;;  %v3634_v20 = vpack.c.bf16 %v870_v12, %v852_v11 }
  0x7c   : > { %3673 = vmatpush1.bf16.msra.mxu1 %v3672_v41  ;;  %v851_v21 = vld [vmem:[#allocation2 + $0xea0] sm:$0xff]  ;;  %v869_v22 = vld [vmem:[#allocation2 + $0xf30] sm:$0xff]  ;;  %v888_v23 = vld [vmem:[#allocation2 + $0xfc8] sm:$0xff]  ;;  %v3688_v25 = vpack.c.bf16 %v763_v16, %v745_v15  ;;  %v3690_v26 = vpack.c.bf16 %v800_v19, %v782_v18 }
  0x7d   : > { %3675 = vmatprep.subr.bf16.mxu1 %v3674_v42  ;;  %v906_v24 = vld [vmem:[#allocation2 + $0x1058] sm:$0xff]  ;;  %v781_v27 = vld [vmem:[#allocation2 + $0xc70] sm:$0xff]  ;;  %v799_v28 = vld [vmem:[#allocation2 + $0xd00] sm:$0xff]  ;;  %v3636_v29 = vpack.c.bf16 %v869_v22, %v851_v21 }
  0x7e   : > { %3617 = vmatpush1.bf16.msra.mxu0 %v3616_v32  ;;  %v818_v30 = vld [vmem:[#allocation2 + $0xd98] sm:$0xff]  ;;  %v836_v31 = vld [vmem:[#allocation2 + $0xe28] sm:$0xff]  ;;  %v3638_v32 = vpack.c.bf16 %v906_v24, %v888_v23  ;;  %v887_v33 = vld [vmem:[#allocation2 + $0xfc0] sm:$0xff]  ;;  %v3692_v37 = vpack.c.bf16 %v799_v28, %v781_v27 }
  0x7f   : > { %3619 = vmatprep.subr.bf16.mxu0 %v3618_v35  ;;  %v905_v34 = vld [vmem:[#allocation2 + $0x1050] sm:$0xff]  ;;  %v924_v35 = vld [vmem:[#allocation2 + $0x10e8] sm:$0xff]  ;;  %v942_v36 = vld [vmem:[#allocation2 + $0x1178] sm:$0xff]  ;;  %v3694_v39 = vpack.c.bf16 %v836_v31, %v818_v30 }
  0x80   : > { %3677 = vmatpush1.bf16.msra.mxu1 %v3676_v53  ;;  %v817_v40 = vld [vmem:[#allocation2 + $0xd90] sm:$0xff]  ;;  %v835_v41 = vld [vmem:[#allocation2 + $0xe20] sm:$0xff]  ;;  %v3640_v42 = vpack.c.bf16 %v905_v34, %v887_v33  ;;  %v854_v43 = vld [vmem:[#allocation2 + $0xeb8] sm:$0xff] }
  0x81   : > { %3679 = vmatprep.subr.bf16.mxu1 %v3678_v54  ;;  %v872_v44 = vld [vmem:[#allocation2 + $0xf48] sm:$0xff]  ;;  %v923_v46 = vld [vmem:[#allocation2 + $0x10e0] sm:$0xff]  ;;  %v941_v47 = vld [vmem:[#allocation2 + $0x1170] sm:$0xff]  ;;  %v3696_v50 = vpack.c.bf16 %v835_v41, %v817_v40 }
  0x82   : > { %3621 = vmatpush1.bf16.msra.mxu0 %v3620_v45  ;;  %v3642_v45 = vpack.c.bf16 %v942_v36, %v924_v35  ;;  %v406_v49 = vld [vmem:[#allocation2 + $0xb8] sm:$0xff]  ;;  %v3698_v51 = vpack.c.bf16 %v872_v44, %v854_v43  ;;  %v853_v52 = vld [vmem:[#allocation2 + $0xeb0] sm:$0xff]  ;;  %v871_v53 = vld [vmem:[#allocation2 + $0xf40] sm:$0xff]  ;;  %v3644_v54 = vpack.c.bf16 %v941_v47, %v923_v46 }
  0x83   : > { %3623 = vmatprep.subr.bf16.mxu0 %v3622_v48  ;;  %v388_v48 = vld [vmem:[#allocation2 + $0x28] sm:$0xff]  ;;  %v890_v55 = vld [vmem:[#allocation2 + $0xfd8] sm:$0xff]  ;;  %v387_v58 = vld [vmem:[#allocation2 + $0x20] sm:$0xff]  ;;  %v3700_v62 = vpack.c.bf16 %v871_v53, %v853_v52 }
  0x84   : > { %3681 = vmatpush1.bf16.msra.mxu1 %v3680_v1  ;;  %v908_v56 = vld [vmem:[#allocation2 + $0x1068] sm:$0xff]  ;;  %v405_v59 = vld [vmem:[#allocation2 + $0xb0] sm:$0xff]  ;;  %v442_v61 = vld [vmem:[#allocation2 + $0x1d8] sm:$0xff] }
  0x85   : > { %3683 = vmatprep.subr.bf16.mxu1 %v3682_v2  ;;  %v3702_v63 = vpack.c.bf16 %v908_v56, %v890_v55  ;;  %v889_v0 = vld [vmem:[#allocation2 + $0xfd0] sm:$0xff]  ;;  %v907_v1 = vld [vmem:[#allocation2 + $0x1060] sm:$0xff]  ;;  %v3712_v3 = vpack.c.bf16 %v405_v59, %v387_v58  ;;  %v926_v4 = vld [vmem:[#allocation2 + $0x10f8] sm:$0xff] }
  0x86   : > { %3625 = vmatpush1.bf16.msra.mxu0 %v3624_v57  ;;  %v3710_v57 = vpack.c.bf16 %v406_v49, %v388_v48  ;;  %v5165_v2 = vld [vmem:[%s5157_s24] sm:$0xff]  ;;  %v5168_v6 = vld [vmem:[%s5157_s24 + $0x18] sm:$0xff]  ;;  %v441_v9 = vld [vmem:[#allocation2 + $0x1d0] sm:$0xff]  ;;  %v3704_v12 = vpack.c.bf16 %v907_v1, %v889_v0 }
  0x87   : > { %3627 = vmatprep.subr.bf16.mxu0 %v3626_v60  ;;  %v424_v60 = vld [vmem:[#allocation2 + $0x148] sm:$0xff]  ;;  %v478_v11 = vld [vmem:[#allocation2 + $0x2f8] sm:$0xff]  ;;  %v943_v15 = vld [vmem:[#allocation2 + $0x1180] sm:$0xff] }
  0x88   : > { %3685 = vmatpush1.bf16.msra.mxu1 %v3684_v13  ;;  %v3714_v7 = vpack.c.bf16 %v442_v61, %v424_v60  ;;  %v460_v10 = vld [vmem:[#allocation2 + $0x268] sm:$0xff]  ;;  %v5173_v16 = vld [vmem:[%s5157_s24 + $0x10] sm:$0xff]  ;;  %v390_v18 = vld [vmem:[#allocation2 + $0x38] sm:$0xff] }
  0x89   : > { %3687 = vmatprep.subr.bf16.mxu1 %v3686_v14  ;;  %v925_v14 = vld [vmem:[#allocation2 + $0x10f0] sm:$0xff]  ;;  %v408_v19 = vld [vmem:[#allocation2 + $0xc8] sm:$0xff]  ;;  %v459_v21 = vld [vmem:[#allocation2 + $0x260] sm:$0xff] }
  0x8a   : > { %3629 = vmatpush1.bf16.msra.mxu0 %v3628_v5  ;;  %v944_v5 = vld [vmem:[#allocation2 + $0x1188] sm:$0xff]  ;;  %v477_v22 = vld [vmem:[#allocation2 + $0x2f0] sm:$0xff]  ;;  %v3774_v27 = vpack.c.bf16 %v408_v19, %v390_v18  ;;  %v426_v31 = vld [vmem:[#allocation2 + $0x158] sm:$0xff] }
  0x8b   : > { %3631 = vmatprep.subr.bf16.mxu0 %v3630_v8  ;;  %v423_v8 = vld [vmem:[#allocation2 + $0x140] sm:$0xff]  ;;  %v3706_v13 = vpack.c.bf16 %v944_v5, %v926_v4  ;;  %v5176_v23 = vld [vmem:[%s5157_s24 + $0x28] sm:$0xff]  ;;  %v389_v28 = vld [vmem:[#allocation2 + $0x30] sm:$0xff]  ;;  %v3720_v30 = vpack.c.bf16 %v477_v22, %v459_v21 }
  0x8c   : > { %3689 = vmatpush1.bf16.msra.mxu1 %v3688_v25  ;;  %v496_v24 = vld [vmem:[#allocation2 + $0x388] sm:$0xff]  ;;  %v514_v25 = vld [vmem:[#allocation2 + $0x418] sm:$0xff]  ;;  %v5181_v33 = vld [vmem:[%s5157_s24 + $0x20] sm:$0xff] }
  0x8d   : > { %3691 = vmatprep.subr.bf16.mxu1 %v3690_v26  ;;  %v3708_v26 = vpack.c.bf16 %v943_v15, %v925_v14  ;;  %v3722_v34 = vpack.c.bf16 %v514_v25, %v496_v24  ;;  %v495_v35 = vld [vmem:[#allocation2 + $0x380] sm:$0xff]  ;;  %v513_v36 = vld [vmem:[#allocation2 + $0x410] sm:$0xff]  ;;  %v550_v40 = vld [vmem:[#allocation2 + $0x538] sm:$0xff] }
  0x8e   : > { %3633 = vmatpush1.bf16.msra.mxu0 %v3632_v17  ;;  %v3716_v17 = vpack.c.bf16 %v441_v9, %v423_v8  ;;  %v425_v43 = vld [vmem:[#allocation2 + $0x150] sm:$0xff]  ;;  %v443_v44 = vld [vmem:[#allocation2 + $0x1e0] sm:$0xff]  ;;  %v462_v46 = vld [vmem:[#allocation2 + $0x278] sm:$0xff] }
  0x8f   : > { %3635 = vmatprep.subr.bf16.mxu0 %v3634_v20  ;;  %v3718_v20 = vpack.c.bf16 %v478_v11, %v460_v10  ;;  %v480_v47 = vld [vmem:[#allocation2 + $0x308] sm:$0xff]  ;;  %v5189_v48 = vld [vmem:[%s5157_s24 + $0x30] sm:$0xff]  ;;  %v586_v53 = vld [vmem:[#allocation2 + $0x658] sm:$0xff] }
  0x90   : > { %3693 = vmatpush1.bf16.msra.mxu1 %v3692_v37  ;;  %v5184_v37 = vld [vmem:[%s5157_s24 + $0x38] sm:$0xff]  ;;  %v568_v52 = vld [vmem:[#allocation2 + $0x5c8] sm:$0xff]  ;;  %v3782_v55 = vpack.c.bf16 %v480_v47, %v462_v46  ;;  %v461_v56 = vld [vmem:[#allocation2 + $0x270] sm:$0xff] }
  0x91   : > { %3695 = vmatprep.subr.bf16.mxu1 %v3694_v39  ;;  %v532_v39 = vld [vmem:[#allocation2 + $0x4a8] sm:$0xff]  ;;  %v498_v59 = vld [vmem:[#allocation2 + $0x398] sm:$0xff]  ;;  %v3730_v61 = vpack.c.bf16 %v586_v53, %v568_v52  ;;  %v497_v5 = vld [vmem:[#allocation2 + $0x390] sm:$0xff] }
  0x92   : > { %3637 = vmatpush1.bf16.msra.mxu0 %v3636_v29  ;;  %v407_v29 = vld [vmem:[#allocation2 + $0xc0] sm:$0xff]  ;;  %v3726_v49 = vpack.c.bf16 %v550_v40, %v532_v39  ;;  %v516_v60 = vld [vmem:[#allocation2 + $0x428] sm:$0xff]  ;;  %v622_v1 = vld [vmem:[#allocation2 + $0x778] sm:$0xff] }
  0x93   : > { %3639 = vmatprep.subr.bf16.mxu0 %v3638_v32  ;;  %v444_v32 = vld [vmem:[#allocation2 + $0x1e8] sm:$0xff]  ;;  %v3776_v41 = vpack.c.bf16 %v407_v29, %v389_v28  ;;  %v3786_v4 = vpack.c.bf16 %v516_v60, %v498_v59  ;;  %v534_v9 = vld [vmem:[#allocation2 + $0x4b8] sm:$0xff]  ;;  %v533_v19 = vld [vmem:[#allocation2 + $0x4b0] sm:$0xff] }
  0x94   : > { %3697 = vmatpush1.bf16.msra.mxu1 %v3696_v50  ;;  %v531_v50 = vld [vmem:[#allocation2 + $0x4a0] sm:$0xff]  ;;  %v604_v0 = vld [vmem:[#allocation2 + $0x6e8] sm:$0xff]  ;;  %v658_v15 = vld [vmem:[#allocation2 + $0x898] sm:$0xff] }
  0x95   : > { %3699 = vmatprep.subr.bf16.mxu1 %v3698_v51  ;;  %v549_v51 = vld [vmem:[#allocation2 + $0x530] sm:$0xff]  ;;  %v552_v10 = vld [vmem:[#allocation2 + $0x548] sm:$0xff]  ;;  %v3734_v11 = vpack.c.bf16 %v622_v1, %v604_v0  ;;  %v570_v22 = vld [vmem:[#allocation2 + $0x5d8] sm:$0xff] }
  0x96   : > { %3641 = vmatpush1.bf16.msra.mxu0 %v3640_v42  ;;  %v3778_v42 = vpack.c.bf16 %v444_v32, %v426_v31  ;;  %v3728_v58 = vpack.c.bf16 %v549_v51, %v531_v50  ;;  %v640_v14 = vld [vmem:[#allocation2 + $0x808] sm:$0xff]  ;;  %v3790_v18 = vpack.c.bf16 %v552_v10, %v534_v9  ;;  %v694_v29 = vld [vmem:[#allocation2 + $0x9b8] sm:$0xff]  ;;  %v569_v32 = vld [vmem:[#allocation2 + $0x5d0] sm:$0xff] }
  0x97   : > { %3643 = vmatprep.subr.bf16.mxu0 %v3642_v45  ;;  %v3724_v45 = vpack.c.bf16 %v513_v36, %v495_v35  ;;  %v588_v24 = vld [vmem:[#allocation2 + $0x668] sm:$0xff]  ;;  %v3738_v25 = vpack.c.bf16 %v658_v15, %v640_v14  ;;  %v606_v36 = vld [vmem:[#allocation2 + $0x6f8] sm:$0xff]  ;;  %v605_v47 = vld [vmem:[#allocation2 + $0x6f0] sm:$0xff] }
  0x98   : > { %3701 = vmatpush1.bf16.msra.mxu1 %v3700_v62  ;;  %v567_v62 = vld [vmem:[#allocation2 + $0x5c0] sm:$0xff]  ;;  %v676_v28 = vld [vmem:[#allocation2 + $0x928] sm:$0xff]  ;;  %v3794_v31 = vpack.c.bf16 %v588_v24, %v570_v22  ;;  %v642_v51 = vld [vmem:[#allocation2 + $0x818] sm:$0xff] }
  0x99   : > { %3703 = vmatprep.subr.bf16.mxu1 %v3702_v63  ;;  %v585_v63 = vld [vmem:[#allocation2 + $0x650] sm:$0xff]  ;;  %v624_v39 = vld [vmem:[#allocation2 + $0x788] sm:$0xff]  ;;  %v3742_v40 = vpack.c.bf16 %v694_v29, %v676_v28 }
  0x9a   : > { %3645 = vmatpush1.bf16.msra.mxu0 %v3644_v54  ;;  %v3780_v54 = vpack.c.bf16 %v443_v44, %v425_v43  ;;  %v3732_v8 = vpack.c.bf16 %v585_v63, %v567_v62  ;;  %v712_v43 = vld [vmem:[#allocation2 + $0xa48] sm:$0xff]  ;;  %v730_v44 = vld [vmem:[#allocation2 + $0xad8] sm:$0xff]  ;;  %v3798_v46 = vpack.c.bf16 %v624_v39, %v606_v36  ;;  %v641_v60 = vld [vmem:[#allocation2 + $0x810] sm:$0xff] }
  0x9b   : > { %3711 = vmatprep.subr.bf16.mxu0 %v3710_v57  ;;  %v479_v57 = vld [vmem:[#allocation2 + $0x300] sm:$0xff]  ;;  %v660_v52 = vld [vmem:[#allocation2 + $0x8a8] sm:$0xff]  ;;  %v3746_v53 = vpack.c.bf16 %v730_v44, %v712_v43  ;;  %v678_v63 = vld [vmem:[#allocation2 + $0x938] sm:$0xff] }
  0x9c   : > { %3705 = vmatpush1.bf16.msra.mxu1 %v3704_v12  ;;  %v603_v12 = vld [vmem:[#allocation2 + $0x6e0] sm:$0xff]  ;;  %v3802_v59 = vpack.c.bf16 %v660_v52, %v642_v51  ;;  %v696_v0 = vld [vmem:[#allocation2 + $0x9c8] sm:$0xff]  ;;  %v677_v10 = vld [vmem:[#allocation2 + $0x930] sm:$0xff] }
  0x9d   : > { %1024 = vmatmul.mubr.f32.vlgmr.msra.gmra.mrb[0].mxu0 %v5165_v2  ;;  %3707 = vmatprep.subr.bf16.mxu1 %v3706_v13  ;;  %v621_v13 = vld [vmem:[#allocation2 + $0x770] sm:$0xff]  ;;  %v3806_v9 = vpack.c.bf16 %v696_v0, %v678_v63  ;;  %v732_v14 = vld [vmem:[#allocation2 + $0xae8] sm:$0xff] }
  0x9e   : > { %3713 = vmatpush1.bf16.msra.mxu0 %v3712_v3  ;;  %1029 = vmatprep.mubr.f32.mxu0 %v5168_v6  ;;  %v3784_v3 = vpack.c.bf16 %v479_v57, %v461_v56  ;;  %v3736_v21 = vpack.c.bf16 %v621_v13, %v603_v12  ;;  %v748_v56 = vld [vmem:[#allocation2 + $0xb68] sm:$0xff]  ;;  %v766_v57 = vld [vmem:[#allocation2 + $0xbf8] sm:$0xff]  ;;  %v713_v24 = vld [vmem:[#allocation2 + $0xa50] sm:$0xff] }
  0x9f   : > { %3715 = vmatprep.subr.bf16.mxu0 %v3714_v7  ;;  %v515_v7 = vld [vmem:[#allocation2 + $0x420] sm:$0xff]  ;;  %v3750_v1 = vpack.c.bf16 %v766_v57, %v748_v56  ;;  %v714_v13 = vld [vmem:[#allocation2 + $0xa58] sm:$0xff]  ;;  %v768_v28 = vld [vmem:[#allocation2 + $0xc08] sm:$0xff] }
  0xa0   : > { %3709 = vmatpush1.bf16.msra.mxu1 %v3708_v26  ;;  %v639_v26 = vld [vmem:[#allocation2 + $0x800] sm:$0xff]  ;;  %v3810_v22 = vpack.c.bf16 %v732_v14, %v714_v13  ;;  %v749_v39 = vld [vmem:[#allocation2 + $0xb70] sm:$0xff]  ;;  %v804_v43 = vld [vmem:[#allocation2 + $0xd28] sm:$0xff] }
  0xa1   : > { %1030 = vmatmul.mubr.f32.gmra.mrb[2].mxu0 %v5173_v16  ;;  %3775 = vmatprep.subr.bf16.mxu1 %v3774_v27  ;;  %v657_v27 = vld [vmem:[#allocation2 + $0x890] sm:$0xff]  ;;  %v840_v56 = vld [vmem:[#allocation2 + $0xe48] sm:$0xff] }
  0xa2   : > { %3717 = vmatpush1.bf16.msra.mxu0 %v3716_v17  ;;  %1035 = vmatprep.mubr.f32.mxu0 %v5176_v23  ;;  %v3788_v17 = vpack.c.bf16 %v515_v7, %v497_v5  ;;  %v3740_v35 = vpack.c.bf16 %v657_v27, %v639_v26  ;;  %v784_v5 = vld [vmem:[#allocation2 + $0xc88] sm:$0xff]  ;;  %v802_v7 = vld [vmem:[#allocation2 + $0xd18] sm:$0xff]  ;;  %v785_v52 = vld [vmem:[#allocation2 + $0xc90] sm:$0xff] }
  0xa3   : > { %3719 = vmatprep.subr.bf16.mxu0 %v3718_v20  ;;  %1113 = vmatmul.mubr.f32.vlgmr.msra.gmra.mrb[0].mxu1 %v5165_v2  ;;  %v551_v20 = vld [vmem:[#allocation2 + $0x540] sm:$0xff]  ;;  %v3754_v15 = vpack.c.bf16 %v802_v7, %v784_v5  ;;  %v750_v27 = vld [vmem:[#allocation2 + $0xb78] sm:$0xff]  ;;  %v821_v0 = vld [vmem:[#allocation2 + $0xdb0] sm:$0xff] }
  0xa4   : > { %3777 = vmatpush1.bf16.msra.mxu1 %v3776_v41  ;;  %1118 = vmatprep.mubr.f32.mxu1 %v5168_v6  ;;  %v675_v41 = vld [vmem:[#allocation2 + $0x920] sm:$0xff]  ;;  %v3814_v36 = vpack.c.bf16 %v768_v28, %v750_v27  ;;  %v876_v5 = vld [vmem:[#allocation2 + $0xf68] sm:$0xff]  ;;  %v857_v14 = vld [vmem:[#allocation2 + $0xed0] sm:$0xff] }
  0xa5   : > { %1036 = vmatmul.mubr.f32.gmra.mrb[4].mxu0 %v5181_v33  ;;  %3779 = vmatprep.subr.bf16.mxu1 %v3778_v42  ;;  %v693_v42 = vld [vmem:[#allocation2 + $0x9b0] sm:$0xff] }
  0xa6   : > { %3721 = vmatpush1.bf16.msra.mxu0 %v3720_v30  ;;  %1041 = vmatprep.mubr.f32.mxu0 %v5184_v37  ;;  %v3792_v30 = vpack.c.bf16 %v551_v20, %v533_v19  ;;  %v3744_v50 = vpack.c.bf16 %v693_v42, %v675_v41  ;;  %v820_v19 = vld [vmem:[#allocation2 + $0xda8] sm:$0xff]  ;;  %v838_v20 = vld [vmem:[#allocation2 + $0xe38] sm:$0xff]  ;;  %v893_v28 = vld [vmem:[#allocation2 + $0xff0] sm:$0xff] }
  0xa7   : > { %3723 = vmatprep.subr.bf16.mxu0 %v3722_v34  ;;  %1119 = vmatmul.mubr.f32.gmra.mrb[2].mxu1 %v5173_v16  ;;  %v587_v34 = vld [vmem:[#allocation2 + $0x660] sm:$0xff]  ;;  %v3758_v29 = vpack.c.bf16 %v838_v20, %v820_v19  ;;  %v786_v42 = vld [vmem:[#allocation2 + $0xc98] sm:$0xff]  ;;  %v912_v19 = vld [vmem:[#allocation2 + $0x1088] sm:$0xff] }
  0xa8   : > { %3781 = vmatpush1.bf16.msra.mxu1 %v3780_v54  ;;  %1124 = vmatprep.mubr.f32.mxu1 %v5176_v23  ;;  %v711_v54 = vld [vmem:[#allocation2 + $0xa40] sm:$0xff]  ;;  %v3818_v51 = vpack.c.bf16 %v804_v43, %v786_v42  ;;  %v929_v43 = vld [vmem:[#allocation2 + $0x1110] sm:$0xff] }
  0xa9   : > { %1042 = vmatmul.mubr.f32.gmra.mrb[6].mxu0 %v5189_v48  ;;  %3783 = vmatprep.subr.bf16.mxu1 %v3782_v55  ;;  %v729_v55 = vld [vmem:[#allocation2 + $0xad0] sm:$0xff] }
  0xaa   : > { %3725 = vmatpush1.bf16.msra.mxu0 %v3724_v45  ;;  %1201 = vmatprep.mubr.f32.mxu0 %v5160_v38  ;;  %v3796_v45 = vpack.c.bf16 %v587_v34, %v569_v32  ;;  %v3748_v62 = vpack.c.bf16 %v729_v55, %v711_v54  ;;  %v856_v32 = vld [vmem:[#allocation2 + $0xec8] sm:$0xff]  ;;  %v874_v34 = vld [vmem:[#allocation2 + $0xf58] sm:$0xff] }
  0xab   : > { %3727 = vmatprep.subr.bf16.mxu0 %v3726_v49  ;;  %1125 = vmatmul.mubr.f32.gmra.mrb[4].mxu1 %v5181_v33  ;;  %v623_v49 = vld [vmem:[#allocation2 + $0x780] sm:$0xff]  ;;  %v3762_v44 = vpack.c.bf16 %v874_v34, %v856_v32  ;;  %v822_v55 = vld [vmem:[#allocation2 + $0xdb8] sm:$0xff]  ;;  %v948_v32 = vld [vmem:[#allocation2 + $0x11a8] sm:$0xff] }
  0xac   : > { %3785 = vmatpush1.bf16.msra.mxu1 %v3784_v3  ;;  %1130 = vmatprep.mubr.f32.mxu1 %v5184_v37  ;;  %v747_v3 = vld [vmem:[#allocation2 + $0xb60] sm:$0xff]  ;;  %v3822_v63 = vpack.c.bf16 %v840_v56, %v822_v55  ;;  %v393_v56 = vld [vmem:[#allocation2 + $0x50] sm:$0xff] }
  0xad   : > { %3787 = vmatprep.subr.bf16.mxu1 %v3786_v4  ;;  %v765_v4 = vld [vmem:[#allocation2 + $0xbf0] sm:$0xff] }
  0xae   : > { %3729 = vmatpush1.bf16.msra.mxu0 %v3728_v58  ;;  %v3800_v58 = vpack.c.bf16 %v623_v49, %v605_v47  ;;  %v3752_v12 = vpack.c.bf16 %v765_v4, %v747_v3  ;;  %v892_v47 = vld [vmem:[#allocation2 + $0xfe8] sm:$0xff]  ;;  %v910_v49 = vld [vmem:[#allocation2 + $0x1078] sm:$0xff] }
  0xaf   : > { %3731 = vmatprep.subr.bf16.mxu0 %v3730_v61  ;;  %1131 = vmatmul.mubr.f32.gmra.mrb[6].mxu1 %v5189_v48  ;;  %v659_v61 = vld [vmem:[#allocation2 + $0x8a0] sm:$0xff]  ;;  %v3766_v57 = vpack.c.bf16 %v910_v49, %v892_v47  ;;  %v858_v4 = vld [vmem:[#allocation2 + $0xed8] sm:$0xff]  ;;  %v412_v47 = vld [vmem:[#allocation2 + $0xe8] sm:$0xff] }
  0xb0   : > { %3789 = vmatpush1.bf16.msra.mxu1 %v3788_v17  ;;  %1290 = vmatprep.mubr.f32.mxu1 %v5160_v38  ;;  %v783_v17 = vld [vmem:[#allocation2 + $0xc80] sm:$0xff]  ;;  %v3826_v13 = vpack.c.bf16 %v876_v5, %v858_v4  ;;  %v429_v5 = vld [vmem:[#allocation2 + $0x170] sm:$0xff] }
  0xb1   : > { %3791 = vmatprep.subr.bf16.mxu1 %v3790_v18  ;;  %v801_v18 = vld [vmem:[#allocation2 + $0xd10] sm:$0xff] }
  0xb2   : > { %3733 = vmatpush1.bf16.msra.mxu0 %v3732_v8  ;;  %v3804_v8 = vpack.c.bf16 %v659_v61, %v641_v60  ;;  %v3756_v26 = vpack.c.bf16 %v801_v18, %v783_v17  ;;  %v928_v60 = vld [vmem:[#allocation2 + $0x1108] sm:$0xff]  ;;  %v946_v61 = vld [vmem:[#allocation2 + $0x1198] sm:$0xff] }
  0xb3   : > { %3735 = vmatprep.subr.bf16.mxu0 %v3734_v11  ;;  %v695_v11 = vld [vmem:[#allocation2 + $0x9c0] sm:$0xff]  ;;  %v3770_v7 = vpack.c.bf16 %v946_v61, %v928_v60  ;;  %v894_v18 = vld [vmem:[#allocation2 + $0xff8] sm:$0xff]  ;;  %v448_v60 = vld [vmem:[#allocation2 + $0x208] sm:$0xff] }
  0xb4   : > { %3793 = vmatpush1.bf16.msra.mxu1 %v3792_v30  ;;  %v819_v30 = vld [vmem:[#allocation2 + $0xda0] sm:$0xff]  ;;  %v3830_v27 = vpack.c.bf16 %v912_v19, %v894_v18  ;;  %v465_v19 = vld [vmem:[#allocation2 + $0x290] sm:$0xff] }
  0xb5   : > { %3795 = vmatprep.subr.bf16.mxu1 %v3794_v31  ;;  %v837_v31 = vld [vmem:[#allocation2 + $0xe30] sm:$0xff] }
  0xb6   : > { %3737 = vmatpush1.bf16.msra.mxu0 %v3736_v21  ;;  %v3808_v21 = vpack.c.bf16 %v695_v11, %v677_v10  ;;  %v3760_v41 = vpack.c.bf16 %v837_v31, %v819_v30  ;;  %v392_v10 = vld [vmem:[#allocation2 + $0x48] sm:$0xff]  ;;  %v410_v11 = vld [vmem:[#allocation2 + $0xd8] sm:$0xff] }
  0xb7   : > { %3739 = vmatprep.subr.bf16.mxu0 %v3738_v25  ;;  %v731_v25 = vld [vmem:[#allocation2 + $0xae0] sm:$0xff]  ;;  %v3838_v20 = vpack.c.bf16 %v410_v11, %v392_v10  ;;  %v930_v31 = vld [vmem:[#allocation2 + $0x1118] sm:$0xff]  ;;  %v484_v10 = vld [vmem:[#allocation2 + $0x328] sm:$0xff] }
  0xb8   : > { %3797 = vmatpush1.bf16.msra.mxu1 %v3796_v45  ;;  %v855_v45 = vld [vmem:[#allocation2 + $0xec0] sm:$0xff]  ;;  %v3834_v42 = vpack.c.bf16 %v948_v32, %v930_v31 }
  0xb9   : > { %3799 = vmatprep.subr.bf16.mxu1 %v3798_v46  ;;  %v873_v46 = vld [vmem:[#allocation2 + $0xf50] sm:$0xff]  ;;  %v519_v31 = vld [vmem:[#allocation2 + $0x440] sm:$0xff] }
  0xba   : > { %3741 = vmatpush1.bf16.msra.mxu0 %v3740_v35  ;;  %v3812_v35 = vpack.c.bf16 %v731_v25, %v713_v24  ;;  %v3764_v54 = vpack.c.bf16 %v873_v46, %v855_v45  ;;  %v428_v24 = vld [vmem:[#allocation2 + $0x168] sm:$0xff]  ;;  %v446_v25 = vld [vmem:[#allocation2 + $0x1f8] sm:$0xff] }
  0xbb   : > { %3743 = vmatprep.subr.bf16.mxu0 %v3742_v40  ;;  %v767_v40 = vld [vmem:[#allocation2 + $0xc00] sm:$0xff]  ;;  %v3842_v34 = vpack.c.bf16 %v446_v25, %v428_v24  ;;  %v394_v46 = vld [vmem:[#allocation2 + $0x58] sm:$0xff]  ;;  %v520_v24 = vld [vmem:[#allocation2 + $0x448] sm:$0xff] }
  0xbc   : > { %3801 = vmatpush1.bf16.msra.mxu1 %v3800_v58  ;;  %v891_v58 = vld [vmem:[#allocation2 + $0xfe0] sm:$0xff]  ;;  %v3902_v55 = vpack.c.bf16 %v412_v47, %v394_v46  ;;  %v592_v46 = vld [vmem:[#allocation2 + $0x688] sm:$0xff] }
  0xbd   : > { %3803 = vmatprep.subr.bf16.mxu1 %v3802_v59  ;;  %v909_v59 = vld [vmem:[#allocation2 + $0x1070] sm:$0xff]  ;;  %v571_v25 = vld [vmem:[#allocation2 + $0x5e0] sm:$0xff] }
  0xbe   : > { %3745 = vmatpush1.bf16.msra.mxu0 %v3744_v50  ;;  %v3816_v50 = vpack.c.bf16 %v767_v40, %v749_v39  ;;  %v3768_v3 = vpack.c.bf16 %v909_v59, %v891_v58  ;;  %v464_v39 = vld [vmem:[#allocation2 + $0x288] sm:$0xff]  ;;  %v482_v40 = vld [vmem:[#allocation2 + $0x318] sm:$0xff] }
  0xbf   : > { %3747 = vmatprep.subr.bf16.mxu0 %v3746_v53  ;;  %v803_v53 = vld [vmem:[#allocation2 + $0xd20] sm:$0xff]  ;;  %v3846_v49 = vpack.c.bf16 %v482_v40, %v464_v39  ;;  %v430_v59 = vld [vmem:[#allocation2 + $0x178] sm:$0xff]  ;;  %v625_v39 = vld [vmem:[#allocation2 + $0x790] sm:$0xff] }
  0xc0   : > { %3805 = vmatpush1.bf16.msra.mxu1 %v3804_v8  ;;  %v927_v8 = vld [vmem:[#allocation2 + $0x1100] sm:$0xff]  ;;  %v3906_v4 = vpack.c.bf16 %v448_v60, %v430_v59  ;;  %v662_v40 = vld [vmem:[#allocation2 + $0x8b8] sm:$0xff] }
  0xc1   : > { %3807 = vmatprep.subr.bf16.mxu1 %v3806_v9  ;;  %v945_v9 = vld [vmem:[#allocation2 + $0x1190] sm:$0xff]  ;;  %v679_v60 = vld [vmem:[#allocation2 + $0x940] sm:$0xff] }
  0xc2   : > { %3749 = vmatpush1.bf16.msra.mxu0 %v3748_v62  ;;  %v3820_v62 = vpack.c.bf16 %v803_v53, %v785_v52  ;;  %v3772_v17 = vpack.c.bf16 %v945_v9, %v927_v8  ;;  %v500_v52 = vld [vmem:[#allocation2 + $0x3a8] sm:$0xff]  ;;  %v518_v53 = vld [vmem:[#allocation2 + $0x438] sm:$0xff] }
  0xc3   : > { %3751 = vmatprep.subr.bf16.mxu0 %v3750_v1  ;;  %v839_v1 = vld [vmem:[#allocation2 + $0xe40] sm:$0xff]  ;;  %v3850_v61 = vpack.c.bf16 %v518_v53, %v500_v52  ;;  %v466_v9 = vld [vmem:[#allocation2 + $0x298] sm:$0xff] }
  0xc4   : > { %3809 = vmatpush1.bf16.msra.mxu1 %v3808_v21  ;;  %v391_v21 = vld [vmem:[#allocation2 + $0x40] sm:$0xff]  ;;  %v3910_v18 = vpack.c.bf16 %v484_v10, %v466_v9  ;;  %v733_v10 = vld [vmem:[#allocation2 + $0xaf0] sm:$0xff] }
  0xc5   : > { %3811 = vmatprep.subr.bf16.mxu1 %v3810_v22  ;;  %v409_v22 = vld [vmem:[#allocation2 + $0xd0] sm:$0xff]  ;;  %v715_v9 = vld [vmem:[#allocation2 + $0xa60] sm:$0xff] }
  0xc6   : > { %3753 = vmatpush1.bf16.msra.mxu0 %v3752_v12  ;;  %v3824_v12 = vpack.c.bf16 %v839_v1, %v821_v0  ;;  %v3840_v30 = vpack.c.bf16 %v409_v22, %v391_v21  ;;  %v536_v0 = vld [vmem:[#allocation2 + $0x4c8] sm:$0xff]  ;;  %v554_v1 = vld [vmem:[#allocation2 + $0x558] sm:$0xff] }
  0xc7   : > { %3755 = vmatprep.subr.bf16.mxu0 %v3754_v15  ;;  %v875_v15 = vld [vmem:[#allocation2 + $0xf60] sm:$0xff]  ;;  %v3854_v11 = vpack.c.bf16 %v554_v1, %v536_v0  ;;  %v502_v22 = vld [vmem:[#allocation2 + $0x3b8] sm:$0xff]  ;;  %v609_v1 = vld [vmem:[#allocation2 + $0x710] sm:$0xff] }
  0xc8   : > { %3813 = vmatpush1.bf16.msra.mxu1 %v3812_v35  ;;  %v427_v35 = vld [vmem:[#allocation2 + $0x160] sm:$0xff] }
  0xc9   : > { %3815 = vmatprep.subr.bf16.mxu1 %v3814_v36  ;;  %v445_v36 = vld [vmem:[#allocation2 + $0x1f0] sm:$0xff] }
  0xca   : > { %3757 = vmatpush1.bf16.msra.mxu0 %v3756_v26  ;;  %v3828_v26 = vpack.c.bf16 %v875_v15, %v857_v14  ;;  %v3844_v45 = vpack.c.bf16 %v445_v36, %v427_v35  ;;  %v572_v14 = vld [vmem:[#allocation2 + $0x5e8] sm:$0xff]  ;;  %v590_v15 = vld [vmem:[#allocation2 + $0x678] sm:$0xff]  ;;  %v607_v36 = vld [vmem:[#allocation2 + $0x700] sm:$0xff] }
  0xcb   : > { %3759 = vmatprep.subr.bf16.mxu0 %v3758_v29  ;;  %v911_v29 = vld [vmem:[#allocation2 + $0x1080] sm:$0xff] }
  0xcc   : > { %3817 = vmatpush1.bf16.msra.mxu1 %v3816_v50  ;;  %v463_v50 = vld [vmem:[#allocation2 + $0x280] sm:$0xff] }
  0xcd   : > { %3819 = vmatprep.subr.bf16.mxu1 %v3818_v51  ;;  %v481_v51 = vld [vmem:[#allocation2 + $0x310] sm:$0xff] }
  0xce   : > { %3761 = vmatpush1.bf16.msra.mxu0 %v3760_v41  ;;  %v3832_v41 = vpack.c.bf16 %v911_v29, %v893_v28  ;;  %v3848_v58 = vpack.c.bf16 %v481_v51, %v463_v50  ;;  %v3914_v29 = vpack.c.bf16 %v520_v24, %v502_v22  ;;  %v661_v50 = vld [vmem:[#allocation2 + $0x8b0] sm:$0xff]  ;;  %v698_v51 = vld [vmem:[#allocation2 + $0x9d8] sm:$0xff]  ;;  %v751_v22 = vld [vmem:[#allocation2 + $0xb80] sm:$0xff] }
  0xcf   : > { %3763 = vmatprep.subr.bf16.mxu0 %v3762_v44  ;;  %v947_v44 = vld [vmem:[#allocation2 + $0x11a0] sm:$0xff]  ;;  %v769_v24 = vld [vmem:[#allocation2 + $0xc10] sm:$0xff] }
  0xd0   : > { %3821 = vmatpush1.bf16.msra.mxu1 %v3820_v62  ;;  %v499_v62 = vld [vmem:[#allocation2 + $0x3a0] sm:$0xff] }
  0xd1   : > { %3823 = vmatprep.subr.bf16.mxu1 %v3822_v63  ;;  %v517_v63 = vld [vmem:[#allocation2 + $0x430] sm:$0xff] }
  0xd2   : > { %3765 = vmatpush1.bf16.msra.mxu0 %v3764_v54  ;;  %v3836_v54 = vpack.c.bf16 %v947_v44, %v929_v43  ;;  %v3852_v8 = vpack.c.bf16 %v517_v63, %v499_v62  ;;  %v555_v43 = vld [vmem:[#allocation2 + $0x560] sm:$0xff]  ;;  %v3864_v44 = vpack.c.bf16 %v625_v39, %v607_v36  ;;  %v734_v62 = vld [vmem:[#allocation2 + $0xaf8] sm:$0xff] }
  0xd3   : > { %3767 = vmatprep.subr.bf16.mxu0 %v3766_v57  ;;  %v411_v57 = vld [vmem:[#allocation2 + $0xe0] sm:$0xff]  ;;  %v842_v36 = vld [vmem:[#allocation2 + $0xe58] sm:$0xff] }
  0xd4   : > { %3825 = vmatpush1.bf16.msra.mxu1 %v3824_v12  ;;  %v535_v12 = vld [vmem:[#allocation2 + $0x4c0] sm:$0xff] }
  0xd5   : > { %3827 = vmatprep.subr.bf16.mxu1 %v3826_v13  ;;  %v553_v13 = vld [vmem:[#allocation2 + $0x550] sm:$0xff] }
  0xd6   : > { %3769 = vmatpush1.bf16.msra.mxu0 %v3768_v3  ;;  %v3904_v3 = vpack.c.bf16 %v411_v57, %v393_v56  ;;  %v3856_v21 = vpack.c.bf16 %v553_v13, %v535_v12  ;;  %v610_v57 = vld [vmem:[#allocation2 + $0x718] sm:$0xff] }
  0xd7   : > { %3771 = vmatprep.subr.bf16.mxu0 %v3770_v7  ;;  %v447_v7 = vld [vmem:[#allocation2 + $0x200] sm:$0xff]  ;;  %v770_v12 = vld [vmem:[#allocation2 + $0xc18] sm:$0xff] }
  0xd8   : > { %3829 = vmatpush1.bf16.msra.mxu1 %v3828_v26  ;;  %v589_v26 = vld [vmem:[#allocation2 + $0x670] sm:$0xff] }
  0xd9   : > { %3831 = vmatprep.subr.bf16.mxu1 %v3830_v27  ;;  %v608_v27 = vld [vmem:[#allocation2 + $0x708] sm:$0xff]  ;;  %v3860_v32 = vpack.c.bf16 %v589_v26, %v571_v25  ;;  %v806_v25 = vld [vmem:[#allocation2 + $0xd38] sm:$0xff] }
  0xda   : > { %3773 = vmatpush1.bf16.msra.mxu0 %v3772_v17  ;;  %v3908_v17 = vpack.c.bf16 %v447_v7, %v429_v5  ;;  %v646_v5 = vld [vmem:[#allocation2 + $0x838] sm:$0xff]  ;;  %v664_v7 = vld [vmem:[#allocation2 + $0x8c8] sm:$0xff] }
  0xdb   : > { %3839 = vmatprep.subr.bf16.mxu0 %v3838_v20  ;;  %v483_v20 = vld [vmem:[#allocation2 + $0x320] sm:$0xff] }
  0xdc   : > { %3833 = vmatpush1.bf16.msra.mxu1 %v3832_v41  ;;  %v3912_v28 = vpack.c.bf16 %v483_v20, %v465_v19  ;;  %v682_v19 = vld [vmem:[#allocation2 + $0x958] sm:$0xff]  ;;  %v700_v20 = vld [vmem:[#allocation2 + $0x9e8] sm:$0xff] }
  0xdd   : > { %1202 = vmatmul.mubr.f32.vlgmr.msra.gmra.mrb[8].mxu0 %v5165_v2  ;;  %3835 = vmatprep.subr.bf16.mxu1 %v3834_v42  ;;  %v537_v42 = vld [vmem:[#allocation2 + $0x4d0] sm:$0xff] }
  0xde   : > { %3841 = vmatpush1.bf16.msra.mxu0 %v3840_v30  ;;  %1207 = vmatprep.mubr.f32.mxu0 %v5168_v6  ;;  %v501_v30 = vld [vmem:[#allocation2 + $0x3b0] sm:$0xff]  ;;  %v3920_v52 = vpack.c.bf16 %v555_v43, %v537_v42  ;;  %v754_v42 = vld [vmem:[#allocation2 + $0xb98] sm:$0xff]  ;;  %v772_v43 = vld [vmem:[#allocation2 + $0xc28] sm:$0xff] }
  0xdf   : > { %3843 = vmatprep.subr.bf16.mxu0 %v3842_v34  ;;  %v538_v34 = vld [vmem:[#allocation2 + $0x4d8] sm:$0xff]  ;;  %v3916_v41 = vpack.c.bf16 %v519_v31, %v501_v30  ;;  %v736_v31 = vld [vmem:[#allocation2 + $0xb08] sm:$0xff] }
  0xe0   : > { %3837 = vmatpush1.bf16.msra.mxu1 %v3836_v54  ;;  %v573_v54 = vld [vmem:[#allocation2 + $0x5f0] sm:$0xff]  ;;  %v718_v30 = vld [vmem:[#allocation2 + $0xa78] sm:$0xff] }
  0xe1   : > { %1208 = vmatmul.mubr.f32.gmra.mrb[10].mxu0 %v5173_v16  ;;  %3903 = vmatprep.subr.bf16.mxu1 %v3902_v55  ;;  %v591_v55 = vld [vmem:[#allocation2 + $0x680] sm:$0xff] }
  0xe2   : > { %3845 = vmatpush1.bf16.msra.mxu0 %v3844_v45  ;;  %1213 = vmatprep.mubr.f32.mxu0 %v5176_v23  ;;  %v574_v45 = vld [vmem:[#allocation2 + $0x5f8] sm:$0xff]  ;;  %v3924_v63 = vpack.c.bf16 %v591_v55, %v573_v54  ;;  %v808_v55 = vld [vmem:[#allocation2 + $0xd48] sm:$0xff] }
  0xe3   : > { %3847 = vmatprep.subr.bf16.mxu0 %v3846_v49  ;;  %1291 = vmatmul.mubr.f32.vlgmr.msra.gmra.mrb[8].mxu1 %v5165_v2  ;;  %v3858_v2 = vpack.c.bf16 %v590_v15, %v572_v14  ;;  %v643_v49 = vld [vmem:[#allocation2 + $0x820] sm:$0xff]  ;;  %v3922_v53 = vpack.c.bf16 %v592_v46, %v574_v45  ;;  %v3930_v14 = vpack.c.bf16 %v664_v7, %v646_v5  ;;  %v645_v15 = vld [vmem:[#allocation2 + $0x830] sm:$0xff]  ;;  %v790_v54 = vld [vmem:[#allocation2 + $0xcb8] sm:$0xff] }
  0xe4   : > { %3905 = vmatpush1.bf16.msra.mxu1 %v3904_v3  ;;  %1296 = vmatprep.mubr.f32.mxu1 %v5168_v6  ;;  %v626_v6 = vld [vmem:[#allocation2 + $0x798] sm:$0xff]  ;;  %v3868_v56 = vpack.c.bf16 %v661_v50, %v643_v49  ;;  %v627_v3 = vld [vmem:[#allocation2 + $0x7a0] sm:$0xff]  ;;  %v841_v46 = vld [vmem:[#allocation2 + $0xe50] sm:$0xff] }
  0xe5   : > { %1214 = vmatmul.mubr.f32.gmra.mrb[12].mxu0 %v5181_v33  ;;  %3907 = vmatprep.subr.bf16.mxu1 %v3906_v4  ;;  %v3862_v35 = vpack.c.bf16 %v626_v6, %v608_v27  ;;  %v3928_v13 = vpack.c.bf16 %v627_v3, %v609_v1  ;;  %v3934_v27 = vpack.c.bf16 %v700_v20, %v682_v19  ;;  %v681_v6 = vld [vmem:[#allocation2 + $0x950] sm:$0xff]  ;;  %v823_v45 = vld [vmem:[#allocation2 + $0xdc0] sm:$0xff]  ;;  %v878_v49 = vld [vmem:[#allocation2 + $0xf78] sm:$0xff] }
  0xe6   : > { %3849 = vmatpush1.bf16.msra.mxu0 %v3848_v58  ;;  %1219 = vmatprep.mubr.f32.mxu0 %v5184_v37  ;;  %v628_v58 = vld [vmem:[#allocation2 + $0x7a8] sm:$0xff]  ;;  %v826_v1 = vld [vmem:[#allocation2 + $0xdd8] sm:$0xff]  ;;  %v895_v5 = vld [vmem:[#allocation2 + $0x1000] sm:$0xff] }
  0xe7   : > { %3851 = vmatprep.subr.bf16.mxu0 %v3850_v61  ;;  %1297 = vmatmul.mubr.f32.gmra.mrb[10].mxu1 %v5173_v16  ;;  %v644_v16 = vld [vmem:[#allocation2 + $0x828] sm:$0xff]  ;;  %v3926_v0 = vpack.c.bf16 %v628_v58, %v610_v57  ;;  %v859_v57 = vld [vmem:[#allocation2 + $0xee0] sm:$0xff]  ;;  %v877_v58 = vld [vmem:[#allocation2 + $0xf70] sm:$0xff] }
  0xe8   : > { %3909 = vmatpush1.bf16.msra.mxu1 %v3908_v17  ;;  %1302 = vmatprep.mubr.f32.mxu1 %v5176_v23  ;;  %v3866_v47 = vpack.c.bf16 %v662_v40, %v644_v16  ;;  %v716_v61 = vld [vmem:[#allocation2 + $0xa68] sm:$0xff]  ;;  %v663_v17 = vld [vmem:[#allocation2 + $0x8c0] sm:$0xff]  ;;  %v3938_v16 = vpack.c.bf16 %v736_v31, %v718_v30  ;;  %v717_v40 = vld [vmem:[#allocation2 + $0xa70] sm:$0xff] }
  0xe9   : > { %1220 = vmatmul.mubr.f32.gmra.mrb[14].mxu0 %v5189_v48  ;;  %3911 = vmatprep.subr.bf16.mxu1 %v3910_v18  ;;  %v3876_v18 = vpack.c.bf16 %v733_v10, %v715_v9  ;;  %v3932_v26 = vpack.c.bf16 %v663_v17, %v645_v15  ;;  %v844_v3 = vld [vmem:[#allocation2 + $0xe68] sm:$0xff]  ;;  %v913_v7 = vld [vmem:[#allocation2 + $0x1090] sm:$0xff]  ;;  %v950_v9 = vld [vmem:[#allocation2 + $0x11b8] sm:$0xff] }
  0xea   : > { %3853 = vmatpush1.bf16.msra.mxu0 %v3852_v8  ;;  %1379 = vmatprep.mubr.f32.mxu0 %v5160_v38  ;;  %v556_v38 = vld [vmem:[#allocation2 + $0x568] sm:$0xff]  ;;  %v3874_v8 = vpack.c.bf16 %v734_v62, %v716_v61  ;;  %v3946_v61 = vpack.c.bf16 %v808_v55, %v790_v54  ;;  %v789_v62 = vld [vmem:[#allocation2 + $0xcb0] sm:$0xff]  ;;  %v862_v15 = vld [vmem:[#allocation2 + $0xef8] sm:$0xff] }
  0xeb   : > { %3855 = vmatprep.subr.bf16.mxu0 %v3854_v11  ;;  %1303 = vmatmul.mubr.f32.gmra.mrb[12].mxu1 %v5181_v33  ;;  %v3918_v23 = vpack.c.bf16 %v556_v38, %v538_v34  ;;  %v680_v33 = vld [vmem:[#allocation2 + $0x948] sm:$0xff]  ;;  %v787_v34 = vld [vmem:[#allocation2 + $0xca0] sm:$0xff]  ;;  %v805_v38 = vld [vmem:[#allocation2 + $0xd30] sm:$0xff] }
  0xec   : > { %3913 = vmatpush1.bf16.msra.mxu1 %v3912_v28  ;;  %1308 = vmatprep.mubr.f32.mxu1 %v5184_v37  ;;  %v5217_v37 = vld [vmem:[%s5157_s24 + $0x8] sm:$0xff]  ;;  %v3870_v59 = vpack.c.bf16 %v698_v51, %v680_v33  ;;  %v699_v28 = vld [vmem:[#allocation2 + $0x9e0] sm:$0xff]  ;;  %v3942_v33 = vpack.c.bf16 %v772_v43, %v754_v42  ;;  %v753_v51 = vld [vmem:[#allocation2 + $0xb90] sm:$0xff] }
  0xed   : > { %3915 = vmatprep.subr.bf16.mxu1 %v3914_v29  ;;  %v752_v11 = vld [vmem:[#allocation2 + $0xb88] sm:$0xff]  ;;  %v3880_v29 = vpack.c.bf16 %v769_v24, %v751_v22  ;;  %v3936_v39 = vpack.c.bf16 %v699_v28, %v681_v6  ;;  %v931_v19 = vld [vmem:[#allocation2 + $0x1120] sm:$0xff]  ;;  %v949_v20 = vld [vmem:[#allocation2 + $0x11b0] sm:$0xff] }
  0xee   : > { %3857 = vmatpush1.bf16.msra.mxu0 %v3856_v21  ;;  %v3878_v21 = vpack.c.bf16 %v770_v12, %v752_v11  ;;  %v3950_v11 = vpack.c.bf16 %v844_v3, %v826_v1  ;;  %v825_v12 = vld [vmem:[#allocation2 + $0xdd0] sm:$0xff]  ;;  %v880_v17 = vld [vmem:[#allocation2 + $0xf88] sm:$0xff]  ;;  %v414_v22 = vld [vmem:[#allocation2 + $0xf8] sm:$0xff] }
  0xef   : > { %3859 = vmatprep.subr.bf16.mxu0 %v3858_v2  ;;  %1309 = vmatmul.mubr.f32.gmra.mrb[14].mxu1 %v5189_v48  ;;  %v697_v48 = vld [vmem:[#allocation2 + $0x9d0] sm:$0xff]  ;;  %v788_v2 = vld [vmem:[#allocation2 + $0xca8] sm:$0xff]  ;;  %v898_v6 = vld [vmem:[#allocation2 + $0x1018] sm:$0xff] }
  0xf0   : > { %3917 = vmatpush1.bf16.msra.mxu1 %v3916_v41  ;;  %1468 = vmatprep.mubr.f32.mxu1 %v5217_v37  ;;  %v3872_v4 = vpack.c.bf16 %v697_v48, %v679_v60  ;;  %v735_v41 = vld [vmem:[#allocation2 + $0xb00] sm:$0xff]  ;;  %v914_v60 = vld [vmem:[#allocation2 + $0x1098] sm:$0xff]  ;;  %v916_v28 = vld [vmem:[#allocation2 + $0x10a8] sm:$0xff] }
  0xf1   : > { %3919 = vmatprep.subr.bf16.mxu1 %v3918_v23  ;;  %v3884_v23 = vpack.c.bf16 %v805_v38, %v787_v34  ;;  %v3940_v50 = vpack.c.bf16 %v735_v41, %v717_v40  ;;  %v395_v30 = vld [vmem:[#allocation2 + $0x60] sm:$0xff]  ;;  %v413_v31 = vld [vmem:[#allocation2 + $0xf0] sm:$0xff]  ;;  %v450_v34 = vld [vmem:[#allocation2 + $0x218] sm:$0xff] }
  0xf2   : > { %3861 = vmatpush1.bf16.msra.mxu0 %v3860_v32  ;;  %v3882_v32 = vpack.c.bf16 %v806_v25, %v788_v2  ;;  %v3954_v2 = vpack.c.bf16 %v880_v17, %v862_v15  ;;  %v861_v25 = vld [vmem:[#allocation2 + $0xef0] sm:$0xff]  ;;  %v934_v40 = vld [vmem:[#allocation2 + $0x1138] sm:$0xff]  ;;  %v952_v41 = vld [vmem:[#allocation2 + $0x11c8] sm:$0xff] }
  0xf3   : > { %3863 = vmatprep.subr.bf16.mxu0 %v3862_v35  ;;  %v824_v35 = vld [vmem:[#allocation2 + $0xdc8] sm:$0xff]  ;;  %v431_v42 = vld [vmem:[#allocation2 + $0x180] sm:$0xff]  ;;  %v449_v43 = vld [vmem:[#allocation2 + $0x210] sm:$0xff] }
  0xf4   : > { %3921 = vmatpush1.bf16.msra.mxu1 %v3920_v52  ;;  %v771_v52 = vld [vmem:[#allocation2 + $0xc20] sm:$0xff]  ;;  %v416_v54 = vld [vmem:[#allocation2 + $0x108] sm:$0xff]  ;;  %v434_v1 = vld [vmem:[#allocation2 + $0x198] sm:$0xff] }
  0xf5   : > { %3923 = vmatprep.subr.bf16.mxu1 %v3922_v53  ;;  %v3888_v53 = vpack.c.bf16 %v841_v46, %v823_v45  ;;  %v3944_v48 = vpack.c.bf16 %v771_v52, %v753_v51  ;;  %v486_v45 = vld [vmem:[#allocation2 + $0x338] sm:$0xff]  ;;  %v3972_v52 = vpack.c.bf16 %v449_v43, %v431_v42  ;;  %v452_v3 = vld [vmem:[#allocation2 + $0x228] sm:$0xff]  ;;  %v5237_v15 = vld [vmem:[%s5157_s24 + $0x20] sm:$0xff] }
  0xf6   : > { %3865 = vmatpush1.bf16.msra.mxu0 %v3864_v44  ;;  %v3886_v44 = vpack.c.bf16 %v842_v36, %v824_v35  ;;  %v3958_v35 = vpack.c.bf16 %v916_v28, %v898_v6  ;;  %v897_v36 = vld [vmem:[#allocation2 + $0x1010] sm:$0xff]  ;;  %v5225_v51 = vld [vmem:[%s5157_s24 + $0x18] sm:$0xff]  ;;  %v487_v28 = vld [vmem:[#allocation2 + $0x340] sm:$0xff] }
  0xf7   : > { %3867 = vmatprep.subr.bf16.mxu0 %v3866_v47  ;;  %v860_v47 = vld [vmem:[#allocation2 + $0xee8] sm:$0xff]  ;;  %v469_v6 = vld [vmem:[#allocation2 + $0x2b0] sm:$0xff]  ;;  %v542_v43 = vld [vmem:[#allocation2 + $0x4f8] sm:$0xff] }
  0xf8   : > { %3925 = vmatpush1.bf16.msra.mxu1 %v3924_v63  ;;  %v807_v63 = vld [vmem:[#allocation2 + $0xd40] sm:$0xff] }
  0xf9   : > { %3927 = vmatprep.subr.bf16.mxu1 %v3926_v0  ;;  %v3892_v0 = vpack.c.bf16 %v877_v58, %v859_v57  ;;  %v3948_v10 = vpack.c.bf16 %v807_v63, %v789_v62  ;;  %v485_v57 = vld [vmem:[#allocation2 + $0x330] sm:$0xff]  ;;  %v504_v58 = vld [vmem:[#allocation2 + $0x3c8] sm:$0xff]  ;;  %v415_v63 = vld [vmem:[#allocation2 + $0x100] sm:$0xff] }
  0xfa   : > { %3869 = vmatpush1.bf16.msra.mxu0 %v3868_v56  ;;  %v3890_v56 = vpack.c.bf16 %v878_v49, %v860_v47  ;;  %v5221_v47 = vld [vmem:[%s5157_s24] sm:$0xff]  ;;  %v3962_v49 = vpack.c.bf16 %v952_v41, %v934_v40  ;;  %v397_v62 = vld [vmem:[#allocation2 + $0x70] sm:$0xff] }
  0xfb   : > { %3871 = vmatprep.subr.bf16.mxu0 %v3870_v59  ;;  %v896_v59 = vld [vmem:[#allocation2 + $0x1008] sm:$0xff]  ;;  %v505_v41 = vld [vmem:[#allocation2 + $0x3d0] sm:$0xff] }
  0xfc   : > { %3929 = vmatpush1.bf16.msra.mxu1 %v3928_v13  ;;  %v843_v13 = vld [vmem:[#allocation2 + $0xe60] sm:$0xff] }
  0xfd   : > { %3931 = vmatprep.subr.bf16.mxu1 %v3930_v14  ;;  %v3896_v14 = vpack.c.bf16 %v913_v7, %v895_v5  ;;  %v3952_v24 = vpack.c.bf16 %v843_v13, %v825_v12  ;;  %v503_v7 = vld [vmem:[#allocation2 + $0x3c0] sm:$0xff]  ;;  %v4034_v12 = vpack.c.bf16 %v452_v3, %v434_v1  ;;  %v433_v13 = vld [vmem:[#allocation2 + $0x190] sm:$0xff] }
  0xfe   : > { %3873 = vmatpush1.bf16.msra.mxu0 %v3872_v4  ;;  %v3894_v4 = vpack.c.bf16 %v914_v60, %v896_v59  ;;  %v522_v59 = vld [vmem:[#allocation2 + $0x458] sm:$0xff]  ;;  %v577_v3 = vld [vmem:[#allocation2 + $0x610] sm:$0xff] }
  0xff   : > { %3875 = vmatprep.subr.bf16.mxu0 %v3874_v8  ;;  %v932_v8 = vld [vmem:[#allocation2 + $0x1128] sm:$0xff]  ;;  %v3978_v5 = vpack.c.bf16 %v522_v59, %v504_v58 }
 0x100   : > { %3933 = vmatpush1.bf16.msra.mxu1 %v3932_v26  ;;  %v879_v26 = vld [vmem:[#allocation2 + $0xf80] sm:$0xff]  ;;  %v596_v58 = vld [vmem:[#allocation2 + $0x6a8] sm:$0xff] }
 0x101   : > { %3935 = vmatprep.subr.bf16.mxu1 %v3934_v27  ;;  %v3900_v27 = vpack.c.bf16 %v949_v20, %v931_v19  ;;  %v3956_v38 = vpack.c.bf16 %v879_v26, %v861_v25  ;;  %v488_v19 = vld [vmem:[#allocation2 + $0x348] sm:$0xff]  ;;  %v5241_v20 = vld [vmem:[%s5157_s24 + $0x38] sm:$0xff] }
 0x102   : > { %3877 = vmatpush1.bf16.msra.mxu0 %v3876_v18  ;;  %v3898_v18 = vpack.c.bf16 %v950_v9, %v932_v8  ;;  %v521_v8 = vld [vmem:[#allocation2 + $0x450] sm:$0xff]  ;;  %v540_v9 = vld [vmem:[#allocation2 + $0x4e8] sm:$0xff]  ;;  %v594_v25 = vld [vmem:[#allocation2 + $0x698] sm:$0xff] }
 0x103   : > { %3879 = vmatprep.subr.bf16.mxu0 %v3878_v21  ;;  %v396_v21 = vld [vmem:[#allocation2 + $0x68] sm:$0xff]  ;;  %v3980_v17 = vpack.c.bf16 %v521_v8, %v503_v7  ;;  %v614_v8 = vld [vmem:[#allocation2 + $0x738] sm:$0xff] }
 0x104   : > { %3937 = vmatpush1.bf16.msra.mxu1 %v3936_v39  ;;  %v915_v39 = vld [vmem:[#allocation2 + $0x10a0] sm:$0xff] }
 0x105   : > { %3939 = vmatprep.subr.bf16.mxu1 %v3938_v16  ;;  %v3968_v16 = vpack.c.bf16 %v413_v31, %v395_v30  ;;  %v3960_v46 = vpack.c.bf16 %v915_v39, %v897_v36  ;;  %v506_v31 = vld [vmem:[#allocation2 + $0x3d8] sm:$0xff]  ;;  %v612_v36 = vld [vmem:[#allocation2 + $0x728] sm:$0xff] }
 0x106   : > { %3881 = vmatpush1.bf16.msra.mxu0 %v3880_v29  ;;  %v3966_v29 = vpack.c.bf16 %v414_v22, %v396_v21  ;;  %v539_v22 = vld [vmem:[#allocation2 + $0x4e0] sm:$0xff]  ;;  %v630_v39 = vld [vmem:[#allocation2 + $0x7b8] sm:$0xff] }
 0x107   : > { %3883 = vmatprep.subr.bf16.mxu0 %v3882_v32  ;;  %v432_v32 = vld [vmem:[#allocation2 + $0x188] sm:$0xff] }
 0x108   : > { %3941 = vmatpush1.bf16.msra.mxu1 %v3940_v50  ;;  %v933_v50 = vld [vmem:[#allocation2 + $0x1130] sm:$0xff] }
 0x109   : > { %3943 = vmatprep.subr.bf16.mxu1 %v3942_v33  ;;  %v951_v33 = vld [vmem:[#allocation2 + $0x11c0] sm:$0xff] }
 0x10a   : > { %3885 = vmatpush1.bf16.msra.mxu0 %v3884_v23  ;;  %v3970_v23 = vpack.c.bf16 %v450_v34, %v432_v32  ;;  %v3964_v60 = vpack.c.bf16 %v951_v33, %v933_v50  ;;  %v524_v32 = vld [vmem:[#allocation2 + $0x468] sm:$0xff]  ;;  %v666_v33 = vld [vmem:[#allocation2 + $0x8d8] sm:$0xff] }
 0x10b   : > { %3887 = vmatprep.subr.bf16.mxu0 %v3886_v44  ;;  %v468_v44 = vld [vmem:[#allocation2 + $0x2a8] sm:$0xff]  ;;  %v4042_v40 = vpack.c.bf16 %v524_v32, %v506_v31  ;;  %v649_v32 = vld [vmem:[#allocation2 + $0x850] sm:$0xff] }
 0x10c   : > { %3945 = vmatpush1.bf16.msra.mxu1 %v3944_v48  ;;  %v3974_v55 = vpack.c.bf16 %v486_v45, %v468_v44  ;;  %v5229_v48 = vld [vmem:[%s5157_s24 + $0x10] sm:$0xff]  ;;  %v560_v44 = vld [vmem:[#allocation2 + $0x588] sm:$0xff]  ;;  %v3990_v45 = vpack.c.bf16 %v630_v39, %v612_v36 }
 0x10d   : > { %3947 = vmatprep.subr.bf16.mxu1 %v3946_v61  ;;  %v648_v50 = vld [vmem:[#allocation2 + $0x848] sm:$0xff] }
 0x10e   : > { %3889 = vmatpush1.bf16.msra.mxu0 %v3888_v53  ;;  %v398_v53 = vld [vmem:[#allocation2 + $0x78] sm:$0xff]  ;;  %v3994_v59 = vpack.c.bf16 %v666_v33, %v648_v50  ;;  %v704_v36 = vld [vmem:[#allocation2 + $0xa08] sm:$0xff] }
 0x10f   : > { %3891 = vmatprep.subr.bf16.mxu0 %v3890_v56  ;;  %v467_v56 = vld [vmem:[#allocation2 + $0x2a0] sm:$0xff]  ;;  %v4030_v61 = vpack.c.bf16 %v416_v54, %v398_v53  ;;  %v4046_v53 = vpack.c.bf16 %v560_v44, %v542_v43  ;;  %v541_v54 = vld [vmem:[#allocation2 + $0x4f0] sm:$0xff]  ;;  %v740_v50 = vld [vmem:[#allocation2 + $0xb28] sm:$0xff] }
 0x110   : > { %3949 = vmatpush1.bf16.msra.mxu1 %v3948_v10  ;;  %v558_v10 = vld [vmem:[#allocation2 + $0x578] sm:$0xff]  ;;  %v685_v44 = vld [vmem:[#allocation2 + $0x970] sm:$0xff] }
 0x111   : > { %3951 = vmatprep.subr.bf16.mxu1 %v3950_v11  ;;  %v4032_v11 = vpack.c.bf16 %v415_v63, %v397_v62  ;;  %v3982_v21 = vpack.c.bf16 %v558_v10, %v540_v9  ;;  %v684_v62 = vld [vmem:[#allocation2 + $0x968] sm:$0xff]  ;;  %v702_v63 = vld [vmem:[#allocation2 + $0x9f8] sm:$0xff] }
 0x112   : > { %3893 = vmatpush1.bf16.msra.mxu0 %v3892_v0  ;;  %v3976_v0 = vpack.c.bf16 %v485_v57, %v467_v56  ;;  %v578_v57 = vld [vmem:[#allocation2 + $0x618] sm:$0xff]  ;;  %v632_v9 = vld [vmem:[#allocation2 + $0x7c8] sm:$0xff]  ;;  %v3998_v10 = vpack.c.bf16 %v702_v63, %v684_v62 }
 0x113   : > { %3895 = vmatprep.subr.bf16.mxu0 %v3894_v4  ;;  %v5233_v4 = vld [vmem:[%s5157_s24 + $0x28] sm:$0xff]  ;;  %v4050_v1 = vpack.c.bf16 %v596_v58, %v578_v57  ;;  %v721_v58 = vld [vmem:[#allocation2 + $0xa90] sm:$0xff] }
 0x114   : > { %3953 = vmatpush1.bf16.msra.mxu1 %v3952_v24  ;;  %v557_v24 = vld [vmem:[#allocation2 + $0x570] sm:$0xff]  ;;  %v776_v62 = vld [vmem:[#allocation2 + $0xc48] sm:$0xff] }
 0x115   : > { %3955 = vmatprep.subr.bf16.mxu1 %v3954_v2  ;;  %v576_v2 = vld [vmem:[#allocation2 + $0x608] sm:$0xff]  ;;  %v3984_v30 = vpack.c.bf16 %v557_v24, %v539_v22  ;;  %v650_v24 = vld [vmem:[#allocation2 + $0x858] sm:$0xff] }
 0x116   : > { %3897 = vmatpush1.bf16.msra.mxu0 %v3896_v14  ;;  %v451_v14 = vld [vmem:[#allocation2 + $0x220] sm:$0xff]  ;;  %v3986_v34 = vpack.c.bf16 %v594_v25, %v576_v2  ;;  %v668_v2 = vld [vmem:[#allocation2 + $0x8e8] sm:$0xff] }
 0x117   : > { %3899 = vmatprep.subr.bf16.mxu0 %v3898_v18  ;;  %v470_v18 = vld [vmem:[#allocation2 + $0x2b8] sm:$0xff]  ;;  %v4036_v26 = vpack.c.bf16 %v451_v14, %v433_v13  ;;  %v720_v13 = vld [vmem:[#allocation2 + $0xa88] sm:$0xff]  ;;  %v4058_v31 = vpack.c.bf16 %v668_v2, %v650_v24  ;;  %v793_v2 = vld [vmem:[#allocation2 + $0xcd0] sm:$0xff] }
 0x118   : > { %3957 = vmatpush1.bf16.msra.mxu1 %v3956_v38  ;;  %v575_v38 = vld [vmem:[#allocation2 + $0x600] sm:$0xff]  ;;  %v738_v14 = vld [vmem:[#allocation2 + $0xb18] sm:$0xff] }
 0x119   : > { %3959 = vmatprep.subr.bf16.mxu1 %v3958_v35  ;;  %v593_v35 = vld [vmem:[#allocation2 + $0x690] sm:$0xff]  ;;  %v4002_v25 = vpack.c.bf16 %v738_v14, %v720_v13  ;;  %v812_v13 = vld [vmem:[#allocation2 + $0xd68] sm:$0xff] }
 0x11a   : > { %3901 = vmatpush1.bf16.msra.mxu0 %v3900_v27  ;;  %v4038_v27 = vpack.c.bf16 %v488_v19, %v470_v18  ;;  %v3988_v42 = vpack.c.bf16 %v593_v35, %v575_v38  ;;  %v4054_v18 = vpack.c.bf16 %v632_v9, %v614_v8  ;;  %v613_v19 = vld [vmem:[#allocation2 + $0x730] sm:$0xff]  ;;  %v686_v35 = vld [vmem:[#allocation2 + $0x978] sm:$0xff] }
 0x11b   : > { %3967 = vmatprep.subr.bf16.mxu0 %v3966_v29  ;;  %v5247_v29 = vld [vmem:[%s5157_s24 + $0x30] sm:$0xff]  ;;  %v4062_v43 = vpack.c.bf16 %v704_v36, %v686_v35 }
 0x11c   : > { %3961 = vmatpush1.bf16.msra.mxu1 %v3960_v46  ;;  %v611_v46 = vld [vmem:[#allocation2 + $0x720] sm:$0xff]  ;;  %v757_v9 = vld [vmem:[#allocation2 + $0xbb0] sm:$0xff] }
 0x11d   : > { %1380 = vmatmul.mubr.f32.vlgmr.msra.gmra.mrb[16].mxu0 %v5221_v47  ;;  %3963 = vmatprep.subr.bf16.mxu1 %v3962_v49  ;;  %v629_v49 = vld [vmem:[#allocation2 + $0x7b0] sm:$0xff] }
 0x11e   : > { %3969 = vmatpush1.bf16.msra.mxu0 %v3968_v16  ;;  %1385 = vmatprep.mubr.f32.mxu0 %v5225_v51  ;;  %v4040_v16 = vpack.c.bf16 %v487_v28, %v469_v6  ;;  %v3992_v56 = vpack.c.bf16 %v629_v49, %v611_v46  ;;  %v756_v6 = vld [vmem:[#allocation2 + $0xba8] sm:$0xff]  ;;  %v774_v28 = vld [vmem:[#allocation2 + $0xc38] sm:$0xff]  ;;  %v829_v36 = vld [vmem:[#allocation2 + $0xdf0] sm:$0xff] }
 0x11f   : > { %3971 = vmatprep.subr.bf16.mxu0 %v3970_v23  ;;  %v523_v23 = vld [vmem:[#allocation2 + $0x460] sm:$0xff]  ;;  %v4006_v39 = vpack.c.bf16 %v774_v28, %v756_v6  ;;  %v722_v49 = vld [vmem:[#allocation2 + $0xa98] sm:$0xff]  ;;  %v848_v6 = vld [vmem:[#allocation2 + $0xe88] sm:$0xff] }
 0x120   : > { %3965 = vmatpush1.bf16.msra.mxu1 %v3964_v60  ;;  %v647_v60 = vld [vmem:[#allocation2 + $0x840] sm:$0xff]  ;;  %v4066_v57 = vpack.c.bf16 %v740_v50, %v722_v49  ;;  %v865_v50 = vld [vmem:[#allocation2 + $0xf10] sm:$0xff] }
 0x121   : > { %1386 = vmatmul.mubr.f32.gmra.mrb[18].mxu0 %v5229_v48  ;;  %4031 = vmatprep.subr.bf16.mxu1 %v4030_v61  ;;  %v665_v61 = vld [vmem:[#allocation2 + $0x8d0] sm:$0xff] }
 0x122   : > { %3973 = vmatpush1.bf16.msra.mxu0 %v3972_v52  ;;  %1391 = vmatprep.mubr.f32.mxu0 %v5233_v4  ;;  %v4044_v52 = vpack.c.bf16 %v523_v23, %v505_v41  ;;  %v3996_v7 = vpack.c.bf16 %v665_v61, %v647_v60  ;;  %v792_v41 = vld [vmem:[#allocation2 + $0xcc8] sm:$0xff]  ;;  %v810_v23 = vld [vmem:[#allocation2 + $0xd58] sm:$0xff] }
 0x123   : > { %3975 = vmatprep.subr.bf16.mxu0 %v3974_v55  ;;  %1469 = vmatmul.mubr.f32.vlgmr.msra.gmra.mrb[16].mxu1 %v5221_v47  ;;  %v559_v55 = vld [vmem:[#allocation2 + $0x580] sm:$0xff]  ;;  %v4010_v33 = vpack.c.bf16 %v810_v23, %v792_v41  ;;  %v758_v61 = vld [vmem:[#allocation2 + $0xbb8] sm:$0xff]  ;;  %v884_v41 = vld [vmem:[#allocation2 + $0xfa8] sm:$0xff] }
 0x124   : > { %4033 = vmatpush1.bf16.msra.mxu1 %v4032_v11  ;;  %1474 = vmatprep.mubr.f32.mxu1 %v5225_v51  ;;  %v683_v11 = vld [vmem:[#allocation2 + $0x960] sm:$0xff]  ;;  %v4070_v8 = vpack.c.bf16 %v776_v62, %v758_v61  ;;  %v901_v62 = vld [vmem:[#allocation2 + $0x1030] sm:$0xff] }
 0x125   : > { %1392 = vmatmul.mubr.f32.gmra.mrb[20].mxu0 %v5237_v15  ;;  %4035 = vmatprep.subr.bf16.mxu1 %v4034_v12  ;;  %v701_v12 = vld [vmem:[#allocation2 + $0x9f0] sm:$0xff] }
 0x126   : > { %3977 = vmatpush1.bf16.msra.mxu0 %v3976_v0  ;;  %1397 = vmatprep.mubr.f32.mxu0 %v5241_v20  ;;  %v4048_v0 = vpack.c.bf16 %v559_v55, %v541_v54  ;;  %v4000_v22 = vpack.c.bf16 %v701_v12, %v683_v11  ;;  %v828_v54 = vld [vmem:[#allocation2 + $0xde8] sm:$0xff]  ;;  %v846_v55 = vld [vmem:[#allocation2 + $0xe78] sm:$0xff] }
 0x127   : > { %3979 = vmatprep.subr.bf16.mxu0 %v3978_v5  ;;  %1475 = vmatmul.mubr.f32.gmra.mrb[18].mxu1 %v5229_v48  ;;  %v595_v5 = vld [vmem:[#allocation2 + $0x6a0] sm:$0xff]  ;;  %v4014_v63 = vpack.c.bf16 %v846_v55, %v828_v54  ;;  %v794_v12 = vld [vmem:[#allocation2 + $0xcd8] sm:$0xff]  ;;  %v920_v54 = vld [vmem:[#allocation2 + $0x10c8] sm:$0xff] }
 0x128   : > { %4037 = vmatpush1.bf16.msra.mxu1 %v4036_v26  ;;  %1480 = vmatprep.mubr.f32.mxu1 %v5233_v4  ;;  %v719_v26 = vld [vmem:[#allocation2 + $0xa80] sm:$0xff]  ;;  %v4074_v24 = vpack.c.bf16 %v812_v13, %v794_v12  ;;  %v937_v13 = vld [vmem:[#allocation2 + $0x1150] sm:$0xff] }
 0x129   : > { %1398 = vmatmul.mubr.f32.gmra.mrb[22].mxu0 %v5247_v29  ;;  %4039 = vmatprep.subr.bf16.mxu1 %v4038_v27  ;;  %v737_v27 = vld [vmem:[#allocation2 + $0xb10] sm:$0xff] }
 0x12a   : > { %3981 = vmatpush1.bf16.msra.mxu0 %v3980_v17  ;;  %1557 = vmatprep.mubr.f32.mxu0 %v5217_v37  ;;  %v4052_v17 = vpack.c.bf16 %v595_v5, %v577_v3  ;;  %v4004_v38 = vpack.c.bf16 %v737_v27, %v719_v26  ;;  %v864_v3 = vld [vmem:[#allocation2 + $0xf08] sm:$0xff]  ;;  %v882_v5 = vld [vmem:[#allocation2 + $0xf98] sm:$0xff] }
 0x12b   : > { %3983 = vmatprep.subr.bf16.mxu0 %v3982_v21  ;;  %1481 = vmatmul.mubr.f32.gmra.mrb[20].mxu1 %v5237_v15  ;;  %v631_v21 = vld [vmem:[#allocation2 + $0x7c0] sm:$0xff]  ;;  %v4018_v14 = vpack.c.bf16 %v882_v5, %v864_v3  ;;  %v830_v27 = vld [vmem:[#allocation2 + $0xdf8] sm:$0xff]  ;;  %v956_v3 = vld [vmem:[#allocation2 + $0x11e8] sm:$0xff] }
 0x12c   : > { %4041 = vmatpush1.bf16.msra.mxu1 %v4040_v16  ;;  %1486 = vmatprep.mubr.f32.mxu1 %v5241_v20  ;;  %v755_v16 = vld [vmem:[#allocation2 + $0xba0] sm:$0xff]  ;;  %v4078_v35 = vpack.c.bf16 %v848_v6, %v830_v27  ;;  %v525_v6 = vld [vmem:[#allocation2 + $0x470] sm:$0xff] }
 0x12d   : > { %4043 = vmatprep.subr.bf16.mxu1 %v4042_v40  ;;  %v773_v40 = vld [vmem:[#allocation2 + $0xc30] sm:$0xff]  ;;  %v507_v27 = vld [vmem:[#allocation2 + $0x3e0] sm:$0xff] }
 0x12e   : > { %3985 = vmatpush1.bf16.msra.mxu0 %v3984_v30  ;;  %v4056_v30 = vpack.c.bf16 %v631_v21, %v613_v19  ;;  %v4008_v46 = vpack.c.bf16 %v773_v40, %v755_v16  ;;  %v900_v19 = vld [vmem:[#allocation2 + $0x1028] sm:$0xff]  ;;  %v918_v21 = vld [vmem:[#allocation2 + $0x10b8] sm:$0xff] }
 0x12f   : > { %3987 = vmatprep.subr.bf16.mxu0 %v3986_v34  ;;  %1487 = vmatmul.mubr.f32.gmra.mrb[22].mxu1 %v5247_v29  ;;  %v667_v34 = vld [vmem:[#allocation2 + $0x8e0] sm:$0xff]  ;;  %v4022_v28 = vpack.c.bf16 %v918_v21, %v900_v19  ;;  %v866_v40 = vld [vmem:[#allocation2 + $0xf18] sm:$0xff]  ;;  %v489_v21 = vld [vmem:[#allocation2 + $0x350] sm:$0xff] }
 0x130   : > { %4045 = vmatpush1.bf16.msra.mxu1 %v4044_v52  ;;  %1646 = vmatprep.mubr.f32.mxu1 %v5217_v37  ;;  %v791_v52 = vld [vmem:[#allocation2 + $0xcc0] sm:$0xff]  ;;  %v4082_v49 = vpack.c.bf16 %v884_v41, %v866_v40  ;;  %v597_v41 = vld [vmem:[#allocation2 + $0x6b0] sm:$0xff] }
 0x131   : > { %4047 = vmatprep.subr.bf16.mxu1 %v4046_v53  ;;  %v809_v53 = vld [vmem:[#allocation2 + $0xd50] sm:$0xff]  ;;  %v471_v19 = vld [vmem:[#allocation2 + $0x2c0] sm:$0xff] }
 0x132   : > { %3989 = vmatpush1.bf16.msra.mxu0 %v3988_v42  ;;  %v4060_v42 = vpack.c.bf16 %v667_v34, %v649_v32  ;;  %v4012_v60 = vpack.c.bf16 %v809_v53, %v791_v52  ;;  %v936_v32 = vld [vmem:[#allocation2 + $0x1148] sm:$0xff]  ;;  %v954_v34 = vld [vmem:[#allocation2 + $0x11d8] sm:$0xff]  ;;  %v579_v40 = vld [vmem:[#allocation2 + $0x620] sm:$0xff] }
 0x133   : > { %3991 = vmatprep.subr.bf16.mxu0 %v3990_v45  ;;  %v703_v45 = vld [vmem:[#allocation2 + $0xa00] sm:$0xff]  ;;  %v4026_v23 = vpack.c.bf16 %v954_v34, %v936_v32  ;;  %v902_v53 = vld [vmem:[#allocation2 + $0x1038] sm:$0xff] }
 0x134   : > { %4049 = vmatpush1.bf16.msra.mxu1 %v4048_v0  ;;  %v827_v0 = vld [vmem:[#allocation2 + $0xde0] sm:$0xff]  ;;  %v4086_v61 = vpack.c.bf16 %v920_v54, %v902_v53 }
 0x135   : > { %4051 = vmatprep.subr.bf16.mxu1 %v4050_v1  ;;  %v845_v1 = vld [vmem:[#allocation2 + $0xe70] sm:$0xff]  ;;  %v543_v34 = vld [vmem:[#allocation2 + $0x500] sm:$0xff] }
 0x136   : > { %3993 = vmatpush1.bf16.msra.mxu0 %v3992_v56  ;;  %v4064_v56 = vpack.c.bf16 %v703_v45, %v685_v44  ;;  %v4016_v11 = vpack.c.bf16 %v845_v1, %v827_v0  ;;  %v400_v44 = vld [vmem:[#allocation2 + $0x88] sm:$0xff]  ;;  %v418_v45 = vld [vmem:[#allocation2 + $0x118] sm:$0xff]  ;;  %v651_v54 = vld [vmem:[#allocation2 + $0x860] sm:$0xff] }
 0x137   : > { %3995 = vmatprep.subr.bf16.mxu0 %v3994_v59  ;;  %v739_v59 = vld [vmem:[#allocation2 + $0xb20] sm:$0xff]  ;;  %v4094_v55 = vpack.c.bf16 %v418_v45, %v400_v44  ;;  %v938_v1 = vld [vmem:[#allocation2 + $0x1158] sm:$0xff] }
 0x138   : > { %4053 = vmatpush1.bf16.msra.mxu1 %v4052_v17  ;;  %v863_v17 = vld [vmem:[#allocation2 + $0xf00] sm:$0xff]  ;;  %v4090_v12 = vpack.c.bf16 %v956_v3, %v938_v1  ;;  %v705_v1 = vld [vmem:[#allocation2 + $0xa10] sm:$0xff]  ;;  %v724_v3 = vld [vmem:[#allocation2 + $0xaa8] sm:$0xff] }
 0x139   : > { %4055 = vmatprep.subr.bf16.mxu1 %v4054_v18  ;;  %v881_v18 = vld [vmem:[#allocation2 + $0xf90] sm:$0xff]  ;;  %v615_v45 = vld [vmem:[#allocation2 + $0x740] sm:$0xff] }
 0x13a   : > { %3997 = vmatpush1.bf16.msra.mxu0 %v3996_v7  ;;  %v4068_v7 = vpack.c.bf16 %v739_v59, %v721_v58  ;;  %v4020_v26 = vpack.c.bf16 %v881_v18, %v863_v17  ;;  %v436_v58 = vld [vmem:[#allocation2 + $0x1a8] sm:$0xff]  ;;  %v454_v59 = vld [vmem:[#allocation2 + $0x238] sm:$0xff] }
 0x13b   : > { %3999 = vmatprep.subr.bf16.mxu0 %v3998_v10  ;;  %v775_v10 = vld [vmem:[#allocation2 + $0xc40] sm:$0xff]  ;;  %v4098_v5 = vpack.c.bf16 %v454_v59, %v436_v58  ;;  %v706_v58 = vld [vmem:[#allocation2 + $0xa18] sm:$0xff] }
 0x13c   : > { %4057 = vmatpush1.bf16.msra.mxu1 %v4056_v30  ;;  %v899_v30 = vld [vmem:[#allocation2 + $0x1020] sm:$0xff] }
 0x13d   : > { %4059 = vmatprep.subr.bf16.mxu1 %v4058_v31  ;;  %v917_v31 = vld [vmem:[#allocation2 + $0x10b0] sm:$0xff] }
 0x13e   : > { %4001 = vmatpush1.bf16.msra.mxu0 %v4000_v22  ;;  %v4072_v22 = vpack.c.bf16 %v775_v10, %v757_v9  ;;  %v4024_v16 = vpack.c.bf16 %v917_v31, %v899_v30  ;;  %v472_v9 = vld [vmem:[#allocation2 + $0x2c8] sm:$0xff]  ;;  %v490_v10 = vld [vmem:[#allocation2 + $0x358] sm:$0xff]  ;;  %v4108_v31 = vpack.c.bf16 %v525_v6, %v507_v27  ;;  %v759_v27 = vld [vmem:[#allocation2 + $0xbc0] sm:$0xff] }
 0x13f   : > { %4003 = vmatprep.subr.bf16.mxu0 %v4002_v25  ;;  %v811_v25 = vld [vmem:[#allocation2 + $0xd60] sm:$0xff]  ;;  %v4102_v18 = vpack.c.bf16 %v490_v10, %v472_v9  ;;  %v562_v30 = vld [vmem:[#allocation2 + $0x598] sm:$0xff]  ;;  %v777_v6 = vld [vmem:[#allocation2 + $0xc50] sm:$0xff] }
 0x140   : > { %4061 = vmatpush1.bf16.msra.mxu1 %v4060_v42  ;;  %v935_v42 = vld [vmem:[#allocation2 + $0x1140] sm:$0xff] }
 0x141   : > { %4063 = vmatprep.subr.bf16.mxu1 %v4062_v43  ;;  %v953_v43 = vld [vmem:[#allocation2 + $0x11d0] sm:$0xff] }
 0x142   : > { %4005 = vmatpush1.bf16.msra.mxu0 %v4004_v38  ;;  %v4076_v38 = vpack.c.bf16 %v811_v25, %v793_v2  ;;  %v4028_v52 = vpack.c.bf16 %v953_v43, %v935_v42  ;;  %v4104_v25 = vpack.c.bf16 %v489_v21, %v471_v19  ;;  %v634_v42 = vld [vmem:[#allocation2 + $0x7d8] sm:$0xff]  ;;  %v4116_v43 = vpack.c.bf16 %v597_v41, %v579_v40  ;;  %v832_v41 = vld [vmem:[#allocation2 + $0xe08] sm:$0xff] }
 0x143   : > { %4007 = vmatprep.subr.bf16.mxu0 %v4006_v39  ;;  %v847_v39 = vld [vmem:[#allocation2 + $0xe80] sm:$0xff] }
 0x144   : > { %4065 = vmatpush1.bf16.msra.mxu1 %v4064_v56  ;;  %v399_v56 = vld [vmem:[#allocation2 + $0x80] sm:$0xff] }
 0x145   : > { %4067 = vmatprep.subr.bf16.mxu1 %v4066_v57  ;;  %v417_v57 = vld [vmem:[#allocation2 + $0x110] sm:$0xff] }
 0x146   : > { %4009 = vmatpush1.bf16.msra.mxu0 %v4008_v46  ;;  %v4080_v46 = vpack.c.bf16 %v847_v39, %v829_v36  ;;  %v4096_v0 = vpack.c.bf16 %v417_v57, %v399_v56  ;;  %v598_v36 = vld [vmem:[#allocation2 + $0x6b8] sm:$0xff]  ;;  %v688_v57 = vld [vmem:[#allocation2 + $0x988] sm:$0xff] }
 0x147   : > { %4011 = vmatprep.subr.bf16.mxu0 %v4010_v33  ;;  %v883_v33 = vld [vmem:[#allocation2 + $0xfa0] sm:$0xff] }
 0x148   : > { %4069 = vmatpush1.bf16.msra.mxu1 %v4068_v7  ;;  %v435_v7 = vld [vmem:[#allocation2 + $0x1a0] sm:$0xff] }
 0x149   : > { %4071 = vmatprep.subr.bf16.mxu1 %v4070_v8  ;;  %v453_v8 = vld [vmem:[#allocation2 + $0x230] sm:$0xff] }
 0x14a   : > { %4013 = vmatpush1.bf16.msra.mxu0 %v4012_v60  ;;  %v4084_v60 = vpack.c.bf16 %v883_v33, %v865_v50  ;;  %v4100_v17 = vpack.c.bf16 %v453_v8, %v435_v7  ;;  %v670_v50 = vld [vmem:[#allocation2 + $0x8f8] sm:$0xff] }
 0x14b   : > { %4015 = vmatprep.subr.bf16.mxu0 %v4014_v63  ;;  %v919_v63 = vld [vmem:[#allocation2 + $0x10c0] sm:$0xff] }
 0x14c   : > { %4073 = vmatpush1.bf16.msra.mxu1 %v4072_v22  ;;  %v508_v22 = vld [vmem:[#allocation2 + $0x3e8] sm:$0xff] }
 0x14d   : > { %4075 = vmatprep.subr.bf16.mxu1 %v4074_v24  ;;  %v526_v24 = vld [vmem:[#allocation2 + $0x478] sm:$0xff] }
 0x14e   : > { %4017 = vmatpush1.bf16.msra.mxu0 %v4016_v11  ;;  %v4088_v11 = vpack.c.bf16 %v919_v63, %v901_v62  ;;  %v4126_v63 = vpack.c.bf16 %v706_v58, %v688_v57  ;;  %v904_v57 = vld [vmem:[#allocation2 + $0x1048] sm:$0xff]  ;;  %v922_v58 = vld [vmem:[#allocation2 + $0x10d8] sm:$0xff] }
 0x14f   : > { %4019 = vmatprep.subr.bf16.mxu0 %v4018_v14  ;;  %v955_v14 = vld [vmem:[#allocation2 + $0x11e0] sm:$0xff] }
 0x150   : > { %4077 = vmatpush1.bf16.msra.mxu1 %v4076_v38  ;;  %v4092_v2 = vpack.c.bf16 %v955_v14, %v937_v13  ;;  %v561_v38 = vld [vmem:[#allocation2 + $0x590] sm:$0xff] }
 0x151   : > { %4079 = vmatprep.subr.bf16.mxu1 %v4078_v35  ;;  %v580_v35 = vld [vmem:[#allocation2 + $0x628] sm:$0xff]  ;;  %v4112_v39 = vpack.c.bf16 %v561_v38, %v543_v34  ;;  %v741_v13 = vld [vmem:[#allocation2 + $0xb30] sm:$0xff]  ;;  %v4136_v38 = vpack.c.bf16 %v777_v6, %v759_v27 }
 0x152   : > { %4021 = vmatpush1.bf16.msra.mxu0 %v4020_v26  ;;  %v4106_v26 = vpack.c.bf16 %v526_v24, %v508_v22 }
 0x153   : > { %4023 = vmatprep.subr.bf16.mxu0 %v4022_v28  ;;  %v544_v28 = vld [vmem:[#allocation2 + $0x508] sm:$0xff] }
 0x154   : > { %4081 = vmatpush1.bf16.msra.mxu1 %v4080_v46  ;;  %v4110_v32 = vpack.c.bf16 %v562_v30, %v544_v28  ;;  %v633_v46 = vld [vmem:[#allocation2 + $0x7d0] sm:$0xff] }
 0x155   : > { %4083 = vmatprep.subr.bf16.mxu1 %v4082_v49 }
 0x156   : > { %4025 = vmatpush1.bf16.msra.mxu0 %v4024_v16  ;;  %v4114_v16 = vpack.c.bf16 %v598_v36, %v580_v35 }
 0x157   : > { %4027 = vmatprep.subr.bf16.mxu0 %v4026_v23  ;;  %v616_v23 = vld [vmem:[#allocation2 + $0x748] sm:$0xff] }
 0x158   : > { %4085 = vmatpush1.bf16.msra.mxu1 %v4084_v60  ;;  %v4118_v44 = vpack.c.bf16 %v634_v42, %v616_v23  ;;  %v850_v23 = vld [vmem:[#allocation2 + $0xe98] sm:$0xff] }
 0x159   : > { %4087 = vmatprep.subr.bf16.mxu1 %v4086_v61 }
 0x15a   : > { %4029 = vmatpush1.bf16.msra.mxu0 %v4028_v52  ;;  %v4120_v52 = vpack.c.bf16 %v633_v46, %v615_v45  ;;  %v831_v45 = vld [vmem:[#allocation2 + $0xe00] sm:$0xff]  ;;  %v849_v46 = vld [vmem:[#allocation2 + $0xe90] sm:$0xff] }
 0x15b   : > { %4095 = vmatprep.subr.bf16.mxu0 %v4094_v55  ;;  %v669_v55 = vld [vmem:[#allocation2 + $0x8f0] sm:$0xff] }
 0x15c   : > { %4089 = vmatpush1.bf16.msra.mxu1 %v4088_v11  ;;  %v4124_v62 = vpack.c.bf16 %v669_v55, %v651_v54  ;;  %v867_v55 = vld [vmem:[#allocation2 + $0xf20] sm:$0xff] }
 0x15d   : > { %1558 = vmatmul.mubr.f32.vlgmr.msra.gmra.mrb[24].mxu0 %v5221_v47  ;;  %4091 = vmatprep.subr.bf16.mxu1 %v4090_v12  ;;  %v723_v12 = vld [vmem:[#allocation2 + $0xaa0] sm:$0xff] }
 0x15e   : > { %4097 = vmatpush1.bf16.msra.mxu0 %v4096_v0  ;;  %1563 = vmatprep.mubr.f32.mxu0 %v5225_v51  ;;  %v687_v0 = vld [vmem:[#allocation2 + $0x980] sm:$0xff]  ;;  %v4132_v24 = vpack.c.bf16 %v741_v13, %v723_v12 }
 0x15f   : > { %4099 = vmatprep.subr.bf16.mxu0 %v4098_v5  ;;  %v742_v5 = vld [vmem:[#allocation2 + $0xb38] sm:$0xff]  ;;  %v4128_v9 = vpack.c.bf16 %v705_v1, %v687_v0 }
 0x160   : > { %4093 = vmatpush1.bf16.msra.mxu1 %v4092_v2  ;;  %v4130_v11 = vpack.c.bf16 %v742_v5, %v724_v3  ;;  %v958_v0 = vld [vmem:[#allocation2 + $0x11f8] sm:$0xff]  ;;  %v939_v5 = vld [vmem:[#allocation2 + $0x1160] sm:$0xff] }
 0x161   : > { %1564 = vmatmul.mubr.f32.gmra.mrb[26].mxu0 %v5229_v48 }
 0x162   : > { %4101 = vmatpush1.bf16.msra.mxu0 %v4100_v17  ;;  %1569 = vmatprep.mubr.f32.mxu0 %v5233_v4  ;;  %v760_v17 = vld [vmem:[#allocation2 + $0xbc8] sm:$0xff] }
 0x163   : > { %4103 = vmatprep.subr.bf16.mxu0 %v4102_v18  ;;  %1647 = vmatmul.mubr.f32.vlgmr.msra.gmra.mrb[24].mxu1 %v5221_v47  ;;  %v778_v18 = vld [vmem:[#allocation2 + $0xc58] sm:$0xff] }
 0x164   : > { %1652 = vmatprep.mubr.f32.mxu1 %v5225_v51 }
 0x165   : > { %1570 = vmatmul.mubr.f32.gmra.mrb[28].mxu0 %v5237_v15 }
 0x166   : > { %4105 = vmatpush1.bf16.msra.mxu0 %v4104_v25  ;;  %1575 = vmatprep.mubr.f32.mxu0 %v5241_v20 }
 0x167   : > { %4107 = vmatprep.subr.bf16.mxu0 %v4106_v26  ;;  %1653 = vmatmul.mubr.f32.gmra.mrb[26].mxu1 %v5229_v48  ;;  %v4134_v26 = vpack.c.bf16 %v778_v18, %v760_v17 }
 0x168   : > { %1658 = vmatprep.mubr.f32.mxu1 %v5233_v4 }
 0x169   : > { %1576 = vmatmul.mubr.f32.gmra.mrb[30].mxu0 %v5247_v29 }
 0x16a   : > { %4109 = vmatpush1.bf16.msra.mxu0 %v4108_v31  ;;  %1735 = vmatprep.mubr.f32.mxu0 %v5217_v37  ;;  %v652_v37 = vld [vmem:[#allocation2 + $0x868] sm:$0xff] }
 0x16b   : > { %4111 = vmatprep.subr.bf16.mxu0 %v4110_v32  ;;  %1659 = vmatmul.mubr.f32.gmra.mrb[28].mxu1 %v5237_v15  ;;  %v4122_v53 = vpack.c.bf16 %v670_v50, %v652_v37  ;;  %v796_v31 = vld [vmem:[#allocation2 + $0xce8] sm:$0xff]  ;;  %v814_v32 = vld [vmem:[#allocation2 + $0xd78] sm:$0xff] }
 0x16c   : > { %1664 = vmatprep.mubr.f32.mxu1 %v5241_v20  ;;  %v4138_v36 = vpack.c.bf16 %v814_v32, %v796_v31  ;;  %v868_v50 = vld [vmem:[#allocation2 + $0xf28] sm:$0xff] }
 0x16e   : > { %4113 = vmatpush1.bf16.msra.mxu0 %v4112_v39  ;;  %v795_v39 = vld [vmem:[#allocation2 + $0xce0] sm:$0xff] }
 0x16f   : > { %4115 = vmatprep.subr.bf16.mxu0 %v4114_v16  ;;  %1665 = vmatmul.mubr.f32.gmra.mrb[30].mxu1 %v5247_v29  ;;  %v813_v16 = vld [vmem:[#allocation2 + $0xd70] sm:$0xff] }
 0x170   : > { %v1025_v49 = vpop.f32.mrb[0].mxu0  ;;  %v4140_v42 = vpack.c.bf16 %v813_v16, %v795_v39 }
 0x171   : > { %v1027_v33 = vpop.f32.mrb[1].mxu0 }
 0x172   : > { %4117 = vmatpush1.bf16.msra.mxu0 %v4116_v43 }
 0x173   : > { %4119 = vmatprep.subr.bf16.mxu0 %v4118_v44  ;;  %v4142_v44 = vpack.c.bf16 %v850_v23, %v832_v41 }
 0x174   : > { %v1031_v56 = vpop.f32.mrb[2].mxu0 }
 0x175   : > { %v4160_v59 = vpack.c.bf16 %v1031_v56, %v1025_v49  ;;  %v1033_v60 = vpop.f32.mrb[3].mxu0  ;;  %v885_v56 = vld [vmem:[#allocation2 + $0xfb0] sm:$0xff] }
 0x176   : > { %v4158_v61 = vpack.c.bf16 %v1033_v60, %v1027_v33  ;;  %4121 = vmatpush1.bf16.msra.mxu0 %v4120_v52  ;;  %v1114_v10 = vpop.f32.mrb[0].mxu1  ;;  %v886_v33 = vld [vmem:[#allocation2 + $0xfb8] sm:$0xff]  ;;  %v4150_v60 = vpack.c.bf16 %v922_v58, %v904_v57  ;;  %v1943_v57 = vld [vmem:[%s5427_s4] sm:$0xff]  ;;  %v4989_v58 = vmov 0  }
 0x177   : > { %4123 = vmatprep.subr.bf16.mxu0 %v4122_v53  ;;  %v1116_v14 = vpop.f32.mrb[1].mxu1  ;;  %v4144_v53 = vpack.c.bf16 %v849_v46, %v831_v45  ;;  %v4146_v54 = vpack.c.bf16 %v886_v33, %v868_v50  ;;  %v4988_v33 = vmov 0.0   ;;  %4873 = vset.pattern.permute.xlu0 %v4989_v58 }
 0x178   : > { %4159 = vmatprep.subr.bf16.mxu1 %v4158_v61  ;;  %v1037_v7 = vpop.f32.mrb[4].mxu0  ;;  %v903_v61 = vld [vmem:[#allocation2 + $0x1040] sm:$0xff]  ;;  %4874 = vset.pattern.permute.xlu1 %v4989_v58 }
 0x179   : > { %4161 = vmatpush1.bf16.msra.mxu1 %v4160_v59  ;;  %v1039_v8 = vpop.f32.mrb[5].mxu0  ;;  %v4148_v59 = vpack.c.bf16 %v885_v56, %v867_v55  ;;  %v1927_v56 = vld [vmem:[%s5426_s3] sm:$0xff]  ;;  %1947 = vperm.xlu1 %4874, %v1943_v57   ;;  %v2095_v57 = vld [vmem:[#allocation6 + $0x1b0] sm:$0xff] }
 0x17a   : > { %4125 = vmatpush1.bf16.msra.mxu0 %v4124_v62  ;;  %v1120_v25 = vpop.f32.mrb[2].mxu1  ;;  %v921_v62 = vld [vmem:[#allocation2 + $0x10d0] sm:$0xff]  ;;  %1931 = vperm.xlu0 %4873, %v1927_v56   ;;  %v2077_v56 = vld [vmem:[#allocation6 + $0x120] sm:$0xff] }
 0x17b   : > { %4127 = vmatprep.subr.bf16.mxu0 %v4126_v63  ;;  %v4168_v28 = vpack.c.bf16 %v1120_v25, %v1114_v10  ;;  %v1122_v30 = vpop.f32.mrb[3].mxu1  ;;  %v940_v63 = vld [vmem:[#allocation2 + $0x1168] sm:$0xff]  ;;  %v4152_v1 = vpack.c.bf16 %v921_v62, %v903_v61  ;;  %v3264_v61 = vld [vmem:[%s5431_s8] sm:$0xff]  ;;  %v4240_v58 = vpack.c.bf16 %v2095_v57, %v2077_v56  ;;  %v2474_v56 = vld [vmem:[#allocation6 + $0xd88] sm:$0xff] }
 0x17c   : > { %v1043_v19 = vpop.f32.mrb[6].mxu0  ;;  %v4166_v34 = vpack.c.bf16 %v1122_v30, %v1116_v14  ;;  %v4154_v3 = vpack.c.bf16 %v958_v0, %v940_v63  ;;  %v3265_v62 = vld [vmem:[%s5431_s8 + $0x8] sm:$0xff]  ;;  %v3266_v63 = vld [vmem:[%s5431_s8 + $0x10] sm:$0xff]  ;;  %v3267_v0 = vld [vmem:[%s5431_s8 + $0x18] sm:$0xff] }
 0x17d   : > { %v4164_v21 = vpack.c.bf16 %v1043_v19, %v1037_v7  ;;  %v1045_v22 = vpop.f32.mrb[7].mxu0  ;;  %v957_v7 = vld [vmem:[#allocation2 + $0x11f0] sm:$0xff]  ;;  %v2492_v57 = vld [vmem:[#allocation6 + $0xe18] sm:$0xff] }
 0x17e   : > { %4129 = vmatpush1.bf16.msra.mxu0 %v4128_v9  ;;  %v4162_v2 = vpack.c.bf16 %v1045_v22, %v1039_v8  ;;  %v1126_v35 = vpop.f32.mrb[4].mxu1  ;;  %v4156_v8 = vpack.c.bf16 %v957_v7, %v939_v5  ;;  %v3270_v5 = vld [vmem:[%s5431_s8 + $0x30] sm:$0xff]  ;;  %v3271_v7 = vld [vmem:[%s5431_s8 + $0x38] sm:$0xff] }
 0x17f   : > { %4131 = vmatprep.subr.bf16.mxu0 %v4130_v11  ;;  %v1128_v40 = vpop.f32.mrb[5].mxu1 }
 0x180   : > { %4163 = vmatprep.subr.bf16.mxu1 %v4162_v2 }
 0x181   : > { %4165 = vmatpush1.bf16.msra.mxu1 %v4164_v21 }
 0x182   : > { %4133 = vmatpush1.bf16.msra.mxu0 %v4132_v24  ;;  %4167 = vmatprep.subr.bf16.mxu1 %v4166_v34  ;;  %v1132_v43 = vpop.f32.mrb[6].mxu1 }
 0x183   : > { %4135 = vmatprep.subr.bf16.mxu0 %v4134_v26  ;;  %v4172_v49 = vpack.c.bf16 %v1132_v43, %v1126_v35  ;;  %v1134_v37 = vpop.f32.mrb[7].mxu1 }
 0x184   : > { %v4170_v52 = vpack.c.bf16 %v1134_v37, %v1128_v40 }
 0x185   : > { %4169 = vmatpush1.bf16.msra.mxu1 %v4168_v28 }
 0x186   : > { %4137 = vmatpush1.bf16.msra.mxu0 %v4136_v38  ;;  %4171 = vmatprep.subr.bf16.mxu1 %v4170_v52 }
 0x187   : > { %4139 = vmatprep.subr.bf16.mxu0 %v4138_v36 }
 0x189   : > { %4173 = vmatpush1.bf16.msra.mxu1 %v4172_v49  ;;  %v1761_v49 = vld [vmem:[%s5425_s2 + $0x8] sm:$0xff] }
 0x18a   : > { %4141 = vmatpush1.bf16.msra.mxu0 %v4140_v42  ;;  %1837 = vmatprep.mubr.f32.mxu1 %v1761_v49 }
 0x18b   : > { %4143 = vmatprep.subr.bf16.mxu0 %v4142_v44 }
 0x18e   : > { %4145 = vmatpush1.bf16.msra.mxu0 %v4144_v53 }
 0x18f   : > { %4147 = vmatprep.subr.bf16.mxu0 %v4146_v54 }
 0x192   : > { %4149 = vmatpush1.bf16.msra.mxu0 %v4148_v59  ;;  %v1928_v59 = vld [vmem:[%s5426_s3 + $0x8] sm:$0xff] }
 0x193   : > { %4151 = vmatprep.subr.bf16.mxu0 %v4150_v60  ;;  %v1944_v60 = vld [vmem:[%s5427_s4 + $0x8] sm:$0xff]  ;;  %1936 = vperm.xlu0 %4873, %v1928_v59   ;;  %v2114_v59 = vld [vmem:[#allocation6 + $0x248] sm:$0xff] }
 0x194   : > { %1952 = vperm.xlu1 %4874, %v1944_v60   ;;  %v2132_v60 = vld [vmem:[#allocation6 + $0x2d8] sm:$0xff] }
 0x196   : > { %4153 = vmatpush1.bf16.msra.mxu0 %v4152_v1  ;;  %v3268_v1 = vld [vmem:[%s5431_s8 + $0x20] sm:$0xff] }
 0x197   : > { %4155 = vmatprep.subr.bf16.mxu0 %v4154_v3  ;;  %3274 = vperm.xlu0 %4873, %v3264_v61   ;;  %v3269_v3 = vld [vmem:[%s5431_s8 + $0x28] sm:$0xff]  ;;  %v4242_v61 = vpack.c.bf16 %v2132_v60, %v2114_v59  ;;  %v2491_v60 = vld [vmem:[#allocation6 + $0xe10] sm:$0xff] }
 0x198   : > { %3279 = vperm.xlu1 %4874, %v3265_v62   ;;  %v2113_v62 = vld [vmem:[#allocation6 + $0x240] sm:$0xff] }
 0x199   : > { %v2473_v59 = vld [vmem:[#allocation6 + $0xd80] sm:$0xff] }
 0x19a   : > { %4157 = vmatpush1.bf16.msra.mxu0 %v4156_v8 }
 0x19b   : > { %3284 = vperm.xlu0 %4873, %v3266_v63   ;;  %v2131_v63 = vld [vmem:[#allocation6 + $0x2d0] sm:$0xff] }
 0x19c   : > { %3289 = vperm.xlu1 %4874, %v3267_v0   ;;  %v4244_v0 = vpack.c.bf16 %v2131_v63, %v2113_v62  ;;  %v2510_v62 = vld [vmem:[#allocation6 + $0xea8] sm:$0xff]  ;;  %v2528_v63 = vld [vmem:[#allocation6 + $0xf38] sm:$0xff] }
 0x19d   : > { %1736 = vmatmul.mubr.f32.vlgmr.msra.gmra.mrb[32].mxu0 %v5221_v47 }
 0x19e   : > { %1741 = vmatprep.mubr.f32.mxu0 %v5225_v51 }
 0x19f   : > { %3294 = vperm.xlu0 %4873, %v3268_v1   ;;  %v2150_v1 = vld [vmem:[#allocation6 + $0x368] sm:$0xff] }
 0x1a0   : > { %3299 = vperm.xlu1 %4874, %v3269_v3   ;;  %v2168_v3 = vld [vmem:[#allocation6 + $0x3f8] sm:$0xff] }
 0x1a1   : > { %1742 = vmatmul.mubr.f32.gmra.mrb[34].mxu0 %v5229_v48 }
 0x1a2   : > { %1747 = vmatprep.mubr.f32.mxu0 %v5233_v4 }
 0x1a3   : > { %3304 = vperm.xlu0 %4873, %v3270_v5   ;;  %v4246_v5 = vpack.c.bf16 %v2168_v3, %v2150_v1  ;;  %v2509_v1 = vld [vmem:[#allocation6 + $0xea0] sm:$0xff]  ;;  %v2527_v3 = vld [vmem:[#allocation6 + $0xf30] sm:$0xff] }
 0x1a4   : > { %3309 = vperm.xlu1 %4874, %v3271_v7   ;;  %v2149_v7 = vld [vmem:[#allocation6 + $0x360] sm:$0xff] }
 0x1a5   : > { %1748 = vmatmul.mubr.f32.gmra.mrb[36].mxu0 %v5237_v15 }
 0x1a6   : > { %1753 = vmatprep.mubr.f32.mxu0 %v5241_v20 }
 0x1a9   : > { %1754 = vmatmul.mubr.f32.gmra.mrb[38].mxu0 %v5247_v29 }
 0x1aa   : > { %1914 = vmatprep.mubr.f32.mxu0 %v4988_v33 }
 0x1b0   : > { %v1203_v9 = vpop.f32.mrb[8].mxu0 }
 0x1b1   : > { %v1205_v10 = vpop.f32.mrb[9].mxu0 }
 0x1b4   : > { %v1209_v11 = vpop.f32.mrb[10].mxu0 }
 0x1b5   : > { %v4176_v12 = vpack.c.bf16 %v1209_v11, %v1203_v9  ;;  %v1211_v13 = vpop.f32.mrb[11].mxu0 }
 0x1b6   : > { %v4174_v14 = vpack.c.bf16 %v1211_v13, %v1205_v10  ;;  %v1292_v17 = vpop.f32.mrb[8].mxu1 }
 0x1b7   : > { %v1294_v48 = vpop.f32.mrb[9].mxu1 }
 0x1b8   : > { %4175 = vmatprep.subr.bf16.mxu1 %v4174_v14  ;;  %v1215_v47 = vpop.f32.mrb[12].mxu0 }
 0x1b9   : > { %4177 = vmatpush1.bf16.msra.mxu1 %v4176_v12  ;;  %v1217_v51 = vpop.f32.mrb[13].mxu0 }
 0x1ba   : > { %v1298_v21 = vpop.f32.mrb[10].mxu1 }
 0x1bb   : > { %v4184_v20 = vpack.c.bf16 %v1298_v21, %v1292_v17  ;;  %v1300_v22 = vpop.f32.mrb[11].mxu1 }
 0x1bc   : > { %v1221_v18 = vpop.f32.mrb[14].mxu0  ;;  %v4182_v29 = vpack.c.bf16 %v1300_v22, %v1294_v48 }
 0x1bd   : > { %v4180_v4 = vpack.c.bf16 %v1221_v18, %v1215_v47  ;;  %v1223_v19 = vpop.f32.mrb[15].mxu0 }
 0x1be   : > { %v4178_v15 = vpack.c.bf16 %v1223_v19, %v1217_v51  ;;  %v1304_v24 = vpop.f32.mrb[12].mxu1 }
 0x1bf   : > { %v1306_v2 = vpop.f32.mrb[13].mxu1 }
 0x1c0   : > { %4179 = vmatprep.subr.bf16.mxu1 %v4178_v15 }
 0x1c1   : > { %4181 = vmatpush1.bf16.msra.mxu1 %v4180_v4 }
 0x1c2   : > { %4183 = vmatprep.subr.bf16.mxu1 %v4182_v29  ;;  %v1310_v25 = vpop.f32.mrb[14].mxu1 }
 0x1c3   : > { %v4188_v26 = vpack.c.bf16 %v1310_v25, %v1304_v24  ;;  %v1312_v27 = vpop.f32.mrb[15].mxu1 }
 0x1c4   : > { %v4186_v6 = vpack.c.bf16 %v1312_v27, %v1306_v2 }
 0x1c5   : > { %4185 = vmatpush1.bf16.msra.mxu1 %v4184_v20 }
 0x1c6   : > { %4187 = vmatprep.subr.bf16.mxu1 %v4186_v6  ;;  %v1760_v6 = vld [vmem:[%s5425_s2] sm:$0xff] }
 0x1c9   : > { %4189 = vmatpush1.bf16.msra.mxu1 %v4188_v26 }
 0x1f0   : > { %v1381_v28 = vpop.f32.mrb[16].mxu0 }
 0x1f1   : > { %v1383_v30 = vpop.f32.mrb[17].mxu0 }
 0x1f4   : > { %v1387_v31 = vpop.f32.mrb[18].mxu0 }
 0x1f5   : > { %v4192_v32 = vpack.c.bf16 %v1387_v31, %v1381_v28  ;;  %v1389_v34 = vpop.f32.mrb[19].mxu0  ;;  %v1764_v28 = vld [vmem:[%s5425_s2 + $0x20] sm:$0xff] }
 0x1f6   : > { %v4190_v38 = vpack.c.bf16 %v1389_v34, %v1383_v30  ;;  %v1470_v39 = vpop.f32.mrb[16].mxu1  ;;  %v1763_v30 = vld [vmem:[%s5425_s2 + $0x18] sm:$0xff] }
 0x1f7   : > { %v1472_v16 = vpop.f32.mrb[17].mxu1 }
 0x1f8   : > { %4191 = vmatprep.subr.bf16.mxu1 %v4190_v38  ;;  %v1393_v35 = vpop.f32.mrb[20].mxu0 }
 0x1f9   : > { %4193 = vmatpush1.bf16.msra.mxu1 %v4192_v32  ;;  %v1395_v36 = vpop.f32.mrb[21].mxu0 }
 0x1fa   : > { %v1476_v43 = vpop.f32.mrb[18].mxu1 }
 0x1fb   : > { %v4200_v44 = vpack.c.bf16 %v1476_v43, %v1470_v39  ;;  %v1478_v45 = vpop.f32.mrb[19].mxu1  ;;  %v1762_v43 = vld [vmem:[%s5425_s2 + $0x10] sm:$0xff] }
 0x1fc   : > { %v1399_v40 = vpop.f32.mrb[22].mxu0  ;;  %v4198_v46 = vpack.c.bf16 %v1478_v45, %v1472_v16  ;;  %v2042_v45 = vld [vmem:[#allocation6 + $0x8] sm:$0xff] }
 0x1fd   : > { %v4196_v41 = vpack.c.bf16 %v1399_v40, %v1393_v35  ;;  %v1401_v23 = vpop.f32.mrb[23].mxu0 }
 0x1fe   : > { %v4194_v42 = vpack.c.bf16 %v1401_v23, %v1395_v36  ;;  %v1482_v37 = vpop.f32.mrb[20].mxu1 }
 0x1ff   : > { %v1484_v50 = vpop.f32.mrb[21].mxu1 }
 0x200   : > { %4195 = vmatprep.subr.bf16.mxu1 %v4194_v42 }
 0x201   : > { %4197 = vmatpush1.bf16.msra.mxu1 %v4196_v41 }
 0x202   : > { %4199 = vmatprep.subr.bf16.mxu1 %v4198_v46  ;;  %v1488_v52 = vpop.f32.mrb[22].mxu1  ;;  %v2060_v46 = vld [vmem:[#allocation6 + $0x98] sm:$0xff] }
 0x203   : > { %v4204_v53 = vpack.c.bf16 %v1488_v52, %v1482_v37  ;;  %v1490_v54 = vpop.f32.mrb[23].mxu1  ;;  %v4234_v49 = vpack.c.bf16 %v2060_v46, %v2042_v45  ;;  %v2041_v37 = vld [vmem:[#allocation6] sm:$0xff]  ;;  %v2419_v46 = vld [vmem:[#allocation6 + $0xbd0] sm:$0xff] }
 0x204   : > { %v4202_v55 = vpack.c.bf16 %v1490_v54, %v1484_v50  ;;  %v2059_v50 = vld [vmem:[#allocation6 + $0x90] sm:$0xff]  ;;  %v2096_v54 = vld [vmem:[#allocation6 + $0x1b8] sm:$0xff]  ;;  %v2401_v45 = vld [vmem:[#allocation6 + $0xb40] sm:$0xff] }
 0x205   : > { %4201 = vmatpush1.bf16.msra.mxu1 %v4200_v44  ;;  %v1765_v44 = vld [vmem:[%s5425_s2 + $0x28] sm:$0xff]  ;;  %v4236_v52 = vpack.c.bf16 %v2059_v50, %v2041_v37  ;;  %v2438_v37 = vld [vmem:[#allocation6 + $0xc68] sm:$0xff]  ;;  %v2456_v50 = vld [vmem:[#allocation6 + $0xcf8] sm:$0xff] }
 0x206   : > { %4203 = vmatprep.subr.bf16.mxu1 %v4202_v55 }
 0x209   : > { %4205 = vmatpush1.bf16.msra.mxu1 %v4204_v53  ;;  %v2078_v53 = vld [vmem:[#allocation6 + $0x128] sm:$0xff] }
 0x20a   : > { %v4238_v55 = vpack.c.bf16 %v2096_v54, %v2078_v53  ;;  %v2437_v53 = vld [vmem:[#allocation6 + $0xc60] sm:$0xff]  ;;  %v2455_v54 = vld [vmem:[#allocation6 + $0xcf0] sm:$0xff] }
 0x230   : > { %v1559_v8 = vpop.f32.mrb[24].mxu0 }
 0x231   : > { %v1561_v9 = vpop.f32.mrb[25].mxu0 }
 0x234   : > { %v1565_v10 = vpop.f32.mrb[26].mxu0 }
 0x235   : > { %v4208_v11 = vpack.c.bf16 %v1565_v10, %v1559_v8  ;;  %v1567_v12 = vpop.f32.mrb[27].mxu0  ;;  %v2167_v8 = vld [vmem:[#allocation6 + $0x3f0] sm:$0xff]  ;;  %v2186_v10 = vld [vmem:[#allocation6 + $0x488] sm:$0xff] }
 0x236   : > { %v4206_v13 = vpack.c.bf16 %v1567_v12, %v1561_v9  ;;  %v1648_v51 = vpop.f32.mrb[24].mxu1  ;;  %v4248_v9 = vpack.c.bf16 %v2167_v8, %v2149_v7  ;;  %v2546_v7 = vld [vmem:[#allocation6 + $0xfc8] sm:$0xff]  ;;  %v2564_v8 = vld [vmem:[#allocation6 + $0x1058] sm:$0xff] }
 0x237   : > { %v1650_v17 = vpop.f32.mrb[25].mxu1 }
 0x238   : > { %4207 = vmatprep.subr.bf16.mxu1 %v4206_v13  ;;  %v1571_v14 = vpop.f32.mrb[28].mxu0  ;;  %v2185_v13 = vld [vmem:[#allocation6 + $0x480] sm:$0xff] }
 0x239   : > { %4209 = vmatpush1.bf16.msra.mxu1 %v4208_v11  ;;  %v1573_v47 = vpop.f32.mrb[29].mxu0  ;;  %v2204_v11 = vld [vmem:[#allocation6 + $0x518] sm:$0xff] }
 0x23a   : > { %v1654_v15 = vpop.f32.mrb[26].mxu1  ;;  %v4250_v12 = vpack.c.bf16 %v2204_v11, %v2186_v10  ;;  %v4290_v10 = vpack.c.bf16 %v2564_v8, %v2546_v7  ;;  %v2545_v11 = vld [vmem:[#allocation6 + $0xfc0] sm:$0xff]  ;;  %v2187_v8 = vld [vmem:[#allocation6 + $0x490] sm:$0xff] }
 0x23b   : > { %v4216_v21 = vpack.c.bf16 %v1654_v15, %v1648_v51  ;;  %v1656_v20 = vpop.f32.mrb[27].mxu1  ;;  %v2222_v51 = vld [vmem:[#allocation6 + $0x5a8] sm:$0xff] }
 0x23c   : > { %v1577_v48 = vpop.f32.mrb[30].mxu0  ;;  %v4214_v22 = vpack.c.bf16 %v1656_v20, %v1650_v17  ;;  %v2240_v17 = vld [vmem:[#allocation6 + $0x638] sm:$0xff]  ;;  %v2258_v15 = vld [vmem:[#allocation6 + $0x6c8] sm:$0xff] }
 0x23d   : > { %v4212_v18 = vpack.c.bf16 %v1577_v48, %v1571_v14  ;;  %v1579_v4 = vpop.f32.mrb[31].mxu0  ;;  %v2203_v14 = vld [vmem:[#allocation6 + $0x510] sm:$0xff]  ;;  %v4254_v48 = vpack.c.bf16 %v2240_v17, %v2222_v51  ;;  %v1932_v17 = vpop.permute.xlu0 %1931 }
 0x23e   : > { %v4210_v19 = vpack.c.bf16 %v1579_v4, %v1573_v47  ;;  %v1660_v29 = vpop.f32.mrb[28].mxu1  ;;  %v4252_v47 = vpack.c.bf16 %v2203_v14, %v2185_v13  ;;  %v2239_v4 = vld [vmem:[#allocation6 + $0x630] sm:$0xff] }
 0x23f   : > { %v1662_v24 = vpop.f32.mrb[29].mxu1 }
 0x240   : > { %4211 = vmatprep.subr.bf16.mxu1 %v4210_v19 }
 0x241   : > { %4213 = vmatpush1.bf16.msra.mxu1 %v4212_v18  ;;  %v2221_v18 = vld [vmem:[#allocation6 + $0x5a0] sm:$0xff] }
 0x242   : > { %4215 = vmatprep.subr.bf16.mxu1 %v4214_v22  ;;  %v1666_v2 = vpop.f32.mrb[30].mxu1  ;;  %v4256_v19 = vpack.c.bf16 %v2239_v4, %v2221_v18  ;;  %v2257_v22 = vld [vmem:[#allocation6 + $0x6c0] sm:$0xff] }
 0x243   : > { %v4220_v25 = vpack.c.bf16 %v1666_v2, %v1660_v29  ;;  %v1668_v26 = vpop.f32.mrb[31].mxu1  ;;  %v2275_v29 = vld [vmem:[#allocation6 + $0x750] sm:$0xff]  ;;  %v2294_v2 = vld [vmem:[#allocation6 + $0x7e8] sm:$0xff] }
 0x244   : > { %v4218_v27 = vpack.c.bf16 %v1668_v26, %v1662_v24  ;;  %v4260_v24 = vpack.c.bf16 %v2275_v29, %v2257_v22 }
 0x245   : > { %4217 = vmatpush1.bf16.msra.mxu1 %v4216_v21  ;;  %v2276_v21 = vld [vmem:[#allocation6 + $0x758] sm:$0xff] }
 0x246   : > { %4219 = vmatprep.subr.bf16.mxu1 %v4218_v27  ;;  %v4258_v20 = vpack.c.bf16 %v2276_v21, %v2258_v15  ;;  %v2293_v27 = vld [vmem:[#allocation6 + $0x7e0] sm:$0xff] }
 0x249   : > { %4221 = vmatpush1.bf16.msra.mxu1 %v4220_v25  ;;  %v2312_v25 = vld [vmem:[#allocation6 + $0x878] sm:$0xff] }
 0x24a   : > { %4235 = vmatprep.subr.bf16.mxu1 %v4234_v49  ;;  %v4262_v26 = vpack.c.bf16 %v2312_v25, %v2294_v2  ;;  %v4276_v49 = vpack.c.bf16 %v2419_v46, %v2401_v45  ;;  %v1937_v2 = vpop.permute.xlu0 %1936  ;;  %v2098_v45 = vld [vmem:[#allocation6 + $0x1c8] sm:$0xff]  ;;  %v1963_v46 = vld [vmem:[#allocation4] sm:$0xff] }
 0x24c   : > { %1838 = vmatmul.mubr.f32.vlgmr.msra.gmra.mrb[32].mxu1 %v1760_v6  ;;  %v2311_v6 = vld [vmem:[#allocation6 + $0x870] sm:$0xff] }
 0x24d   : > { %1843 = vmatprep.mubr.f32.mxu1 %v1764_v28  ;;  %4237 = vmatpush1.bf16.msra.mxu1 %v4236_v52  ;;  %v4264_v28 = vpack.c.bf16 %v2311_v6, %v2293_v27  ;;  %v4278_v52 = vpack.c.bf16 %v2456_v50, %v2438_v37  ;;  %v2079_v50 = vld [vmem:[#allocation6 + $0x130] sm:$0xff] }
 0x24e   : > { %4239 = vmatprep.subr.bf16.mxu1 %v4238_v55  ;;  %v4280_v55 = vpack.c.bf16 %v2455_v54, %v2437_v53  ;;  %v2116_v53 = vld [vmem:[#allocation6 + $0x258] sm:$0xff]  ;;  %v2134_v54 = vld [vmem:[#allocation6 + $0x2e8] sm:$0xff] }
 0x250   : > { %1844 = vmatmul.mubr.f32.gmra.mrb[34].mxu1 %v1763_v30  ;;  %v2330_v30 = vld [vmem:[#allocation6 + $0x908] sm:$0xff] }
 0x251   : > { %4241 = vmatpush1.bf16.msra.mxu1 %v4240_v58  ;;  %v4282_v58 = vpack.c.bf16 %v2492_v57, %v2474_v56  ;;  %v4306_v56 = vpack.c.bf16 %v2134_v54, %v2116_v53  ;;  %v2115_v57 = vld [vmem:[#allocation6 + $0x250] sm:$0xff] }
 0x252   : > { %4243 = vmatprep.subr.bf16.mxu1 %v4242_v61  ;;  %v4284_v61 = vpack.c.bf16 %v2491_v60, %v2473_v59  ;;  %v2152_v59 = vld [vmem:[#allocation6 + $0x378] sm:$0xff]  ;;  %v2170_v60 = vld [vmem:[#allocation6 + $0x408] sm:$0xff]  ;;  %v2475_v54 = vld [vmem:[#allocation6 + $0xd90] sm:$0xff] }
 0x255   : > { %4245 = vmatpush1.bf16.msra.mxu1 %v4244_v0  ;;  %v4286_v0 = vpack.c.bf16 %v2528_v63, %v2510_v62  ;;  %v4310_v62 = vpack.c.bf16 %v2170_v60, %v2152_v59  ;;  %v2151_v63 = vld [vmem:[#allocation6 + $0x370] sm:$0xff] }
 0x256   : > { %4247 = vmatprep.subr.bf16.mxu1 %v4246_v5  ;;  %v4288_v5 = vpack.c.bf16 %v2527_v3, %v2509_v1  ;;  %v2188_v1 = vld [vmem:[#allocation6 + $0x498] sm:$0xff]  ;;  %v2206_v3 = vld [vmem:[#allocation6 + $0x528] sm:$0xff]  ;;  %v2511_v60 = vld [vmem:[#allocation6 + $0xeb0] sm:$0xff] }
 0x257   : > { %v4314_v7 = vpack.c.bf16 %v2206_v3, %v2188_v1  ;;  %v2547_v3 = vld [vmem:[#allocation6 + $0xfd0] sm:$0xff] }
 0x259   : > { %4249 = vmatpush1.bf16.msra.mxu1 %v4248_v9 }
 0x25a   : > { %4251 = vmatprep.subr.bf16.mxu1 %v4250_v12  ;;  %v2563_v12 = vld [vmem:[#allocation6 + $0x1050] sm:$0xff] }
 0x25b   : > { %v4292_v14 = vpack.c.bf16 %v2563_v12, %v2545_v11  ;;  %v2242_v11 = vld [vmem:[#allocation6 + $0x648] sm:$0xff] }
 0x25d   : > { %4253 = vmatpush1.bf16.msra.mxu1 %v4252_v47 }
 0x25e   : > { %4255 = vmatprep.subr.bf16.mxu1 %v4254_v48 }
 0x261   : > { %4257 = vmatpush1.bf16.msra.mxu1 %v4256_v19  ;;  %v1948_v19 = vpop.permute.xlu1 %1947 }
 0x262   : > { %4259 = vmatprep.subr.bf16.mxu1 %v4258_v20 }
 0x265   : > { %4261 = vmatpush1.bf16.msra.mxu1 %v4260_v24  ;;  %v1953_v6 = vpop.permute.xlu1 %1952 }
 0x266   : > { %4263 = vmatprep.subr.bf16.mxu1 %v4262_v26 }
 0x269   : > { %4265 = vmatpush1.bf16.msra.mxu1 %v4264_v28 }
 0x270   : > { %v1737_v31 = vpop.f32.mrb[32].mxu0 }
 0x271   : > { %v1739_v32 = vpop.f32.mrb[33].mxu0 }
 0x274   : > { %v1743_v34 = vpop.f32.mrb[34].mxu0 }
 0x275   : > { %v4224_v38 = vpack.c.bf16 %v1743_v34, %v1737_v31  ;;  %v1745_v35 = vpop.f32.mrb[35].mxu0  ;;  %v2348_v31 = vld [vmem:[#allocation6 + $0x998] sm:$0xff]  ;;  %v2329_v34 = vld [vmem:[#allocation6 + $0x900] sm:$0xff] }
 0x276   : > { %v4222_v36 = vpack.c.bf16 %v1745_v35, %v1739_v32  ;;  %v4266_v32 = vpack.c.bf16 %v2348_v31, %v2330_v30 }
 0x278   : > { %v1749_v39 = vpop.f32.mrb[36].mxu0  ;;  %4223 = vmatprep.subr.bf16.mxu0 %v4222_v36  ;;  %4267 = vmatprep.subr.bf16.mxu1 %v4266_v32  ;;  %v2366_v36 = vld [vmem:[#allocation6 + $0xa28] sm:$0xff] }
 0x279   : > { %v1751_v16 = vpop.f32.mrb[37].mxu0  ;;  %4225 = vmatpush1.bf16.msra.mxu0 %v4224_v38  ;;  %v2347_v38 = vld [vmem:[#allocation6 + $0x990] sm:$0xff] }
 0x27a   : > { %v4268_v35 = vpack.c.bf16 %v2347_v38, %v2329_v34 }
 0x27c   : > { %v1755_v40 = vpop.f32.mrb[38].mxu0  ;;  %4269 = vmatpush1.bf16.msra.mxu1 %v4268_v35  ;;  %v2044_v35 = vld [vmem:[#allocation6 + $0x18] sm:$0xff] }
 0x27d   : > { %v4228_v41 = vpack.c.bf16 %v1755_v40, %v1749_v39  ;;  %v1757_v23 = vpop.f32.mrb[39].mxu0  ;;  %v2384_v39 = vld [vmem:[#allocation6 + $0xab8] sm:$0xff]  ;;  %v2365_v40 = vld [vmem:[#allocation6 + $0xa20] sm:$0xff] }
 0x27e   : > { %v4226_v42 = vpack.c.bf16 %v1757_v23, %v1751_v16  ;;  %v4270_v16 = vpack.c.bf16 %v2384_v39, %v2366_v36  ;;  %v2062_v36 = vld [vmem:[#allocation6 + $0xa8] sm:$0xff] }
 0x280   : > { %4227 = vmatprep.subr.bf16.mxu0 %v4226_v42  ;;  %4271 = vmatprep.subr.bf16.mxu1 %v4270_v16  ;;  %v2402_v42 = vld [vmem:[#allocation6 + $0xb48] sm:$0xff] }
 0x281   : > { %4229 = vmatpush1.bf16.msra.mxu0 %v4228_v41  ;;  %v2383_v41 = vld [vmem:[#allocation6 + $0xab0] sm:$0xff] }
 0x282   : > { %v4272_v23 = vpack.c.bf16 %v2383_v41, %v2365_v40 }
 0x284   : > { %3567 = vmatmul.mubr.msk.f32.vlgmr.msra.gmra.mrb[40].mxu0 %vm1766_vm0, %v1762_v43  ;;  %v2420_v43 = vld [vmem:[#allocation6 + $0xbd8] sm:$0xff]  ;;  %4273 = vmatpush1.bf16.msra.mxu1 %v4272_v23  ;;  %v4298_v23 = vpack.c.bf16 %v2062_v36, %v2044_v35  ;;  %v2385_v35 = vld [vmem:[#allocation6 + $0xac0] sm:$0xff] }
 0x285   : > { %1920 = vmatprep.mubr.f32.mxu0 %v4988_v33  ;;  %v2404_v36 = vld [vmem:[#allocation6 + $0xb58] sm:$0xff] }
 0x288   : > { %3568 = vmatmul.mubr.msk.f32.gmra.mrb[42].mxu0 %vm1766_vm0, %v1765_v44  ;;  %v4274_v44 = vpack.c.bf16 %v2420_v43, %v2402_v42  ;;  %v2043_v42 = vld [vmem:[#allocation6 + $0x10] sm:$0xff]  ;;  %v2061_v43 = vld [vmem:[#allocation6 + $0xa0] sm:$0xff] }
 0x289   : > { %2032 = vmatprep.mubr.f32.mxu0 %v4988_v33 }
 0x28a   : > { %4275 = vmatprep.subr.bf16.mxu1 %v4274_v44  ;;  %v2080_v44 = vld [vmem:[#allocation6 + $0x138] sm:$0xff] }
 0x28b   : > { %4277 = vmatpush1.bf16.msra.mxu1 %v4276_v49  ;;  %v4300_v49 = vpack.c.bf16 %v2061_v43, %v2043_v42  ;;  %v4302_v37 = vpack.c.bf16 %v2098_v45, %v2080_v44  ;;  %v2440_v42 = vld [vmem:[#allocation6 + $0xc78] sm:$0xff]  ;;  %v2458_v43 = vld [vmem:[#allocation6 + $0xd08] sm:$0xff] }
 0x28c   : > { %4279 = vmatprep.subr.bf16.mxu1 %v4278_v52  ;;  %v2097_v52 = vld [vmem:[#allocation6 + $0x1c0] sm:$0xff]  ;;  %v4342_v45 = vpack.c.bf16 %v2458_v43, %v2440_v42  ;;  %v2136_v43 = vld [vmem:[#allocation6 + $0x2f8] sm:$0xff] }
 0x28f   : > { %4281 = vmatpush1.bf16.msra.mxu1 %v4280_v55  ;;  %v4304_v55 = vpack.c.bf16 %v2097_v52, %v2079_v50  ;;  %v2494_v50 = vld [vmem:[#allocation6 + $0xe28] sm:$0xff] }
 0x290   : > { %4283 = vmatprep.subr.bf16.mxu1 %v4282_v58  ;;  %v2133_v58 = vld [vmem:[#allocation6 + $0x2e0] sm:$0xff] }
 0x293   : > { %4285 = vmatpush1.bf16.msra.mxu1 %v4284_v61  ;;  %v4308_v61 = vpack.c.bf16 %v2133_v58, %v2115_v57  ;;  %v2530_v57 = vld [vmem:[#allocation6 + $0xf48] sm:$0xff] }
 0x294   : > { %4287 = vmatprep.subr.bf16.mxu1 %v4286_v0  ;;  %v2169_v0 = vld [vmem:[#allocation6 + $0x400] sm:$0xff] }
 0x297   : > { %4289 = vmatpush1.bf16.msra.mxu1 %v4288_v5  ;;  %v4312_v5 = vpack.c.bf16 %v2169_v0, %v2151_v63  ;;  %v2566_v63 = vld [vmem:[#allocation6 + $0x1068] sm:$0xff] }
 0x298   : > { %4291 = vmatprep.subr.bf16.mxu1 %v4290_v10  ;;  %v2224_v10 = vld [vmem:[#allocation6 + $0x5b8] sm:$0xff] }
 0x29b   : > { %4293 = vmatpush1.bf16.msra.mxu1 %v4292_v14  ;;  %v2223_v14 = vld [vmem:[#allocation6 + $0x5b0] sm:$0xff] }
 0x31f   : > { %v1839_v9 = vpop.f32.mrb[32].mxu1 }
 0x320   : > { %v1841_v13 = vpop.f32.mrb[33].mxu1 }
 0x323   : > { %v1845_v47 = vpop.f32.mrb[34].mxu1 }
 0x324   : > { %v1847_v51 = vpop.f32.mrb[35].mxu1 }
 0x357   : > { %v1916_v48 = vpop.f32.mrb[40].mxu0 }
 0x358   : > { %v1917_v18 = vadd.f32 %v1916_v48, %v1839_v9  ;;  %v1918_v4 = vpop.f32.mrb[41].mxu0  ;;  %v2205_v9 = vld [vmem:[#allocation6 + $0x520] sm:$0xff] }
 0x359   : > { %v1919_v15 = vadd.f32 %v1918_v4, %v1841_v13  ;;  %v4316_v12 = vpack.c.bf16 %v2205_v9, %v2187_v8  ;;  %v4318_v13 = vpack.c.bf16 %v2242_v11, %v2224_v10  ;;  %v2259_v4 = vld [vmem:[#allocation6 + $0x6d0] sm:$0xff]  ;;  %v2582_v8 = vld [vmem:[#allocation6 + $0x10e8] sm:$0xff]  ;;  %v2600_v9 = vld [vmem:[#allocation6 + $0x1178] sm:$0xff] }
 0x35a   : > { %v1939_v21 = vmul.f32 %v1932_v17, %v1917_v18  ;;  %v2584_v10 = vld [vmem:[#allocation6 + $0x10f8] sm:$0xff]  ;;  %v4294_v11 = vpack.c.bf16 %v2600_v9, %v2582_v8 }
 0x35b   : > { %v1940_v20 = vmul.f32 %v1932_v17, %v1919_v15  ;;  %v1922_v22 = vpop.f32.mrb[42].mxu0  ;;  %v2278_v17 = vld [vmem:[#allocation6 + $0x768] sm:$0xff]  ;;  %v2296_v15 = vld [vmem:[#allocation6 + $0x7f8] sm:$0xff] }
 0x35c   : > { %v1923_v29 = vadd.f32 %v1922_v22, %v1845_v47  ;;  %v1924_v24 = vpop.f32.mrb[43].mxu0  ;;  %v1955_v26 = vadd.f32 %v1948_v19, %v1939_v21  ;;  %v2241_v47 = vld [vmem:[#allocation6 + $0x640] sm:$0xff]  ;;  %v2314_v21 = vld [vmem:[#allocation6 + $0x888] sm:$0xff]  ;;  %4295 = vmatprep.subr.bf16.mxu1 %v4294_v11  ;;  %v2208_v8 = vld [vmem:[#allocation6 + $0x538] sm:$0xff] }
 0x35d   : > { %v1925_v25 = vadd.f32 %v1924_v24, %v1847_v51  ;;  %v1956_v28 = vadd.f32 %v1948_v19, %v1940_v20  ;;  %v2260_v51 = vld [vmem:[#allocation6 + $0x6d8] sm:$0xff]  ;;  %v4320_v48 = vpack.c.bf16 %v2241_v47, %v2223_v14  ;;  %v2277_v19 = vld [vmem:[#allocation6 + $0x760] sm:$0xff]  ;;  %v4326_v22 = vpack.c.bf16 %v2314_v21, %v2296_v15  ;;  %v2599_v14 = vld [vmem:[#allocation6 + $0x1170] sm:$0xff] }
 0x35e   : > { %v1941_v27 = vmul.f32 %v1937_v2, %v1923_v29  ;;  %v1959_v34 = vmax.f32 %v1955_v26, 0.0  ;;  %v4322_v18 = vpack.c.bf16 %v2278_v17, %v2260_v51  ;;  %v4324_v20 = vpack.c.bf16 %v2277_v19, %v2259_v4  ;;  %v2295_v29 = vld [vmem:[#allocation6 + $0x7f0] sm:$0xff]  ;;  %v2313_v24 = vld [vmem:[#allocation6 + $0x880] sm:$0xff]  ;;  %v2046_v4 = vld [vmem:[#allocation6 + $0x28] sm:$0xff] }
 0x35f   : > { %v1942_v30 = vmul.f32 %v1937_v2, %v1925_v25  ;;  %v1960_v39 = vmax.f32 %v1956_v28, 0.0  ;;  %v2332_v2 = vld [vmem:[#allocation6 + $0x918] sm:$0xff]  ;;  %v2350_v25 = vld [vmem:[#allocation6 + $0x9a8] sm:$0xff]  ;;  %v4328_v26 = vpack.c.bf16 %v2313_v24, %v2295_v29  ;;  %v2349_v28 = vld [vmem:[#allocation6 + $0x9a0] sm:$0xff] }
 0x360   : > { %v1957_v31 = vadd.f32 %v1953_v6, %v1941_v27  ;;  %v4330_v27 = vpack.c.bf16 %v2350_v25, %v2332_v2  ;;  %v2583_v17 = vld [vmem:[#allocation6 + $0x10f0] sm:$0xff]  ;;  %v2064_v19 = vld [vmem:[#allocation6 + $0xb8] sm:$0xff]  ;;  %v2045_v29 = vld [vmem:[#allocation6 + $0x20] sm:$0xff] }
 0x361   : > { %v1958_v32 = vadd.f32 %v1953_v6, %v1942_v30  ;;  %v2331_v6 = vld [vmem:[#allocation6 + $0x910] sm:$0xff]  ;;  %v2368_v30 = vld [vmem:[#allocation6 + $0xa38] sm:$0xff]  ;;  %v4362_v21 = vpack.c.bf16 %v2064_v19, %v2046_v4  ;;  %v2065_v25 = vld [vmem:[#allocation6 + $0xc0] sm:$0xff] }
 0x362   : > { %v1961_v38 = vmax.f32 %v1957_v31, 0.0  ;;  %v2386_v31 = vld [vmem:[#allocation6 + $0xac8] sm:$0xff]  ;;  %v2048_v15 = vld [vmem:[#allocation6 + $0x38] sm:$0xff]  ;;  %v2063_v24 = vld [vmem:[#allocation6 + $0xb0] sm:$0xff] }
 0x363   : > { %v1962_v16 = vmax.f32 %v1958_v32, 0.0  ;;  %v4332_v32 = vpack.c.bf16 %v2349_v28, %v2331_v6  ;;  %v2047_v2 = vld [vmem:[#allocation6 + $0x30] sm:$0xff]  ;;  %v2100_v6 = vld [vmem:[#allocation6 + $0x1d8] sm:$0xff] }
 0x364   : > { %v4232_v40 = vpack.c.bf16 %v1961_v38, %v1959_v34  ;;  %v4334_v34 = vpack.c.bf16 %v2386_v31, %v2368_v30  ;;  %v2367_v38 = vld [vmem:[#allocation6 + $0xa30] sm:$0xff]  ;;  %v2084_v30 = vld [vmem:[#allocation6 + $0x158] sm:$0xff]  ;;  %v2102_v31 = vld [vmem:[#allocation6 + $0x1e8] sm:$0xff] }
 0x365   : > { %v4230_v41 = vpack.c.bf16 %v1962_v16, %v1960_v39  ;;  %v2422_v39 = vld [vmem:[#allocation6 + $0xbe8] sm:$0xff]  ;;  %v4336_v16 = vpack.c.bf16 %v2385_v35, %v2367_v38  ;;  %v4428_v38 = vpack.c.bf16 %v2065_v25, %v2047_v2  ;;  %v2081_v35 = vld [vmem:[#allocation6 + $0x140] sm:$0xff]  ;;  %v4430_v42 = vpack.c.bf16 %v2102_v31, %v2084_v30  ;;  %v2192_v9 = vld [vmem:[#allocation6 + $0x4b8] sm:$0xff] }
 0x366   : > { %v2244_v4 = vld [vmem:[#allocation6 + $0x658] sm:$0xff]  ;;  %v2227_v25 = vld [vmem:[#allocation6 + $0x5d0] sm:$0xff]  ;;  %v2282_v30 = vld [vmem:[#allocation6 + $0x788] sm:$0xff] }
 0x367   : > { %4231 = vmatprep.subr.bf16.mxu0 %v4230_v41  ;;  %v2403_v41 = vld [vmem:[#allocation6 + $0xb50] sm:$0xff]  ;;  %v2228_v19 = vld [vmem:[#allocation6 + $0x5d8] sm:$0xff] }
 0x368   : > { %4233 = vmatpush1.bf16.msra.mxu0 %v4232_v40  ;;  %v4338_v40 = vpack.c.bf16 %v2422_v39, %v2404_v36  ;;  %v2099_v36 = vld [vmem:[#allocation6 + $0x1d0] sm:$0xff] }
 0x369   : > { %4299 = vmatprep.subr.bf16.mxu0 %v4298_v23  ;;  %v2421_v23 = vld [vmem:[#allocation6 + $0xbe0] sm:$0xff] }
 0x36a   : > { %v4340_v44 = vpack.c.bf16 %v2421_v23, %v2403_v41  ;;  %v2101_v41 = vld [vmem:[#allocation6 + $0x1e0] sm:$0xff]  ;;  %v2118_v23 = vld [vmem:[#allocation6 + $0x268] sm:$0xff] }
 0x36b   : > { %3569 = vmatmul.mubr.msk.f32.vlgmr.msra.gmra.mrb[44].mxu0 %vm1964_vm1, %v1963_v46  ;;  %v2439_v46 = vld [vmem:[#allocation6 + $0xc70] sm:$0xff] }
 0x36c   : > { %4301 = vmatpush1.bf16.msra.mxu0 %v4300_v49  ;;  %v2457_v49 = vld [vmem:[#allocation6 + $0xd00] sm:$0xff] }
 0x36d   : > { %4303 = vmatprep.subr.bf16.mxu0 %v4302_v37  ;;  %v2476_v37 = vld [vmem:[#allocation6 + $0xd98] sm:$0xff]  ;;  %v4344_v52 = vpack.c.bf16 %v2457_v49, %v2439_v46  ;;  %v4368_v46 = vpack.c.bf16 %v2099_v36, %v2081_v35  ;;  %v2279_v35 = vld [vmem:[#allocation6 + $0x770] sm:$0xff] }
 0x36e   : > { %v4346_v53 = vpack.c.bf16 %v2494_v50, %v2476_v37  ;;  %v2117_v37 = vld [vmem:[#allocation6 + $0x260] sm:$0xff]  ;;  %v2135_v50 = vld [vmem:[#allocation6 + $0x2f0] sm:$0xff] }
 0x370   : > { %4305 = vmatpush1.bf16.msra.mxu0 %v4304_v55  ;;  %v2493_v55 = vld [vmem:[#allocation6 + $0xe20] sm:$0xff] }
 0x371   : > { %4307 = vmatprep.subr.bf16.mxu0 %v4306_v56  ;;  %v2512_v56 = vld [vmem:[#allocation6 + $0xeb8] sm:$0xff]  ;;  %v4348_v58 = vpack.c.bf16 %v2493_v55, %v2475_v54  ;;  %v2119_v54 = vld [vmem:[#allocation6 + $0x270] sm:$0xff]  ;;  %v2137_v55 = vld [vmem:[#allocation6 + $0x300] sm:$0xff] }
 0x372   : > { %v4350_v59 = vpack.c.bf16 %v2530_v57, %v2512_v56  ;;  %v2154_v56 = vld [vmem:[#allocation6 + $0x388] sm:$0xff]  ;;  %v2172_v57 = vld [vmem:[#allocation6 + $0x418] sm:$0xff] }
 0x374   : > { %4309 = vmatpush1.bf16.msra.mxu0 %v4308_v61  ;;  %v2529_v61 = vld [vmem:[#allocation6 + $0xf40] sm:$0xff] }
 0x375   : > { %4311 = vmatprep.subr.bf16.mxu0 %v4310_v62  ;;  %v2548_v62 = vld [vmem:[#allocation6 + $0xfd8] sm:$0xff]  ;;  %v4352_v0 = vpack.c.bf16 %v2529_v61, %v2511_v60  ;;  %v4372_v60 = vpack.c.bf16 %v2135_v50, %v2117_v37  ;;  %v4436_v61 = vpack.c.bf16 %v2137_v55, %v2119_v54  ;;  %v2315_v37 = vld [vmem:[#allocation6 + $0x890] sm:$0xff]  ;;  %v2317_v54 = vld [vmem:[#allocation6 + $0x8a0] sm:$0xff] }
 0x376   : > { %v4354_v1 = vpack.c.bf16 %v2566_v63, %v2548_v62  ;;  %v2153_v62 = vld [vmem:[#allocation6 + $0x380] sm:$0xff]  ;;  %v2171_v63 = vld [vmem:[#allocation6 + $0x410] sm:$0xff]  ;;  %v2334_v55 = vld [vmem:[#allocation6 + $0x928] sm:$0xff] }
 0x377   : > { %v4376_v11 = vpack.c.bf16 %v2171_v63, %v2153_v62  ;;  %v2351_v62 = vld [vmem:[#allocation6 + $0x9b0] sm:$0xff] }
 0x378   : > { %4313 = vmatpush1.bf16.msra.mxu0 %v4312_v5  ;;  %v2565_v5 = vld [vmem:[#allocation6 + $0x1060] sm:$0xff] }
 0x379   : > { %4315 = vmatprep.subr.bf16.mxu0 %v4314_v7  ;;  %v4356_v7 = vpack.c.bf16 %v2565_v5, %v2547_v3  ;;  %v2155_v3 = vld [vmem:[#allocation6 + $0x390] sm:$0xff]  ;;  %v2173_v5 = vld [vmem:[#allocation6 + $0x420] sm:$0xff] }
 0x37c   : > { %4317 = vmatpush1.bf16.msra.mxu0 %v4316_v12  ;;  %v2602_v12 = vld [vmem:[#allocation6 + $0x1188] sm:$0xff] }
 0x37d   : > { %4319 = vmatprep.subr.bf16.mxu0 %v4318_v13  ;;  %v2581_v13 = vld [vmem:[#allocation6 + $0x10e0] sm:$0xff]  ;;  %v4358_v47 = vpack.c.bf16 %v2602_v12, %v2584_v10  ;;  %v2210_v10 = vld [vmem:[#allocation6 + $0x548] sm:$0xff]  ;;  %v4440_v12 = vpack.c.bf16 %v2173_v5, %v2155_v3 }
 0x37e   : > { %v4296_v51 = vpack.c.bf16 %v2599_v14, %v2581_v13  ;;  %v2189_v13 = vld [vmem:[#allocation6 + $0x4a0] sm:$0xff]  ;;  %v2207_v14 = vld [vmem:[#allocation6 + $0x530] sm:$0xff]  ;;  %v2370_v5 = vld [vmem:[#allocation6 + $0xa48] sm:$0xff] }
 0x37f   : > { %v2353_v3 = vld [vmem:[#allocation6 + $0x9c0] sm:$0xff] }
 0x380   : > { %4321 = vmatpush1.bf16.msra.mxu0 %v4320_v48  ;;  %v2601_v48 = vld [vmem:[#allocation6 + $0x1180] sm:$0xff]  ;;  %4297 = vmatpush1.bf16.msra.mxu1 %v4296_v51  ;;  %v4442_v51 = vpack.c.bf16 %v2210_v10, %v2192_v9  ;;  %v2390_v9 = vld [vmem:[#allocation6 + $0xae8] sm:$0xff] }
 0x381   : > { %4323 = vmatprep.subr.bf16.mxu0 %v4322_v18  ;;  %v4360_v18 = vpack.c.bf16 %v2601_v48, %v2583_v17  ;;  %4363 = vmatprep.subr.bf16.mxu1 %v4362_v21  ;;  %v2191_v17 = vld [vmem:[#allocation6 + $0x4b0] sm:$0xff]  ;;  %v2209_v48 = vld [vmem:[#allocation6 + $0x540] sm:$0xff]  ;;  %v4380_v21 = vpack.c.bf16 %v2207_v14, %v2189_v13 }
 0x382   : > { %v2387_v13 = vld [vmem:[#allocation6 + $0xad0] sm:$0xff] }
 0x384   : > { %4325 = vmatpush1.bf16.msra.mxu0 %v4324_v20  ;;  %v2066_v20 = vld [vmem:[#allocation6 + $0xc8] sm:$0xff] }
 0x385   : > { %4327 = vmatprep.subr.bf16.mxu0 %v4326_v22  ;;  %v4426_v22 = vpack.c.bf16 %v2066_v20, %v2048_v15  ;;  %v2246_v15 = vld [vmem:[#allocation6 + $0x668] sm:$0xff]  ;;  %v4444_v20 = vpack.c.bf16 %v2209_v48, %v2191_v17  ;;  %v2389_v17 = vld [vmem:[#allocation6 + $0xae0] sm:$0xff] }
 0x386   : > { %v4446_v2 = vpack.c.bf16 %v2246_v15, %v2228_v19  ;;  %v2406_v48 = vld [vmem:[#allocation6 + $0xb68] sm:$0xff] }
 0x387   : > { %v2426_v19 = vld [vmem:[#allocation6 + $0xc08] sm:$0xff] }
 0x388   : > { %4329 = vmatpush1.bf16.msra.mxu0 %v4328_v26 }
 0x389   : > { %4331 = vmatprep.subr.bf16.mxu0 %v4330_v27  ;;  %v2082_v27 = vld [vmem:[#allocation6 + $0x148] sm:$0xff] }
 0x38c   : > { %4333 = vmatpush1.bf16.msra.mxu0 %v4332_v32 }
 0x38d   : > { %4335 = vmatprep.subr.bf16.mxu0 %v4334_v34  ;;  %v4364_v34 = vpack.c.bf16 %v2063_v24, %v2045_v29  ;;  %v2243_v29 = vld [vmem:[#allocation6 + $0x650] sm:$0xff] }
 0x390   : > { %4337 = vmatpush1.bf16.msra.mxu0 %v4336_v16  ;;  %v4366_v16 = vpack.c.bf16 %v2100_v6, %v2082_v27  ;;  %v2262_v27 = vld [vmem:[#allocation6 + $0x6e8] sm:$0xff]  ;;  %v2280_v6 = vld [vmem:[#allocation6 + $0x778] sm:$0xff] }
 0x391   : > { %4339 = vmatprep.subr.bf16.mxu0 %v4338_v40  ;;  %v2083_v40 = vld [vmem:[#allocation6 + $0x150] sm:$0xff]  ;;  %v4386_v36 = vpack.c.bf16 %v2280_v6, %v2262_v27  ;;  %v2460_v27 = vld [vmem:[#allocation6 + $0xd18] sm:$0xff] }
 0x392   : > { %v4432_v49 = vpack.c.bf16 %v2101_v41, %v2083_v40  ;;  %v2263_v40 = vld [vmem:[#allocation6 + $0x6f0] sm:$0xff]  ;;  %v2281_v41 = vld [vmem:[#allocation6 + $0x780] sm:$0xff]  ;;  %v2444_v6 = vld [vmem:[#allocation6 + $0xc98] sm:$0xff] }
 0x394   : > { %4341 = vmatpush1.bf16.msra.mxu0 %v4340_v44  ;;  %v2120_v44 = vld [vmem:[#allocation6 + $0x278] sm:$0xff] }
 0x395   : > { %4343 = vmatprep.subr.bf16.mxu0 %v4342_v45  ;;  %v2138_v45 = vld [vmem:[#allocation6 + $0x308] sm:$0xff] }
 0x398   : > { %4345 = vmatpush1.bf16.msra.mxu0 %v4344_v52  ;;  %v4370_v52 = vpack.c.bf16 %v2136_v43, %v2118_v23  ;;  %v2298_v23 = vld [vmem:[#allocation6 + $0x808] sm:$0xff]  ;;  %v2300_v43 = vld [vmem:[#allocation6 + $0x818] sm:$0xff] }
 0x399   : > { %4347 = vmatprep.subr.bf16.mxu0 %v4346_v53  ;;  %v4434_v53 = vpack.c.bf16 %v2138_v45, %v2120_v44  ;;  %v2318_v44 = vld [vmem:[#allocation6 + $0x8a8] sm:$0xff] }
 0x39c   : > { %4349 = vmatpush1.bf16.msra.mxu0 %v4348_v58  ;;  %v2156_v58 = vld [vmem:[#allocation6 + $0x398] sm:$0xff] }
 0x39d   : > { %4351 = vmatprep.subr.bf16.mxu0 %v4350_v59  ;;  %v2174_v59 = vld [vmem:[#allocation6 + $0x428] sm:$0xff] }
 0x3a0   : > { %4353 = vmatpush1.bf16.msra.mxu0 %v4352_v0  ;;  %v4374_v0 = vpack.c.bf16 %v2172_v57, %v2154_v56  ;;  %v2352_v56 = vld [vmem:[#allocation6 + $0x9b8] sm:$0xff] }
 0x3a1   : > { %4355 = vmatprep.subr.bf16.mxu0 %v4354_v1  ;;  %v4438_v1 = vpack.c.bf16 %v2174_v59, %v2156_v58  ;;  %v2336_v57 = vld [vmem:[#allocation6 + $0x938] sm:$0xff]  ;;  %v2354_v58 = vld [vmem:[#allocation6 + $0x9c8] sm:$0xff]  ;;  %v4394_v63 = vpack.c.bf16 %v2352_v56, %v2334_v55 }
 0x3a2   : > { %v2532_v55 = vld [vmem:[#allocation6 + $0xf58] sm:$0xff] }
 0x3a3   : > { %v2516_v56 = vld [vmem:[#allocation6 + $0xed8] sm:$0xff] }
 0x3a4   : > { %4357 = vmatpush1.bf16.msra.mxu0 %v4356_v7  ;;  %v2190_v7 = vld [vmem:[#allocation6 + $0x4a8] sm:$0xff] }
 0x3a5   : > { %4359 = vmatprep.subr.bf16.mxu0 %v4358_v47  ;;  %v4378_v47 = vpack.c.bf16 %v2208_v8, %v2190_v7  ;;  %v2388_v7 = vld [vmem:[#allocation6 + $0xad8] sm:$0xff] }
 0x3a6   : > { %v2372_v8 = vld [vmem:[#allocation6 + $0xa58] sm:$0xff]  ;;  %v4398_v14 = vpack.c.bf16 %v2388_v7, %v2370_v5 }
 0x3a7   : > { %v2568_v5 = vld [vmem:[#allocation6 + $0x1078] sm:$0xff] }
 0x3a8   : > { %4361 = vmatpush1.bf16.msra.mxu0 %v4360_v18  ;;  %v2226_v18 = vld [vmem:[#allocation6 + $0x5c8] sm:$0xff]  ;;  %v2552_v7 = vld [vmem:[#allocation6 + $0xff8] sm:$0xff] }
 0x3a9   : > { %4427 = vmatprep.subr.bf16.mxu0 %v4426_v22  ;;  %v2225_v22 = vld [vmem:[#allocation6 + $0x5c0] sm:$0xff]  ;;  %v4382_v24 = vpack.c.bf16 %v2244_v4, %v2226_v18  ;;  %v2424_v18 = vld [vmem:[#allocation6 + $0xbf8] sm:$0xff] }
 0x3aa   : > { %v4384_v31 = vpack.c.bf16 %v2243_v29, %v2225_v22  ;;  %v2408_v4 = vld [vmem:[#allocation6 + $0xb78] sm:$0xff]  ;;  %v2423_v22 = vld [vmem:[#allocation6 + $0xbf0] sm:$0xff]  ;;  %v4402_v29 = vpack.c.bf16 %v2424_v18, %v2406_v48 }
 0x3ab   : > { %v2604_v48 = vld [vmem:[#allocation6 + $0x1198] sm:$0xff] }
 0x3ac   : > { %v2588_v18 = vld [vmem:[#allocation6 + $0x1118] sm:$0xff] }
 0x43e   : > { %v2034_v26 = vpop.f32.mrb[44].mxu0 }
 0x43f   : > { %v2036_v28 = vpop.f32.mrb[45].mxu0  ;;  %v5338_v39 = vmax.f32 %v2034_v26, 0.0  ;;  %v2245_v26 = vld [vmem:[#allocation6 + $0x660] sm:$0xff] }
 0x440   : > { %v5336_v32 = vmax.f32 %v2036_v28, 0.0  ;;  %v2264_v28 = vld [vmem:[#allocation6 + $0x6f8] sm:$0xff] }
 0x442   : > { %2681 = vmatprep.mubr.f32.mxu1 %v5336_v32  ;;  %2752 = vmatprep.mubr.f32.mxu0 %v5336_v32 }
 0x443   : > { %2682 = vmatmul.mubr.f32.vlgmr.msra.gmra.mrb[36].mxu1 %v5338_v39  ;;  %2753 = vmatmul.mubr.f32.vlgmr.msra.gmra.mrb[46].mxu0 %v5338_v39 }
 0x444   : > { %4365 = vmatpush1.bf16.msra.mxu1 %v4364_v34  ;;  %4429 = vmatpush1.bf16.msra.mxu0 %v4428_v38  ;;  %v4448_v34 = vpack.c.bf16 %v2245_v26, %v2227_v25  ;;  %v2261_v38 = vld [vmem:[#allocation6 + $0x6e0] sm:$0xff]  ;;  %v2442_v26 = vld [vmem:[#allocation6 + $0xc88] sm:$0xff] }
 0x445   : > { %4367 = vmatprep.subr.bf16.mxu1 %v4366_v16  ;;  %2823 = vmatprep.mubr.f32.mxu1 %v5336_v32  ;;  %v4450_v16 = vpack.c.bf16 %v2282_v30, %v2264_v28  ;;  %v4388_v45 = vpack.c.bf16 %v2279_v35, %v2261_v38  ;;  %v2425_v25 = vld [vmem:[#allocation6 + $0xc00] sm:$0xff]  ;;  %v2462_v28 = vld [vmem:[#allocation6 + $0xd28] sm:$0xff]  ;;  %v2459_v38 = vld [vmem:[#allocation6 + $0xd10] sm:$0xff]  ;;  %v4406_v35 = vpack.c.bf16 %v2460_v27, %v2442_v26 }
 0x446   : > { %4431 = vmatprep.subr.bf16.mxu0 %v4430_v42  ;;  %2894 = vmatprep.mubr.f32.mxu0 %v5336_v32  ;;  %v2316_v42 = vld [vmem:[#allocation6 + $0x898] sm:$0xff] }
 0x447   : > { %v4390_v50 = vpack.c.bf16 %v2316_v42, %v2298_v23  ;;  %v2496_v23 = vld [vmem:[#allocation6 + $0xe38] sm:$0xff] }
 0x448   : > { %4369 = vmatpush1.bf16.msra.mxu1 %v4368_v46  ;;  %4433 = vmatpush1.bf16.msra.mxu0 %v4432_v49  ;;  %v4452_v46 = vpack.c.bf16 %v2281_v41, %v2263_v40  ;;  %v2297_v49 = vld [vmem:[#allocation6 + $0x800] sm:$0xff]  ;;  %v2478_v41 = vld [vmem:[#allocation6 + $0xda8] sm:$0xff]  ;;  %v2480_v42 = vld [vmem:[#allocation6 + $0xdb8] sm:$0xff] }
 0x449   : > { %4371 = vmatprep.subr.bf16.mxu1 %v4370_v52  ;;  %4435 = vmatprep.subr.bf16.mxu0 %v4434_v53  ;;  %v4454_v52 = vpack.c.bf16 %v2318_v44, %v2300_v43  ;;  %v2299_v53 = vld [vmem:[#allocation6 + $0x810] sm:$0xff]  ;;  %v4392_v59 = vpack.c.bf16 %v2315_v37, %v2297_v49  ;;  %v2461_v40 = vld [vmem:[#allocation6 + $0xd20] sm:$0xff]  ;;  %v2498_v43 = vld [vmem:[#allocation6 + $0xe48] sm:$0xff]  ;;  %v4410_v37 = vpack.c.bf16 %v2496_v23, %v2478_v41 }
 0x44a   : > { %v2495_v49 = vld [vmem:[#allocation6 + $0xe30] sm:$0xff]  ;;  %v2068_v26 = vld [vmem:[#allocation6 + $0xd8] sm:$0xff] }
 0x44b   : > { %v2052_v27 = vld [vmem:[#allocation6 + $0x58] sm:$0xff] }
 0x44c   : > { %4373 = vmatpush1.bf16.msra.mxu1 %v4372_v60  ;;  %4437 = vmatpush1.bf16.msra.mxu0 %v4436_v61  ;;  %v4456_v60 = vpack.c.bf16 %v2317_v54, %v2299_v53  ;;  %v2333_v61 = vld [vmem:[#allocation6 + $0x920] sm:$0xff]  ;;  %v2514_v54 = vld [vmem:[#allocation6 + $0xec8] sm:$0xff]  ;;  %v2104_v41 = vld [vmem:[#allocation6 + $0x1f8] sm:$0xff] }
 0x44d   : > { %4375 = vmatprep.subr.bf16.mxu1 %v4374_v0  ;;  %4439 = vmatprep.subr.bf16.mxu0 %v4438_v1  ;;  %v4458_v0 = vpack.c.bf16 %v2354_v58, %v2336_v57  ;;  %v2335_v1 = vld [vmem:[#allocation6 + $0x930] sm:$0xff]  ;;  %v4396_v10 = vpack.c.bf16 %v2351_v62, %v2333_v61  ;;  %v2497_v53 = vld [vmem:[#allocation6 + $0xe40] sm:$0xff]  ;;  %v2534_v57 = vld [vmem:[#allocation6 + $0xf68] sm:$0xff]  ;;  %v4414_v62 = vpack.c.bf16 %v2532_v55, %v2514_v54 }
 0x44e   : > { %v2531_v61 = vld [vmem:[#allocation6 + $0xf50] sm:$0xff]  ;;  %v2088_v23 = vld [vmem:[#allocation6 + $0x178] sm:$0xff] }
 0x44f   : > { %v2140_v54 = vld [vmem:[#allocation6 + $0x318] sm:$0xff] }
 0x450   : > { %4377 = vmatpush1.bf16.msra.mxu1 %v4376_v11  ;;  %4441 = vmatpush1.bf16.msra.mxu0 %v4440_v12  ;;  %v4460_v11 = vpack.c.bf16 %v2353_v3, %v2335_v1  ;;  %v2369_v12 = vld [vmem:[#allocation6 + $0xa40] sm:$0xff]  ;;  %v2550_v3 = vld [vmem:[#allocation6 + $0xfe8] sm:$0xff]  ;;  %v2124_v55 = vld [vmem:[#allocation6 + $0x298] sm:$0xff] }
 0x451   : > { %4379 = vmatprep.subr.bf16.mxu1 %v4378_v47  ;;  %4443 = vmatprep.subr.bf16.mxu0 %v4442_v51  ;;  %v4462_v47 = vpack.c.bf16 %v2390_v9, %v2372_v8  ;;  %v2371_v51 = vld [vmem:[#allocation6 + $0xa50] sm:$0xff]  ;;  %v4400_v15 = vpack.c.bf16 %v2387_v13, %v2369_v12  ;;  %v2533_v1 = vld [vmem:[#allocation6 + $0xf60] sm:$0xff]  ;;  %v2570_v8 = vld [vmem:[#allocation6 + $0x1088] sm:$0xff]  ;;  %v4418_v13 = vpack.c.bf16 %v2568_v5, %v2550_v3 }
 0x452   : > { %v2567_v12 = vld [vmem:[#allocation6 + $0x1070] sm:$0xff]  ;;  %v2176_v3 = vld [vmem:[#allocation6 + $0x438] sm:$0xff] }
 0x453   : > { %v2160_v5 = vld [vmem:[#allocation6 + $0x3b8] sm:$0xff] }
 0x454   : > { %4381 = vmatpush1.bf16.msra.mxu1 %v4380_v21  ;;  %4445 = vmatpush1.bf16.msra.mxu0 %v4444_v20  ;;  %v4464_v21 = vpack.c.bf16 %v2389_v17, %v2371_v51  ;;  %v2405_v20 = vld [vmem:[#allocation6 + $0xb60] sm:$0xff]  ;;  %v2586_v17 = vld [vmem:[#allocation6 + $0x1108] sm:$0xff] }
 0x455   : > { %4383 = vmatprep.subr.bf16.mxu1 %v4382_v24  ;;  %4447 = vmatprep.subr.bf16.mxu0 %v4446_v2  ;;  %v4466_v24 = vpack.c.bf16 %v2426_v19, %v2408_v4  ;;  %v2407_v2 = vld [vmem:[#allocation6 + $0xb70] sm:$0xff]  ;;  %v4404_v30 = vpack.c.bf16 %v2423_v22, %v2405_v20  ;;  %v2569_v51 = vld [vmem:[#allocation6 + $0x1080] sm:$0xff]  ;;  %v2606_v4 = vld [vmem:[#allocation6 + $0x11a8] sm:$0xff]  ;;  %v4422_v22 = vpack.c.bf16 %v2604_v48, %v2586_v17 }
 0x456   : > { %v2603_v20 = vld [vmem:[#allocation6 + $0x1190] sm:$0xff]  ;;  %v2212_v17 = vld [vmem:[#allocation6 + $0x558] sm:$0xff] }
 0x457   : > { %v2196_v48 = vld [vmem:[#allocation6 + $0x4d8] sm:$0xff] }
 0x458   : > { %4385 = vmatpush1.bf16.msra.mxu1 %v4384_v31  ;;  %4449 = vmatpush1.bf16.msra.mxu0 %v4448_v34  ;;  %v4468_v31 = vpack.c.bf16 %v2425_v25, %v2407_v2  ;;  %v2441_v34 = vld [vmem:[#allocation6 + $0xc80] sm:$0xff]  ;;  %v2050_v25 = vld [vmem:[#allocation6 + $0x48] sm:$0xff] }
 0x459   : > { %4387 = vmatprep.subr.bf16.mxu1 %v4386_v36  ;;  %4451 = vmatprep.subr.bf16.mxu0 %v4450_v16  ;;  %v4470_v36 = vpack.c.bf16 %v2462_v28, %v2444_v6  ;;  %v2443_v16 = vld [vmem:[#allocation6 + $0xc90] sm:$0xff]  ;;  %v4408_v44 = vpack.c.bf16 %v2459_v38, %v2441_v34  ;;  %v2605_v2 = vld [vmem:[#allocation6 + $0x11a0] sm:$0xff]  ;;  %v2070_v6 = vld [vmem:[#allocation6 + $0xe8] sm:$0xff] }
 0x45a   : > { %v4554_v34 = vpack.c.bf16 %v2070_v6, %v2052_v27  ;;  %v2049_v38 = vld [vmem:[#allocation6 + $0x40] sm:$0xff]  ;;  %v2250_v27 = vld [vmem:[#allocation6 + $0x688] sm:$0xff] }
 0x45c   : > { %4389 = vmatpush1.bf16.msra.mxu1 %v4388_v45  ;;  %4453 = vmatpush1.bf16.msra.mxu0 %v4452_v46  ;;  %v4472_v45 = vpack.c.bf16 %v2461_v40, %v2443_v16  ;;  %v2477_v46 = vld [vmem:[#allocation6 + $0xda0] sm:$0xff]  ;;  %v2086_v40 = vld [vmem:[#allocation6 + $0x168] sm:$0xff] }
 0x45d   : > { %4391 = vmatprep.subr.bf16.mxu1 %v4390_v50  ;;  %4455 = vmatprep.subr.bf16.mxu0 %v4454_v52  ;;  %v4474_v50 = vpack.c.bf16 %v2498_v43, %v2480_v42  ;;  %v2479_v52 = vld [vmem:[#allocation6 + $0xdb0] sm:$0xff]  ;;  %v4412_v58 = vpack.c.bf16 %v2495_v49, %v2477_v46  ;;  %v2069_v16 = vld [vmem:[#allocation6 + $0xe0] sm:$0xff]  ;;  %v2106_v42 = vld [vmem:[#allocation6 + $0x208] sm:$0xff] }
 0x45e   : > { %v2103_v46 = vld [vmem:[#allocation6 + $0x1f0] sm:$0xff] }
 0x45f   : > { %v2087_v49 = vld [vmem:[#allocation6 + $0x170] sm:$0xff] }
 0x460   : > { %4393 = vmatpush1.bf16.msra.mxu1 %v4392_v59  ;;  %4457 = vmatpush1.bf16.msra.mxu0 %v4456_v60  ;;  %v4476_v59 = vpack.c.bf16 %v2497_v53, %v2479_v52  ;;  %v2513_v60 = vld [vmem:[#allocation6 + $0xec0] sm:$0xff]  ;;  %v2122_v53 = vld [vmem:[#allocation6 + $0x288] sm:$0xff] }
 0x461   : > { %4395 = vmatprep.subr.bf16.mxu1 %v4394_v63  ;;  %4459 = vmatprep.subr.bf16.mxu0 %v4458_v0  ;;  %v4478_v63 = vpack.c.bf16 %v2534_v57, %v2516_v56  ;;  %v2515_v0 = vld [vmem:[#allocation6 + $0xed0] sm:$0xff]  ;;  %v4416_v9 = vpack.c.bf16 %v2531_v61, %v2513_v60  ;;  %v2105_v52 = vld [vmem:[#allocation6 + $0x200] sm:$0xff]  ;;  %v2142_v56 = vld [vmem:[#allocation6 + $0x328] sm:$0xff] }
 0x462   : > { %v2121_v60 = vld [vmem:[#allocation6 + $0x280] sm:$0xff]  ;;  %v2139_v61 = vld [vmem:[#allocation6 + $0x310] sm:$0xff] }
 0x464   : > { %4397 = vmatpush1.bf16.msra.mxu1 %v4396_v10  ;;  %4461 = vmatpush1.bf16.msra.mxu0 %v4460_v11  ;;  %v4480_v10 = vpack.c.bf16 %v2533_v1, %v2515_v0  ;;  %v2549_v11 = vld [vmem:[#allocation6 + $0xfe0] sm:$0xff]  ;;  %v2158_v1 = vld [vmem:[#allocation6 + $0x3a8] sm:$0xff] }
 0x465   : > { %4399 = vmatprep.subr.bf16.mxu1 %v4398_v14  ;;  %4463 = vmatprep.subr.bf16.mxu0 %v4462_v47  ;;  %v4482_v14 = vpack.c.bf16 %v2570_v8, %v2552_v7  ;;  %v2551_v47 = vld [vmem:[#allocation6 + $0xff0] sm:$0xff]  ;;  %v4420_v19 = vpack.c.bf16 %v2567_v12, %v2549_v11  ;;  %v2141_v0 = vld [vmem:[#allocation6 + $0x320] sm:$0xff]  ;;  %v2178_v7 = vld [vmem:[#allocation6 + $0x448] sm:$0xff]  ;;  %v4500_v8 = vpack.c.bf16 %v2139_v61, %v2121_v60 }
 0x466   : > { %v2157_v11 = vld [vmem:[#allocation6 + $0x3a0] sm:$0xff]  ;;  %v2175_v12 = vld [vmem:[#allocation6 + $0x430] sm:$0xff] }
 0x467   : > { %v2319_v60 = vld [vmem:[#allocation6 + $0x8b0] sm:$0xff] }
 0x468   : > { %4401 = vmatpush1.bf16.msra.mxu1 %v4400_v15  ;;  %4465 = vmatpush1.bf16.msra.mxu0 %v4464_v21  ;;  %v4484_v15 = vpack.c.bf16 %v2569_v51, %v2551_v47  ;;  %v2585_v21 = vld [vmem:[#allocation6 + $0x1100] sm:$0xff]  ;;  %v2194_v51 = vld [vmem:[#allocation6 + $0x4c8] sm:$0xff]  ;;  %v2303_v61 = vld [vmem:[#allocation6 + $0x830] sm:$0xff] }
 0x469   : > { %4403 = vmatprep.subr.bf16.mxu1 %v4402_v29  ;;  %4467 = vmatprep.subr.bf16.mxu0 %v4466_v24  ;;  %v4486_v29 = vpack.c.bf16 %v2606_v4, %v2588_v18  ;;  %v2587_v24 = vld [vmem:[#allocation6 + $0x1110] sm:$0xff]  ;;  %v4424_v28 = vpack.c.bf16 %v2603_v20, %v2585_v21  ;;  %v2177_v47 = vld [vmem:[#allocation6 + $0x440] sm:$0xff]  ;;  %v2214_v18 = vld [vmem:[#allocation6 + $0x568] sm:$0xff]  ;;  %v4504_v4 = vpack.c.bf16 %v2175_v12, %v2157_v11 }
 0x46a   : > { %v2193_v21 = vld [vmem:[#allocation6 + $0x4c0] sm:$0xff]  ;;  %v2211_v20 = vld [vmem:[#allocation6 + $0x550] sm:$0xff] }
 0x46b   : > { %v4508_v6 = vpack.c.bf16 %v2211_v20, %v2193_v21  ;;  %v2355_v11 = vld [vmem:[#allocation6 + $0x9d0] sm:$0xff] }
 0x46c   : > { %4405 = vmatpush1.bf16.msra.mxu1 %v4404_v30  ;;  %4469 = vmatpush1.bf16.msra.mxu0 %v4468_v31  ;;  %v4488_v30 = vpack.c.bf16 %v2605_v2, %v2587_v24  ;;  %v4490_v31 = vpack.c.bf16 %v2068_v26, %v2050_v25  ;;  %v2213_v24 = vld [vmem:[#allocation6 + $0x560] sm:$0xff]  ;;  %v2230_v2 = vld [vmem:[#allocation6 + $0x5e8] sm:$0xff]  ;;  %v2248_v25 = vld [vmem:[#allocation6 + $0x678] sm:$0xff] }
 0x46d   : > { %4407 = vmatprep.subr.bf16.mxu1 %v4406_v35  ;;  %4471 = vmatprep.subr.bf16.mxu0 %v4470_v36  ;;  %v2067_v35 = vld [vmem:[#allocation6 + $0xd0] sm:$0xff]  ;;  %v2232_v26 = vld [vmem:[#allocation6 + $0x5f8] sm:$0xff] }
 0x46e   : > { %v2051_v36 = vld [vmem:[#allocation6 + $0x50] sm:$0xff]  ;;  %v4492_v43 = vpack.c.bf16 %v2067_v35, %v2049_v38  ;;  %v4574_v35 = vpack.c.bf16 %v2250_v27, %v2232_v26  ;;  %v2430_v26 = vld [vmem:[#allocation6 + $0xc28] sm:$0xff] }
 0x46f   : > { %v2231_v38 = vld [vmem:[#allocation6 + $0x5f0] sm:$0xff] }
 0x470   : > { %4409 = vmatpush1.bf16.msra.mxu1 %v4408_v44  ;;  %4473 = vmatpush1.bf16.msra.mxu0 %v4472_v45  ;;  %v4556_v44 = vpack.c.bf16 %v2069_v16, %v2051_v36  ;;  %v2085_v45 = vld [vmem:[#allocation6 + $0x160] sm:$0xff]  ;;  %v2266_v16 = vld [vmem:[#allocation6 + $0x708] sm:$0xff]  ;;  %v2339_v12 = vld [vmem:[#allocation6 + $0x950] sm:$0xff] }
 0x471   : > { %4411 = vmatprep.subr.bf16.mxu1 %v4410_v37  ;;  %4475 = vmatprep.subr.bf16.mxu0 %v4474_v50  ;;  %v4494_v37 = vpack.c.bf16 %v2104_v41, %v2086_v40  ;;  %v4558_v50 = vpack.c.bf16 %v2106_v42, %v2088_v23  ;;  %v4496_v57 = vpack.c.bf16 %v2103_v46, %v2085_v45  ;;  %v2249_v36 = vld [vmem:[#allocation6 + $0x680] sm:$0xff]  ;;  %v2284_v40 = vld [vmem:[#allocation6 + $0x798] sm:$0xff]  ;;  %v2286_v23 = vld [vmem:[#allocation6 + $0x7a8] sm:$0xff] }
 0x472   : > { %v2268_v41 = vld [vmem:[#allocation6 + $0x718] sm:$0xff]  ;;  %v2265_v45 = vld [vmem:[#allocation6 + $0x700] sm:$0xff]  ;;  %v2283_v46 = vld [vmem:[#allocation6 + $0x790] sm:$0xff] }
 0x473   : > { %v2391_v21 = vld [vmem:[#allocation6 + $0xaf0] sm:$0xff] }
 0x474   : > { %4413 = vmatpush1.bf16.msra.mxu1 %v4412_v58  ;;  %4477 = vmatpush1.bf16.msra.mxu0 %v4476_v59  ;;  %v4560_v58 = vpack.c.bf16 %v2105_v52, %v2087_v49  ;;  %v4498_v59 = vpack.c.bf16 %v2140_v54, %v2122_v53  ;;  %v2267_v49 = vld [vmem:[#allocation6 + $0x710] sm:$0xff]  ;;  %v2302_v52 = vld [vmem:[#allocation6 + $0x828] sm:$0xff]  ;;  %v2320_v53 = vld [vmem:[#allocation6 + $0x8b8] sm:$0xff] }
 0x475   : > { %4415 = vmatprep.subr.bf16.mxu1 %v4414_v62  ;;  %4479 = vmatprep.subr.bf16.mxu0 %v4478_v63  ;;  %v2123_v62 = vld [vmem:[#allocation6 + $0x290] sm:$0xff]  ;;  %v4562_v63 = vpack.c.bf16 %v2142_v56, %v2124_v55  ;;  %v2304_v54 = vld [vmem:[#allocation6 + $0x838] sm:$0xff]  ;;  %v2322_v55 = vld [vmem:[#allocation6 + $0x8c8] sm:$0xff]  ;;  %v4516_v56 = vpack.c.bf16 %v2283_v46, %v2265_v45 }
 0x476   : > { %v2375_v20 = vld [vmem:[#allocation6 + $0xa70] sm:$0xff] }
 0x477   : > { %v2463_v45 = vld [vmem:[#allocation6 + $0xd30] sm:$0xff] }
 0x478   : > { %4417 = vmatpush1.bf16.msra.mxu1 %v4416_v9  ;;  %4481 = vmatpush1.bf16.msra.mxu0 %v4480_v10  ;;  %v4564_v9 = vpack.c.bf16 %v2141_v0, %v2123_v62  ;;  %v4502_v10 = vpack.c.bf16 %v2176_v3, %v2158_v1  ;;  %v4582_v62 = vpack.c.bf16 %v2322_v55, %v2304_v54  ;;  %v2338_v0 = vld [vmem:[#allocation6 + $0x948] sm:$0xff]  ;;  %v2356_v1 = vld [vmem:[#allocation6 + $0x9d8] sm:$0xff]  ;;  %v2447_v46 = vld [vmem:[#allocation6 + $0xcb0] sm:$0xff] }
 0x479   : > { %4419 = vmatprep.subr.bf16.mxu1 %v4418_v13  ;;  %4483 = vmatprep.subr.bf16.mxu0 %v4482_v14  ;;  %v2159_v13 = vld [vmem:[#allocation6 + $0x3b0] sm:$0xff]  ;;  %v4566_v14 = vpack.c.bf16 %v2178_v7, %v2160_v5  ;;  %v2340_v3 = vld [vmem:[#allocation6 + $0x958] sm:$0xff]  ;;  %v2358_v5 = vld [vmem:[#allocation6 + $0x9e8] sm:$0xff] }
 0x47a   : > { %v2502_v54 = vld [vmem:[#allocation6 + $0xe68] sm:$0xff] }
 0x47c   : > { %4421 = vmatpush1.bf16.msra.mxu1 %v4420_v19  ;;  %4485 = vmatpush1.bf16.msra.mxu0 %v4484_v15  ;;  %v4568_v19 = vpack.c.bf16 %v2177_v47, %v2159_v13  ;;  %v4506_v15 = vpack.c.bf16 %v2212_v17, %v2194_v51  ;;  %v4586_v13 = vpack.c.bf16 %v2358_v5, %v2340_v3  ;;  %v2374_v47 = vld [vmem:[#allocation6 + $0xa68] sm:$0xff]  ;;  %v2392_v51 = vld [vmem:[#allocation6 + $0xaf8] sm:$0xff] }
 0x47d   : > { %4423 = vmatprep.subr.bf16.mxu1 %v4422_v22  ;;  %4487 = vmatprep.subr.bf16.mxu0 %v4486_v29  ;;  %v2195_v22 = vld [vmem:[#allocation6 + $0x4d0] sm:$0xff]  ;;  %v4570_v29 = vpack.c.bf16 %v2214_v18, %v2196_v48  ;;  %v2376_v17 = vld [vmem:[#allocation6 + $0xa78] sm:$0xff]  ;;  %v2394_v48 = vld [vmem:[#allocation6 + $0xb08] sm:$0xff] }
 0x47e   : > { %v2538_v3 = vld [vmem:[#allocation6 + $0xf88] sm:$0xff] }
 0x480   : > { %4425 = vmatpush1.bf16.msra.mxu1 %v4424_v28  ;;  %4489 = vmatpush1.bf16.msra.mxu0 %v4488_v30  ;;  %v4572_v28 = vpack.c.bf16 %v2213_v24, %v2195_v22  ;;  %v4510_v30 = vpack.c.bf16 %v2248_v25, %v2230_v2  ;;  %v4590_v22 = vpack.c.bf16 %v2394_v48, %v2376_v17  ;;  %v2410_v24 = vld [vmem:[#allocation6 + $0xb88] sm:$0xff]  ;;  %v2428_v2 = vld [vmem:[#allocation6 + $0xc18] sm:$0xff] }
 0x481   : > { %4491 = vmatprep.subr.bf16.mxu1 %v4490_v31  ;;  %4555 = vmatprep.subr.bf16.mxu0 %v4554_v34  ;;  %v2229_v31 = vld [vmem:[#allocation6 + $0x5e0] sm:$0xff]  ;;  %v2247_v34 = vld [vmem:[#allocation6 + $0x670] sm:$0xff]  ;;  %v2412_v25 = vld [vmem:[#allocation6 + $0xb98] sm:$0xff] }
 0x482   : > { %v4512_v42 = vpack.c.bf16 %v2247_v34, %v2229_v31  ;;  %v2427_v31 = vld [vmem:[#allocation6 + $0xc10] sm:$0xff]  ;;  %v2574_v17 = vld [vmem:[#allocation6 + $0x10a8] sm:$0xff] }
 0x483   : > { %2824 = vmatmul.mubr.f32.vlgmr.msra.gmra.mrb[38].mxu1 %v5338_v39  ;;  %2895 = vmatmul.mubr.f32.vlgmr.msra.gmra.mrb[48].mxu0 %v5338_v39  ;;  %v2411_v34 = vld [vmem:[#allocation6 + $0xb90] sm:$0xff] }
 0x484   : > { %4493 = vmatpush1.bf16.msra.mxu1 %v4492_v43  ;;  %2965 = vmatprep.mubr.f32.mxu1 %v5336_v32  ;;  %v4576_v43 = vpack.c.bf16 %v2249_v36, %v2231_v38  ;;  %v4594_v38 = vpack.c.bf16 %v2430_v26, %v2412_v25  ;;  %v2446_v36 = vld [vmem:[#allocation6 + $0xca8] sm:$0xff] }
 0x485   : > { %4557 = vmatpush1.bf16.msra.mxu0 %v4556_v44  ;;  %3036 = vmatprep.mubr.f32.mxu0 %v5336_v32  ;;  %v4514_v44 = vpack.c.bf16 %v2284_v40, %v2266_v16  ;;  %v2464_v16 = vld [vmem:[#allocation6 + $0xd38] sm:$0xff]  ;;  %v2610_v25 = vld [vmem:[#allocation6 + $0x11c8] sm:$0xff] }
 0x486   : > { %4495 = vmatprep.subr.bf16.mxu1 %v4494_v37  ;;  %4559 = vmatprep.subr.bf16.mxu0 %v4558_v50  ;;  %v4578_v37 = vpack.c.bf16 %v2286_v23, %v2268_v41  ;;  %v2285_v50 = vld [vmem:[#allocation6 + $0x7a0] sm:$0xff]  ;;  %v2448_v40 = vld [vmem:[#allocation6 + $0xcb8] sm:$0xff]  ;;  %v2466_v41 = vld [vmem:[#allocation6 + $0xd48] sm:$0xff] }
 0x488   : > { %4497 = vmatpush1.bf16.msra.mxu1 %v4496_v57  ;;  %v4580_v57 = vpack.c.bf16 %v2285_v50, %v2267_v49  ;;  %v4598_v49 = vpack.c.bf16 %v2466_v41, %v2448_v40  ;;  %v2482_v50 = vld [vmem:[#allocation6 + $0xdc8] sm:$0xff] }
 0x489   : > { %4561 = vmatpush1.bf16.msra.mxu0 %v4560_v58  ;;  %4499 = vmatprep.subr.bf16.mxu1 %v4498_v59  ;;  %v4518_v58 = vpack.c.bf16 %v2320_v53, %v2302_v52  ;;  %v2301_v59 = vld [vmem:[#allocation6 + $0x820] sm:$0xff]  ;;  %v2500_v52 = vld [vmem:[#allocation6 + $0xe58] sm:$0xff]  ;;  %v2074_v40 = vld [vmem:[#allocation6 + $0x108] sm:$0xff] }
 0x48a   : > { %4563 = vmatprep.subr.bf16.mxu0 %v4562_v63  ;;  %v2321_v63 = vld [vmem:[#allocation6 + $0x8c0] sm:$0xff]  ;;  %v4520_v7 = vpack.c.bf16 %v2319_v60, %v2301_v59  ;;  %v2484_v53 = vld [vmem:[#allocation6 + $0xdd8] sm:$0xff]  ;;  %v2499_v59 = vld [vmem:[#allocation6 + $0xe50] sm:$0xff] }
 0x48b   : > { %v2483_v60 = vld [vmem:[#allocation6 + $0xdd0] sm:$0xff] }
 0x48c   : > { %4501 = vmatpush1.bf16.msra.mxu1 %v4500_v8  ;;  %v4584_v8 = vpack.c.bf16 %v2321_v63, %v2303_v61  ;;  %v4602_v61 = vpack.c.bf16 %v2502_v54, %v2484_v53  ;;  %v2518_v63 = vld [vmem:[#allocation6 + $0xee8] sm:$0xff]  ;;  %v2092_v53 = vld [vmem:[#allocation6 + $0x198] sm:$0xff] }
 0x48d   : > { %4565 = vmatpush1.bf16.msra.mxu0 %v4564_v9  ;;  %4503 = vmatprep.subr.bf16.mxu1 %v4502_v10  ;;  %v4522_v9 = vpack.c.bf16 %v2356_v1, %v2338_v0  ;;  %v2337_v10 = vld [vmem:[#allocation6 + $0x940] sm:$0xff]  ;;  %v2536_v0 = vld [vmem:[#allocation6 + $0xf78] sm:$0xff]  ;;  %v2110_v54 = vld [vmem:[#allocation6 + $0x228] sm:$0xff] }
 0x48e   : > { %4567 = vmatprep.subr.bf16.mxu0 %v4566_v14  ;;  %v2357_v14 = vld [vmem:[#allocation6 + $0x9e0] sm:$0xff]  ;;  %v4524_v18 = vpack.c.bf16 %v2355_v11, %v2337_v10  ;;  %v2520_v1 = vld [vmem:[#allocation6 + $0xef8] sm:$0xff]  ;;  %v2535_v10 = vld [vmem:[#allocation6 + $0xf70] sm:$0xff] }
 0x48f   : > { %v2519_v11 = vld [vmem:[#allocation6 + $0xef0] sm:$0xff] }
 0x490   : > { %4505 = vmatpush1.bf16.msra.mxu1 %v4504_v4  ;;  %v4588_v4 = vpack.c.bf16 %v2357_v14, %v2339_v12  ;;  %v4606_v12 = vpack.c.bf16 %v2538_v3, %v2520_v1  ;;  %v2554_v14 = vld [vmem:[#allocation6 + $0x1008] sm:$0xff] }
 0x491   : > { %4569 = vmatpush1.bf16.msra.mxu0 %v4568_v19  ;;  %4507 = vmatprep.subr.bf16.mxu1 %v4506_v15  ;;  %v4526_v19 = vpack.c.bf16 %v2392_v51, %v2374_v47  ;;  %v2373_v15 = vld [vmem:[#allocation6 + $0xa60] sm:$0xff]  ;;  %v2572_v47 = vld [vmem:[#allocation6 + $0x1098] sm:$0xff]  ;;  %v2146_v1 = vld [vmem:[#allocation6 + $0x348] sm:$0xff] }
 0x492   : > { %4571 = vmatprep.subr.bf16.mxu0 %v4570_v29  ;;  %v2393_v29 = vld [vmem:[#allocation6 + $0xb00] sm:$0xff]  ;;  %v4528_v27 = vpack.c.bf16 %v2391_v21, %v2373_v15  ;;  %v2556_v51 = vld [vmem:[#allocation6 + $0x1018] sm:$0xff]  ;;  %v2571_v15 = vld [vmem:[#allocation6 + $0x1090] sm:$0xff] }
 0x493   : > { %v2555_v21 = vld [vmem:[#allocation6 + $0x1010] sm:$0xff] }
 0x494   : > { %4509 = vmatpush1.bf16.msra.mxu1 %v4508_v6  ;;  %v4592_v6 = vpack.c.bf16 %v2393_v29, %v2375_v20  ;;  %v4610_v20 = vpack.c.bf16 %v2574_v17, %v2556_v51  ;;  %v2590_v29 = vld [vmem:[#allocation6 + $0x1128] sm:$0xff] }
 0x495   : > { %4573 = vmatpush1.bf16.msra.mxu0 %v4572_v28  ;;  %4511 = vmatprep.subr.bf16.mxu1 %v4510_v30  ;;  %v4530_v28 = vpack.c.bf16 %v2428_v2, %v2410_v24  ;;  %v2409_v30 = vld [vmem:[#allocation6 + $0xb80] sm:$0xff]  ;;  %v2608_v24 = vld [vmem:[#allocation6 + $0x11b8] sm:$0xff]  ;;  %v2182_v51 = vld [vmem:[#allocation6 + $0x468] sm:$0xff] }
 0x496   : > { %4575 = vmatprep.subr.bf16.mxu0 %v4574_v35  ;;  %v2429_v35 = vld [vmem:[#allocation6 + $0xc20] sm:$0xff]  ;;  %v4532_v23 = vpack.c.bf16 %v2427_v31, %v2409_v30  ;;  %v2592_v2 = vld [vmem:[#allocation6 + $0x1138] sm:$0xff]  ;;  %v2607_v30 = vld [vmem:[#allocation6 + $0x11b0] sm:$0xff] }
 0x497   : > { %v2591_v31 = vld [vmem:[#allocation6 + $0x1130] sm:$0xff] }
 0x498   : > { %4513 = vmatpush1.bf16.msra.mxu1 %v4512_v42  ;;  %v4596_v42 = vpack.c.bf16 %v2429_v35, %v2411_v34  ;;  %v4614_v34 = vpack.c.bf16 %v2610_v25, %v2592_v2  ;;  %v2054_v35 = vld [vmem:[#allocation6 + $0x68] sm:$0xff] }
 0x499   : > { %4577 = vmatpush1.bf16.msra.mxu0 %v4576_v43  ;;  %4515 = vmatprep.subr.bf16.mxu1 %v4514_v44  ;;  %v4534_v43 = vpack.c.bf16 %v2464_v16, %v2446_v36  ;;  %v2445_v44 = vld [vmem:[#allocation6 + $0xca0] sm:$0xff]  ;;  %v2072_v36 = vld [vmem:[#allocation6 + $0xf8] sm:$0xff]  ;;  %v2218_v2 = vld [vmem:[#allocation6 + $0x588] sm:$0xff] }
 0x49a   : > { %4579 = vmatprep.subr.bf16.mxu0 %v4578_v37  ;;  %v2465_v37 = vld [vmem:[#allocation6 + $0xd40] sm:$0xff]  ;;  %v4536_v55 = vpack.c.bf16 %v2463_v45, %v2445_v44  ;;  %v2056_v16 = vld [vmem:[#allocation6 + $0x78] sm:$0xff]  ;;  %v2071_v44 = vld [vmem:[#allocation6 + $0xf0] sm:$0xff] }
 0x49b   : > { %v4682_v45 = vpack.c.bf16 %v2074_v40, %v2056_v16  ;;  %v2254_v16 = vld [vmem:[#allocation6 + $0x6a8] sm:$0xff] }
 0x49c   : > { %4517 = vmatpush1.bf16.msra.mxu1 %v4516_v56  ;;  %v4600_v56 = vpack.c.bf16 %v2465_v37, %v2447_v46  ;;  %v2055_v46 = vld [vmem:[#allocation6 + $0x70] sm:$0xff]  ;;  %v2090_v37 = vld [vmem:[#allocation6 + $0x188] sm:$0xff] }
 0x49d   : > { %4581 = vmatpush1.bf16.msra.mxu0 %v4580_v57  ;;  %4519 = vmatprep.subr.bf16.mxu1 %v4518_v58  ;;  %v4538_v57 = vpack.c.bf16 %v2500_v52, %v2482_v50  ;;  %v2481_v58 = vld [vmem:[#allocation6 + $0xdc0] sm:$0xff]  ;;  %v2108_v50 = vld [vmem:[#allocation6 + $0x218] sm:$0xff] }
 0x49e   : > { %4583 = vmatprep.subr.bf16.mxu0 %v4582_v62  ;;  %v2501_v62 = vld [vmem:[#allocation6 + $0xe60] sm:$0xff]  ;;  %v4540_v5 = vpack.c.bf16 %v2499_v59, %v2481_v58  ;;  %v2091_v58 = vld [vmem:[#allocation6 + $0x190] sm:$0xff]  ;;  %v4622_v59 = vpack.c.bf16 %v2108_v50, %v2090_v37  ;;  %v2288_v37 = vld [vmem:[#allocation6 + $0x7b8] sm:$0xff] }
 0x49f   : > { %v2272_v50 = vld [vmem:[#allocation6 + $0x738] sm:$0xff] }
 0x4a0   : > { %4521 = vmatpush1.bf16.msra.mxu1 %v4520_v7  ;;  %v4604_v7 = vpack.c.bf16 %v2501_v62, %v2483_v60  ;;  %v2109_v60 = vld [vmem:[#allocation6 + $0x220] sm:$0xff]  ;;  %v2144_v62 = vld [vmem:[#allocation6 + $0x338] sm:$0xff] }
 0x4a1   : > { %4585 = vmatpush1.bf16.msra.mxu0 %v4584_v8  ;;  %4523 = vmatprep.subr.bf16.mxu1 %v4522_v9  ;;  %v4542_v8 = vpack.c.bf16 %v2536_v0, %v2518_v63  ;;  %v2517_v9 = vld [vmem:[#allocation6 + $0xee0] sm:$0xff]  ;;  %v4686_v63 = vpack.c.bf16 %v2110_v54, %v2092_v53  ;;  %v2128_v0 = vld [vmem:[#allocation6 + $0x2b8] sm:$0xff] }
 0x4a2   : > { %4587 = vmatprep.subr.bf16.mxu0 %v4586_v13  ;;  %v2537_v13 = vld [vmem:[#allocation6 + $0xf80] sm:$0xff]  ;;  %v4544_v48 = vpack.c.bf16 %v2535_v10, %v2517_v9  ;;  %v2143_v9 = vld [vmem:[#allocation6 + $0x330] sm:$0xff] }
 0x4a3   : > { %v2127_v10 = vld [vmem:[#allocation6 + $0x2b0] sm:$0xff] }
 0x4a4   : > { %4525 = vmatpush1.bf16.msra.mxu1 %v4524_v18  ;;  %v4608_v18 = vpack.c.bf16 %v2537_v13, %v2519_v11  ;;  %v4690_v11 = vpack.c.bf16 %v2146_v1, %v2128_v0  ;;  %v2162_v13 = vld [vmem:[#allocation6 + $0x3c8] sm:$0xff] }
 0x4a5   : > { %4589 = vmatpush1.bf16.msra.mxu0 %v4588_v4  ;;  %4527 = vmatprep.subr.bf16.mxu1 %v4526_v19  ;;  %v4546_v4 = vpack.c.bf16 %v2572_v47, %v2554_v14  ;;  %v2553_v19 = vld [vmem:[#allocation6 + $0x1000] sm:$0xff]  ;;  %v2180_v14 = vld [vmem:[#allocation6 + $0x458] sm:$0xff]  ;;  %v2326_v0 = vld [vmem:[#allocation6 + $0x8e8] sm:$0xff] }
 0x4a6   : > { %4591 = vmatprep.subr.bf16.mxu0 %v4590_v22  ;;  %v2573_v22 = vld [vmem:[#allocation6 + $0x10a0] sm:$0xff]  ;;  %v4548_v26 = vpack.c.bf16 %v2571_v15, %v2553_v19  ;;  %v2164_v47 = vld [vmem:[#allocation6 + $0x3d8] sm:$0xff]  ;;  %v2179_v19 = vld [vmem:[#allocation6 + $0x450] sm:$0xff] }
 0x4a7   : > { %v2163_v15 = vld [vmem:[#allocation6 + $0x3d0] sm:$0xff] }
 0x4a8   : > { %4529 = vmatpush1.bf16.msra.mxu1 %v4528_v27  ;;  %v4612_v27 = vpack.c.bf16 %v2573_v22, %v2555_v21  ;;  %v4694_v21 = vpack.c.bf16 %v2182_v51, %v2164_v47  ;;  %v2198_v22 = vld [vmem:[#allocation6 + $0x4e8] sm:$0xff] }
 0x4a9   : > { %4593 = vmatpush1.bf16.msra.mxu0 %v4592_v6  ;;  %4531 = vmatprep.subr.bf16.mxu1 %v4530_v28  ;;  %v4550_v6 = vpack.c.bf16 %v2608_v24, %v2590_v29  ;;  %v2589_v28 = vld [vmem:[#allocation6 + $0x1120] sm:$0xff]  ;;  %v2216_v29 = vld [vmem:[#allocation6 + $0x578] sm:$0xff]  ;;  %v2362_v47 = vld [vmem:[#allocation6 + $0xa08] sm:$0xff] }
 0x4aa   : > { %4595 = vmatprep.subr.bf16.mxu0 %v4594_v38  ;;  %v2609_v38 = vld [vmem:[#allocation6 + $0x11c0] sm:$0xff]  ;;  %v4552_v41 = vpack.c.bf16 %v2607_v30, %v2589_v28  ;;  %v2200_v24 = vld [vmem:[#allocation6 + $0x4f8] sm:$0xff]  ;;  %v2215_v28 = vld [vmem:[#allocation6 + $0x570] sm:$0xff] }
 0x4ab   : > { %v2199_v30 = vld [vmem:[#allocation6 + $0x4f0] sm:$0xff] }
 0x4ac   : > { %4533 = vmatpush1.bf16.msra.mxu1 %v4532_v23  ;;  %v4616_v23 = vpack.c.bf16 %v2609_v38, %v2591_v31  ;;  %v4698_v31 = vpack.c.bf16 %v2218_v2, %v2200_v24  ;;  %v2234_v38 = vld [vmem:[#allocation6 + $0x608] sm:$0xff] }
 0x4ad   : > { %4597 = vmatpush1.bf16.msra.mxu0 %v4596_v42  ;;  %4535 = vmatprep.subr.bf16.mxu1 %v4534_v43  ;;  %v4618_v42 = vpack.c.bf16 %v2072_v36, %v2054_v35  ;;  %v2053_v43 = vld [vmem:[#allocation6 + $0x60] sm:$0xff]  ;;  %v2252_v35 = vld [vmem:[#allocation6 + $0x698] sm:$0xff]  ;;  %v2398_v24 = vld [vmem:[#allocation6 + $0xb28] sm:$0xff] }
 0x4ae   : > { %4599 = vmatprep.subr.bf16.mxu0 %v4598_v49  ;;  %v2073_v49 = vld [vmem:[#allocation6 + $0x100] sm:$0xff]  ;;  %v4620_v52 = vpack.c.bf16 %v2071_v44, %v2053_v43  ;;  %v2236_v36 = vld [vmem:[#allocation6 + $0x618] sm:$0xff]  ;;  %v2251_v43 = vld [vmem:[#allocation6 + $0x690] sm:$0xff] }
 0x4af   : > { %v2235_v44 = vld [vmem:[#allocation6 + $0x610] sm:$0xff] }
 0x4b0   : > { %4537 = vmatpush1.bf16.msra.mxu1 %v4536_v55  ;;  %v4684_v55 = vpack.c.bf16 %v2073_v49, %v2055_v46  ;;  %v2253_v46 = vld [vmem:[#allocation6 + $0x6a0] sm:$0xff]  ;;  %v2270_v49 = vld [vmem:[#allocation6 + $0x728] sm:$0xff] }
 0x4b1   : > { %4601 = vmatpush1.bf16.msra.mxu0 %v4600_v56  ;;  %4539 = vmatprep.subr.bf16.mxu1 %v4538_v57  ;;  %v2089_v56 = vld [vmem:[#allocation6 + $0x180] sm:$0xff]  ;;  %v2107_v57 = vld [vmem:[#allocation6 + $0x210] sm:$0xff]  ;;  %v4704_v54 = vpack.c.bf16 %v2253_v46, %v2235_v44  ;;  %v2450_v46 = vld [vmem:[#allocation6 + $0xcc8] sm:$0xff] }
 0x4b2   : > { %4603 = vmatprep.subr.bf16.mxu0 %v4602_v61  ;;  %v2126_v61 = vld [vmem:[#allocation6 + $0x2a8] sm:$0xff]  ;;  %v4624_v3 = vpack.c.bf16 %v2107_v57, %v2089_v56  ;;  %v2269_v56 = vld [vmem:[#allocation6 + $0x720] sm:$0xff]  ;;  %v2287_v57 = vld [vmem:[#allocation6 + $0x7b0] sm:$0xff] }
 0x4b3   : > { %v4644_v1 = vpack.c.bf16 %v2287_v57, %v2269_v56  ;;  %v2467_v56 = vld [vmem:[#allocation6 + $0xd50] sm:$0xff] }
 0x4b4   : > { %4541 = vmatpush1.bf16.msra.mxu1 %v4540_v5  ;;  %v4688_v5 = vpack.c.bf16 %v2109_v60, %v2091_v58  ;;  %v2271_v58 = vld [vmem:[#allocation6 + $0x730] sm:$0xff]  ;;  %v2289_v60 = vld [vmem:[#allocation6 + $0x7c0] sm:$0xff] }
 0x4b5   : > { %4605 = vmatpush1.bf16.msra.mxu0 %v4604_v7  ;;  %4543 = vmatprep.subr.bf16.mxu1 %v4542_v8  ;;  %v4626_v7 = vpack.c.bf16 %v2144_v62, %v2126_v61  ;;  %v2125_v8 = vld [vmem:[#allocation6 + $0x2a0] sm:$0xff]  ;;  %v2306_v61 = vld [vmem:[#allocation6 + $0x848] sm:$0xff]  ;;  %v2324_v62 = vld [vmem:[#allocation6 + $0x8d8] sm:$0xff] }
 0x4b6   : > { %4607 = vmatprep.subr.bf16.mxu0 %v4606_v12  ;;  %v2145_v12 = vld [vmem:[#allocation6 + $0x340] sm:$0xff]  ;;  %v4628_v17 = vpack.c.bf16 %v2143_v9, %v2125_v8  ;;  %v2323_v8 = vld [vmem:[#allocation6 + $0x8d0] sm:$0xff] }
 0x4b7   : > { %v2307_v9 = vld [vmem:[#allocation6 + $0x850] sm:$0xff] }
 0x4b8   : > { %4545 = vmatpush1.bf16.msra.mxu1 %v4544_v48  ;;  %v4692_v48 = vpack.c.bf16 %v2145_v12, %v2127_v10  ;;  %v2342_v12 = vld [vmem:[#allocation6 + $0x968] sm:$0xff]  ;;  %v2451_v57 = vld [vmem:[#allocation6 + $0xcd0] sm:$0xff] }
 0x4b9   : > { %4609 = vmatpush1.bf16.msra.mxu0 %v4608_v18  ;;  %4547 = vmatprep.subr.bf16.mxu1 %v4546_v4  ;;  %v4630_v18 = vpack.c.bf16 %v2180_v14, %v2162_v13  ;;  %v2161_v4 = vld [vmem:[#allocation6 + $0x3c0] sm:$0xff]  ;;  %v2360_v13 = vld [vmem:[#allocation6 + $0x9f8] sm:$0xff] }
 0x4ba   : > { %4611 = vmatprep.subr.bf16.mxu0 %v4610_v20  ;;  %v2181_v20 = vld [vmem:[#allocation6 + $0x460] sm:$0xff]  ;;  %v4632_v25 = vpack.c.bf16 %v2179_v19, %v2161_v4  ;;  %v2344_v14 = vld [vmem:[#allocation6 + $0x978] sm:$0xff]  ;;  %v2359_v4 = vld [vmem:[#allocation6 + $0x9f0] sm:$0xff] }
 0x4bb   : > { %v2343_v19 = vld [vmem:[#allocation6 + $0x970] sm:$0xff] }
 0x4bc   : > { %4549 = vmatpush1.bf16.msra.mxu1 %v4548_v26  ;;  %v4696_v26 = vpack.c.bf16 %v2181_v20, %v2163_v15  ;;  %v4714_v15 = vpack.c.bf16 %v2362_v47, %v2344_v14  ;;  %v2378_v20 = vld [vmem:[#allocation6 + $0xa88] sm:$0xff] }
 0x4bd   : > { %4613 = vmatpush1.bf16.msra.mxu0 %v4612_v27  ;;  %4551 = vmatprep.subr.bf16.mxu1 %v4550_v6  ;;  %v4634_v27 = vpack.c.bf16 %v2216_v29, %v2198_v22  ;;  %v2197_v6 = vld [vmem:[#allocation6 + $0x4e0] sm:$0xff]  ;;  %v2396_v22 = vld [vmem:[#allocation6 + $0xb18] sm:$0xff]  ;;  %v2542_v14 = vld [vmem:[#allocation6 + $0xfa8] sm:$0xff] }
 0x4be   : > { %4615 = vmatprep.subr.bf16.mxu0 %v4614_v34  ;;  %v2217_v34 = vld [vmem:[#allocation6 + $0x580] sm:$0xff]  ;;  %v4636_v40 = vpack.c.bf16 %v2215_v28, %v2197_v6  ;;  %v2380_v29 = vld [vmem:[#allocation6 + $0xa98] sm:$0xff]  ;;  %v2395_v6 = vld [vmem:[#allocation6 + $0xb10] sm:$0xff] }
 0x4bf   : > { %v2379_v28 = vld [vmem:[#allocation6 + $0xa90] sm:$0xff] }
 0x4c0   : > { %4553 = vmatpush1.bf16.msra.mxu1 %v4552_v41  ;;  %v4700_v41 = vpack.c.bf16 %v2217_v34, %v2199_v30  ;;  %v4718_v30 = vpack.c.bf16 %v2398_v24, %v2380_v29  ;;  %v2414_v34 = vld [vmem:[#allocation6 + $0xba8] sm:$0xff] }
 0x4c1   : > { %4617 = vmatpush1.bf16.msra.mxu0 %v4616_v23  ;;  %4619 = vmatprep.subr.bf16.mxu1 %v4618_v42  ;;  %v4638_v23 = vpack.c.bf16 %v2252_v35, %v2234_v38  ;;  %v2233_v42 = vld [vmem:[#allocation6 + $0x600] sm:$0xff]  ;;  %v2432_v38 = vld [vmem:[#allocation6 + $0xc38] sm:$0xff]  ;;  %v2578_v29 = vld [vmem:[#allocation6 + $0x10c8] sm:$0xff] }
 0x4c2   : > { %4683 = vmatprep.subr.bf16.mxu0 %v4682_v45  ;;  %v4702_v45 = vpack.c.bf16 %v2254_v16, %v2236_v36  ;;  %v4640_v53 = vpack.c.bf16 %v2251_v43, %v2233_v42  ;;  %v2416_v35 = vld [vmem:[#allocation6 + $0xbb8] sm:$0xff]  ;;  %v2434_v36 = vld [vmem:[#allocation6 + $0xc48] sm:$0xff]  ;;  %v2431_v42 = vld [vmem:[#allocation6 + $0xc30] sm:$0xff] }
 0x4c3   : > { %2966 = vmatmul.mubr.f32.vlgmr.msra.gmra.mrb[40].mxu1 %v5338_v39  ;;  %v2415_v43 = vld [vmem:[#allocation6 + $0xbb0] sm:$0xff]  ;;  %v4722_v44 = vpack.c.bf16 %v2434_v36, %v2416_v35  ;;  %v2614_v35 = vld [vmem:[#allocation6 + $0x11e8] sm:$0xff] }
 0x4c4   : > { %3037 = vmatmul.mubr.f32.vlgmr.msra.gmra.mrb[50].mxu0 %v5338_v39  ;;  %4621 = vmatpush1.bf16.msra.mxu1 %v4620_v52  ;;  %v2290_v52 = vld [vmem:[#allocation6 + $0x7c8] sm:$0xff] }
 0x4c5   : > { %3107 = vmatprep.mubr.f32.mxu1 %v5336_v32  ;;  %4685 = vmatpush1.bf16.msra.mxu0 %v4684_v55  ;;  %v4642_v55 = vpack.c.bf16 %v2288_v37, %v2270_v49  ;;  %v2468_v49 = vld [vmem:[#allocation6 + $0xd58] sm:$0xff] }
 0x4c6   : > { %3178 = vmatprep.mubr.f32.mxu0 %v5336_v32  ;;  %4623 = vmatprep.subr.bf16.mxu1 %v4622_v59  ;;  %v4706_v59 = vpack.c.bf16 %v2290_v52, %v2272_v50  ;;  %v2452_v37 = vld [vmem:[#allocation6 + $0xcd8] sm:$0xff]  ;;  %v2470_v50 = vld [vmem:[#allocation6 + $0xd68] sm:$0xff] }
 0x4c7   : > { %4687 = vmatprep.subr.bf16.mxu0 %v4686_v63  ;;  %v2308_v63 = vld [vmem:[#allocation6 + $0x858] sm:$0xff] }
 0x4c8   : > { %4625 = vmatpush1.bf16.msra.mxu1 %v4624_v3  ;;  %v4708_v3 = vpack.c.bf16 %v2289_v60, %v2271_v58  ;;  %v4710_v10 = vpack.c.bf16 %v2326_v0, %v2308_v63  ;;  %v4726_v58 = vpack.c.bf16 %v2470_v50, %v2452_v37  ;;  %v2486_v60 = vld [vmem:[#allocation6 + $0xde8] sm:$0xff] }
 0x4c9   : > { %4689 = vmatpush1.bf16.msra.mxu0 %v4688_v5  ;;  %4627 = vmatprep.subr.bf16.mxu1 %v4626_v7  ;;  %v4646_v5 = vpack.c.bf16 %v2324_v62, %v2306_v61  ;;  %v2305_v7 = vld [vmem:[#allocation6 + $0x840] sm:$0xff]  ;;  %v2504_v61 = vld [vmem:[#allocation6 + $0xe78] sm:$0xff]  ;;  %v2506_v63 = vld [vmem:[#allocation6 + $0xe88] sm:$0xff] }
 0x4ca   : > { %4691 = vmatprep.subr.bf16.mxu0 %v4690_v11  ;;  %v2325_v11 = vld [vmem:[#allocation6 + $0x8e0] sm:$0xff]  ;;  %v4648_v51 = vpack.c.bf16 %v2323_v8, %v2305_v7  ;;  %v2488_v62 = vld [vmem:[#allocation6 + $0xdf8] sm:$0xff]  ;;  %v2503_v7 = vld [vmem:[#allocation6 + $0xe70] sm:$0xff] }
 0x4cb   : > { %v2487_v8 = vld [vmem:[#allocation6 + $0xdf0] sm:$0xff] }
 0x4cc   : > { %4629 = vmatpush1.bf16.msra.mxu1 %v4628_v17  ;;  %v4712_v17 = vpack.c.bf16 %v2325_v11, %v2307_v9  ;;  %v4730_v9 = vpack.c.bf16 %v2506_v63, %v2488_v62  ;;  %v2522_v11 = vld [vmem:[#allocation6 + $0xf08] sm:$0xff] }
 0x4cd   : > { %4693 = vmatpush1.bf16.msra.mxu0 %v4692_v48  ;;  %4631 = vmatprep.subr.bf16.mxu1 %v4630_v18  ;;  %v4650_v48 = vpack.c.bf16 %v2360_v13, %v2342_v12  ;;  %v2341_v18 = vld [vmem:[#allocation6 + $0x960] sm:$0xff]  ;;  %v2540_v12 = vld [vmem:[#allocation6 + $0xf98] sm:$0xff] }
 0x4ce   : > { %4695 = vmatprep.subr.bf16.mxu0 %v4694_v21  ;;  %v2361_v21 = vld [vmem:[#allocation6 + $0xa00] sm:$0xff]  ;;  %v4652_v2 = vpack.c.bf16 %v2359_v4, %v2341_v18  ;;  %v2524_v13 = vld [vmem:[#allocation6 + $0xf18] sm:$0xff]  ;;  %v2539_v18 = vld [vmem:[#allocation6 + $0xf90] sm:$0xff] }
 0x4cf   : > { %v2523_v4 = vld [vmem:[#allocation6 + $0xf10] sm:$0xff] }
 0x4d0   : > { %4633 = vmatpush1.bf16.msra.mxu1 %v4632_v25  ;;  %v4716_v25 = vpack.c.bf16 %v2361_v21, %v2343_v19  ;;  %v4734_v19 = vpack.c.bf16 %v2542_v14, %v2524_v13  ;;  %v2558_v21 = vld [vmem:[#allocation6 + $0x1028] sm:$0xff]  ;;  %v2201_v14 = vld [vmem:[#allocation6 + $0x500] sm:$0xff] }
 0x4d1   : > { %4697 = vmatpush1.bf16.msra.mxu0 %v4696_v26  ;;  %4635 = vmatprep.subr.bf16.mxu1 %v4634_v27  ;;  %v4654_v26 = vpack.c.bf16 %v2396_v22, %v2378_v20  ;;  %v2377_v27 = vld [vmem:[#allocation6 + $0xa80] sm:$0xff]  ;;  %v2576_v20 = vld [vmem:[#allocation6 + $0x10b8] sm:$0xff] }
 0x4d2   : > { %4699 = vmatprep.subr.bf16.mxu0 %v4698_v31  ;;  %v2397_v31 = vld [vmem:[#allocation6 + $0xb20] sm:$0xff]  ;;  %v4656_v16 = vpack.c.bf16 %v2395_v6, %v2377_v27  ;;  %v2560_v22 = vld [vmem:[#allocation6 + $0x1038] sm:$0xff]  ;;  %v2575_v27 = vld [vmem:[#allocation6 + $0x10b0] sm:$0xff] }
 0x4d3   : > { %v2559_v6 = vld [vmem:[#allocation6 + $0x1030] sm:$0xff] }
 0x4d4   : > { %4637 = vmatpush1.bf16.msra.mxu1 %v4636_v40  ;;  %v4720_v40 = vpack.c.bf16 %v2397_v31, %v2379_v28  ;;  %v4738_v28 = vpack.c.bf16 %v2578_v29, %v2560_v22  ;;  %v2594_v31 = vld [vmem:[#allocation6 + $0x1148] sm:$0xff]  ;;  %v2273_v29 = vld [vmem:[#allocation6 + $0x740] sm:$0xff] }
 0x4d5   : > { %4701 = vmatpush1.bf16.msra.mxu0 %v4700_v41  ;;  %4639 = vmatprep.subr.bf16.mxu1 %v4638_v23  ;;  %v4658_v41 = vpack.c.bf16 %v2432_v38, %v2414_v34  ;;  %v2413_v23 = vld [vmem:[#allocation6 + $0xba0] sm:$0xff]  ;;  %v2612_v34 = vld [vmem:[#allocation6 + $0x11d8] sm:$0xff] }
 0x4d6   : > { %4703 = vmatprep.subr.bf16.mxu0 %v4702_v45  ;;  %v2433_v45 = vld [vmem:[#allocation6 + $0xc40] sm:$0xff]  ;;  %v4660_v52 = vpack.c.bf16 %v2431_v42, %v2413_v23  ;;  %v2596_v38 = vld [vmem:[#allocation6 + $0x1158] sm:$0xff]  ;;  %v2611_v23 = vld [vmem:[#allocation6 + $0x11d0] sm:$0xff] }
 0x4d7   : > { %v2595_v42 = vld [vmem:[#allocation6 + $0x1150] sm:$0xff] }
 0x4d8   : > { %4641 = vmatpush1.bf16.msra.mxu1 %v4640_v53  ;;  %v4724_v53 = vpack.c.bf16 %v2433_v45, %v2415_v43  ;;  %v4742_v43 = vpack.c.bf16 %v2614_v35, %v2596_v38  ;;  %v2058_v45 = vld [vmem:[#allocation6 + $0x88] sm:$0xff]  ;;  %v2309_v35 = vld [vmem:[#allocation6 + $0x860] sm:$0xff] }
 0x4d9   : > { %4705 = vmatpush1.bf16.msra.mxu0 %v4704_v54  ;;  %4643 = vmatprep.subr.bf16.mxu1 %v4642_v55  ;;  %v4662_v54 = vpack.c.bf16 %v2468_v49, %v2450_v46  ;;  %v2449_v55 = vld [vmem:[#allocation6 + $0xcc0] sm:$0xff]  ;;  %v2076_v46 = vld [vmem:[#allocation6 + $0x118] sm:$0xff] }
 0x4da   : > { %4707 = vmatprep.subr.bf16.mxu0 %v4706_v59  ;;  %v2469_v59 = vld [vmem:[#allocation6 + $0xd60] sm:$0xff]  ;;  %v4664_v0 = vpack.c.bf16 %v2467_v56, %v2449_v55  ;;  %v4746_v50 = vpack.c.bf16 %v2076_v46, %v2058_v45  ;;  %v2112_v55 = vld [vmem:[#allocation6 + $0x238] sm:$0xff] }
 0x4db   : > { %v2400_v45 = vld [vmem:[#allocation6 + $0xb38] sm:$0xff] }
 0x4dc   : > { %4645 = vmatpush1.bf16.msra.mxu1 %v4644_v1  ;;  %v4728_v1 = vpack.c.bf16 %v2469_v59, %v2451_v57  ;;  %v2111_v59 = vld [vmem:[#allocation6 + $0x230] sm:$0xff] }
 0x4dd   : > { %4709 = vmatpush1.bf16.msra.mxu0 %v4708_v3  ;;  %4647 = vmatprep.subr.bf16.mxu1 %v4646_v5  ;;  %v4666_v3 = vpack.c.bf16 %v2504_v61, %v2486_v60  ;;  %v2485_v5 = vld [vmem:[#allocation6 + $0xde0] sm:$0xff]  ;;  %v2130_v60 = vld [vmem:[#allocation6 + $0x2c8] sm:$0xff]  ;;  %v2148_v61 = vld [vmem:[#allocation6 + $0x358] sm:$0xff] }
 0x4de   : > { %4711 = vmatprep.subr.bf16.mxu0 %v4710_v10  ;;  %v2505_v10 = vld [vmem:[#allocation6 + $0xe80] sm:$0xff]  ;;  %v4668_v47 = vpack.c.bf16 %v2503_v7, %v2485_v5  ;;  %v4754_v63 = vpack.c.bf16 %v2148_v61, %v2130_v60  ;;  %v2184_v5 = vld [vmem:[#allocation6 + $0x478] sm:$0xff] }
 0x4e0   : > { %4649 = vmatpush1.bf16.msra.mxu1 %v4648_v51  ;;  %v4732_v51 = vpack.c.bf16 %v2505_v10, %v2487_v8  ;;  %v2183_v10 = vld [vmem:[#allocation6 + $0x470] sm:$0xff] }
 0x4e1   : > { %4713 = vmatpush1.bf16.msra.mxu0 %v4712_v17  ;;  %4651 = vmatprep.subr.bf16.mxu1 %v4650_v48  ;;  %v4670_v17 = vpack.c.bf16 %v2540_v12, %v2522_v11  ;;  %v2521_v48 = vld [vmem:[#allocation6 + $0xf00] sm:$0xff]  ;;  %v2202_v11 = vld [vmem:[#allocation6 + $0x508] sm:$0xff]  ;;  %v2220_v12 = vld [vmem:[#allocation6 + $0x598] sm:$0xff] }
 0x4e2   : > { %4715 = vmatprep.subr.bf16.mxu0 %v4714_v15  ;;  %v2541_v15 = vld [vmem:[#allocation6 + $0xfa0] sm:$0xff]  ;;  %v4672_v24 = vpack.c.bf16 %v2539_v18, %v2521_v48 }
 0x4e4   : > { %4653 = vmatpush1.bf16.msra.mxu1 %v4652_v2  ;;  %v4736_v2 = vpack.c.bf16 %v2541_v15, %v2523_v4  ;;  %v2237_v4 = vld [vmem:[#allocation6 + $0x620] sm:$0xff]  ;;  %v2274_v15 = vld [vmem:[#allocation6 + $0x748] sm:$0xff] }
 0x4e5   : > { %4717 = vmatpush1.bf16.msra.mxu0 %v4716_v25  ;;  %4655 = vmatprep.subr.bf16.mxu1 %v4654_v26  ;;  %v4674_v25 = vpack.c.bf16 %v2576_v20, %v2558_v21  ;;  %v2557_v26 = vld [vmem:[#allocation6 + $0x1020] sm:$0xff]  ;;  %v2292_v21 = vld [vmem:[#allocation6 + $0x7d8] sm:$0xff] }
 0x4e6   : > { %4719 = vmatprep.subr.bf16.mxu0 %v4718_v30  ;;  %v2577_v30 = vld [vmem:[#allocation6 + $0x10c0] sm:$0xff]  ;;  %v4676_v36 = vpack.c.bf16 %v2575_v27, %v2557_v26  ;;  %v4770_v22 = vpack.c.bf16 %v2292_v21, %v2274_v15  ;;  %v2310_v26 = vld [vmem:[#allocation6 + $0x868] sm:$0xff]  ;;  %v2328_v27 = vld [vmem:[#allocation6 + $0x8f8] sm:$0xff] }
 0x4e7   : > { %v4774_v38 = vpack.c.bf16 %v2328_v27, %v2310_v26 }
 0x4e8   : > { %4657 = vmatpush1.bf16.msra.mxu1 %v4656_v16  ;;  %v4740_v16 = vpack.c.bf16 %v2577_v30, %v2559_v6 }
 0x4e9   : > { %4721 = vmatpush1.bf16.msra.mxu0 %v4720_v40  ;;  %4659 = vmatprep.subr.bf16.mxu1 %v4658_v41  ;;  %v4678_v40 = vpack.c.bf16 %v2612_v34, %v2594_v31  ;;  %v2593_v41 = vld [vmem:[#allocation6 + $0x1140] sm:$0xff] }
 0x4ea   : > { %4723 = vmatprep.subr.bf16.mxu0 %v4722_v44  ;;  %v2613_v44 = vld [vmem:[#allocation6 + $0x11e0] sm:$0xff]  ;;  %v4680_v49 = vpack.c.bf16 %v2611_v23, %v2593_v41 }
 0x4eb   : > { %v4744_v37 = vpack.c.bf16 %v2613_v44, %v2595_v42  ;;  %v2345_v42 = vld [vmem:[#allocation6 + $0x980] sm:$0xff]  ;;  %v2382_v44 = vld [vmem:[#allocation6 + $0xaa8] sm:$0xff] }
 0x4ec   : > { %4661 = vmatpush1.bf16.msra.mxu1 %v4660_v52  ;;  %v2057_v52 = vld [vmem:[#allocation6 + $0x80] sm:$0xff] }
 0x4ed   : > { %4725 = vmatpush1.bf16.msra.mxu0 %v4724_v53  ;;  %4663 = vmatprep.subr.bf16.mxu1 %v4662_v54  ;;  %v2075_v53 = vld [vmem:[#allocation6 + $0x110] sm:$0xff]  ;;  %v2094_v54 = vld [vmem:[#allocation6 + $0x1a8] sm:$0xff] }
 0x4ee   : > { %4727 = vmatprep.subr.bf16.mxu0 %v4726_v58  ;;  %v4748_v56 = vpack.c.bf16 %v2075_v53, %v2057_v52  ;;  %v4750_v57 = vpack.c.bf16 %v2112_v55, %v2094_v54  ;;  %v2093_v58 = vld [vmem:[#allocation6 + $0x1a0] sm:$0xff]  ;;  %v2418_v52 = vld [vmem:[#allocation6 + $0xbc8] sm:$0xff]  ;;  %v2436_v53 = vld [vmem:[#allocation6 + $0xc58] sm:$0xff] }
 0x4ef   : > { %v4752_v62 = vpack.c.bf16 %v2111_v59, %v2093_v58  ;;  %v4786_v55 = vpack.c.bf16 %v2436_v53, %v2418_v52  ;;  %v2454_v58 = vld [vmem:[#allocation6 + $0xce8] sm:$0xff]  ;;  %v2472_v59 = vld [vmem:[#allocation6 + $0xd78] sm:$0xff]  ;;  %v3263_v53 = vld [vmem:[%s5430_s7 + $0x38] sm:$0xff] }
 0x4f0   : > { %4665 = vmatpush1.bf16.msra.mxu1 %v4664_v0  ;;  %v2129_v0 = vld [vmem:[#allocation6 + $0x2c0] sm:$0xff]  ;;  %v4790_v61 = vpack.c.bf16 %v2472_v59, %v2454_v58  ;;  %v3262_v52 = vld [vmem:[%s5430_s7 + $0x30] sm:$0xff]  ;;  %v3280_v58 = vpop.permute.xlu1 %3279 }
 0x4f1   : > { %4729 = vmatpush1.bf16.msra.mxu0 %v4728_v1  ;;  %4667 = vmatprep.subr.bf16.mxu1 %v4666_v3  ;;  %v2147_v1 = vld [vmem:[#allocation6 + $0x350] sm:$0xff]  ;;  %v2166_v3 = vld [vmem:[#allocation6 + $0x3e8] sm:$0xff] }
 0x4f2   : > { %4731 = vmatprep.subr.bf16.mxu0 %v4730_v9  ;;  %v4756_v7 = vpack.c.bf16 %v2147_v1, %v2129_v0  ;;  %v4758_v8 = vpack.c.bf16 %v2184_v5, %v2166_v3  ;;  %v2165_v9 = vld [vmem:[#allocation6 + $0x3e0] sm:$0xff]  ;;  %v2490_v0 = vld [vmem:[#allocation6 + $0xe08] sm:$0xff]  ;;  %v2508_v1 = vld [vmem:[#allocation6 + $0xe98] sm:$0xff] }
 0x4f3   : > { %v4760_v13 = vpack.c.bf16 %v2183_v10, %v2165_v9  ;;  %v4794_v5 = vpack.c.bf16 %v2508_v1, %v2490_v0  ;;  %v2526_v9 = vld [vmem:[#allocation6 + $0xf28] sm:$0xff]  ;;  %v2544_v10 = vld [vmem:[#allocation6 + $0xfb8] sm:$0xff] }
 0x4f4   : > { %4669 = vmatpush1.bf16.msra.mxu1 %v4668_v47  ;;  %v2219_v47 = vld [vmem:[#allocation6 + $0x590] sm:$0xff] }
 0x4f5   : > { %4733 = vmatpush1.bf16.msra.mxu0 %v4732_v51  ;;  %4671 = vmatprep.subr.bf16.mxu1 %v4670_v17  ;;  %v2238_v51 = vld [vmem:[#allocation6 + $0x628] sm:$0xff]  ;;  %v2256_v17 = vld [vmem:[#allocation6 + $0x6b8] sm:$0xff]  ;;  %v4764_v48 = vpack.c.bf16 %v2219_v47, %v2201_v14 }
 0x4f6   : > { %4735 = vmatprep.subr.bf16.mxu0 %v4734_v19  ;;  %v4766_v18 = vpack.c.bf16 %v2256_v17, %v2238_v51  ;;  %v2255_v19 = vld [vmem:[#allocation6 + $0x6b0] sm:$0xff]  ;;  %v2562_v14 = vld [vmem:[#allocation6 + $0x1048] sm:$0xff]  ;;  %v2580_v47 = vld [vmem:[#allocation6 + $0x10d8] sm:$0xff] }
 0x4f7   : > { %v4768_v20 = vpack.c.bf16 %v2255_v19, %v2237_v4  ;;  %v4802_v17 = vpack.c.bf16 %v2580_v47, %v2562_v14  ;;  %v2598_v4 = vld [vmem:[#allocation6 + $0x1168] sm:$0xff]  ;;  %v2616_v19 = vld [vmem:[#allocation6 + $0x11f8] sm:$0xff] }
 0x4f8   : > { %4673 = vmatpush1.bf16.msra.mxu1 %v4672_v24  ;;  %v2291_v24 = vld [vmem:[#allocation6 + $0x7d0] sm:$0xff]  ;;  %v4806_v21 = vpack.c.bf16 %v2616_v19, %v2598_v4 }
 0x4f9   : > { %4737 = vmatpush1.bf16.msra.mxu0 %v4736_v2  ;;  %4675 = vmatprep.subr.bf16.mxu1 %v4674_v25  ;;  %v4772_v34 = vpack.c.bf16 %v2291_v24, %v2273_v29 }
 0x4fa   : > { %4739 = vmatprep.subr.bf16.mxu0 %v4738_v28 }
 0x4fc   : > { %4677 = vmatpush1.bf16.msra.mxu1 %v4676_v36  ;;  %v2327_v36 = vld [vmem:[#allocation6 + $0x8f0] sm:$0xff] }
 0x4fd   : > { %4741 = vmatpush1.bf16.msra.mxu0 %v4740_v16  ;;  %4679 = vmatprep.subr.bf16.mxu1 %v4678_v40  ;;  %v2346_v16 = vld [vmem:[#allocation6 + $0x988] sm:$0xff]  ;;  %v2364_v40 = vld [vmem:[#allocation6 + $0xa18] sm:$0xff]  ;;  %v4776_v41 = vpack.c.bf16 %v2327_v36, %v2309_v35 }
 0x4fe   : > { %4743 = vmatprep.subr.bf16.mxu0 %v4742_v43  ;;  %v4778_v23 = vpack.c.bf16 %v2364_v40, %v2346_v16  ;;  %v2363_v43 = vld [vmem:[#allocation6 + $0xa10] sm:$0xff] }
 0x4ff   : > { %v4780_v46 = vpack.c.bf16 %v2363_v43, %v2345_v42 }
 0x500   : > { %4681 = vmatpush1.bf16.msra.mxu1 %v4680_v49  ;;  %v4782_v49 = vpack.c.bf16 %v2400_v45, %v2382_v44  ;;  %v3256_v44 = vld [vmem:[%s5430_s7] sm:$0xff]  ;;  %v3257_v45 = vld [vmem:[%s5430_s7 + $0x8] sm:$0xff] }
 0x501   : > { %4745 = vmatpush1.bf16.msra.mxu0 %v4744_v37  ;;  %4747 = vmatprep.subr.bf16.mxu1 %v4746_v50  ;;  %v2381_v37 = vld [vmem:[#allocation6 + $0xaa0] sm:$0xff]  ;;  %v2399_v50 = vld [vmem:[#allocation6 + $0xb30] sm:$0xff] }
 0x502   : > { %v4784_v54 = vpack.c.bf16 %v2399_v50, %v2381_v37  ;;  %v3260_v37 = vld [vmem:[%s5430_s7 + $0x20] sm:$0xff]  ;;  %v3261_v50 = vld [vmem:[%s5430_s7 + $0x28] sm:$0xff] }
 0x503   : > { %3108 = vmatmul.mubr.f32.vlgmr.msra.gmra.mrb[42].mxu1 %v5338_v39 }
 0x504   : > { %3179 = vmatmul.mubr.f32.vlgmr.msra.gmra.mrb[52].mxu0 %v5338_v39  ;;  %4749 = vmatpush1.bf16.msra.mxu1 %v4748_v56  ;;  %v2417_v56 = vld [vmem:[#allocation6 + $0xbc0] sm:$0xff] }
 0x505   : > { %3249 = vmatprep.mubr.f32.mxu1 %v5336_v32  ;;  %4751 = vmatprep.subr.bf16.mxu1 %v4750_v57  ;;  %v4762_v32 = vpack.c.bf16 %v2220_v12, %v2202_v11  ;;  %v2435_v57 = vld [vmem:[#allocation6 + $0xc50] sm:$0xff]  ;;  %v4798_v12 = vpack.c.bf16 %v2544_v10, %v2526_v9 }
 0x506   : > { %3401 = vmatprep.mubr.f32.mxu0 %v4988_v33  ;;  %v4788_v60 = vpack.c.bf16 %v2435_v57, %v2417_v56 }
 0x508   : > { %4753 = vmatpush1.bf16.msra.mxu1 %v4752_v62  ;;  %v2453_v62 = vld [vmem:[#allocation6 + $0xce0] sm:$0xff] }
 0x509   : > { %4755 = vmatprep.subr.bf16.mxu1 %v4754_v63  ;;  %v2471_v63 = vld [vmem:[#allocation6 + $0xd70] sm:$0xff] }
 0x50a   : > { %v4792_v3 = vpack.c.bf16 %v2471_v63, %v2453_v62 }
 0x50c   : > { %4757 = vmatpush1.bf16.msra.mxu1 %v4756_v7  ;;  %v2489_v7 = vld [vmem:[#allocation6 + $0xe00] sm:$0xff] }
 0x50d   : > { %4759 = vmatprep.subr.bf16.mxu1 %v4758_v8  ;;  %v2507_v8 = vld [vmem:[#allocation6 + $0xe90] sm:$0xff] }
 0x50e   : > { %v4796_v11 = vpack.c.bf16 %v2507_v8, %v2489_v7  ;;  %v3290_v7 = vpop.permute.xlu1 %3289 }
 0x510   : > { %4761 = vmatpush1.bf16.msra.mxu1 %v4760_v13  ;;  %v2525_v13 = vld [vmem:[#allocation6 + $0xf20] sm:$0xff] }
 0x511   : > { %4763 = vmatprep.subr.bf16.mxu1 %v4762_v32  ;;  %v2543_v32 = vld [vmem:[#allocation6 + $0xfb0] sm:$0xff] }
 0x512   : > { %v4800_v51 = vpack.c.bf16 %v2543_v32, %v2525_v13 }
 0x514   : > { %4765 = vmatpush1.bf16.msra.mxu1 %v4764_v48  ;;  %v2561_v48 = vld [vmem:[#allocation6 + $0x1040] sm:$0xff] }
 0x515   : > { %4767 = vmatprep.subr.bf16.mxu1 %v4766_v18  ;;  %v2579_v18 = vld [vmem:[#allocation6 + $0x10d0] sm:$0xff] }
 0x516   : > { %v2683_v2 = vpop.f32.mrb[36].mxu1  ;;  %v2754_v25 = vpop.f32.mrb[46].mxu0  ;;  %v4804_v15 = vpack.c.bf16 %v2579_v18, %v2561_v48 }
 0x517   : > { %v4812_v6 = vpack.c.bf16 %v2754_v25, %v2683_v2  ;;  %v2685_v28 = vpop.f32.mrb[37].mxu1  ;;  %v2756_v30 = vpop.f32.mrb[47].mxu0 }
 0x518   : > { %4769 = vmatpush1.bf16.msra.mxu1 %v4768_v20  ;;  %v4810_v31 = vpack.c.bf16 %v2756_v30, %v2685_v28  ;;  %v2597_v20 = vld [vmem:[#allocation6 + $0x1160] sm:$0xff] }
 0x519   : > { %4771 = vmatprep.subr.bf16.mxu1 %v4770_v22  ;;  %v2615_v22 = vld [vmem:[#allocation6 + $0x11f0] sm:$0xff] }
 0x51a   : > { %4811 = vmatprep.subr.bf16.mxu0 %v4810_v31  ;;  %v4808_v29 = vpack.c.bf16 %v2615_v22, %v2597_v20 }
 0x51b   : > { %4813 = vmatpush1.bf16.msra.mxu0 %v4812_v6 }
 0x51c   : > { %4773 = vmatpush1.bf16.msra.mxu1 %v4772_v34 }
 0x51d   : > { %4775 = vmatprep.subr.bf16.mxu1 %v4774_v38 }
 0x520   : > { %4777 = vmatpush1.bf16.msra.mxu1 %v4776_v41 }
 0x521   : > { %4779 = vmatprep.subr.bf16.mxu1 %v4778_v23 }
 0x524   : > { %4781 = vmatpush1.bf16.msra.mxu1 %v4780_v46  ;;  %v3258_v46 = vld [vmem:[%s5430_s7 + $0x10] sm:$0xff] }
 0x525   : > { %4783 = vmatprep.subr.bf16.mxu1 %v4782_v49  ;;  %v3259_v49 = vld [vmem:[%s5430_s7 + $0x18] sm:$0xff] }
 0x528   : > { %4785 = vmatpush1.bf16.msra.mxu1 %v4784_v54  ;;  %v3275_v54 = vpop.permute.xlu0 %3274 }
 0x529   : > { %4787 = vmatprep.subr.bf16.mxu1 %v4786_v55 }
 0x52c   : > { %4789 = vmatpush1.bf16.msra.mxu1 %v4788_v60  ;;  %v3285_v63 = vpop.permute.xlu0 %3284 }
 0x52d   : > { %4791 = vmatprep.subr.bf16.mxu1 %v4790_v61 }
 0x530   : > { %4793 = vmatpush1.bf16.msra.mxu1 %v4792_v3 }
 0x531   : > { %4795 = vmatprep.subr.bf16.mxu1 %v4794_v5 }
 0x534   : > { %4797 = vmatpush1.bf16.msra.mxu1 %v4796_v11 }
 0x535   : > { %4799 = vmatprep.subr.bf16.mxu1 %v4798_v12  ;;  %v3295_v12 = vpop.permute.xlu0 %3294 }
 0x538   : > { %4801 = vmatpush1.bf16.msra.mxu1 %v4800_v51  ;;  %v3300_v51 = vpop.permute.xlu1 %3299 }
 0x539   : > { %4803 = vmatprep.subr.bf16.mxu1 %v4802_v17  ;;  %v3305_v19 = vpop.permute.xlu0 %3304 }
 0x53c   : > { %4805 = vmatpush1.bf16.msra.mxu1 %v4804_v15 }
 0x53d   : > { %4807 = vmatprep.subr.bf16.mxu1 %v4806_v21 }
 0x540   : > { %4809 = vmatpush1.bf16.msra.mxu1 %v4808_v29  ;;  %v3310_v29 = vpop.permute.xlu1 %3309 }
 0x543   : > { %3250 = vmatmul.mubr.f32.vlgmr.msra.gmra.mrb[44].mxu1 %v5338_v39 }
 0x556   : > { %v2825_v24 = vpop.f32.mrb[38].mxu1  ;;  %v2896_v2 = vpop.f32.mrb[48].mxu0 }
 0x557   : > { %v4816_v25 = vpack.c.bf16 %v2896_v2, %v2825_v24  ;;  %v2827_v26 = vpop.f32.mrb[39].mxu1  ;;  %v2898_v27 = vpop.f32.mrb[49].mxu0 }
 0x558   : > { %v4814_v6 = vpack.c.bf16 %v2898_v27, %v2827_v26 }
 0x55a   : > { %4815 = vmatprep.subr.bf16.mxu0 %v4814_v6 }
 0x55b   : > { %4817 = vmatpush1.bf16.msra.mxu0 %v4816_v25 }
 0x596   : > { %v2967_v28 = vpop.f32.mrb[40].mxu1 }
 0x597   : > { %v3038_v30 = vpop.f32.mrb[50].mxu0  ;;  %v2969_v31 = vpop.f32.mrb[41].mxu1 }
 0x598   : > { %v4820_v34 = vpack.c.bf16 %v3038_v30, %v2967_v28  ;;  %v3040_v38 = vpop.f32.mrb[51].mxu0 }
 0x599   : > { %v4818_v35 = vpack.c.bf16 %v3040_v38, %v2969_v31 }
 0x59b   : > { %4819 = vmatprep.subr.bf16.mxu0 %v4818_v35 }
 0x59c   : > { %4821 = vmatpush1.bf16.msra.mxu0 %v4820_v34 }
 0x5d6   : > { %v3109_v36 = vpop.f32.mrb[42].mxu1 }
 0x5d7   : > { %v3180_v16 = vpop.f32.mrb[52].mxu0  ;;  %v3111_v40 = vpop.f32.mrb[43].mxu1 }
 0x5d8   : > { %v4824_v39 = vpack.c.bf16 %v3180_v16, %v3109_v36  ;;  %v3182_v41 = vpop.f32.mrb[53].mxu0 }
 0x5d9   : > { %v4822_v23 = vpack.c.bf16 %v3182_v41, %v3111_v40 }
 0x5db   : > { %4823 = vmatprep.subr.bf16.mxu0 %v4822_v23 }
 0x5dc   : > { %4825 = vmatpush1.bf16.msra.mxu0 %v4824_v39 }
 0x616   : > { %v3251_v42 = vpop.f32.mrb[44].mxu1 }
 0x617   : > { %v3253_v43 = vpop.f32.mrb[45].mxu1 }
 0x618   : > { %3353 = vmatprep.subr.mxu0 %v3253_v43 }
 0x619   : > { %3354 = vmatpush1.msra.mxu0 %v3251_v42 }
 0x61a   : > { %3570 = vmatmul.mubr.msk.f32.vlgmr.msra.gmra.mrb[54].mxu0 %vm3312_vm2, %v3256_v44 }
 0x61b   : > { %3407 = vmatprep.mubr.f32.mxu0 %v4988_v33 }
 0x61e   : > { %3571 = vmatmul.mubr.msk.f32.gmra.mrb[56].mxu0 %vm3312_vm2, %v3257_v45 }
 0x61f   : > { %3413 = vmatprep.mubr.f32.mxu0 %v4988_v33 }
 0x622   : > { %3572 = vmatmul.mubr.msk.f32.gmra.mrb[58].mxu0 %vm3312_vm2, %v3258_v46 }
 0x623   : > { %3419 = vmatprep.mubr.f32.mxu0 %v4988_v33 }
 0x626   : > { %3573 = vmatmul.mubr.msk.f32.gmra.mrb[60].mxu0 %vm3312_vm2, %v3259_v49 }
 0x627   : > { %3425 = vmatprep.mubr.f32.mxu0 %v4988_v33 }
 0x62a   : > { %3574 = vmatmul.mubr.msk.f32.gmra.mrb[62].mxu0 %vm3312_vm2, %v3260_v37 }
 0x62b   : > { %3431 = vmatprep.mubr.f32.mxu0 %v4988_v33 }
 0x62e   : > { %3575 = vmatmul.mubr.msk.f32.gmra.mrb[64].mxu0 %vm3312_vm2, %v3261_v50 }
 0x62f   : > { %3437 = vmatprep.mubr.f32.mxu0 %v4988_v33 }
 0x632   : > { %3576 = vmatmul.mubr.msk.f32.gmra.mrb[66].mxu0 %vm3312_vm2, %v3262_v52 }
 0x633   : > { %3443 = vmatprep.mubr.f32.mxu0 %v4988_v33 }
 0x636   : > { %3577 = vmatmul.mubr.msk.f32.gmra.mrb[68].mxu0 %vm3312_vm2, %v3263_v53 }
 0x6ed   : > { %v3403_v55 = vpop.f32.mrb[54].mxu0 }
 0x6ee   : > { %v3404_v56 = vadd.f32 %v3403_v55, %v3275_v54  ;;  %v3405_v33 = vpop.f32.mrb[55].mxu0 }
 0x6ef   : > { %v3406_v57 = vadd.f32 %v3405_v33, %v3275_v54 }
 0x6f0   : > { %3450 = vst [vmem:[%s5402_s18] sm:$0xff] %v3404_v56 }
 0x6f1   : > { %3451 = vst [vmem:[%s5402_s18 + $0x8] sm:$0xff] %v3406_v57  ;;  %v3409_v59 = vpop.f32.mrb[56].mxu0 }
 0x6f2   : > { %v3410_v60 = vadd.f32 %v3409_v59, %v3280_v58  ;;  %v3411_v61 = vpop.f32.mrb[57].mxu0 }
 0x6f3   : > { %v3412_v62 = vadd.f32 %v3411_v61, %v3280_v58 }
 0x6f4   : > { %3452 = vst [vmem:[%s5402_s18 + $0x10] sm:$0xff] %v3410_v60 }
 0x6f5   : > { %3453 = vst [vmem:[%s5402_s18 + $0x18] sm:$0xff] %v3412_v62  ;;  %v3415_v0 = vpop.f32.mrb[58].mxu0 }
 0x6f6   : > { %v3416_v1 = vadd.f32 %v3415_v0, %v3285_v63  ;;  %v3417_v3 = vpop.f32.mrb[59].mxu0 }
 0x6f7   : > { %v3418_v5 = vadd.f32 %v3417_v3, %v3285_v63 }
 0x6f8   : > { %3454 = vst [vmem:[%s5402_s18 + $0x20] sm:$0xff] %v3416_v1 }
 0x6f9   : > { %3455 = vst [vmem:[%s5402_s18 + $0x28] sm:$0xff] %v3418_v5  ;;  %v3421_v8 = vpop.f32.mrb[60].mxu0 }
 0x6fa   : > { %v3422_v9 = vadd.f32 %v3421_v8, %v3290_v7  ;;  %v3423_v10 = vpop.f32.mrb[61].mxu0 }
 0x6fb   : > { %v3424_v11 = vadd.f32 %v3423_v10, %v3290_v7 }
 0x6fc   : > { %3456 = vst [vmem:[%s5402_s18 + $0x30] sm:$0xff] %v3422_v9 }
 0x6fd   : > { %3457 = vst [vmem:[%s5402_s18 + $0x38] sm:$0xff] %v3424_v11  ;;  %v3427_v13 = vpop.f32.mrb[62].mxu0 }
 0x6fe   : > { %v3428_v32 = vadd.f32 %v3427_v13, %v3295_v12  ;;  %v3429_v14 = vpop.f32.mrb[63].mxu0 }
 0x6ff   : > { %v3430_v47 = vadd.f32 %v3429_v14, %v3295_v12 }
 0x700   : > { %3458 = vst [vmem:[%s5402_s18 + $0x40] sm:$0xff] %v3428_v32 }
 0x701   : > { %3459 = vst [vmem:[%s5402_s18 + $0x48] sm:$0xff] %v3430_v47  ;;  %v3433_v17 = vpop.f32.mrb[64].mxu0 }
 0x702   : > { %v3434_v48 = vadd.f32 %v3433_v17, %v3300_v51  ;;  %v3435_v18 = vpop.f32.mrb[65].mxu0 }
 0x703   : > { %v3436_v4 = vadd.f32 %v3435_v18, %v3300_v51 }
 0x704   : > { %3460 = vst [vmem:[%s5402_s18 + $0x50] sm:$0xff] %v3434_v48 }
 0x705   : > { %3461 = vst [vmem:[%s5402_s18 + $0x58] sm:$0xff] %v3436_v4  ;;  %v3439_v15 = vpop.f32.mrb[66].mxu0 }
 0x706   : > { %v3440_v21 = vadd.f32 %v3439_v15, %v3305_v19  ;;  %v3441_v20 = vpop.f32.mrb[67].mxu0 }
 0x707   : > { %v3442_v22 = vadd.f32 %v3441_v20, %v3305_v19 }
 0x708   : > { %3462 = vst [vmem:[%s5402_s18 + $0x60] sm:$0xff] %v3440_v21 }
 0x709   : > { %3463 = vst [vmem:[%s5402_s18 + $0x68] sm:$0xff] %v3442_v22  ;;  %v3445_v24 = vpop.f32.mrb[68].mxu0 }
 0x70a   : > { %v3446_v2 = vadd.f32 %v3445_v24, %v3310_v29  ;;  %v3447_v25 = vpop.f32.mrb[69].mxu0 }
 0x70b   : > { %v3448_v26 = vadd.f32 %v3447_v25, %v3310_v29 }
 0x70c   : > { %3464 = vst [vmem:[%s5402_s18 + $0x70] sm:$0xff] %v3446_v2 }
 0x70d   : > { %3465 = vst [vmem:[%s5402_s18 + $0x78] sm:$0xff] %v3448_v26 }
 0x70e PF: > { %s21_s30 = sadd.s32 1, %s4981_s30  }
 0x70f   : > { %p18_p3 = scmp.ge.s32.totalorder %s21_s30, 10  }
 0x711   :  { %20 = sbr.rel (!%p18_p3) target bundleno = 2 (0x2), region = 99 }
 0x718   :  { %3487 = vsyncpa [#allocation3], 1 }
 0x719   :  { %3489 = vsyncpa [#allocation3 + $0x1], 1 }
 0x71a   :  { %3490 = vsyncpa [#allocation5], 1 }

</bundles_post_ra>
